<compile_context>
chip_gen: v6e
topology: v6e:2x2x1
jax: 0.10.0
libtpu: 0.0.40
codegen_flags: <defaults>
</compile_context>

<pallas_src>
import functools

import numpy as np
import jax
import jax.numpy as jnp
from jax import lax
from jax.experimental import pallas as pl
from jax.experimental.pallas import tpu as pltpu

LANE = 128        # channel padding target (vreg lane width)
BN_EPS = 1e-5


# -------------------------------- kernel ------------------------------------ #

def fused_conv_bn_relu_kernel(x_ref, w_ref, b_ref, g_ref, bt_ref, o_ref,
                              y_ref, stats_ref, *, h, w, c, inv_m, inv_hw, pool):
    """One ConvBNRelu layer, fused.

    Grid = (2, N):   axis 0 = phase (0: conv + batch stats, 1: normalize),
                     axis 1 = image index.
    x_ref:     (h+2, w+2, c) bf16   spatially padded input image (halo incl.)
    w_ref:     (9*c, c)      bf16   conv weights, rows ordered (kh, kw, cin)
    b/g/bt:    (1, c)        f32    conv bias / BN gamma / BN beta
    o_ref:     (h, w, c) bf16       activations   (pool=False)
               (N, c)   f32         pooled means  (pool=True, grid-resident)
    y_ref:     (N, h*w, c) f32      VMEM-resident pre-BN conv outputs
    stats_ref: (8, c)      f32      row 0: sum, row 1: sum of squares
    """
    p = pl.program_id(0)          # phase
    i = pl.program_id(1)          # image

    @pl.when(jnp.logical_and(p == 0, i == 0))
    def _init_stats():
        stats_ref[...] = jnp.zeros_like(stats_ref)

    @pl.when(p == 0)
    def _conv_and_stats():
        acc = None
        for kh in range(3):
            for kw in range(3):
                # Per-tap ref slice: patch is loaded right before its matmul
                # (keeps vreg live ranges short).
                patch = x_ref[kh:kh + h, kw:kw + w, :].reshape(h * w, c)
                row0 = (kh * 3 + kw) * c
                part = jnp.dot(patch, w_ref[row0:row0 + c, :],
                               preferred_element_type=jnp.float32)
                acc = part if acc is None else acc + part
        y = acc + b_ref[...]                                  # (h*w, c) f32
        y_ref[i] = y
        stats_ref[0:1, :] = stats_ref[0:1, :] + jnp.sum(y, axis=0, keepdims=True)
        stats_ref[1:2, :] = stats_ref[1:2, :] + jnp.sum(y * y, axis=0, keepdims=True)

    @pl.when(p == 1)
    def _normalize_relu():
        y = y_ref[i]
        mean = stats_ref[0:1, :] * inv_m
        # TODO(synk): E[y^2]-mean^2 is cancellation-prone for very large batches;
        # switch to a centered second pass if used beyond small inputs.
        var = jnp.maximum(stats_ref[1:2, :] * inv_m - mean * mean, 0.0)
        out = (y - mean) * lax.rsqrt(var + BN_EPS) * g_ref[...] + bt_ref[...]
        out = jnp.maximum(out, 0.0)
        if pool:
            # Fused AdaptiveAvgPool2d((1,1)): one row of the resident (N, c) block.
            o_ref[pl.ds(i, 1), :] = jnp.sum(out, axis=0, keepdims=True) * inv_hw
        else:
            o_ref[...] = out.reshape(h, w, c).astype(o_ref.dtype)


# ------------------------------ JAX wrappers -------------------------------- #

def conv_bn_relu_layer(x, wmat, b, g, bt, *, pool=False):
    """x: (N, H, W, LANE) bf16 lane-padded activations.

    Returns (N, H, W, LANE) bf16 activations, or (N, LANE) f32 pooled means
    when pool=True (last layer, AdaptiveAvgPool fused in).
    """
    n, h, w, c = x.shape
    xp = jnp.pad(x, ((0, 0), (1, 1), (1, 1), (0, 0)))         # SAME-conv halo
    hp, wp = h + 2, w + 2
    inv_m = 1.0 / (n * h * w)                                  # BN batch count

    grid = (2, n)                                              # (phase, image)

    # Phase 0 streams image i; phase 1 pins the last image block (y is already
    # resident in scratch, so no new input DMA is needed in phase 1).
    x_spec = pl.BlockSpec((None, hp, wp, c),
                          lambda p, i: (i * (1 - p) + (n - 1) * p, 0, 0, 0))
    w_spec = pl.BlockSpec((9 * c, c), lambda p, i: (0, 0))
    vec_spec = pl.BlockSpec((1, c), lambda p, i: (0, 0))

    if pool:
        out_shape = jax.ShapeDtypeStruct((n, c), jnp.float32)
        # Grid-resident pooled block; each image writes its own row in phase 1.
        out_spec = pl.BlockSpec((n, c), lambda p, i: (0, 0))
    else:
        out_shape = jax.ShapeDtypeStruct((n, h, w, c), jnp.bfloat16)
        # Written only in phase 1; index stays 0 during phase 0 so no garbage
        # write-back ever reaches HBM.
        out_spec = pl.BlockSpec((None, h, w, c), lambda p, i: (i * p, 0, 0, 0))

    kernel = functools.partial(fused_conv_bn_relu_kernel, h=h, w=w, c=c,
                               inv_m=inv_m, inv_hw=1.0 / (h * w), pool=pool)

    return pl.pallas_call(
        kernel,
        out_shape=out_shape,
        grid=grid,
        in_specs=[x_spec, w_spec, vec_spec, vec_spec, vec_spec],
        out_specs=out_spec,
        scratch_shapes=[pltpu.VMEM((n, h * w, c), jnp.float32),   # resident y
                        pltpu.VMEM((8, c), jnp.float32)],         # sum / sumsq
        compiler_params=pltpu.CompilerParams(
            # Both axes carry the stats / y-scratch dependency -> arbitrary.
            dimension_semantics=("arbitrary", "arbitrary")),
    )(xp, wmat, b, g, bt)


def discriminator_forward(x_nchw, params):
    x = jnp.transpose(x_nchw, (0, 2, 3, 1)).astype(jnp.float32)   # NCHW -> NHWC
    n, h, w, cin = x.shape
    assert cin <= LANE
    x = jnp.pad(x, ((0, 0), (0, 0), (0, 0), (0, LANE - cin)))     # lane-pad C
    x = x.astype(jnp.bfloat16)                                    # bf16 activations
    n_layers = len(params["convs"])
    for li, (wmat, b, g, bt) in enumerate(params["convs"]):
        x = conv_bn_relu_layer(x, wmat, b, g, bt, pool=(li == n_layers - 1))
    c_out = params["lin_w"].shape[0]
    pooled = x[:, :c_out]                                         # drop padded lanes
    # Final Linear (N,C)@(C,1) + squeeze glue stays in plain XLA (degenerate
    # 1-lane Pallas output would force masked stores).
    return pooled @ params["lin_w"] + params["lin_b"]


# --------------------------- pure-JAX reference ----------------------------- #

def reference_forward(x_nchw, params):
    x = jnp.transpose(x_nchw, (0, 2, 3, 1)).astype(jnp.float32)
    for (w, b, g, bt) in params["convs"]:
        y = lax.conv_general_dilated(
            x, w, (1, 1), "SAME",
            dimension_numbers=("NHWC", "HWIO", "NHWC")) + b.reshape(1, 1, 1, -1)
        mean = jnp.mean(y, axis=(0, 1, 2), keepdims=True)
        var = jnp.mean(jnp.square(y - mean), axis=(0, 1, 2), keepdims=True)
        y = (y - mean) * lax.rsqrt(var + BN_EPS)
        y = y * g.reshape(1, 1, 1, -1) + bt.reshape(1, 1, 1, -1)
        x = jnp.maximum(y, 0.0)
    pooled = jnp.mean(x, axis=(1, 2))
    return pooled @ params["lin_w"] + params["lin_b"]


# ----------------------------- parameter init ------------------------------- #

def init_params(key, num_channels):
    assert num_channels <= LANE
    chans = [(3, num_channels), (num_channels, num_channels),
             (num_channels, num_channels)]
    convs_raw, convs_pad = [], []
    for cin, cout in chans:
        key, k1, k2 = jax.random.split(key, 3)
        bound = 1.0 / np.sqrt(cin * 9)
        w = jax.random.uniform(k1, (3, 3, cin, cout), jnp.float32, -bound, bound)  # HWIO
        b = jax.random.uniform(k2, (cout,), jnp.float32, -bound, bound)
        g = jnp.ones((cout,), jnp.float32)                      # BatchNorm weight
        bt = jnp.zeros((cout,), jnp.float32)                    # BatchNorm bias
        convs_raw.append((w, b, g, bt))

        wpad = jnp.zeros((3, 3, LANE, LANE), jnp.float32).at[:, :, :cin, :cout].set(w)
        convs_pad.append((
            wpad.reshape(9 * LANE, LANE).astype(jnp.bfloat16),  # (kh,kw,cin) rows, bf16
            jnp.zeros((1, LANE), jnp.float32).at[0, :cout].set(b),
            jnp.zeros((1, LANE), jnp.float32).at[0, :cout].set(g),
            jnp.zeros((1, LANE), jnp.float32).at[0, :cout].set(bt),
        ))
    key, k1, k2 = jax.random.split(key, 3)
    lb = 1.0 / np.sqrt(num_channels)
    lin_w = jax.random.uniform(k1, (num_channels, 1), jnp.float32, -lb, lb)
    lin_b = jax.random.uniform(k2, (1,), jnp.float32, -lb, lb)
    pallas_params = {"convs": convs_pad, "lin_w": lin_w, "lin_b": lin_b}
    ref_params = {"convs": convs_raw, "lin_w": lin_w, "lin_b": lin_b}
    return pallas_params, ref_params


if __name__ == "__main__":
    key = jax.random.PRNGKey(0)
    pkey, xkey = jax.random.split(key)
    num_channels = 32
    pallas_params, ref_params = init_params(pkey, num_channels)
    x = jax.random.normal(xkey, (2, 3, 16, 16), jnp.float32)     # NCHW, like PyTorch

    fwd = jax.jit(discriminator_forward)
    out = jax.block_until_ready(fwd(x, pallas_params))
    ref = jax.block_until_ready(reference_forward(x, ref_params))

    assert out.shape == (2, 1), out.shape
    # bf16 matmul operands vs f32 reference -> loosened tolerance (per review).
    np.testing.assert_allclose(np.asarray(out, dtype=np.float32), np.asarray(ref),
                               rtol=2e-2, atol=2e-2)
    print("KERNEL_OK")
</pallas_src>

<mosaic_0001>
module attributes {stable_mosaic.version = 11 : i64} {
  func.func @fused_conv_bn_relu_kernel(%arg0: i32, %arg1: i32, %arg2: memref<1x18x18x128xbf16, #tpu.memory_space<vmem>>, %arg3: memref<1152x128xbf16, #tpu.memory_space<vmem>>, %arg4: memref<1x128xf32, #tpu.memory_space<vmem>>, %arg5: memref<1x128xf32, #tpu.memory_space<vmem>>, %arg6: memref<1x128xf32, #tpu.memory_space<vmem>>, %arg7: memref<1x16x16x128xbf16, #tpu.memory_space<vmem>>, %arg8: memref<2x256x128xf32, #tpu.memory_space<vmem>>, %arg9: memref<8x128xf32, #tpu.memory_space<vmem>>) attributes {dimension_semantics = [#tpu.dimension_semantics<arbitrary>, #tpu.dimension_semantics<arbitrary>], iteration_bounds = array<i64: 2, 2>, scalar_prefetch = 0 : i64, scratch_operands = 2 : i64, tpu.core_type = #tpu.core_type<tc>, window_params = [{transform_indices = @transform_0, window_bounds = array<i64: 1, 18, 18, 128>}, {pipeline_mode = #tpu.pipeline_mode<synchronous>, transform_indices = @transform_1, window_bounds = array<i64: 1152, 128>}, {pipeline_mode = #tpu.pipeline_mode<synchronous>, transform_indices = @transform_2, window_bounds = array<i64: 1, 128>}, {pipeline_mode = #tpu.pipeline_mode<synchronous>, transform_indices = @transform_3, window_bounds = array<i64: 1, 128>}, {pipeline_mode = #tpu.pipeline_mode<synchronous>, transform_indices = @transform_4, window_bounds = array<i64: 1, 128>}, {transform_indices = @transform_5, window_bounds = array<i64: 1, 16, 16, 128>}]} {
    %c0_i32 = arith.constant 0 : i32
    %0 = arith.cmpi eq, %arg0, %c0_i32 : i32
    %c0_i32_0 = arith.constant 0 : i32
    %1 = arith.cmpi eq, %arg1, %c0_i32_0 : i32
    %2 = arith.andi %0, %1 : i1
    %3 = arith.extui %2 : i1 to i32
    %c0_i32_1 = arith.constant 0 : i32
    %4 = arith.cmpi ne, %3, %c0_i32_1 : i32
    scf.if %4 {
      %cst = arith.constant 0.000000e+00 : f32
      %11 = vector.broadcast %cst : f32 to vector<8x128xf32>
      %c0 = arith.constant 0 : index
      %c0_5 = arith.constant 0 : index
      %12 = vector.load %arg9[%c0, %c0_5] : memref<8x128xf32, #tpu.memory_space<vmem>>, vector<8x128xf32>
      tpu.vector_store %arg9[%c0, %c0_5], %11 {strides = array<i32>} : memref<8x128xf32, #tpu.memory_space<vmem>>, vector<8x128xf32>,
    } else {
    }
    %c0_i32_2 = arith.constant 0 : i32
    %5 = arith.cmpi eq, %arg0, %c0_i32_2 : i32
    %6 = arith.extui %5 : i1 to i32
    %c0_i32_3 = arith.constant 0 : i32
    %7 = arith.cmpi ne, %6, %c0_i32_3 : i32
    scf.if %7 {
      %c0 = arith.constant 0 : index
      %c0_5 = arith.constant 0 : index
      %c0_6 = arith.constant 0 : index
      %c0_7 = arith.constant 0 : index
      %11 = vector.load %arg2[%c0, %c0_5, %c0_6, %c0_7] : memref<1x18x18x128xbf16, #tpu.memory_space<vmem>>, vector<1x16x16x128xbf16>
      %12 = vector.shape_cast %11 : vector<1x16x16x128xbf16> to vector<16x16x128xbf16>
      %13 = vector.shape_cast %12 : vector<16x16x128xbf16> to vector<256x128xbf16>
      %c0_8 = arith.constant 0 : index
      %c0_9 = arith.constant 0 : index
      %14 = vector.load %arg3[%c0_8, %c0_9] : memref<1152x128xbf16, #tpu.memory_space<vmem>>, vector<128x128xbf16>
      %cst = arith.constant dense<0.000000e+00> : vector<256x128xf32>
      %15 = tpu.matmul %13, %14, %cst {dimension_numbers = #tpu.dot_dimension_numbers<[1], [0], [0], [1], [0, 0, 1, 1], [], []>} : vector<256x128xbf16>, vector<128x128xbf16>, vector<256x128xf32> -> vector<256x128xf32>
      %c0_10 = arith.constant 0 : index
      %c0_11 = arith.constant 0 : index
      %c1 = arith.constant 1 : index
      %c0_12 = arith.constant 0 : index
      %16 = vector.load %arg2[%c0_10, %c0_11, %c1, %c0_12] : memref<1x18x18x128xbf16, #tpu.memory_space<vmem>>, vector<1x16x16x128xbf16>
      %17 = vector.shape_cast %16 : vector<1x16x16x128xbf16> to vector<16x16x128xbf16>
      %18 = vector.shape_cast %17 : vector<16x16x128xbf16> to vector<256x128xbf16>
      %c128 = arith.constant 128 : index
      %c0_13 = arith.constant 0 : index
      %19 = vector.load %arg3[%c128, %c0_13] : memref<1152x128xbf16, #tpu.memory_space<vmem>>, vector<128x128xbf16>
      %cst_14 = arith.constant dense<0.000000e+00> : vector<256x128xf32>
      %20 = tpu.matmul %18, %19, %cst_14 {dimension_numbers = #tpu.dot_dimension_numbers<[1], [0], [0], [1], [0, 0, 1, 1], [], []>} : vector<256x128xbf16>, vector<128x128xbf16>, vector<256x128xf32> -> vector<256x128xf32>
      %21 = arith.addf %15, %20 : vector<256x128xf32>
      %c0_15 = arith.constant 0 : index
      %c0_16 = arith.constant 0 : index
      %c2 = arith.constant 2 : index
      %c0_17 = arith.constant 0 : index
      %22 = vector.load %arg2[%c0_15, %c0_16, %c2, %c0_17] : memref<1x18x18x128xbf16, #tpu.memory_space<vmem>>, vector<1x16x16x128xbf16>
      %23 = vector.shape_cast %22 : vector<1x16x16x128xbf16> to vector<16x16x128xbf16>
      %24 = vector.shape_cast %23 : vector<16x16x128xbf16> to vector<256x128xbf16>
      %c256 = arith.constant 256 : index
      %c0_18 = arith.constant 0 : index
      %25 = vector.load %arg3[%c256, %c0_18] : memref<1152x128xbf16, #tpu.memory_space<vmem>>, vector<128x128xbf16>
      %cst_19 = arith.constant dense<0.000000e+00> : vector<256x128xf32>
      %26 = tpu.matmul %24, %25, %cst_19 {dimension_numbers = #tpu.dot_dimension_numbers<[1], [0], [0], [1], [0, 0, 1, 1], [], []>} : vector<256x128xbf16>, vector<128x128xbf16>, vector<256x128xf32> -> vector<256x128xf32>
      %27 = arith.addf %21, %26 : vector<256x128xf32>
      %c0_20 = arith.constant 0 : index
      %c1_21 = arith.constant 1 : index
      %c0_22 = arith.constant 0 : index
      %c0_23 = arith.constant 0 : index
      %28 = vector.load %arg2[%c0_20, %c1_21, %c0_22, %c0_23] : memref<1x18x18x128xbf16, #tpu.memory_space<vmem>>, vector<1x16x16x128xbf16>
      %29 = vector.shape_cast %28 : vector<1x16x16x128xbf16> to vector<16x16x128xbf16>
      %30 = vector.shape_cast %29 : vector<16x16x128xbf16> to vector<256x128xbf16>
      %c384 = arith.constant 384 : index
      %c0_24 = arith.constant 0 : index
      %31 = vector.load %arg3[%c384, %c0_24] : memref<1152x128xbf16, #tpu.memory_space<vmem>>, vector<128x128xbf16>
      %cst_25 = arith.constant dense<0.000000e+00> : vector<256x128xf32>
      %32 = tpu.matmul %30, %31, %cst_25 {dimension_numbers = #tpu.dot_dimension_numbers<[1], [0], [0], [1], [0, 0, 1, 1], [], []>} : vector<256x128xbf16>, vector<128x128xbf16>, vector<256x128xf32> -> vector<256x128xf32>
      %33 = arith.addf %27, %32 : vector<256x128xf32>
      %c0_26 = arith.constant 0 : index
      %c1_27 = arith.constant 1 : index
      %c1_28 = arith.constant 1 : index
      %c0_29 = arith.constant 0 : index
      %34 = vector.load %arg2[%c0_26, %c1_27, %c1_28, %c0_29] : memref<1x18x18x128xbf16, #tpu.memory_space<vmem>>, vector<1x16x16x128xbf16>
      %35 = vector.shape_cast %34 : vector<1x16x16x128xbf16> to vector<16x16x128xbf16>
      %36 = vector.shape_cast %35 : vector<16x16x128xbf16> to vector<256x128xbf16>
      %c512 = arith.constant 512 : index
      %c0_30 = arith.constant 0 : index
      %37 = vector.load %arg3[%c512, %c0_30] : memref<1152x128xbf16, #tpu.memory_space<vmem>>, vector<128x128xbf16>
      %cst_31 = arith.constant dense<0.000000e+00> : vector<256x128xf32>
      %38 = tpu.matmul %36, %37, %cst_31 {dimension_numbers = #tpu.dot_dimension_numbers<[1], [0], [0], [1], [0, 0, 1, 1], [], []>} : vector<256x128xbf16>, vector<128x128xbf16>, vector<256x128xf32> -> vector<256x128xf32>
      %39 = arith.addf %33, %38 : vector<256x128xf32>
      %c0_32 = arith.constant 0 : index
      %c1_33 = arith.constant 1 : index
      %c2_34 = arith.constant 2 : index
      %c0_35 = arith.constant 0 : index
      %40 = vector.load %arg2[%c0_32, %c1_33, %c2_34, %c0_35] : memref<1x18x18x128xbf16, #tpu.memory_space<vmem>>, vector<1x16x16x128xbf16>
      %41 = vector.shape_cast %40 : vector<1x16x16x128xbf16> to vector<16x16x128xbf16>
      %42 = vector.shape_cast %41 : vector<16x16x128xbf16> to vector<256x128xbf16>
      %c640 = arith.constant 640 : index
      %c0_36 = arith.constant 0 : index
      %43 = vector.load %arg3[%c640, %c0_36] : memref<1152x128xbf16, #tpu.memory_space<vmem>>, vector<128x128xbf16>
      %cst_37 = arith.constant dense<0.000000e+00> : vector<256x128xf32>
      %44 = tpu.matmul %42, %43, %cst_37 {dimension_numbers = #tpu.dot_dimension_numbers<[1], [0], [0], [1], [0, 0, 1, 1], [], []>} : vector<256x128xbf16>, vector<128x128xbf16>, vector<256x128xf32> -> vector<256x128xf32>
      %45 = arith.addf %39, %44 : vector<256x128xf32>
      %c0_38 = arith.constant 0 : index
      %c2_39 = arith.constant 2 : index
      %c0_40 = arith.constant 0 : index
      %c0_41 = arith.constant 0 : index
      %46 = vector.load %arg2[%c0_38, %c2_39, %c0_40, %c0_41] : memref<1x18x18x128xbf16, #tpu.memory_space<vmem>>, vector<1x16x16x128xbf16>
      %47 = vector.shape_cast %46 : vector<1x16x16x128xbf16> to vector<16x16x128xbf16>
      %48 = vector.shape_cast %47 : vector<16x16x128xbf16> to vector<256x128xbf16>
      %c768 = arith.constant 768 : index
      %c0_42 = arith.constant 0 : index
      %49 = vector.load %arg3[%c768, %c0_42] : memref<1152x128xbf16, #tpu.memory_space<vmem>>, vector<128x128xbf16>
      %cst_43 = arith.constant dense<0.000000e+00> : vector<256x128xf32>
      %50 = tpu.matmul %48, %49, %cst_43 {dimension_numbers = #tpu.dot_dimension_numbers<[1], [0], [0], [1], [0, 0, 1, 1], [], []>} : vector<256x128xbf16>, vector<128x128xbf16>, vector<256x128xf32> -> vector<256x128xf32>
      %51 = arith.addf %45, %50 : vector<256x128xf32>
      %c0_44 = arith.constant 0 : index
      %c2_45 = arith.constant 2 : index
      %c1_46 = arith.constant 1 : index
      %c0_47 = arith.constant 0 : index
      %52 = vector.load %arg2[%c0_44, %c2_45, %c1_46, %c0_47] : memref<1x18x18x128xbf16, #tpu.memory_space<vmem>>, vector<1x16x16x128xbf16>
      %53 = vector.shape_cast %52 : vector<1x16x16x128xbf16> to vector<16x16x128xbf16>
      %54 = vector.shape_cast %53 : vector<16x16x128xbf16> to vector<256x128xbf16>
      %c896 = arith.constant 896 : index
      %c0_48 = arith.constant 0 : index
      %55 = vector.load %arg3[%c896, %c0_48] : memref<1152x128xbf16, #tpu.memory_space<vmem>>, vector<128x128xbf16>
      %cst_49 = arith.constant dense<0.000000e+00> : vector<256x128xf32>
      %56 = tpu.matmul %54, %55, %cst_49 {dimension_numbers = #tpu.dot_dimension_numbers<[1], [0], [0], [1], [0, 0, 1, 1], [], []>} : vector<256x128xbf16>, vector<128x128xbf16>, vector<256x128xf32> -> vector<256x128xf32>
      %57 = arith.addf %51, %56 : vector<256x128xf32>
      %c0_50 = arith.constant 0 : index
      %c2_51 = arith.constant 2 : index
      %c2_52 = arith.constant 2 : index
      %c0_53 = arith.constant 0 : index
      %58 = vector.load %arg2[%c0_50, %c2_51, %c2_52, %c0_53] : memref<1x18x18x128xbf16, #tpu.memory_space<vmem>>, vector<1x16x16x128xbf16>
      %59 = vector.shape_cast %58 : vector<1x16x16x128xbf16> to vector<16x16x128xbf16>
      %60 = vector.shape_cast %59 : vector<16x16x128xbf16> to vector<256x128xbf16>
      %c1024 = arith.constant 1024 : index
      %c0_54 = arith.constant 0 : index
      %61 = vector.load %arg3[%c1024, %c0_54] : memref<1152x128xbf16, #tpu.memory_space<vmem>>, vector<128x128xbf16>
      %cst_55 = arith.constant dense<0.000000e+00> : vector<256x128xf32>
      %62 = tpu.matmul %60, %61, %cst_55 {dimension_numbers = #tpu.dot_dimension_numbers<[1], [0], [0], [1], [0, 0, 1, 1], [], []>} : vector<256x128xbf16>, vector<128x128xbf16>, vector<256x128xf32> -> vector<256x128xf32>
      %63 = arith.addf %57, %62 : vector<256x128xf32>
      %c0_56 = arith.constant 0 : index
      %c0_57 = arith.constant 0 : index
      %64 = vector.load %arg4[%c0_56, %c0_57] : memref<1x128xf32, #tpu.memory_space<vmem>>, vector<1x128xf32>
      %65 = vector.broadcast %64 : vector<1x128xf32> to vector<256x128xf32>
      %66 = arith.addf %63, %65 : vector<256x128xf32>
      %67 = arith.index_cast %arg1 : i32 to index
      %c0_58 = arith.constant 0 : index
      %c0_59 = arith.constant 0 : index
      %68 = vector.load %arg8[%67, %c0_58, %c0_59] : memref<2x256x128xf32, #tpu.memory_space<vmem>>, vector<1x256x128xf32>
      %69 = vector.shape_cast %68 : vector<1x256x128xf32> to vector<256x128xf32>
      %70 = vector.shape_cast %66 : vector<256x128xf32> to vector<1x256x128xf32>
      tpu.vector_store %arg8[%67, %c0_58, %c0_59], %70 {strides = array<i32>} : memref<2x256x128xf32, #tpu.memory_space<vmem>>, vector<1x256x128xf32>,
      %c0_60 = arith.constant 0 : index
      %c0_61 = arith.constant 0 : index
      %71 = vector.load %arg9[%c0_60, %c0_61] : memref<8x128xf32, #tpu.memory_space<vmem>>, vector<1x128xf32>
      %cst_62 = arith.constant dense<0.000000e+00> : vector<128xf32>
      %72 = vector.multi_reduction <add>, %66, %cst_62 [0] : vector<256x128xf32> to vector<128xf32>
      %73 = vector.shape_cast %72 : vector<128xf32> to vector<1x128xf32>
      %74 = arith.addf %71, %73 : vector<1x128xf32>
      %c0_63 = arith.constant 0 : index
      %c0_64 = arith.constant 0 : index
      %75 = vector.load %arg9[%c0_63, %c0_64] : memref<8x128xf32, #tpu.memory_space<vmem>>, vector<1x128xf32>
      tpu.vector_store %arg9[%c0_63, %c0_64], %74 {strides = array<i32>} : memref<8x128xf32, #tpu.memory_space<vmem>>, vector<1x128xf32>,
      %c1_65 = arith.constant 1 : index
      %c0_66 = arith.constant 0 : index
      %76 = vector.load %arg9[%c1_65, %c0_66] : memref<8x128xf32, #tpu.memory_space<vmem>>, vector<1x128xf32>
      %77 = arith.mulf %66, %66 : vector<256x128xf32>
      %cst_67 = arith.constant dense<0.000000e+00> : vector<128xf32>
      %78 = vector.multi_reduction <add>, %77, %cst_67 [0] : vector<256x128xf32> to vector<128xf32>
      %79 = vector.shape_cast %78 : vector<128xf32> to vector<1x128xf32>
      %80 = arith.addf %76, %79 : vector<1x128xf32>
      %c1_68 = arith.constant 1 : index
      %c0_69 = arith.constant 0 : index
      %81 = vector.load %arg9[%c1_68, %c0_69] : memref<8x128xf32, #tpu.memory_space<vmem>>, vector<1x128xf32>
      tpu.vector_store %arg9[%c1_68, %c0_69], %80 {strides = array<i32>} : memref<8x128xf32, #tpu.memory_space<vmem>>, vector<1x128xf32>,
    } else {
    }
    %c1_i32 = arith.constant 1 : i32
    %8 = arith.cmpi eq, %arg0, %c1_i32 : i32
    %9 = arith.extui %8 : i1 to i32
    %c0_i32_4 = arith.constant 0 : i32
    %10 = arith.cmpi ne, %9, %c0_i32_4 : i32
    scf.if %10 {
      %11 = arith.index_cast %arg1 : i32 to index
      %c0 = arith.constant 0 : index
      %c0_5 = arith.constant 0 : index
      %12 = vector.load %arg8[%11, %c0, %c0_5] : memref<2x256x128xf32, #tpu.memory_space<vmem>>, vector<1x256x128xf32>
      %13 = vector.shape_cast %12 : vector<1x256x128xf32> to vector<256x128xf32>
      %c0_6 = arith.constant 0 : index
      %c0_7 = arith.constant 0 : index
      %14 = vector.load %arg9[%c0_6, %c0_7] : memref<8x128xf32, #tpu.memory_space<vmem>>, vector<1x128xf32>
      %cst = arith.constant 0.001953125 : f32
      %15 = vector.broadcast %cst : f32 to vector<1x128xf32>
      %16 = arith.mulf %14, %15 : vector<1x128xf32>
      %c1 = arith.constant 1 : index
      %c0_8 = arith.constant 0 : index
      %17 = vector.load %arg9[%c1, %c0_8] : memref<8x128xf32, #tpu.memory_space<vmem>>, vector<1x128xf32>
      %cst_9 = arith.constant 0.001953125 : f32
      %18 = vector.broadcast %cst_9 : f32 to vector<1x128xf32>
      %19 = arith.mulf %17, %18 : vector<1x128xf32>
      %20 = arith.mulf %16, %16 : vector<1x128xf32>
      %21 = arith.subf %19, %20 : vector<1x128xf32>
      %cst_10 = arith.constant 0.000000e+00 : f32
      %22 = vector.broadcast %cst_10 : f32 to vector<1x128xf32>
      %23 = arith.maximumf %21, %22 : vector<1x128xf32>
      %24 = vector.broadcast %16 : vector<1x128xf32> to vector<256x128xf32>
      %25 = arith.subf %13, %24 : vector<256x128xf32>
      %cst_11 = arith.constant 9.99999974E-6 : f32
      %26 = vector.broadcast %cst_11 : f32 to vector<1x128xf32>
      %27 = arith.addf %23, %26 : vector<1x128xf32>
      %28 = math.rsqrt %27 : vector<1x128xf32>
      %29 = vector.broadcast %28 : vector<1x128xf32> to vector<256x128xf32>
      %30 = arith.mulf %25, %29 : vector<256x128xf32>
      %c0_12 = arith.constant 0 : index
      %c0_13 = arith.constant 0 : index
      %31 = vector.load %arg5[%c0_12, %c0_13] : memref<1x128xf32, #tpu.memory_space<vmem>>, vector<1x128xf32>
      %32 = vector.broadcast %31 : vector<1x128xf32> to vector<256x128xf32>
      %33 = arith.mulf %30, %32 : vector<256x128xf32>
      %c0_14 = arith.constant 0 : index
      %c0_15 = arith.constant 0 : index
      %34 = vector.load %arg6[%c0_14, %c0_15] : memref<1x128xf32, #tpu.memory_space<vmem>>, vector<1x128xf32>
      %35 = vector.broadcast %34 : vector<1x128xf32> to vector<256x128xf32>
      %36 = arith.addf %33, %35 : vector<256x128xf32>
      %cst_16 = arith.constant 0.000000e+00 : f32
      %37 = vector.broadcast %cst_16 : f32 to vector<256x128xf32>
      %38 = arith.maximumf %36, %37 : vector<256x128xf32>
      %39 = vector.shape_cast %38 : vector<256x128xf32> to vector<16x16x128xf32>
      %40 = arith.truncf %39 : vector<16x16x128xf32> to vector<16x16x128xbf16>
      %c0_17 = arith.constant 0 : index
      %c0_18 = arith.constant 0 : index
      %c0_19 = arith.constant 0 : index
      %c0_20 = arith.constant 0 : index
      %41 = vector.load %arg7[%c0_17, %c0_18, %c0_19, %c0_20] : memref<1x16x16x128xbf16, #tpu.memory_space<vmem>>, vector<1x16x16x128xbf16>
      %42 = vector.shape_cast %41 : vector<1x16x16x128xbf16> to vector<16x16x128xbf16>
      %43 = vector.shape_cast %40 : vector<16x16x128xbf16> to vector<1x16x16x128xbf16>
      tpu.vector_store %arg7[%c0_17, %c0_18, %c0_19, %c0_20], %43 {strides = array<i32>} : memref<1x16x16x128xbf16, #tpu.memory_space<vmem>>, vector<1x16x16x128xbf16>,
    } else {
    }
    return
  }
  func.func @transform_0(%arg0: i32, %arg1: i32) -> (i32, i32, i32, i32) {
    %c1_i32 = arith.constant 1 : i32
    %0 = arith.subi %c1_i32, %arg0 : i32
    %1 = arith.muli %arg1, %0 : i32
    %c1_i32_0 = arith.constant 1 : i32
    %2 = arith.muli %c1_i32_0, %arg0 : i32
    %3 = arith.addi %1, %2 : i32
    %c0_i32 = arith.constant 0 : i32
    %c0_i32_1 = arith.constant 0 : i32
    %c0_i32_2 = arith.constant 0 : i32
    %c0_i32_3 = arith.constant 0 : i32
    return %3, %c0_i32, %c0_i32_1, %c0_i32_2 : i32, i32, i32, i32
  }
  func.func @transform_1(%arg0: i32, %arg1: i32) -> (i32, i32) {
    %c0_i32 = arith.constant 0 : i32
    %c0_i32_0 = arith.constant 0 : i32
    %c0_i32_1 = arith.constant 0 : i32
    return %c0_i32, %c0_i32_0 : i32, i32
  }
  func.func @transform_2(%arg0: i32, %arg1: i32) -> (i32, i32) {
    %c0_i32 = arith.constant 0 : i32
    %c0_i32_0 = arith.constant 0 : i32
    %c0_i32_1 = arith.constant 0 : i32
    return %c0_i32, %c0_i32_0 : i32, i32
  }
  func.func @transform_3(%arg0: i32, %arg1: i32) -> (i32, i32) {
    %c0_i32 = arith.constant 0 : i32
    %c0_i32_0 = arith.constant 0 : i32
    %c0_i32_1 = arith.constant 0 : i32
    return %c0_i32, %c0_i32_0 : i32, i32
  }
  func.func @transform_4(%arg0: i32, %arg1: i32) -> (i32, i32) {
    %c0_i32 = arith.constant 0 : i32
    %c0_i32_0 = arith.constant 0 : i32
    %c0_i32_1 = arith.constant 0 : i32
    return %c0_i32, %c0_i32_0 : i32, i32
  }
  func.func @transform_5(%arg0: i32, %arg1: i32) -> (i32, i32, i32, i32) {
    %0 = arith.muli %arg1, %arg0 : i32
    %c0_i32 = arith.constant 0 : i32
    %c0_i32_0 = arith.constant 0 : i32
    %c0_i32_1 = arith.constant 0 : i32
    %c0_i32_2 = arith.constant 0 : i32
    return %0, %c0_i32, %c0_i32_0, %c0_i32_1 : i32, i32, i32, i32
  }
}

module attributes {stable_mosaic.version = 11 : i64} {
  func.func @fused_conv_bn_relu_kernel(%arg0: i32, %arg1: i32, %arg2: memref<1x18x18x128xbf16, #tpu.memory_space<vmem>>, %arg3: memref<1152x128xbf16, #tpu.memory_space<vmem>>, %arg4: memref<1x128xf32, #tpu.memory_space<vmem>>, %arg5: memref<1x128xf32, #tpu.memory_space<vmem>>, %arg6: memref<1x128xf32, #tpu.memory_space<vmem>>, %arg7: memref<2x128xf32, #tpu.memory_space<vmem>>, %arg8: memref<2x256x128xf32, #tpu.memory_space<vmem>>, %arg9: memref<8x128xf32, #tpu.memory_space<vmem>>) attributes {dimension_semantics = [#tpu.dimension_semantics<arbitrary>, #tpu.dimension_semantics<arbitrary>], iteration_bounds = array<i64: 2, 2>, scalar_prefetch = 0 : i64, scratch_operands = 2 : i64, tpu.core_type = #tpu.core_type<tc>, window_params = [{transform_indices = @transform_0, window_bounds = array<i64: 1, 18, 18, 128>}, {pipeline_mode = #tpu.pipeline_mode<synchronous>, transform_indices = @transform_1, window_bounds = array<i64: 1152, 128>}, {pipeline_mode = #tpu.pipeline_mode<synchronous>, transform_indices = @transform_2, window_bounds = array<i64: 1, 128>}, {pipeline_mode = #tpu.pipeline_mode<synchronous>, transform_indices = @transform_3, window_bounds = array<i64: 1, 128>}, {pipeline_mode = #tpu.pipeline_mode<synchronous>, transform_indices = @transform_4, window_bounds = array<i64: 1, 128>}, {pipeline_mode = #tpu.pipeline_mode<synchronous>, transform_indices = @transform_5, window_bounds = array<i64: 2, 128>}]} {
    %c0_i32 = arith.constant 0 : i32
    %0 = arith.cmpi eq, %arg0, %c0_i32 : i32
    %c0_i32_0 = arith.constant 0 : i32
    %1 = arith.cmpi eq, %arg1, %c0_i32_0 : i32
    %2 = arith.andi %0, %1 : i1
    %3 = arith.extui %2 : i1 to i32
    %c0_i32_1 = arith.constant 0 : i32
    %4 = arith.cmpi ne, %3, %c0_i32_1 : i32
    scf.if %4 {
      %cst = arith.constant 0.000000e+00 : f32
      %11 = vector.broadcast %cst : f32 to vector<8x128xf32>
      %c0 = arith.constant 0 : index
      %c0_5 = arith.constant 0 : index
      %12 = vector.load %arg9[%c0, %c0_5] : memref<8x128xf32, #tpu.memory_space<vmem>>, vector<8x128xf32>
      tpu.vector_store %arg9[%c0, %c0_5], %11 {strides = array<i32>} : memref<8x128xf32, #tpu.memory_space<vmem>>, vector<8x128xf32>,
    } else {
    }
    %c0_i32_2 = arith.constant 0 : i32
    %5 = arith.cmpi eq, %arg0, %c0_i32_2 : i32
    %6 = arith.extui %5 : i1 to i32
    %c0_i32_3 = arith.constant 0 : i32
    %7 = arith.cmpi ne, %6, %c0_i32_3 : i32
    scf.if %7 {
      %c0 = arith.constant 0 : index
      %c0_5 = arith.constant 0 : index
      %c0_6 = arith.constant 0 : index
      %c0_7 = arith.constant 0 : index
      %11 = vector.load %arg2[%c0, %c0_5, %c0_6, %c0_7] : memref<1x18x18x128xbf16, #tpu.memory_space<vmem>>, vector<1x16x16x128xbf16>
      %12 = vector.shape_cast %11 : vector<1x16x16x128xbf16> to vector<16x16x128xbf16>
      %13 = vector.shape_cast %12 : vector<16x16x128xbf16> to vector<256x128xbf16>
      %c0_8 = arith.constant 0 : index
      %c0_9 = arith.constant 0 : index
      %14 = vector.load %arg3[%c0_8, %c0_9] : memref<1152x128xbf16, #tpu.memory_space<vmem>>, vector<128x128xbf16>
      %cst = arith.constant dense<0.000000e+00> : vector<256x128xf32>
      %15 = tpu.matmul %13, %14, %cst {dimension_numbers = #tpu.dot_dimension_numbers<[1], [0], [0], [1], [0, 0, 1, 1], [], []>} : vector<256x128xbf16>, vector<128x128xbf16>, vector<256x128xf32> -> vector<256x128xf32>
      %c0_10 = arith.constant 0 : index
      %c0_11 = arith.constant 0 : index
      %c1 = arith.constant 1 : index
      %c0_12 = arith.constant 0 : index
      %16 = vector.load %arg2[%c0_10, %c0_11, %c1, %c0_12] : memref<1x18x18x128xbf16, #tpu.memory_space<vmem>>, vector<1x16x16x128xbf16>
      %17 = vector.shape_cast %16 : vector<1x16x16x128xbf16> to vector<16x16x128xbf16>
      %18 = vector.shape_cast %17 : vector<16x16x128xbf16> to vector<256x128xbf16>
      %c128 = arith.constant 128 : index
      %c0_13 = arith.constant 0 : index
      %19 = vector.load %arg3[%c128, %c0_13] : memref<1152x128xbf16, #tpu.memory_space<vmem>>, vector<128x128xbf16>
      %cst_14 = arith.constant dense<0.000000e+00> : vector<256x128xf32>
      %20 = tpu.matmul %18, %19, %cst_14 {dimension_numbers = #tpu.dot_dimension_numbers<[1], [0], [0], [1], [0, 0, 1, 1], [], []>} : vector<256x128xbf16>, vector<128x128xbf16>, vector<256x128xf32> -> vector<256x128xf32>
      %21 = arith.addf %15, %20 : vector<256x128xf32>
      %c0_15 = arith.constant 0 : index
      %c0_16 = arith.constant 0 : index
      %c2 = arith.constant 2 : index
      %c0_17 = arith.constant 0 : index
      %22 = vector.load %arg2[%c0_15, %c0_16, %c2, %c0_17] : memref<1x18x18x128xbf16, #tpu.memory_space<vmem>>, vector<1x16x16x128xbf16>
      %23 = vector.shape_cast %22 : vector<1x16x16x128xbf16> to vector<16x16x128xbf16>
      %24 = vector.shape_cast %23 : vector<16x16x128xbf16> to vector<256x128xbf16>
      %c256 = arith.constant 256 : index
      %c0_18 = arith.constant 0 : index
      %25 = vector.load %arg3[%c256, %c0_18] : memref<1152x128xbf16, #tpu.memory_space<vmem>>, vector<128x128xbf16>
      %cst_19 = arith.constant dense<0.000000e+00> : vector<256x128xf32>
      %26 = tpu.matmul %24, %25, %cst_19 {dimension_numbers = #tpu.dot_dimension_numbers<[1], [0], [0], [1], [0, 0, 1, 1], [], []>} : vector<256x128xbf16>, vector<128x128xbf16>, vector<256x128xf32> -> vector<256x128xf32>
      %27 = arith.addf %21, %26 : vector<256x128xf32>
      %c0_20 = arith.constant 0 : index
      %c1_21 = arith.constant 1 : index
      %c0_22 = arith.constant 0 : index
      %c0_23 = arith.constant 0 : index
      %28 = vector.load %arg2[%c0_20, %c1_21, %c0_22, %c0_23] : memref<1x18x18x128xbf16, #tpu.memory_space<vmem>>, vector<1x16x16x128xbf16>
      %29 = vector.shape_cast %28 : vector<1x16x16x128xbf16> to vector<16x16x128xbf16>
      %30 = vector.shape_cast %29 : vector<16x16x128xbf16> to vector<256x128xbf16>
      %c384 = arith.constant 384 : index
      %c0_24 = arith.constant 0 : index
      %31 = vector.load %arg3[%c384, %c0_24] : memref<1152x128xbf16, #tpu.memory_space<vmem>>, vector<128x128xbf16>
      %cst_25 = arith.constant dense<0.000000e+00> : vector<256x128xf32>
      %32 = tpu.matmul %30, %31, %cst_25 {dimension_numbers = #tpu.dot_dimension_numbers<[1], [0], [0], [1], [0, 0, 1, 1], [], []>} : vector<256x128xbf16>, vector<128x128xbf16>, vector<256x128xf32> -> vector<256x128xf32>
      %33 = arith.addf %27, %32 : vector<256x128xf32>
      %c0_26 = arith.constant 0 : index
      %c1_27 = arith.constant 1 : index
      %c1_28 = arith.constant 1 : index
      %c0_29 = arith.constant 0 : index
      %34 = vector.load %arg2[%c0_26, %c1_27, %c1_28, %c0_29] : memref<1x18x18x128xbf16, #tpu.memory_space<vmem>>, vector<1x16x16x128xbf16>
      %35 = vector.shape_cast %34 : vector<1x16x16x128xbf16> to vector<16x16x128xbf16>
      %36 = vector.shape_cast %35 : vector<16x16x128xbf16> to vector<256x128xbf16>
      %c512 = arith.constant 512 : index
      %c0_30 = arith.constant 0 : index
      %37 = vector.load %arg3[%c512, %c0_30] : memref<1152x128xbf16, #tpu.memory_space<vmem>>, vector<128x128xbf16>
      %cst_31 = arith.constant dense<0.000000e+00> : vector<256x128xf32>
      %38 = tpu.matmul %36, %37, %cst_31 {dimension_numbers = #tpu.dot_dimension_numbers<[1], [0], [0], [1], [0, 0, 1, 1], [], []>} : vector<256x128xbf16>, vector<128x128xbf16>, vector<256x128xf32> -> vector<256x128xf32>
      %39 = arith.addf %33, %38 : vector<256x128xf32>
      %c0_32 = arith.constant 0 : index
      %c1_33 = arith.constant 1 : index
      %c2_34 = arith.constant 2 : index
      %c0_35 = arith.constant 0 : index
      %40 = vector.load %arg2[%c0_32, %c1_33, %c2_34, %c0_35] : memref<1x18x18x128xbf16, #tpu.memory_space<vmem>>, vector<1x16x16x128xbf16>
      %41 = vector.shape_cast %40 : vector<1x16x16x128xbf16> to vector<16x16x128xbf16>
      %42 = vector.shape_cast %41 : vector<16x16x128xbf16> to vector<256x128xbf16>
      %c640 = arith.constant 640 : index
      %c0_36 = arith.constant 0 : index
      %43 = vector.load %arg3[%c640, %c0_36] : memref<1152x128xbf16, #tpu.memory_space<vmem>>, vector<128x128xbf16>
      %cst_37 = arith.constant dense<0.000000e+00> : vector<256x128xf32>
      %44 = tpu.matmul %42, %43, %cst_37 {dimension_numbers = #tpu.dot_dimension_numbers<[1], [0], [0], [1], [0, 0, 1, 1], [], []>} : vector<256x128xbf16>, vector<128x128xbf16>, vector<256x128xf32> -> vector<256x128xf32>
      %45 = arith.addf %39, %44 : vector<256x128xf32>
      %c0_38 = arith.constant 0 : index
      %c2_39 = arith.constant 2 : index
      %c0_40 = arith.constant 0 : index
      %c0_41 = arith.constant 0 : index
      %46 = vector.load %arg2[%c0_38, %c2_39, %c0_40, %c0_41] : memref<1x18x18x128xbf16, #tpu.memory_space<vmem>>, vector<1x16x16x128xbf16>
      %47 = vector.shape_cast %46 : vector<1x16x16x128xbf16> to vector<16x16x128xbf16>
      %48 = vector.shape_cast %47 : vector<16x16x128xbf16> to vector<256x128xbf16>
      %c768 = arith.constant 768 : index
      %c0_42 = arith.constant 0 : index
      %49 = vector.load %arg3[%c768, %c0_42] : memref<1152x128xbf16, #tpu.memory_space<vmem>>, vector<128x128xbf16>
      %cst_43 = arith.constant dense<0.000000e+00> : vector<256x128xf32>
      %50 = tpu.matmul %48, %49, %cst_43 {dimension_numbers = #tpu.dot_dimension_numbers<[1], [0], [0], [1], [0, 0, 1, 1], [], []>} : vector<256x128xbf16>, vector<128x128xbf16>, vector<256x128xf32> -> vector<256x128xf32>
      %51 = arith.addf %45, %50 : vector<256x128xf32>
      %c0_44 = arith.constant 0 : index
      %c2_45 = arith.constant 2 : index
      %c1_46 = arith.constant 1 : index
      %c0_47 = arith.constant 0 : index
      %52 = vector.load %arg2[%c0_44, %c2_45, %c1_46, %c0_47] : memref<1x18x18x128xbf16, #tpu.memory_space<vmem>>, vector<1x16x16x128xbf16>
      %53 = vector.shape_cast %52 : vector<1x16x16x128xbf16> to vector<16x16x128xbf16>
      %54 = vector.shape_cast %53 : vector<16x16x128xbf16> to vector<256x128xbf16>
      %c896 = arith.constant 896 : index
      %c0_48 = arith.constant 0 : index
      %55 = vector.load %arg3[%c896, %c0_48] : memref<1152x128xbf16, #tpu.memory_space<vmem>>, vector<128x128xbf16>
      %cst_49 = arith.constant dense<0.000000e+00> : vector<256x128xf32>
      %56 = tpu.matmul %54, %55, %cst_49 {dimension_numbers = #tpu.dot_dimension_numbers<[1], [0], [0], [1], [0, 0, 1, 1], [], []>} : vector<256x128xbf16>, vector<128x128xbf16>, vector<256x128xf32> -> vector<256x128xf32>
      %57 = arith.addf %51, %56 : vector<256x128xf32>
      %c0_50 = arith.constant 0 : index
      %c2_51 = arith.constant 2 : index
      %c2_52 = arith.constant 2 : index
      %c0_53 = arith.constant 0 : index
      %58 = vector.load %arg2[%c0_50, %c2_51, %c2_52, %c0_53] : memref<1x18x18x128xbf16, #tpu.memory_space<vmem>>, vector<1x16x16x128xbf16>
      %59 = vector.shape_cast %58 : vector<1x16x16x128xbf16> to vector<16x16x128xbf16>
      %60 = vector.shape_cast %59 : vector<16x16x128xbf16> to vector<256x128xbf16>
      %c1024 = arith.constant 1024 : index
      %c0_54 = arith.constant 0 : index
      %61 = vector.load %arg3[%c1024, %c0_54] : memref<1152x128xbf16, #tpu.memory_space<vmem>>, vector<128x128xbf16>
      %cst_55 = arith.constant dense<0.000000e+00> : vector<256x128xf32>
      %62 = tpu.matmul %60, %61, %cst_55 {dimension_numbers = #tpu.dot_dimension_numbers<[1], [0], [0], [1], [0, 0, 1, 1], [], []>} : vector<256x128xbf16>, vector<128x128xbf16>, vector<256x128xf32> -> vector<256x128xf32>
      %63 = arith.addf %57, %62 : vector<256x128xf32>
      %c0_56 = arith.constant 0 : index
      %c0_57 = arith.constant 0 : index
      %64 = vector.load %arg4[%c0_56, %c0_57] : memref<1x128xf32, #tpu.memory_space<vmem>>, vector<1x128xf32>
      %65 = vector.broadcast %64 : vector<1x128xf32> to vector<256x128xf32>
      %66 = arith.addf %63, %65 : vector<256x128xf32>
      %67 = arith.index_cast %arg1 : i32 to index
      %c0_58 = arith.constant 0 : index
      %c0_59 = arith.constant 0 : index
      %68 = vector.load %arg8[%67, %c0_58, %c0_59] : memref<2x256x128xf32, #tpu.memory_space<vmem>>, vector<1x256x128xf32>
      %69 = vector.shape_cast %68 : vector<1x256x128xf32> to vector<256x128xf32>
      %70 = vector.shape_cast %66 : vector<256x128xf32> to vector<1x256x128xf32>
      tpu.vector_store %arg8[%67, %c0_58, %c0_59], %70 {strides = array<i32>} : memref<2x256x128xf32, #tpu.memory_space<vmem>>, vector<1x256x128xf32>,
      %c0_60 = arith.constant 0 : index
      %c0_61 = arith.constant 0 : index
      %71 = vector.load %arg9[%c0_60, %c0_61] : memref<8x128xf32, #tpu.memory_space<vmem>>, vector<1x128xf32>
      %cst_62 = arith.constant dense<0.000000e+00> : vector<128xf32>
      %72 = vector.multi_reduction <add>, %66, %cst_62 [0] : vector<256x128xf32> to vector<128xf32>
      %73 = vector.shape_cast %72 : vector<128xf32> to vector<1x128xf32>
      %74 = arith.addf %71, %73 : vector<1x128xf32>
      %c0_63 = arith.constant 0 : index
      %c0_64 = arith.constant 0 : index
      %75 = vector.load %arg9[%c0_63, %c0_64] : memref<8x128xf32, #tpu.memory_space<vmem>>, vector<1x128xf32>
      tpu.vector_store %arg9[%c0_63, %c0_64], %74 {strides = array<i32>} : memref<8x128xf32, #tpu.memory_space<vmem>>, vector<1x128xf32>,
      %c1_65 = arith.constant 1 : index
      %c0_66 = arith.constant 0 : index
      %76 = vector.load %arg9[%c1_65, %c0_66] : memref<8x128xf32, #tpu.memory_space<vmem>>, vector<1x128xf32>
      %77 = arith.mulf %66, %66 : vector<256x128xf32>
      %cst_67 = arith.constant dense<0.000000e+00> : vector<128xf32>
      %78 = vector.multi_reduction <add>, %77, %cst_67 [0] : vector<256x128xf32> to vector<128xf32>
      %79 = vector.shape_cast %78 : vector<128xf32> to vector<1x128xf32>
      %80 = arith.addf %76, %79 : vector<1x128xf32>
      %c1_68 = arith.constant 1 : index
      %c0_69 = arith.constant 0 : index
      %81 = vector.load %arg9[%c1_68, %c0_69] : memref<8x128xf32, #tpu.memory_space<vmem>>, vector<1x128xf32>
      tpu.vector_store %arg9[%c1_68, %c0_69], %80 {strides = array<i32>} : memref<8x128xf32, #tpu.memory_space<vmem>>, vector<1x128xf32>,
    } else {
    }
    %c1_i32 = arith.constant 1 : i32
    %8 = arith.cmpi eq, %arg0, %c1_i32 : i32
    %9 = arith.extui %8 : i1 to i32
    %c0_i32_4 = arith.constant 0 : i32
    %10 = arith.cmpi ne, %9, %c0_i32_4 : i32
    scf.if %10 {
      %11 = arith.index_cast %arg1 : i32 to index
      %c0 = arith.constant 0 : index
      %c0_5 = arith.constant 0 : index
      %12 = vector.load %arg8[%11, %c0, %c0_5] : memref<2x256x128xf32, #tpu.memory_space<vmem>>, vector<1x256x128xf32>
      %13 = vector.shape_cast %12 : vector<1x256x128xf32> to vector<256x128xf32>
      %c0_6 = arith.constant 0 : index
      %c0_7 = arith.constant 0 : index
      %14 = vector.load %arg9[%c0_6, %c0_7] : memref<8x128xf32, #tpu.memory_space<vmem>>, vector<1x128xf32>
      %cst = arith.constant 0.001953125 : f32
      %15 = vector.broadcast %cst : f32 to vector<1x128xf32>
      %16 = arith.mulf %14, %15 : vector<1x128xf32>
      %c1 = arith.constant 1 : index
      %c0_8 = arith.constant 0 : index
      %17 = vector.load %arg9[%c1, %c0_8] : memref<8x128xf32, #tpu.memory_space<vmem>>, vector<1x128xf32>
      %cst_9 = arith.constant 0.001953125 : f32
      %18 = vector.broadcast %cst_9 : f32 to vector<1x128xf32>
      %19 = arith.mulf %17, %18 : vector<1x128xf32>
      %20 = arith.mulf %16, %16 : vector<1x128xf32>
      %21 = arith.subf %19, %20 : vector<1x128xf32>
      %cst_10 = arith.constant 0.000000e+00 : f32
      %22 = vector.broadcast %cst_10 : f32 to vector<1x128xf32>
      %23 = arith.maximumf %21, %22 : vector<1x128xf32>
      %24 = vector.broadcast %16 : vector<1x128xf32> to vector<256x128xf32>
      %25 = arith.subf %13, %24 : vector<256x128xf32>
      %cst_11 = arith.constant 9.99999974E-6 : f32
      %26 = vector.broadcast %cst_11 : f32 to vector<1x128xf32>
      %27 = arith.addf %23, %26 : vector<1x128xf32>
      %28 = math.rsqrt %27 : vector<1x128xf32>
      %29 = vector.broadcast %28 : vector<1x128xf32> to vector<256x128xf32>
      %30 = arith.mulf %25, %29 : vector<256x128xf32>
      %c0_12 = arith.constant 0 : index
      %c0_13 = arith.constant 0 : index
      %31 = vector.load %arg5[%c0_12, %c0_13] : memref<1x128xf32, #tpu.memory_space<vmem>>, vector<1x128xf32>
      %32 = vector.broadcast %31 : vector<1x128xf32> to vector<256x128xf32>
      %33 = arith.mulf %30, %32 : vector<256x128xf32>
      %c0_14 = arith.constant 0 : index
      %c0_15 = arith.constant 0 : index
      %34 = vector.load %arg6[%c0_14, %c0_15] : memref<1x128xf32, #tpu.memory_space<vmem>>, vector<1x128xf32>
      %35 = vector.broadcast %34 : vector<1x128xf32> to vector<256x128xf32>
      %36 = arith.addf %33, %35 : vector<256x128xf32>
      %cst_16 = arith.constant 0.000000e+00 : f32
      %37 = vector.broadcast %cst_16 : f32 to vector<256x128xf32>
      %38 = arith.maximumf %36, %37 : vector<256x128xf32>
      %cst_17 = arith.constant dense<0.000000e+00> : vector<128xf32>
      %39 = vector.multi_reduction <add>, %38, %cst_17 [0] : vector<256x128xf32> to vector<128xf32>
      %40 = vector.shape_cast %39 : vector<128xf32> to vector<1x128xf32>
      %cst_18 = arith.constant 3.906250e-03 : f32
      %41 = vector.broadcast %cst_18 : f32 to vector<1x128xf32>
      %42 = arith.mulf %40, %41 : vector<1x128xf32>
      %43 = arith.index_cast %arg1 : i32 to index
      %c0_19 = arith.constant 0 : index
      %44 = vector.load %arg7[%43, %c0_19] : memref<2x128xf32, #tpu.memory_space<vmem>>, vector<1x128xf32>
      tpu.vector_store %arg7[%43, %c0_19], %42 {strides = array<i32>} : memref<2x128xf32, #tpu.memory_space<vmem>>, vector<1x128xf32>,
    } else {
    }
    return
  }
  func.func @transform_0(%arg0: i32, %arg1: i32) -> (i32, i32, i32, i32) {
    %c1_i32 = arith.constant 1 : i32
    %0 = arith.subi %c1_i32, %arg0 : i32
    %1 = arith.muli %arg1, %0 : i32
    %c1_i32_0 = arith.constant 1 : i32
    %2 = arith.muli %c1_i32_0, %arg0 : i32
    %3 = arith.addi %1, %2 : i32
    %c0_i32 = arith.constant 0 : i32
    %c0_i32_1 = arith.constant 0 : i32
    %c0_i32_2 = arith.constant 0 : i32
    %c0_i32_3 = arith.constant 0 : i32
    return %3, %c0_i32, %c0_i32_1, %c0_i32_2 : i32, i32, i32, i32
  }
  func.func @transform_1(%arg0: i32, %arg1: i32) -> (i32, i32) {
    %c0_i32 = arith.constant 0 : i32
    %c0_i32_0 = arith.constant 0 : i32
    %c0_i32_1 = arith.constant 0 : i32
    return %c0_i32, %c0_i32_0 : i32, i32
  }
  func.func @transform_2(%arg0: i32, %arg1: i32) -> (i32, i32) {
    %c0_i32 = arith.constant 0 : i32
    %c0_i32_0 = arith.constant 0 : i32
    %c0_i32_1 = arith.constant 0 : i32
    return %c0_i32, %c0_i32_0 : i32, i32
  }
  func.func @transform_3(%arg0: i32, %arg1: i32) -> (i32, i32) {
    %c0_i32 = arith.constant 0 : i32
    %c0_i32_0 = arith.constant 0 : i32
    %c0_i32_1 = arith.constant 0 : i32
    return %c0_i32, %c0_i32_0 : i32, i32
  }
  func.func @transform_4(%arg0: i32, %arg1: i32) -> (i32, i32) {
    %c0_i32 = arith.constant 0 : i32
    %c0_i32_0 = arith.constant 0 : i32
    %c0_i32_1 = arith.constant 0 : i32
    return %c0_i32, %c0_i32_0 : i32, i32
  }
  func.func @transform_5(%arg0: i32, %arg1: i32) -> (i32, i32) {
    %c0_i32 = arith.constant 0 : i32
    %c0_i32_0 = arith.constant 0 : i32
    %c0_i32_1 = arith.constant 0 : i32
    return %c0_i32, %c0_i32_0 : i32, i32
  }
}

</mosaic_0001>

<bundles_post_ra>
// kernel: discriminator_forward.5
= control target key start
LH: loop header
LB: loop body
LE: loop exit
PB: predicated region body
PF: predicated region fallthrough
CT: control target
= control target key end

     0   :  { %s6931_s18 = smov 0   ;;  %s6933_s19 = smov 0   ;;  %s9870_s0 = inlined_call_operand.vmem [shape: bf16[2,18,18,128], index: 0, kind: input, shape index: {}]   ;;  %s9871_s1 = inlined_call_operand.vmem [shape: bf16[1152,128], index: 1, kind: input, shape index: {}]   ;;  %s9872_s2 = inlined_call_operand.vmem [shape: f32[1,128], index: 2, kind: input, shape index: {}]   ;;  %s9873_s3 = inlined_call_operand.vmem [shape: f32[1,128], index: 3, kind: input, shape index: {}]   ;;  %s9874_s4 = inlined_call_operand.vmem [shape: f32[1,128], index: 4, kind: input, shape index: {}]   ;;  %s9875_s5 = inlined_call_operand.vmem [shape: f32[2,128], index: 5, kind: output, shape index: {}]  }
   0x1   :  { %s6935_s20 = smov 0   ;;  %s6937_s21 = smov 0  }
   0x2   :  { %s6939_s22 = smov 0  }
   0x3 LB: > { %s24_s23 = sadd.s32 1, %s6890_s20  ;;  %s27_s24 = sadd.s32 1, %s6894_s21  ;;  %s6898_s22 = sphi %s6939_s22, %s15_s22   ;;  %s6894_s21 = sphi %s6937_s21, %s10128_s21   ;;  %s6890_s20 = sphi %s6935_s20, %s10127_s20   ;;  %s6886_s19 = sphi %s6933_s19, %s10126_s19   ;;  %s6882_s18 = sphi %s6931_s18, %s10125_s18  }
   0x4   : > { %p25_p0 = scmp.ge.s32.totalorder %s24_s23, 2  ;;  %p5556_p1 = scmp.ge.s32.totalorder %s6898_s22, 1 }
   0x5   : > { %p206_p2 = scmp.lt.s32.totalorder %s6898_s22, 5 }
   0x6   : > { %s10130_s23 = smov (%p25_p0, %s24_s23), 0  ;;  %s10132_s24 = smov (!%p25_p0, %s27_s24), %s6894_s21 }
   0x7   : > { %p207_p3 = pnand %p5556_p1, %p206_p2  ;;  %p29_p4 = scmp.ge.s32.totalorder %s10132_s24, 2 }
   0x8   : > { %s232_s25 = ssub.s32 (!%p207_p3), 1, %s6886_s19  ;;  %p244_p5 = scmp.eq.s32.totalorder (!%p207_p3), %s6886_s19, 0 }
   0x9   : > { %s10134_s24 = smov (%p29_p4, %s10132_s24), 0  ;;  %210 = sbr.rel (%p207_p3) target bundleno = 711 (0x2c7), region = 40 }
   0xa   : > { %s233_s26 = smul.u32 (!%p207_p3), %s6882_s18, %s232_s25  ;;  %p245_p6 = scmp.eq.s32.totalorder (!%p207_p3), %s6882_s18, 0 }
   0xc   : > { %s234_s27 = sadd.s32 (!%p207_p3), %s6886_s19, %s233_s26  ;;  %p246_p7 = pnand (!%p207_p3), %p245_p6, %p244_p5 }
   0xd   : > { %p235_p8 = scmp.lt.s32.totalorder (!%p207_p3), %s234_s27, 1 }
   0xe   : > { %249 = sbr.rel (%p246_p7) target bundleno = 21 (0x15), region = 44 }
   0xf   : > { %s10136_s27 = smov (!%p235_p8, %s234_s27), 1 }
  0x10   : > { %s6687_s28 = smul.u32 216, %s10136_s27 }
  0x12   : > { %s6973_s6 = scalar_lea.vmem %s9870_s0, %s6687_s28 }
  0x13   : > { %v6900_v0 = vmov 0.0  }
  0x14   : > { %250 = vst [vmem:[#allocation3] sm:$0xff] %v6900_v0 }
  0x15 PF: > { %p5558_p9 = scmp.ne.s32.totalorder %s6886_s19, 0 }
  0x17   : > { %253 = sbr.rel (%p5558_p9) target bundleno = 592 (0x250), region = 48 }
  0x1c   : > { %v6729_v1 = vld [vmem:[%s9871_s1 + $0x78] sm:$0xff]   ;;  %v6730_v2 = vld [vmem:[%s9871_s1 + $0x70] sm:$0xff]   ;;  %v6731_v3 = vld [vmem:[%s9871_s1 + $0x68] sm:$0xff]   ;;  %vm318_vm0 = vsmask.f32 3328  ;;  %vm1347_vm3 = vcmask 1042432  }
  0x1d   : > { %6239 = vmatprep.subr.bf16.mxu0 %v6729_v1  ;;  %6671 = vmatprep.subr.bf16.mxu1 %v6729_v1  ;;  %v6732_v4 = vld [vmem:[%s9871_s1 + $0x60] sm:$0xff]   ;;  %v6995_v7 = vld [vmem:[%s6973_s6 + $0x8] sm:$0x1]  ;;  %vm319_vm1 = vsmask.f32 7440  ;;  %v6733_v18 = vld [vmem:[%s9871_s1 + $0x58] sm:$0xff]  }
  0x1e   : > { %6240 = vmatpush3.bf16.msra.mxu0 %v6729_v1  ;;  %6679 = vmatpush3.bf16.msra.mxu1 %v6729_v1  ;;  %v6989_v5 = vld [vmem:[%s6973_s6] sm:$0xf]  ;;  %v6992_v6 = vld [vmem:[%s6973_s6 + $0x4] sm:$0xf]  ;;  %v341_v12 = vshll.u32 %v6995_v7, 16  ;;  %vm7014_vm2 = vmor %vm318_vm0, %vm319_vm1  ;;  %vm1348_vm4 = vcmask 1046532  }
  0x1f   : > { %6241 = vmatprep.subr.bf16.mxu0 %v6730_v2  ;;  %6672 = vmatprep.subr.bf16.mxu1 %v6730_v2  ;;  %v322_v8 = vshrl.u32 %v6989_v5, 16  ;;  %v325_v9 = vshll.u32 %v6989_v5, 16  ;;  %v331_v10 = vshll.u32 %v6992_v6, 16  ;;  %v335_v11 = vshrl.u32 %v6992_v6, 16  ;;  %v270_v13 = vld [vmem:[%s6973_s6 + $0x60] sm:$0xf]  ;;  %vm7325_vm5 = vmor %vm1347_vm3, %vm1348_vm4 }
  0x20   : > { %v271_v16 = vld [vmem:[%s6973_s6 + $0x64] sm:$0xf]  ;;  %v310_v17 = vld [vmem:[%s6973_s6 + $0x68] sm:$0x1]  ;;  %v514_v22 = vshrl.u32 %v270_v13, 16  ;;  %v517_v24 = vshll.u32 %v270_v13, 16 }
  0x21   : > { %v324_v14 = vrot.slane %v322_v8, 4  ;;  %v327_v15 = vrot.slane %v325_v9, 5  ;;  %v333_v19 = vrot.slane %v331_v10, 5  ;;  %v337_v20 = vrot.slane %v335_v11, 4  ;;  %v7010_v27 = vld [vmem:[%s6973_s6 + $0xc] sm:$0xf] }
  0x22   : > { %6242 = vmatpush3.bf16.msra.mxu0 %v6730_v2  ;;  %6680 = vmatpush3.bf16.msra.mxu1 %v6730_v2  ;;  %v523_v25 = vshll.u32 %v271_v16, 16  ;;  %v527_v26 = vshrl.u32 %v271_v16, 16  ;;  %v343_v30 = vrot.slane %v341_v12, 5  ;;  %v516_v31 = vrot.slane %v514_v22, 4  ;;  %v7019_v33 = vld [vmem:[%s6973_s6 + $0x10] sm:$0xf] }
  0x23   : > { %6243 = vmatprep.subr.bf16.mxu0 %v6731_v3  ;;  %6673 = vmatprep.subr.bf16.mxu1 %v6731_v3  ;;  %v328_v23 = vor.u32 %v327_v15, %v324_v14  ;;  %v338_v29 = vor.u32 %v337_v20, %v333_v19  ;;  %v533_v32 = vshll.u32 %v310_v17, 16  ;;  %v6734_v34 = vld [vmem:[%s9871_s1 + $0x50] sm:$0xff]   ;;  %v519_v36 = vrot.slane %v517_v24, 5  ;;  %v272_v48 = vld [vmem:[%s6973_s6 + $0x6c] sm:$0xf]  ;;  %v6736_v16 = vld [vmem:[%s9871_s1 + $0x40] sm:$0xff]  }
  0x24   : > { %v525_v37 = vrot.slane %v523_v25, 5  ;;  %v529_v38 = vrot.slane %v527_v26, 4  ;;  %v7025_v41 = vld [vmem:[%s6973_s6 + $0x14] sm:$0x1]  ;;  %v346_v42 = vshrl.u32 %v7010_v27, 16  ;;  %v349_v43 = vshll.u32 %v7010_v27, 16 }
  0x25   : > { %v329_v35 = vrot.slane %v328_v23, 4  ;;  %v339_v39 = vrot.slane %v338_v29, 4  ;;  %v535_v40 = vrot.slane %v533_v32, 5  ;;  %v520_v45 = vor.u32 %v519_v36, %v516_v31  ;;  %v273_v53 = vld [vmem:[%s6973_s6 + $0x70] sm:$0xf]  ;;  %v6735_v59 = vld [vmem:[%s9871_s1 + $0x48] sm:$0xff]  }
  0x26   : > { %6244 = vmatpush3.bf16.msra.mxu0 %v6731_v3  ;;  %6681 = vmatpush3.bf16.msra.mxu1 %v6731_v3  ;;  %v530_v46 = vor.u32 %v529_v38, %v525_v37  ;;  %v355_v47 = vshll.u32 %v7019_v33, 16  ;;  %v348_v50 = vrot.slane %v346_v42, 4  ;;  %v351_v51 = vrot.slane %v349_v43, 5  ;;  %v311_v58 = vld [vmem:[%s6973_s6 + $0x74] sm:$0x1]  ;;  %v6737_v42 = vld [vmem:[%s9871_s1 + $0x38] sm:$0xff]  }
  0x27   : > { %6245 = vmatprep.subr.bf16.mxu0 %v6732_v4  ;;  %6674 = vmatprep.subr.bf16.mxu1 %v6732_v4  ;;  %v334_v44 = vsel %vm7014_vm2, %v329_v35, %v333_v19  ;;  %v344_v49 = vsel %vm7014_vm2, %v339_v39, %v343_v30  ;;  %v359_v52 = vshrl.u32 %v7019_v33, 16  ;;  %v521_v55 = vrot.slane %v520_v45, 4  ;;  %v7048_v15 = vld [vmem:[%s6973_s6 + $0x18] sm:$0xf]  ;;  %v7056_v20 = vld [vmem:[%s6973_s6 + $0x1c] sm:$0xf] }
  0x28   : > { %v5559_v54 = vcombine.low %v334_v44, %v344_v49  ;;  %v531_v56 = vrot.slane %v530_v46, 4  ;;  %v357_v57 = vrot.slane %v355_v47, 5  ;;  %v352_v60 = vor.u32 %v351_v51, %v348_v50  ;;  %v7061_v26 = vld [vmem:[%s6973_s6 + $0x20] sm:$0x1]  ;;  %v274_v35 = vld [vmem:[%s6973_s6 + $0x78] sm:$0xf] }
  0x29   : > { %v361_v61 = vrot.slane %v359_v52, 4  ;;  %v365_v62 = vshll.u32 %v7025_v41, 16  ;;  %v526_v0 = vsel %vm7014_vm2, %v521_v55, %v525_v37  ;;  %v538_v2 = vshrl.u32 %v272_v48, 16  ;;  %v6738_v43 = vld [vmem:[%s9871_s1 + $0xb8] sm:$0xff]   ;;  %v312_v50 = vld [vmem:[%s6973_s6 + $0x80] sm:$0x1] }
  0x2a   : > { %6246 = vmatpush3.bf16.msra.mxu0 %v6732_v4  ;;  %6682 = vmatpush3.bf16.msra.mxu1 %v6732_v4  ;;  %v536_v1 = vsel %vm7014_vm2, %v531_v56, %v535_v40  ;;  %v541_v3 = vshll.u32 %v272_v48, 16  ;;  %v353_v8 = vrot.slane %v352_v60, 4  ;;  %v547_v13 = vshll.u32 %v273_v53, 16  ;;  %v7070_v40 = vld [vmem:[%s6973_s6 + $0x7c] sm:$0xf]  ;;  %v6740_v60 = vld [vmem:[%s9871_s1 + $0xb0] sm:$0xff]  }
  0x2b   : > { %6247 = vmatprep.subr.bf16.mxu0 %v6733_v18  ;;  %6675 = vmatprep.subr.bf16.mxu1 %v6733_v18  ;;  %v5567_v4 = vcombine.low %v526_v0, %v536_v1  ;;  %v362_v9 = vor.u32 %v361_v61, %v357_v57  ;;  %v367_v10 = vrot.slane %v365_v62, 5  ;;  %v540_v11 = vrot.slane %v538_v2, 4  ;;  %v7097_v1 = vld [vmem:[%s6973_s6 + $0x28] sm:$0xf] }
  0x2c   : > { %6255 = vmatprep.mubr.bf16.mxu0 %v5559_v54  ;;  %v543_v12 = vrot.slane %v541_v3, 5  ;;  %v551_v14 = vshrl.u32 %v273_v53, 16  ;;  %v358_v17 = vsel %vm7014_vm2, %v353_v8, %v357_v57  ;;  %v557_v19 = vshll.u32 %v311_v58, 16  ;;  %v6739_v53 = vld [vmem:[%s9871_s1 + $0x30] sm:$0xff]   ;;  %v7088_v58 = vld [vmem:[%s6973_s6 + $0x24] sm:$0xf] }
  0x2d   : > { %6271 = vmatprep.mubr.bf16.mxu1 %v5567_v4  ;;  %v549_v24 = vrot.slane %v547_v13, 5  ;;  %v370_v29 = vshrl.u32 %v7048_v15, 16  ;;  %v373_v32 = vshll.u32 %v7048_v15, 16  ;;  %v383_v46 = vshrl.u32 %v7056_v20, 16 }
  0x2e   : > { %6248 = vmatpush3.bf16.msra.mxu0 %v6733_v18  ;;  %6683 = vmatpush3.bf16.msra.mxu1 %v6733_v18  ;;  %v363_v18 = vrot.slane %v362_v9, 4  ;;  %v544_v23 = vor.u32 %v543_v12, %v540_v11  ;;  %v553_v25 = vrot.slane %v551_v14, 4  ;;  %v559_v31 = vrot.slane %v557_v19, 5  ;;  %v7100_v9 = vld [vmem:[%s6973_s6 + $0x2c] sm:$0x1] }
  0x2f   : > { %6249 = vmatprep.subr.bf16.mxu0 %v6734_v34  ;;  %6676 = vmatprep.subr.bf16.mxu1 %v6734_v34  ;;  %v372_v39 = vrot.slane %v370_v29, 4  ;;  %v375_v44 = vrot.slane %v373_v32, 5  ;;  %v389_v47 = vshll.u32 %v7061_v26, 16  ;;  %v562_v51 = vshrl.u32 %v274_v35, 16  ;;  %v7104_v14 = vld [vmem:[%s6973_s6 + $0x84] sm:$0xf] }
  0x30   : > { %v368_v30 = vsel %vm7014_vm2, %v363_v18, %v367_v10  ;;  %v545_v37 = vrot.slane %v544_v23, 4  ;;  %v554_v38 = vor.u32 %v553_v25, %v549_v24  ;;  %v565_v52 = vshll.u32 %v274_v35, 16  ;;  %v7111_v23 = vld [vmem:[%s6973_s6 + $0x88] sm:$0xf] }
  0x31   : > { %v5560_v36 = vcombine.low %v358_v17, %v368_v30  ;;  %v376_v54 = vor.u32 %v375_v44, %v372_v39  ;;  %v385_v55 = vrot.slane %v383_v46, 4  ;;  %v391_v56 = vrot.slane %v389_v47, 5 }
  0x32   : > { %6250 = vmatpush3.bf16.msra.mxu0 %v6734_v34  ;;  %6684 = vmatpush3.bf16.msra.mxu1 %v6734_v34  ;;  %v379_v34 = vshll.u32 %v7056_v20, 16  ;;  %v550_v48 = vsel %vm7014_vm2, %v545_v37, %v549_v24  ;;  %v555_v49 = vrot.slane %v554_v38, 4  ;;  %v571_v57 = vshll.u32 %v7070_v40, 16  ;;  %v7120_v37 = vld [vmem:[%s6973_s6 + $0x8c] sm:$0x1] }
  0x33   : > { %6251 = vmatprep.subr.bf16.mxu0 %v6735_v59  ;;  %6677 = vmatprep.subr.bf16.mxu1 %v6735_v59  ;;  %v564_v61 = vrot.slane %v562_v51, 4  ;;  %v567_v62 = vrot.slane %v565_v52, 5  ;;  %v575_v0 = vshrl.u32 %v7070_v40, 16  ;;  %v377_v3 = vrot.slane %v376_v54, 4  ;;  %v6742_v38 = vld [vmem:[%s9871_s1 + $0xa8] sm:$0xff]  }
  0x34   : > { %v381_v45 = vrot.slane %v379_v34, 5  ;;  %v573_v8 = vrot.slane %v571_v57, 5  ;;  %v581_v12 = vshll.u32 %v312_v50, 16  ;;  %v394_v13 = vshrl.u32 %v7088_v58, 16  ;;  %v7135_v54 = vld [vmem:[%s6973_s6 + $0x30] sm:$0xf] }
  0x35   : > { %v568_v10 = vor.u32 %v567_v62, %v564_v61  ;;  %v577_v11 = vrot.slane %v575_v0, 4  ;;  %v397_v18 = vshll.u32 %v7088_v58, 16  ;;  %v403_v19 = vshll.u32 %v7097_v1, 16  ;;  %v7144_v61 = vld [vmem:[%s6973_s6 + $0x34] sm:$0xf] }
  0x36   : > { %6252 = vmatpush3.bf16.msra.mxu0 %v6735_v59  ;;  %6685 = vmatpush3.bf16.msra.mxu1 %v6735_v59  ;;  %v560_v59 = vsel %vm7014_vm2, %v555_v49, %v559_v31  ;;  %v386_v4 = vor.u32 %v385_v55, %v381_v45  ;;  %v583_v29 = vrot.slane %v581_v12, 5  ;;  %v396_v30 = vrot.slane %v394_v13, 4  ;;  %v6741_v31 = vld [vmem:[%s9871_s1 + $0x28] sm:$0xff]  }
  0x37   : > { %6253 = vmatprep.subr.bf16.mxu0 %v6736_v16  ;;  %6678 = vmatprep.subr.bf16.mxu1 %v6736_v16  ;;  %v5568_v2 = vcombine.low %v550_v48, %v560_v59  ;;  %v569_v24 = vrot.slane %v568_v10, 4  ;;  %v578_v25 = vor.u32 %v577_v11, %v573_v8  ;;  %v399_v34 = vrot.slane %v397_v18, 5 }
  0x38   : > { %v387_v17 = vrot.slane %v386_v4, 4  ;;  %v405_v35 = vrot.slane %v403_v19, 5  ;;  %v413_v44 = vshll.u32 %v7100_v9, 16  ;;  %v586_v47 = vshrl.u32 %v7104_v14, 16  ;;  %v7156_v19 = vld [vmem:[%s6973_s6 + $0x90] sm:$0xf] }
  0x39   : > { %v589_v48 = vshll.u32 %v7104_v14, 16  ;;  %v595_v51 = vshll.u32 %v7111_v23, 16  ;;  %v599_v52 = vshrl.u32 %v7111_v23, 16  ;;  %v418_v10 = vshrl.u32 %v7135_v54, 16 }
  0x3a   : > { %6254 = vmatpush3.bf16.msra.mxu0 %v6736_v16  ;;  %6686 = vmatpush3.bf16.msra.mxu1 %v6736_v16  ;;  %v382_v16 = vsel %vm7014_vm2, %v377_v3, %v381_v45  ;;  %v392_v32 = vsel %vm7014_vm2, %v387_v17, %v391_v56  ;;  %v400_v45 = vor.u32 %v399_v34, %v396_v30  ;;  %v415_v50 = vrot.slane %v413_v44, 5  ;;  %v7152_v17 = vld [vmem:[%s6973_s6 + $0x38] sm:$0x1] }
  0x3b   : > { %6287 = vmatprep.subr.bf16.mxu1 %v6737_v42  ;;  %6335 = vmatprep.subr.bf16.mxu0 %v6738_v43  ;;  %v5561_v39 = vcombine.low %v382_v16, %v392_v32  ;;  %v588_v59 = vrot.slane %v586_v47, 4  ;;  %v591_v62 = vrot.slane %v589_v48, 5  ;;  %v597_v0 = vrot.slane %v595_v51, 5  ;;  %v7162_v32 = vld [vmem:[%s6973_s6 + $0x94] sm:$0xf] }
  0x3c   : > { %v401_v56 = vrot.slane %v400_v45, 4  ;;  %v605_v3 = vshll.u32 %v7120_v37, 16  ;;  %v421_v11 = vshll.u32 %v7135_v54, 16  ;;  %v427_v18 = vshll.u32 %v7144_v61, 16  ;;  %v7172_v45 = vld [vmem:[%s6973_s6 + $0x98] sm:$0x1] }
  0x3d   : > { %6256 = vmatmul.mubr.bf16.vlgmr.msra.gmra.mxu0 %v5560_v36  ;;  %6272 = vmatmul.mubr.bf16.vlgmr.msra.gmra.mxu1 %v5568_v2  ;;  %v407_v36 = vshrl.u32 %v7097_v1, 16  ;;  %v601_v2 = vrot.slane %v599_v52, 4  ;;  %v592_v12 = vor.u32 %v591_v62, %v588_v59  ;;  %v431_v30 = vshrl.u32 %v7144_v61, 16  ;;  %v6747_v47 = vld [vmem:[%s9871_s1 + $0x10] sm:$0xff]   ;;  %v7185_v52 = vld [vmem:[%s6973_s6 + $0x3c] sm:$0xf] }
  0x3e   : > { %6288 = vmatpush3.bf16.msra.mxu1 %v6737_v42  ;;  %6336 = vmatpush3.bf16.msra.mxu0 %v6738_v43  ;;  %v574_v42 = vsel %vm7014_vm2, %v569_v24, %v573_v8  ;;  %v579_v43 = vrot.slane %v578_v25, 4  ;;  %v406_v4 = vsel %vm7014_vm2, %v401_v56, %v405_v35  ;;  %v607_v16 = vrot.slane %v605_v3, 5  ;;  %v6748_v56 = vld [vmem:[%s9871_s1 + $0x90] sm:$0xff]  }
  0x3f   : > { %6289 = vmatprep.subr.bf16.mxu1 %v6739_v53  ;;  %6337 = vmatprep.subr.bf16.mxu0 %v6740_v60  ;;  %v409_v46 = vrot.slane %v407_v36, 4  ;;  %v602_v13 = vor.u32 %v601_v2, %v597_v0  ;;  %v420_v25 = vrot.slane %v418_v10, 4  ;;  %v437_v44 = vshll.u32 %v7152_v17, 16  ;;  %v7198_v10 = vld [vmem:[%s6973_s6 + $0x9c] sm:$0xf] }
  0x40   : > { %v584_v49 = vsel %vm7014_vm2, %v579_v43, %v583_v29  ;;  %6259 = vmatprep.mubr.bf16.mxu0 %v5561_v39  ;;  %v423_v29 = vrot.slane %v421_v11, 5  ;;  %v6746_v39 = vld [vmem:[%s9871_s1 + $0x98] sm:$0xff]   ;;  %v433_v43 = vrot.slane %v431_v30, 4  ;;  %v619_v51 = vshll.u32 %v7162_v32, 16  ;;  %v6749_v30 = vld [vmem:[%s9871_s1 + $0x8] sm:$0xff]  }
  0x41   : > { %v5569_v55 = vcombine.low %v574_v42, %v584_v49  ;;  %v410_v57 = vor.u32 %v409_v46, %v405_v35  ;;  %v593_v35 = vrot.slane %v592_v12, 4  ;;  %v603_v36 = vrot.slane %v602_v13, 4 }
  0x42   : > { %6290 = vmatpush3.bf16.msra.mxu1 %v6739_v53  ;;  %6338 = vmatpush3.bf16.msra.mxu0 %v6740_v60  ;;  %v6743_v53 = vld [vmem:[%s9871_s1 + $0x20] sm:$0xff]   ;;  %v424_v42 = vor.u32 %v423_v29, %v420_v25  ;;  %v610_v46 = vshrl.u32 %v7156_v19, 16  ;;  %v621_v3 = vrot.slane %v619_v51, 5  ;;  %v629_v12 = vshll.u32 %v7172_v45, 16 }
  0x43   : > { %6291 = vmatprep.subr.bf16.mxu1 %v6741_v31  ;;  %v6744_v60 = vld [vmem:[%s9871_s1 + $0xa0] sm:$0xff]   ;;  %6339 = vmatprep.subr.bf16.mxu0 %v6742_v38  ;;  %v411_v8 = vrot.slane %v410_v57, 4  ;;  %v598_v48 = vsel %vm7014_vm2, %v593_v35, %v597_v0  ;;  %v608_v49 = vsel %vm7014_vm2, %v603_v36, %v607_v16  ;;  %v439_v0 = vrot.slane %v437_v44, 5 }
  0x44   : > { %6275 = vmatprep.mubr.bf16.mxu1 %v5569_v55  ;;  %v7188_v55 = vld [vmem:[%s6973_s6 + $0x40] sm:$0xf]  ;;  %v5570_v57 = vcombine.low %v598_v48, %v608_v49  ;;  %v425_v59 = vrot.slane %v424_v42, 4  ;;  %v442_v13 = vshrl.u32 %v7185_v52, 16  ;;  %v631_v35 = vrot.slane %v629_v12, 5  ;;  %v6750_v42 = vld [vmem:[%s9871_s1 + $0x88] sm:$0xff]  }
  0x45   : > { %v416_v24 = vsel %vm7014_vm2, %v411_v8, %v415_v50  ;;  %v613_v50 = vshll.u32 %v7156_v19, 16  ;;  %v7195_v8 = vld [vmem:[%s6973_s6 + $0x44] sm:$0x1]  ;;  %v451_v25 = vshll.u32 %v7188_v55, 16  ;;  %v7207_v29 = vld [vmem:[%s6973_s6 + $0xa0] sm:$0xf] }
  0x46   : > { %6292 = vmatpush3.bf16.msra.mxu1 %v6741_v31  ;;  %6340 = vmatpush3.bf16.msra.mxu0 %v6742_v38  ;;  %v6745_v31 = vld [vmem:[%s9871_s1 + $0x18] sm:$0xff]   ;;  %v5562_v34 = vcombine.low %v406_v4, %v416_v24  ;;  %v429_v38 = vrot.slane %v427_v18, 5  ;;  %v623_v4 = vshrl.u32 %v7162_v32, 16  ;;  %v445_v24 = vshll.u32 %v7185_v52, 16 }
  0x47   : > { %6293 = vmatprep.subr.bf16.mxu1 %v6743_v53  ;;  %6341 = vmatprep.subr.bf16.mxu0 %v6744_v60  ;;  %v615_v2 = vrot.slane %v613_v50, 5  ;;  %v444_v36 = vrot.slane %v442_v13, 4  ;;  %v453_v48 = vrot.slane %v451_v25, 5  ;;  %v461_v50 = vshll.u32 %v7195_v8, 16 }
  0x48   : > { %6260 = vmatmul.mubr.bf16.gmra.mxu0 %v5562_v34  ;;  %v434_v62 = vor.u32 %v433_v43, %v429_v38  ;;  %6276 = vmatmul.mubr.bf16.gmra.mxu1 %v5570_v57  ;;  %v430_v11 = vsel %vm7014_vm2, %v425_v59, %v429_v38  ;;  %v625_v18 = vrot.slane %v623_v4, 4  ;;  %v455_v38 = vshrl.u32 %v7188_v55, 16 }
  0x49   : > { %v634_v51 = vshrl.u32 %v7198_v10, 16 }
  0x4a   : > { %6294 = vmatpush3.bf16.msra.mxu1 %v6743_v53  ;;  %6342 = vmatpush3.bf16.msra.mxu0 %v6744_v60  ;;  %v612_v53 = vrot.slane %v610_v46, 4  ;;  %v435_v60 = vrot.slane %v434_v62, 4  ;;  %v626_v44 = vor.u32 %v625_v18, %v621_v3  ;;  %v447_v46 = vrot.slane %v445_v24, 5  ;;  %v7223_v62 = vld [vmem:[%s6973_s6 + $0xa4] sm:$0x1] }
  0x4b   : > { %6295 = vmatprep.subr.bf16.mxu1 %v6745_v31  ;;  %6343 = vmatprep.subr.bf16.mxu0 %v6746_v39  ;;  %v457_v49 = vrot.slane %v455_v38, 4  ;;  %v636_v4 = vrot.slane %v634_v51, 4  ;;  %v7237_v18 = vld [vmem:[%s6973_s6 + $0x4c] sm:$0xf] }
  0x4c   : > { %v616_v16 = vor.u32 %v615_v2, %v612_v53  ;;  %v440_v34 = vsel %vm7014_vm2, %v435_v60, %v439_v0  ;;  %v627_v57 = vrot.slane %v626_v44, 4  ;;  %v448_v59 = vor.u32 %v447_v46, %v444_v36  ;;  %v7228_v60 = vld [vmem:[%s6973_s6 + $0x48] sm:$0xf] }
  0x4d   : > { %v5563_v43 = vcombine.low %v430_v11, %v440_v34  ;;  %v637_v0 = vshll.u32 %v7198_v10, 16  ;;  %v458_v53 = vor.u32 %v457_v49, %v453_v48  ;;  %v463_v2 = vrot.slane %v461_v50, 5 }
  0x4e   : > { %6296 = vmatpush3.bf16.msra.mxu1 %v6745_v31  ;;  %6344 = vmatpush3.bf16.msra.mxu0 %v6746_v39  ;;  %v617_v31 = vrot.slane %v616_v16, 4  ;;  %v643_v11 = vshll.u32 %v7207_v29, 16  ;;  %v632_v12 = vsel %vm7014_vm2, %v627_v57, %v631_v35  ;;  %v449_v13 = vrot.slane %v448_v59, 4 }
  0x4f   : > { %6297 = vmatprep.subr.bf16.mxu1 %v6747_v47  ;;  %6345 = vmatprep.subr.bf16.mxu0 %v6748_v56  ;;  %v639_v16 = vrot.slane %v637_v0, 5  ;;  %v459_v25 = vrot.slane %v458_v53, 4  ;;  %v653_v36 = vshll.u32 %v7223_v62, 16  ;;  %v466_v44 = vshrl.u32 %v7228_v60, 16  ;;  %v7262_v53 = vld [vmem:[%s6973_s6 + $0xac] sm:$0xf] }
  0x50   : > { %6263 = vmatprep.mubr.bf16.mxu0 %v5563_v43  ;;  %v622_v39 = vsel %vm7014_vm2, %v617_v31, %v621_v3  ;;  %v6751_v3 = vld [vmem:[%s9871_s1] sm:$0xff]   ;;  %v645_v34 = vrot.slane %v643_v11, 5  ;;  %v454_v35 = vsel %vm7014_vm2, %v449_v13, %v453_v48  ;;  %v7246_v31 = vld [vmem:[%s6973_s6 + $0x50] sm:$0x1]  ;;  %v469_v50 = vshll.u32 %v7228_v60, 16  ;;  %v7259_v48 = vld [vmem:[%s9871_s1 + $0xf8] sm:$0xff]  }
  0x51   : > { %v5571_v24 = vcombine.low %v622_v39, %v632_v12  ;;  %v640_v38 = vor.u32 %v639_v16, %v636_v4  ;;  %v464_v46 = vsel %vm7014_vm2, %v459_v25, %v463_v2  ;;  %v655_v49 = vrot.slane %v653_v36, 5  ;;  %v7254_v39 = vld [vmem:[%s6973_s6 + $0xa8] sm:$0xf]  ;;  %v7267_v2 = vld [vmem:[%s9871_s1 + $0x138] sm:$0xff]   ;;  %v7272_v13 = vld [vmem:[%s6973_s6 + $0xb0] sm:$0x1] }
  0x52   : > { %6298 = vmatpush3.bf16.msra.mxu1 %v6747_v47  ;;  %6346 = vmatpush3.bf16.msra.mxu0 %v6748_v56  ;;  %v647_v47 = vshrl.u32 %v7207_v29, 16  ;;  %v6752_v56 = vld [vmem:[%s9871_s1 + $0x80] sm:$0xff]   ;;  %v475_v51 = vshll.u32 %v7237_v18, 16  ;;  %9902 = vst [vmem:[#allocation4_spill] sm:$0xff] %v7254_v39  ;;  %v468_v0 = vrot.slane %v466_v44, 4  ;;  %v479_v11 = vshrl.u32 %v7237_v18, 16 }
  0x53   : > { %6299 = vmatprep.subr.bf16.mxu1 %v6749_v30  ;;  %6347 = vmatprep.subr.bf16.mxu0 %v6750_v42  ;;  %v641_v57 = vrot.slane %v640_v38, 4  ;;  %v485_v12 = vshll.u32 %v7246_v31, 16  ;;  %9903 = vst [vmem:[#allocation5_spill] sm:$0xff] %v7272_v13  ;;  %v7275_v16 = vld [vmem:[%s6973_s6 + $0x54] sm:$0xf]  ;;  %v658_v25 = vshrl.u32 %v7254_v39, 16 }
  0x54   : > { %v649_v43 = vrot.slane %v647_v47, 4  ;;  %6279 = vmatprep.mubr.bf16.mxu1 %v5571_v24  ;;  %v477_v4 = vrot.slane %v475_v51, 5  ;;  %v661_v36 = vshll.u32 %v7254_v39, 16  ;;  %v490_v22 = vshrl.u32 %v7275_v16, 16 }
  0x55   : > { %v646_v47 = vsel %vm7014_vm2, %v641_v57, %v645_v34  ;;  %v487_v44 = vrot.slane %v485_v12, 5  ;;  %v677_v12 = vshll.u32 %v7272_v13, 16 }
  0x56   : > { %6300 = vmatpush3.bf16.msra.mxu1 %v6749_v30  ;;  %6348 = vmatpush3.bf16.msra.mxu0 %v6750_v42  ;;  %v5564_v30 = vcombine.low %v454_v35, %v464_v46  ;;  %v650_v59 = vor.u32 %v649_v43, %v645_v34  ;;  %v471_v42 = vrot.slane %v469_v50, 5  ;;  %v7282_v35 = vld [vmem:[%s6973_s6 + $0x58] sm:$0xf]  ;;  %v481_v43 = vrot.slane %v479_v11, 4 }
  0x57   : > { %6301 = vmatprep.subr.bf16.mxu1 %v6751_v3  ;;  %6349 = vmatprep.subr.bf16.mxu0 %v6752_v56  ;;  %v667_v46 = vshll.u32 %v7262_v53, 16  ;;  %v660_v50 = vrot.slane %v658_v25, 4  ;;  %v663_v51 = vrot.slane %v661_v36, 5  ;;  %v499_v36 = vshll.u32 %v7282_v35, 16 }
  0x58   : > { %6264 = vmatmul.mubr.bf16.gmra.mxu0 %v5564_v30  ;;  %v651_v24 = vrot.slane %v650_v59, 4  ;;  %v472_v38 = vor.u32 %v471_v42, %v468_v0  ;;  %v671_v30 = vshrl.u32 %v7262_v53, 16  ;;  %v482_v59 = vor.u32 %v481_v43, %v477_v4 }
  0x59   : > { %v669_v0 = vrot.slane %v667_v46, 5  ;;  %v664_v42 = vor.u32 %v663_v51, %v660_v50  ;;  %v492_v50 = vrot.slane %v490_v22, 4  ;;  %v503_v63 = vshrl.u32 %v7282_v35, 16 }
  0x5a   : > { %6302 = vmatpush3.bf16.msra.mxu1 %v6751_v3  ;;  %6350 = vmatpush3.bf16.msra.mxu0 %v6752_v56  ;;  %v656_v34 = vsel %vm7014_vm2, %v651_v24, %v655_v49  ;;  %v473_v57 = vrot.slane %v472_v38, 4  ;;  %v7291_v56 = vld [vmem:[%s6973_s6 + $0x5c] sm:$0x1]  ;;  %v673_v11 = vrot.slane %v671_v30, 4  ;;  %v7296_v49 = vld [vmem:[%s6973_s6 + $0xb4] sm:$0xf] }
  0x5b   : > { %6383 = vmatprep.subr.bf16.mxu1 %v7259_v48  ;;  %6431 = vmatprep.subr.bf16.mxu0 %v7267_v2  ;;  %v5572_v3 = vcombine.low %v646_v47, %v656_v34  ;;  %9904 = vst [vmem:[#allocation6_spill] sm:$0xff] %v7296_v49  ;;  %v483_v25 = vrot.slane %v482_v59, 4  ;;  %v493_v47 = vshll.u32 %v7275_v16, 16  ;;  %v7303_v38 = vld [vmem:[%s6973_s6 + $0xb8] sm:$0xf]  ;;  %v665_v43 = vrot.slane %v664_v42, 4 }
  0x5c   : > { %v478_v24 = vsel %vm7014_vm2, %v473_v57, %v477_v4  ;;  %9905 = vst [vmem:[#allocation7_spill] sm:$0xff] %v7303_v38  ;;  %v674_v46 = vor.u32 %v673_v11, %v669_v0  ;;  %v679_v34 = vrot.slane %v677_v12, 5  ;;  %v7309_v4 = vld [vmem:[%s6973_s6 + $0xbc] sm:$0x1]  ;;  %v509_v42 = vshll.u32 %v7291_v56, 16 }
  0x5d   : > { %6280 = vmatmul.mubr.bf16.gmra.mxu1 %v5572_v3  ;;  %v488_v51 = vsel %vm7014_vm2, %v483_v25, %v487_v44  ;;  %v495_v30 = vrot.slane %v493_v47, 5  ;;  %v501_v3 = vrot.slane %v499_v36, 5  ;;  %9906 = vst [vmem:[#allocation8_spill] sm:$0xff] %v7309_v4  ;;  %v670_v59 = vsel %vm7014_vm2, %v665_v43, %v669_v0  ;;  %v1299_v11 = vld [vmem:[%s6973_s6] sm:$0xe] }
  0x5e   : > { %v5565_v57 = vcombine.low %v478_v24, %v488_v51  ;;  %v675_v21 = vrot.slane %v674_v46, 4  ;;  %v505_v22 = vrot.slane %v503_v63, 4  ;;  %v682_v13 = vshrl.u32 %v7296_v49, 16 }
  0x5f   : > { %v496_v12 = vor.u32 %v495_v30, %v492_v50  ;;  %v685_v44 = vshll.u32 %v7296_v49, 16  ;;  %v511_v24 = vrot.slane %v509_v42, 5  ;;  %v691_v47 = vshll.u32 %v7303_v38, 16  ;;  %v1300_v50 = vld [vmem:[%s6973_s6 + $0xc] sm:$0xe] }
  0x60   : > { %6267 = vmatprep.mubr.bf16.mxu0 %v5565_v57  ;;  %v680_v25 = vsel %vm7014_vm2, %v675_v21, %v679_v34  ;;  %v695_v0 = vshrl.u32 %v7303_v38, 16  ;;  %v506_v46 = vor.u32 %v505_v22, %v501_v3  ;;  %v684_v51 = vrot.slane %v682_v13, 4  ;;  %v1301_v21 = vld [vmem:[%s6973_s6 + $0x18] sm:$0xe] }
  0x61   : > { %v5573_v36 = vcombine.low %v670_v59, %v680_v25  ;;  %v497_v43 = vrot.slane %v496_v12, 4  ;;  %v687_v63 = vrot.slane %v685_v44, 5  ;;  %v693_v30 = vrot.slane %v691_v47, 5 }
  0x62   : > { %v697_v39 = vrot.slane %v695_v0, 4  ;;  %v701_v49 = vshll.u32 %v7309_v4, 16  ;;  %v507_v59 = vrot.slane %v506_v46, 4  ;;  %v5607_v42 = vrot.slane %v1299_v11, 9 }
  0x63   : > { %6283 = vmatprep.mubr.bf16.mxu1 %v5573_v36  ;;  %v502_v34 = vsel %vm7014_vm2, %v497_v43, %v501_v3  ;;  %v1352_v13 = vrot.slane %v6992_v6, 5  ;;  %v688_v12 = vor.u32 %v687_v63, %v684_v51  ;;  %v5608_v25 = vrot.slane %v1300_v50, 9 }
  0x64   : > { %v698_v22 = vor.u32 %v697_v39, %v693_v30  ;;  %v703_v44 = vrot.slane %v701_v49, 5  ;;  %v512_v47 = vsel %vm7014_vm2, %v507_v59, %v511_v24  ;;  %v1359_v36 = vrot.slane %v7019_v33, 5 }
  0x65   : > { %v1353_v0 = vsel %vm7325_vm5, %v5607_v42, %v1352_v13  ;;  %v1354_v4 = vrot.slane %v1352_v13, 4  ;;  %v5566_v38 = vcombine.low %v502_v34, %v512_v47  ;;  %v689_v3 = vrot.slane %v688_v12, 4  ;;  %v1303_v13 = vld [vmem:[%s6973_s6 + $0x30] sm:$0xe]  ;;  %v1305_v47 = vld [vmem:[%s6973_s6 + $0x48] sm:$0xe] }
  0x66   : > { %v699_v43 = vrot.slane %v698_v22, 4  ;;  %v5583_v11 = vcombine.low %v6989_v5, %v6992_v6  ;;  %v9909_v39 = vrot.slane %v6995_v7, 5  ;;  %v1361_v46 = vrot.slane %v1359_v36, 4 }
  0x67   : > { %v5609_v24 = vrot.slane %v1301_v21, 9  ;;  %6268 = vmatmul.mubr.bf16.gmra.mxu0 %v5566_v38  ;;  %v694_v51 = vsel %vm7014_vm2, %v689_v3, %v693_v30  ;;  %v1366_v34 = vrot.slane %v7056_v20, 5  ;;  %v1360_v5 = vsel %vm7325_vm5, %v5608_v25, %v1359_v36  ;;  %v1304_v25 = vld [vmem:[%s6973_s6 + $0x3c] sm:$0xe] }
  0x68   : > { %v1356_v49 = vsel %vm7325_vm5, %v1354_v4, %v9909_v39  ;;  %v704_v50 = vsel %vm7014_vm2, %v699_v43, %v703_v44  ;;  %v9910_v6 = vrot.slane %v7025_v41, 5  ;;  %v1369_v38 = vrot.slane %v7061_v26, 5  ;;  %v1302_v4 = vld [vmem:[%s6973_s6 + $0x24] sm:$0xe]  ;;  %v6760_v26 = vld [vmem:[%s9871_s1 + $0x130] sm:$0xff]  }
  0x69   : > { %v5623_v63 = vcombine.low %v1353_v0, %v1356_v49  ;;  %v5574_v59 = vcombine.low %v694_v51, %v704_v50  ;;  %v1367_v30 = vsel %vm7325_vm5, %v5609_v24, %v1366_v34  ;;  %v1368_v21 = vrot.slane %v1366_v34, 4  ;;  %v6759_v24 = vld [vmem:[%s9871_s1 + $0xf0] sm:$0xff]  }
  0x6a   : > { %v1363_v7 = vsel %vm7325_vm5, %v1361_v46, %v9910_v6  ;;  %v1373_v42 = vrot.slane %v7097_v1, 5  ;;  %v5610_v22 = vrot.slane %v1302_v4, 9  ;;  %v1380_v44 = vrot.slane %v7144_v61, 5  ;;  %v7400_v4 = vld [vmem:[%s6973_s6 + $0x68] sm:$0x1] }
  0x6b   : > { %6351 = vmatprep.mubr.bf16.mxu0 %v5623_v63  ;;  %6284 = vmatmul.mubr.bf16.gmra.mxu1 %v5574_v59  ;;  %v5624_v12 = vcombine.low %v1360_v5, %v1363_v7  ;;  %v1370_v41 = vsel %vm7325_vm5, %v1368_v21, %v1369_v38  ;;  %v1376_v3 = vrot.slane %v7100_v9, 5  ;;  %v5611_v43 = vrot.slane %v1303_v13, 9  ;;  %v1306_v38 = vld [vmem:[%s6973_s6 + $0x54] sm:$0xe]  ;;  %v7424_v13 = vld [vmem:[%s6973_s6 + $0x60] sm:$0xe] }
  0x6c   : > { %6303 = vmatprep.mubr.bf16.mxu1 %v5583_v11  ;;  %v5625_v0 = vcombine.low %v1367_v30, %v1370_v41  ;;  %v1375_v36 = vrot.slane %v1373_v42, 4  ;;  %v1382_v39 = vrot.slane %v1380_v44, 4  ;;  %v1383_v11 = vrot.slane %v7152_v17, 5 }
  0x6d   : > { %v1387_v49 = vrot.slane %v7188_v55, 5  ;;  %v5585_v46 = vcombine.low %v7048_v15, %v7056_v20  ;;  %v1394_v51 = vrot.slane %v7237_v18, 5  ;;  %v5612_v50 = vrot.slane %v1304_v25, 9  ;;  %v6768_v25 = vld [vmem:[%s9871_s1 + $0x120] sm:$0xff]  }
  0x6e   : > { %v1390_v9 = vrot.slane %v7195_v8, 5  ;;  %v5613_v34 = vrot.slane %v1305_v47, 9  ;;  %v1374_v15 = vsel %vm7325_vm5, %v5610_v22, %v1373_v42  ;;  %v1377_v20 = vsel %vm7325_vm5, %v1375_v36, %v1376_v3  ;;  %v7436_v47 = vld [vmem:[%s6973_s6 + $0x78] sm:$0xe]  ;;  %v6767_v3 = vld [vmem:[%s9871_s1 + $0xe0] sm:$0xff]  }
  0x6f   : > { %6352 = vmatmul.mubr.bf16.vlgmr.msra.gmra.mxu0 %v5624_v12  ;;  %v1389_v63 = vrot.slane %v1387_v49, 4  ;;  %v1396_v17 = vrot.slane %v1394_v51, 4  ;;  %v1397_v59 = vrot.slane %v7246_v31, 5  ;;  %v1381_v5 = vsel %vm7325_vm5, %v5611_v43, %v1380_v44  ;;  %v7427_v12 = vld [vmem:[%s6973_s6 + $0x6c] sm:$0xe] }
  0x70   : > { %6432 = vmatpush3.bf16.msra.mxu0 %v7267_v2  ;;  %6355 = vmatprep.mubr.bf16.mxu0 %v5625_v0  ;;  %v1384_v8 = vsel %vm7325_vm5, %v1382_v39, %v1383_v11  ;;  %v6764_v2 = vld [vmem:[%s9871_s1 + $0x128] sm:$0xff]   ;;  %v1401_v6 = vrot.slane %v7282_v35, 5  ;;  %v9911_v7 = vcombine.low %v7010_v27, %v7019_v33  ;;  %v5586_v31 = vcombine.low %v7088_v58, %v7097_v1  ;;  %v1310_v0 = vld [vmem:[%s6973_s6 + $0x84] sm:$0xe]  ;;  %v1311_v43 = vld [vmem:[%s6973_s6 + $0x90] sm:$0xe] }
  0x71   : > { %6433 = vmatprep.subr.bf16.mxu0 %v6760_v26  ;;  %v1411_v30 = vrot.slane %v7400_v4, 5  ;;  %v5626_v21 = vcombine.low %v1374_v15, %v1377_v20  ;;  %v7406_v42 = vsel %vm7325_vm5, %v5612_v50, %v1387_v49  ;;  %v7410_v27 = vsel %vm7325_vm5, %v1389_v63, %v1390_v9  ;;  %v6763_v33 = vld [vmem:[%s9871_s1 + $0xe8] sm:$0xff]   ;;  %v7455_v49 = vld [vmem:[%s6973_s6 + $0x64] sm:$0xf]  ;;  %v1312_v50 = vld [vmem:[%s6973_s6 + $0x9c] sm:$0xe] }
  0x72   : > { %v5627_v58 = vcombine.low %v1381_v5, %v1384_v8  ;;  %v7417_v1 = vsel %vm7325_vm5, %v5613_v34, %v1394_v51  ;;  %v5587_v41 = vcombine.low %v7135_v54, %v7144_v61  ;;  %v5614_v22 = vrot.slane %v1306_v38, 9  ;;  %v7477_v5 = vld [vmem:[%s6973_s6 + $0x74] sm:$0x1] }
  0x73   : > { %6304 = vmatmul.mubr.bf16.vlgmr.msra.gmra.mxu1 %v9911_v7  ;;  %v1404_v44 = vrot.slane %v7291_v56, 5  ;;  %v5588_v36 = vcombine.low %v7185_v52, %v7188_v55  ;;  %v5628_v54 = vcombine.low %v7406_v42, %v7410_v27  ;;  %v5589_v61 = vcombine.low %v7228_v60, %v7237_v18  ;;  %v6853_v55 = vld [vmem:[%s6973_s6 + $0x80] sm:$0x1] }
  0x74   : > { %6384 = vmatpush3.bf16.msra.mxu1 %v7259_v48  ;;  %6307 = vmatprep.mubr.bf16.mxu1 %v5585_v46  ;;  %v7421_v48 = vsel %vm7325_vm5, %v1396_v17, %v1397_v59  ;;  %v5590_v56 = vcombine.low %v7275_v16, %v7282_v35  ;;  %v5615_v11 = vrot.slane %v7424_v13, 9  ;;  %v1408_v46 = vrot.slane %v7455_v49, 5  ;;  %v7473_v17 = vld [vmem:[%s6973_s6 + $0x70] sm:$0xf]  ;;  %v6854_v18 = vld [vmem:[%s6973_s6 + $0x60] sm:$0xf] }
  0x75   : > { %6385 = vmatprep.subr.bf16.mxu1 %v6759_v24  ;;  %6434 = vmatpush3.bf16.msra.mxu0 %v6760_v26  ;;  %v1403_v26 = vrot.slane %v1401_v6, 4  ;;  %v5629_v39 = vcombine.low %v7417_v1, %v7421_v48  ;;  %v5616_v63 = vrot.slane %v7427_v12, 9  ;;  %v1429_v9 = vrot.slane %v7111_v23, 5  ;;  %v1313_v1 = vld [vmem:[%s6973_s6 + $0xa8] sm:$0xe]  ;;  %v7657_v16 = vld [vmem:[%s9871_s1 + $0x1b8] sm:$0xff]  }
  0x76   : > { %6435 = vmatprep.subr.bf16.mxu0 %v6764_v2  ;;  %v1432_v34 = vrot.slane %v7120_v37, 5  ;;  %v7466_v15 = vsel %vm7325_vm5, %v5614_v22, %v1401_v6  ;;  %v1415_v59 = vrot.slane %v7473_v17, 5  ;;  %v1418_v8 = vrot.slane %v7477_v5, 5  ;;  %v6771_v37 = vld [vmem:[%s9871_s1 + $0xd8] sm:$0xff]  }
  0x77   : > { %6356 = vmatmul.mubr.bf16.gmra.mxu0 %v5626_v21  ;;  %v7470_v20 = vsel %vm7325_vm5, %v1403_v26, %v1404_v44  ;;  %v5617_v6 = vrot.slane %v7436_v47, 9  ;;  %v1431_v38 = vrot.slane %v1429_v9, 4  ;;  %v5619_v42 = vrot.slane %v1311_v43, 9  ;;  %v5703_v43 = vld [vmem:[%s6973_s6 + $0xc] sm:$0xf] }
  0x78   : > { %6386 = vmatpush3.bf16.msra.mxu1 %v6759_v24  ;;  %6359 = vmatprep.mubr.bf16.mxu0 %v5627_v58  ;;  %v5618_v24 = vrot.slane %v1310_v0, 9  ;;  %v1436_v27 = vrot.slane %v7162_v32, 5  ;;  %v1439_v58 = vrot.slane %v7172_v45, 5  ;;  %v1422_v48 = vrot.slane %v7070_v40, 5 }
  0x79   : > { %6387 = vmatprep.subr.bf16.mxu1 %v6763_v33  ;;  %6436 = vmatpush3.bf16.msra.mxu0 %v6764_v2  ;;  %v6772_v2 = vld [vmem:[%s9871_s1 + $0x118] sm:$0xff]   ;;  %v7501_v22 = vsel %vm7325_vm5, %v1431_v38, %v1432_v34  ;;  %v1443_v0 = vrot.slane %v7207_v29, 5  ;;  %v5621_v34 = vrot.slane %v1313_v1, 9  ;;  %v1450_v38 = vrot.slane %v7262_v53, 5  ;;  %v6775_v1 = vld [vmem:[%s9871_s1 + $0xd0] sm:$0xff]  }
  0x7a   : > { %6437 = vmatprep.subr.bf16.mxu0 %v6768_v25  ;;  %v7489_v7 = vsel %vm7325_vm5, %v5618_v24, %v1429_v9  ;;  %v7509_v45 = vsel %vm7325_vm5, %v5619_v42, %v1436_v27  ;;  %v1438_v44 = vrot.slane %v1436_v27, 4  ;;  %v6776_v24 = vld [vmem:[%s9871_s1 + $0x110] sm:$0xff]   ;;  %v1446_v9 = vrot.slane %v7223_v62, 5 }
  0x7b   : > { %6308 = vmatmul.mubr.bf16.gmra.mxu1 %v5586_v31  ;;  %v1410_v31 = vrot.slane %v1408_v46, 4  ;;  %v1445_v21 = vrot.slane %v1443_v0, 4  ;;  %v9913_v62 = vld [vmem:[#allocation5_spill] sm:$0xff]  ;;  %v2218_v13 = vshrl.u32 %v5703_v43, 16  ;;  %v1417_v52 = vrot.slane %v1415_v59, 4 }
  0x7c   : > { %6311 = vmatprep.mubr.bf16.mxu1 %v5587_v41  ;;  %6388 = vmatpush3.bf16.msra.mxu1 %v6763_v33  ;;  %v5620_v41 = vrot.slane %v1312_v50, 9  ;;  %v7521_v33 = vld [vmem:[%s6973_s6 + $0x10] sm:$0xf]  ;;  %v7525_v42 = vsel %vm7325_vm5, %v1438_v44, %v1439_v58  ;;  %v1453_v51 = vrot.slane %v9913_v62, 5  ;;  %v1452_v58 = vrot.slane %v1450_v38, 4  ;;  %v9915_v44 = vld [vmem:[#allocation6_spill] sm:$0xff] }
  0x7d   : > { %6389 = vmatprep.subr.bf16.mxu1 %v6767_v3  ;;  %6438 = vmatpush3.bf16.msra.mxu0 %v6768_v25  ;;  %v9912_v25 = vld [vmem:[#allocation4_spill] sm:$0xff]  ;;  %v1409_v62 = vsel %vm7325_vm5, %v5615_v11, %v1408_v46  ;;  %v2221_v11 = vshll.u32 %v5703_v43, 16  ;;  %v5706_v46 = vld [vmem:[%s6973_s6 + $0x18] sm:$0xf]  ;;  %v2227_v60 = vshll.u32 %v7521_v33, 16  ;;  %v1419_v12 = vsel %vm7325_vm5, %v1417_v52, %v1418_v8 }
  0x7e   : > { %6439 = vmatprep.subr.bf16.mxu0 %v6772_v2  ;;  %v7529_v27 = vsel %vm7325_vm5, %v5620_v41, %v1443_v0  ;;  %v9914_v41 = vld [vmem:[#allocation7_spill] sm:$0xff]  ;;  %v7595_v43 = vld [vmem:[%s6973_s6 + $0x14] sm:$0x1]  ;;  %v2220_v0 = vrot.slane %v2218_v13, 4  ;;  %v1423_v5 = vsel %vm7325_vm5, %v5617_v6, %v1422_v48  ;;  %v9917_v6 = vld [vmem:[#allocation8_spill] sm:$0xff] }
  0x7f   : > { %6360 = vmatmul.mubr.bf16.gmra.mxu0 %v5628_v54  ;;  %v2223_v50 = vrot.slane %v2221_v11, 5  ;;  %v5709_v54 = vld [vmem:[%s6973_s6 + $0x24] sm:$0xf] }
  0x80   : > { %6390 = vmatpush3.bf16.msra.mxu1 %v6767_v3  ;;  %6363 = vmatprep.mubr.bf16.mxu0 %v5629_v39  ;;  %v7539_v3 = vsel %vm7325_vm5, %v5621_v34, %v1450_v38  ;;  %v5630_v39 = vcombine.low %v7466_v15, %v7470_v20  ;;  %v1412_v34 = vsel %vm7325_vm5, %v1410_v31, %v1411_v30  ;;  %v6780_v15 = vld [vmem:[%s9871_s1 + $0x108] sm:$0xff]   ;;  %v6784_v31 = vld [vmem:[%s9871_s1 + $0x100] sm:$0xff]   ;;  %v7614_v20 = vrot.slane %v2227_v60, 5 }
  0x81   : > { %6391 = vmatprep.subr.bf16.mxu1 %v6771_v37  ;;  %6440 = vmatpush3.bf16.msra.mxu0 %v6772_v2  ;;  %v7557_v38 = vsel %vm7325_vm5, %v1445_v21, %v1446_v9  ;;  %v7569_v30 = vsel %vm7325_vm5, %v1452_v58, %v1453_v51  ;;  %v6779_v51 = vld [vmem:[%s9871_s1 + $0xc8] sm:$0xff]   ;;  %v7584_v2 = vld [vmem:[%s6973_s6 + $0xb4] sm:$0xe]  ;;  %v5631_v21 = vcombine.low %v1409_v62, %v1412_v34  ;;  %v2231_v9 = vshrl.u32 %v7521_v33, 16  ;;  %v7612_v62 = vld [vmem:[%s6973_s6 + $0x1c] sm:$0xf] }
  0x82   : > { %6441 = vmatprep.subr.bf16.mxu0 %v6776_v24  ;;  %v7599_v58 = vld [vmem:[%s6973_s6 + $0x6c] sm:$0xf]  ;;  %v2242_v34 = vshrl.u32 %v5706_v46, 16  ;;  %v2251_v52 = vshll.u32 %v7612_v62, 16  ;;  %v2255_v40 = vshrl.u32 %v7612_v62, 16  ;;  %v2266_v60 = vshrl.u32 %v5709_v54, 16 }
  0x83   : > { %6312 = vmatmul.mubr.bf16.gmra.mxu1 %v5588_v36  ;;  %v1425_v36 = vrot.slane %v6853_v55, 5  ;;  %v5592_v55 = vcombine.low %v7599_v58, %v7473_v17  ;;  %v2233_v4 = vrot.slane %v2231_v9, 4  ;;  %v2269_v47 = vshll.u32 %v5709_v54, 16  ;;  %v6857_v9 = vld [vmem:[%s6973_s6 + $0x7c] sm:$0xf] }
  0x84   : > { %6315 = vmatprep.mubr.bf16.mxu1 %v5589_v61  ;;  %6392 = vmatpush3.bf16.msra.mxu1 %v6771_v37  ;;  %v5591_v61 = vcombine.low %v6854_v18, %v7455_v49  ;;  %v1424_v37 = vrot.slane %v1422_v48, 4  ;;  %v7609_v49 = vsel %vm7325_vm5, %v5616_v63, %v1415_v59  ;;  %v2245_v18 = vshll.u32 %v5706_v46, 16  ;;  %v6783_v59 = vld [vmem:[%s9871_s1 + $0xc0] sm:$0xff]   ;;  %v7639_v46 = vld [vmem:[%s6973_s6 + $0x28] sm:$0xf] }
  0x85   : > { %6393 = vmatprep.subr.bf16.mxu1 %v6775_v1  ;;  %6442 = vmatpush3.bf16.msra.mxu0 %v6776_v24  ;;  %v9885_v63 = vrot.slane %v9914_v41, 5  ;;  %v7626_v24 = vld [vmem:[%s6973_s6 + $0x20] sm:$0x1]  ;;  %v2244_v13 = vrot.slane %v2242_v34, 4  ;;  %9916 = vst [vmem:[#allocation4_spill] sm:$0xff] %v7639_v46  ;;  %v5632_v35 = vcombine.low %v7609_v49, %v1419_v12  ;;  %v2275_v54 = vshll.u32 %v7639_v46, 16 }
  0x86   : > { %6443 = vmatprep.subr.bf16.mxu0 %v6780_v15  ;;  %v2247_v11 = vrot.slane %v2245_v18, 5  ;;  %v1426_v8 = vsel %vm7325_vm5, %v1424_v37, %v1425_v36  ;;  %v2224_v36 = vor.u32 %v2223_v50, %v2220_v0  ;;  %v7652_v37 = vld [vmem:[%s9871_s1 + $0x178] sm:$0xff]   ;;  %v5712_v0 = vld [vmem:[%s6973_s6 + $0x30] sm:$0xf]  ;;  %v7673_v49 = vld [vmem:[%s6973_s6 + $0x34] sm:$0xf] }
  0x87   : > { %6364 = vmatmul.mubr.bf16.gmra.mxu0 %v5630_v39  ;;  %v2237_v39 = vshll.u32 %v7595_v43, 16  ;;  %v5633_v18 = vcombine.low %v1423_v5, %v1426_v8  ;;  %9919 = vst [vmem:[#allocation7_spill] sm:$0xff] %v7673_v49  ;;  %v7675_v12 = vrot.slane %v2251_v52, 5  ;;  %v2271_v48 = vrot.slane %v2269_v47, 5  ;;  %v7694_v47 = vld [vmem:[%s6973_s6 + $0x40] sm:$0xf] }
  0x88   : > { %6394 = vmatpush3.bf16.msra.mxu1 %v6775_v1  ;;  %6367 = vmatprep.mubr.bf16.mxu0 %v5631_v21  ;;  %v2234_v21 = vor.u32 %v2233_v4, %v7614_v20  ;;  %v2248_v50 = vor.u32 %v2247_v11, %v2244_v13  ;;  %v6856_v4 = vld [vmem:[%s6973_s6 + $0x78] sm:$0xf]  ;;  %v2257_v13 = vrot.slane %v2255_v40, 4  ;;  %v2268_v11 = vrot.slane %v2266_v60, 4  ;;  %9920 = vst [vmem:[#allocation6_spill] sm:$0xff] %v7694_v47 }
  0x89   : > { %6395 = vmatprep.subr.bf16.mxu1 %v6779_v51  ;;  %6444 = vmatpush3.bf16.msra.mxu0 %v6780_v15  ;;  %v2261_v15 = vshll.u32 %v7626_v24, 16  ;;  %v5593_v34 = vcombine.low %v6856_v4, %v6857_v9  ;;  %v7666_v26 = vrot.slane %v2237_v39, 5  ;;  %v7678_v1 = vld [vmem:[%s6973_s6 + $0x38] sm:$0x1]  ;;  %v7680_v5 = vrot.slane %v2224_v36, 4 }
  0x8a   : > { %6445 = vmatprep.subr.bf16.mxu0 %v6784_v31  ;;  %v7682_v8 = vrot.slane %v2234_v21, 4  ;;  %v2290_v4 = vshrl.u32 %v5712_v0, 16  ;;  %v5715_v9 = vld [vmem:[%s6973_s6 + $0x3c] sm:$0xf]  ;;  %v7690_v52 = vrot.slane %v2275_v54, 5  ;;  %v2293_v40 = vshll.u32 %v5712_v0, 16 }
  0x8b   : > { %6316 = vmatmul.mubr.bf16.gmra.mxu1 %v5590_v56  ;;  %v1459_v56 = vrot.slane %v9885_v63, 4  ;;  %v7684_v39 = vrot.slane %v2261_v15, 5  ;;  %v2299_v60 = vshll.u32 %v7673_v49, 16  ;;  %v2303_v21 = vshrl.u32 %v7673_v49, 16 }
  0x8c   : > { %6319 = vmatprep.mubr.bf16.mxu1 %v5591_v61  ;;  %6396 = vmatpush3.bf16.msra.mxu1 %v6779_v51  ;;  %v7669_v61 = vld [vmem:[%s6973_s6 + $0x2c] sm:$0x1]  ;;  %v2279_v51 = vshrl.u32 %v7639_v46, 16  ;;  %v2258_v15 = vor.u32 %v2257_v13, %v7675_v12  ;;  %v2292_v54 = vrot.slane %v2290_v4, 4  ;;  %v2295_v0 = vrot.slane %v2293_v40, 5 }
  0x8d   : > { %6397 = vmatprep.subr.bf16.mxu1 %v6783_v59  ;;  %9918 = vst [vmem:[#allocation5_spill] sm:$0xff] %v7669_v61  ;;  %6446 = vmatpush3.bf16.msra.mxu0 %v6784_v31  ;;  %v7688_v31 = vrot.slane %v2248_v50, 4  ;;  %v2314_v50 = vshrl.u32 %v5715_v9, 16  ;;  %v2317_v63 = vshll.u32 %v5715_v9, 16  ;;  %v2305_v49 = vrot.slane %v2303_v21, 4 }
  0x8e   : > { %6527 = vmatprep.subr.bf16.mxu0 %v7657_v16  ;;  %v2281_v36 = vrot.slane %v2279_v51, 4  ;;  %v7704_v51 = vrot.slane %v2299_v60, 5  ;;  %v7707_v46 = vld [vmem:[%s6973_s6 + $0x44] sm:$0x1]  ;;  %v2327_v13 = vshrl.u32 %v7694_v47, 16  ;;  %v9921_v17 = vrot.slane %v9914_v41, 5 }
  0x8f   : > { %6368 = vmatmul.mubr.bf16.gmra.mxu0 %v5632_v35  ;;  %v2285_v35 = vshll.u32 %v7669_v61, 16  ;;  %v9922_v58 = vrot.slane %v7584_v2, 9  ;;  %v7728_v40 = vld [vmem:[%s6973_s6 + $0x4c] sm:$0xf]  ;;  %v2316_v60 = vrot.slane %v2314_v50, 4  ;;  %v2319_v21 = vrot.slane %v2317_v63, 5 }
  0x90   : > { %6398 = vmatpush3.bf16.msra.mxu1 %v6783_v59  ;;  %6371 = vmatprep.mubr.bf16.mxu0 %v5633_v18  ;;  %v2272_v59 = vor.u32 %v2271_v48, %v2268_v11  ;;  %v2309_v18 = vshll.u32 %v7678_v1, 16  ;;  %v2323_v48 = vshll.u32 %v7694_v47, 16  ;;  %v5718_v11 = vld [vmem:[%s6973_s6 + $0x48] sm:$0xf]  ;;  %v2282_v9 = vor.u32 %v2281_v36, %v7690_v52 }
  0x91   : > { %6479 = vmatprep.subr.bf16.mxu1 %v7652_v37  ;;  %v2329_v2 = vrot.slane %v2327_v13, 4  ;;  %v7732_v47 = vrot.slane %v2258_v15, 4  ;;  %v2230_v63 = vsel %vm7014_vm2, %v7680_v5, %v7614_v20  ;;  %v2240_v36 = vsel %vm7014_vm2, %v7682_v8, %v7666_v26  ;;  %v5721_v5 = vld [vmem:[%s6973_s6 + $0x54] sm:$0xf] }
  0x92   : > { %v7730_v61 = vrot.slane %v2323_v48, 5  ;;  %v2341_v15 = vshll.u32 %v5718_v11, 16  ;;  %v2333_v50 = vshll.u32 %v7707_v46, 16  ;;  %v2351_v20 = vshrl.u32 %v7728_v40, 16 }
  0x93   : > { %6320 = vmatmul.mubr.bf16.gmra.mxu1 %v5592_v55  ;;  %v7718_v55 = vsel %vm7325_vm5, %v9922_v58, %v9921_v17  ;;  %v7734_v17 = vrot.slane %v2272_v59, 4  ;;  %v7736_v58 = vrot.slane %v2285_v35, 5  ;;  %v2347_v59 = vshll.u32 %v7728_v40, 16 }
  0x94   : > { %6323 = vmatprep.mubr.bf16.mxu1 %v5593_v34  ;;  %v9923_v34 = vrot.slane %v9917_v6, 5  ;;  %v2338_v6 = vshrl.u32 %v5718_v11, 16  ;;  %v9925_v35 = vcombine.low %v7509_v45, %v7525_v42  ;;  %v7757_v48 = vrot.slane %v2282_v9, 4  ;;  %v7763_v11 = vld [vmem:[%s6973_s6 + $0x58] sm:$0xf] }
  0x95   : > { %v7759_v13 = vrot.slane %v2309_v18, 5  ;;  %v2320_v26 = vor.u32 %v2319_v21, %v2316_v60  ;;  %v2330_v8 = vor.u32 %v2329_v2, %v7730_v61  ;;  %v9926_v45 = vcombine.low %v7104_v14, %v7111_v23  ;;  %v7769_v42 = vld [vmem:[%s6973_s6 + $0x50] sm:$0x1] }
  0x96   : > { %v7724_v4 = vsel %vm7325_vm5, %v1459_v56, %v9923_v34  ;;  %v9924_v56 = vcombine.low %v7489_v7, %v7501_v22  ;;  %v2296_v7 = vor.u32 %v2295_v0, %v2292_v54  ;;  %v2306_v22 = vor.u32 %v2305_v49, %v7704_v51 }
  0x97   : > { %v2340_v49 = vrot.slane %v2338_v6, 4  ;;  %v2343_v54 = vrot.slane %v2341_v15, 5  ;;  %v7771_v0 = vrot.slane %v2347_v59, 5  ;;  %v2353_v18 = vrot.slane %v2351_v20, 4  ;;  %v5724_v6 = vld [vmem:[%s6973_s6 + $0x60] sm:$0xf] }
  0x98   : > { %6372 = vmatmul.mubr.bf16.gmra.mxu0 %v9924_v56  ;;  %v9927_v34 = vcombine.low %v7156_v19, %v7162_v32  ;;  %v2362_v9 = vshrl.u32 %v5721_v5, 16  ;;  %v2365_v60 = vshll.u32 %v5721_v5, 16  ;;  %v7776_v21 = vrot.slane %v2296_v7, 4  ;;  %v7793_v32 = vld [vmem:[%s6973_s6 + $0x64] sm:$0xf] }
  0x99   : > { %6375 = vmatprep.mubr.bf16.mxu0 %v9925_v35  ;;  %v7778_v2 = vrot.slane %v2306_v22, 4  ;;  %v7780_v14 = vrot.slane %v2333_v50, 5  ;;  %v2371_v23 = vshll.u32 %v7763_v11, 16  ;;  %v5638_v56 = vcombine.low %v7718_v55, %v7724_v4  ;;  %v7789_v35 = vld [vmem:[%s6973_s6 + $0x5c] sm:$0x1] }
  0x9a   : > { %v5751_v15 = vcombine.low %v2230_v63, %v2240_v36  ;;  %v7786_v59 = vrot.slane %v2320_v26, 4  ;;  %v2375_v19 = vshrl.u32 %v7763_v11, 16  ;;  %v7795_v7 = vrot.slane %v2330_v8, 4 }
  0x9b   : > { %6324 = vmatmul.mubr.bf16.gmra.mxu1 %v9926_v45  ;;  %v2357_v22 = vshll.u32 %v7769_v42, 16  ;;  %v2386_v50 = vshrl.u32 %v5724_v6, 16  ;;  %v2389_v20 = vshll.u32 %v5724_v6, 16  ;;  %v9928_v5 = vcombine.low %v7529_v27, %v7557_v38 }
  0x9c   : > { %6327 = vmatprep.mubr.bf16.mxu1 %v9927_v34  ;;  %v2344_v55 = vor.u32 %v2343_v54, %v2340_v49  ;;  %v2354_v4 = vor.u32 %v2353_v18, %v7771_v0  ;;  %v2364_v63 = vrot.slane %v2362_v9, 4  ;;  %v2367_v36 = vrot.slane %v2365_v60, 5  ;;  %v7833_v9 = vld [vmem:[%s6973_s6 + $0x70] sm:$0xf] }
  0x9d   : > { %v9929_v26 = vcombine.low %v7539_v3, %v7569_v30  ;;  %v7805_v8 = vrot.slane %v2371_v23, 5  ;;  %v2377_v45 = vrot.slane %v2375_v19, 4  ;;  %v2381_v34 = vshll.u32 %v7789_v35, 16 }
  0x9e   : > { %v2395_v27 = vshll.u32 %v7793_v32, 16  ;;  %v2254_v38 = vsel %vm7014_vm2, %v7688_v31, %v7675_v12  ;;  %v2264_v3 = vsel %vm7014_vm2, %v7732_v47, %v7684_v39  ;;  %v2388_v30 = vrot.slane %v2386_v50, 4  ;;  %v5727_v47 = vld [vmem:[%s6973_s6 + $0x6c] sm:$0xf] }
  0x9f   : > { %v2391_v49 = vrot.slane %v2389_v20, 5  ;;  %v9930_v54 = vcombine.low %v7198_v10, %v7207_v29  ;;  %v2278_v18 = vsel %vm7014_vm2, %v7734_v17, %v7690_v52  ;;  %v2288_v12 = vsel %vm7014_vm2, %v7757_v48, %v7736_v58  ;;  %v7841_v17 = vld [vmem:[%s6973_s6 + $0x68] sm:$0x1] }
  0xa0   : > { %6376 = vmatmul.mubr.bf16.gmra.mxu0 %v9928_v5  ;;  %v7828_v31 = vrot.slane %v2357_v22, 5  ;;  %v2399_v39 = vshrl.u32 %v7793_v32, 16  ;;  %v9931_v10 = vcombine.low %v9912_v25, %v7262_v53  ;;  %v7838_v29 = vrot.slane %v2344_v55, 4  ;;  %v6785_v53 = vld [vmem:[%s6973_s6 + $0xc] sm:$0xff]  }
  0xa1   : > { %6379 = vmatprep.mubr.bf16.mxu0 %v9929_v26  ;;  %v2368_v52 = vor.u32 %v2367_v36, %v2364_v63  ;;  %v2410_v60 = vshrl.u32 %v5727_v47, 16  ;;  %v2413_v58 = vshll.u32 %v5727_v47, 16  ;;  %v7843_v48 = vrot.slane %v2354_v4, 4  ;;  %v7854_v63 = vld [vmem:[%s6973_s6 + $0x74] sm:$0x1] }
  0xa2   : > { %v2378_v23 = vor.u32 %v2377_v45, %v7805_v8  ;;  %v7846_v6 = vrot.slane %v2381_v34, 5  ;;  %v2419_v19 = vshll.u32 %v7833_v9, 16  ;;  %v2392_v25 = vor.u32 %v2391_v49, %v2388_v30  ;;  %v5730_v26 = vld [vmem:[%s6973_s6 + $0x78] sm:$0xf]  ;;  %v7858_v45 = vld [vmem:[%s6973_s6 + $0x7c] sm:$0xf] }
  0xa3   : > { %6328 = vmatmul.mubr.bf16.gmra.mxu1 %v9930_v54  ;;  %v7850_v22 = vrot.slane %v2395_v27, 5  ;;  %v2401_v50 = vrot.slane %v2399_v39, 4  ;;  %v2423_v20 = vshrl.u32 %v7833_v9, 16  ;;  %v5752_v5 = vcombine.low %v2254_v38, %v2264_v3  ;;  %v7865_v27 = vld [vmem:[%s6973_s6 + $0x80] sm:$0x1] }
  0xa4   : > { %6331 = vmatprep.mubr.bf16.mxu1 %v9931_v10  ;;  %v5753_v55 = vcombine.low %v2278_v18, %v2288_v12  ;;  %v2412_v4 = vrot.slane %v2410_v60, 4  ;;  %v2415_v36 = vrot.slane %v2413_v58, 5  ;;  %v7860_v34 = vrot.slane %v2368_v52, 4 }
  0xa5   : > { %v7862_v54 = vrot.slane %v2419_v19, 5  ;;  %v2425_v30 = vrot.slane %v2423_v20, 4  ;;  %v2434_v49 = vshrl.u32 %v5730_v26, 16  ;;  %v2405_v38 = vshll.u32 %v7841_v17, 16  ;;  %v5733_v20 = vld [vmem:[%s6973_s6 + $0x84] sm:$0xf] }
  0xa6   : > { %v2437_v3 = vshll.u32 %v5730_v26, 16  ;;  %v2443_v18 = vshll.u32 %v7858_v45, 16  ;;  %v2447_v12 = vshrl.u32 %v7858_v45, 16  ;;  %v7870_v39 = vrot.slane %v2378_v23, 4  ;;  %v6789_v26 = vld [vmem:[%s6973_s6 + $0x24] sm:$0xff]  }
  0xa7   : > { %v7872_v47 = vrot.slane %v2392_v25, 4  ;;  %v2436_v10 = vrot.slane %v2434_v49, 4  ;;  %v9932_v52 = vcombine.low %v9915_v44, %v9914_v41  ;;  %v2302_v23 = vsel %vm7014_vm2, %v7776_v21, %v7704_v51 }
  0xa8   : > { %6380 = vmatmul.mubr.bf16.gmra.mxu0 %v5638_v56  ;;  %v2402_v56 = vor.u32 %v2401_v50, %v7850_v22  ;;  %v2439_v60 = vrot.slane %v2437_v3, 5  ;;  %v7878_v58 = vrot.slane %v2443_v18, 5  ;;  %v2449_v19 = vrot.slane %v2447_v12, 4  ;;  %v7927_v18 = vld [vmem:[%s6973_s6 + $0x8c] sm:$0x1] }
  0xa9   : > { %6447 = vmatprep.mubr.bf16.mxu0 %v5751_v15  ;;  %v2416_v15 = vor.u32 %v2415_v36, %v2412_v4  ;;  %v2426_v25 = vor.u32 %v2425_v30, %v7862_v54  ;;  %v2429_v50 = vshll.u32 %v7854_v63, 16  ;;  %v2453_v41 = vshll.u32 %v7865_v27, 16  ;;  %v7901_v4 = vld [vmem:[%s6973_s6 + $0x88] sm:$0xf]  ;;  %v6786_v36 = vld [vmem:[%s6973_s6 + $0x18] sm:$0xff]  }
  0xaa   : > { %v2312_v44 = vsel %vm7014_vm2, %v7778_v2, %v7759_v13  ;;  %v2336_v51 = vsel %vm7014_vm2, %v7795_v7, %v7780_v14  ;;  %v2440_v21 = vor.u32 %v2439_v60, %v2436_v10  ;;  %v6792_v13 = vld [vmem:[%s9871_s1 + $0x1b0] sm:$0xff]   ;;  %v7908_v2 = vrot.slane %v2405_v38, 5  ;;  %v7932_v12 = vld [vmem:[%s9871_s1 + $0x1a8] sm:$0xff]  }
  0xab   : > { %6332 = vmatmul.mubr.bf16.gmra.mxu1 %v9932_v52  ;;  %v2461_v30 = vshll.u32 %v5733_v20, 16  ;;  %v6791_v14 = vld [vmem:[%s9871_s1 + $0x170] sm:$0xff]   ;;  %v2350_v7 = vsel %vm7014_vm2, %v7838_v29, %v7771_v0  ;;  %v2360_v49 = vsel %vm7014_vm2, %v7843_v48, %v7828_v31  ;;  %v7922_v38 = vrot.slane %v2402_v56, 4 }
  0xac   : > { %6399 = vmatprep.mubr.bf16.mxu1 %v6785_v53  ;;  %v2326_v53 = vsel %vm7014_vm2, %v7786_v59, %v7730_v61  ;;  %v2450_v61 = vor.u32 %v2449_v19, %v7878_v58  ;;  %v2458_v59 = vshrl.u32 %v5733_v20, 16  ;;  %v7924_v3 = vrot.slane %v2416_v15, 4  ;;  %v5736_v15 = vld [vmem:[%s6973_s6 + $0x90] sm:$0xf]  ;;  %v7955_v60 = vld [vmem:[%s6973_s6 + $0x94] sm:$0xf] }
  0xad   : > { %v7934_v0 = vrot.slane %v2426_v25, 4  ;;  %v7936_v29 = vrot.slane %v2429_v50, 5  ;;  %v2467_v31 = vshll.u32 %v7901_v4, 16  ;;  %v2471_v48 = vshrl.u32 %v7901_v4, 16  ;;  %9933 = vst [vmem:[#allocation8_spill] sm:$0xff] %v7955_v60 }
  0xae   : > { %v2384_v56 = vsel %vm7014_vm2, %v7870_v39, %v7846_v6  ;;  %v7949_v10 = vrot.slane %v2440_v21, 4  ;;  %v7951_v52 = vrot.slane %v2453_v41, 5  ;;  %v2463_v19 = vrot.slane %v2461_v30, 5  ;;  %v6795_v6 = vld [vmem:[%s9871_s1 + $0x168] sm:$0xff]  }
  0xaf   : > { %v2485_v39 = vshll.u32 %v5736_v15, 16  ;;  %v2491_v25 = vshll.u32 %v7955_v60, 16  ;;  %v2495_v50 = vshrl.u32 %v7955_v60, 16  ;;  %v5754_v41 = vcombine.low %v2302_v23, %v2312_v44 }
  0xb0   : > { %6448 = vmatmul.mubr.bf16.vlgmr.msra.gmra.mxu0 %v5752_v5  ;;  %v2374_v5 = vsel %vm7014_vm2, %v7860_v34, %v7805_v8  ;;  %v2477_v8 = vshll.u32 %v7927_v18, 16  ;;  %v2482_v34 = vshrl.u32 %v5736_v15, 16  ;;  %v5755_v21 = vcombine.low %v2326_v53, %v2336_v51 }
  0xb1   : > { %6528 = vmatpush3.bf16.msra.mxu0 %v7657_v16  ;;  %6451 = vmatprep.mubr.bf16.mxu0 %v5753_v55  ;;  %v7957_v16 = vrot.slane %v2450_v61, 4  ;;  %v2460_v55 = vrot.slane %v2458_v59, 4  ;;  %v7966_v20 = vrot.slane %v2467_v31, 5  ;;  %v6790_v61 = vld [vmem:[%s6973_s6 + $0x30] sm:$0xff]   ;;  %v6800_v59 = vld [vmem:[%s9871_s1 + $0x1a0] sm:$0xff]   ;;  %v2487_v15 = vrot.slane %v2485_v39, 5 }
  0xb2   : > { %6529 = vmatprep.subr.bf16.mxu0 %v6792_v13  ;;  %v2484_v30 = vrot.slane %v2482_v34, 4  ;;  %v2497_v23 = vrot.slane %v2495_v50, 4  ;;  %v7974_v44 = vcombine.low %v2350_v7, %v2360_v49  ;;  %v7977_v53 = vcombine.low %v2374_v5, %v2384_v56  ;;  %v5739_v31 = vld [vmem:[%s6973_s6 + $0x9c] sm:$0xf]  ;;  %v7999_v5 = vld [vmem:[%s6973_s6 + $0xa4] sm:$0x1] }
  0xb3   : > { %6400 = vmatmul.mubr.bf16.vlgmr.msra.gmra.mxu1 %v6786_v36  ;;  %v2473_v36 = vrot.slane %v2471_v48, 4  ;;  %v2464_v49 = vor.u32 %v2463_v19, %v2460_v55  ;;  %v7996_v48 = vld [vmem:[%s6973_s6 + $0xa0] sm:$0xf]  ;;  %9936 = vst [vmem:[#allocation11_spill] sm:$0xff] %v7999_v5  ;;  %v2506_v56 = vshrl.u32 %v5739_v31, 16  ;;  %v2509_v34 = vshll.u32 %v5739_v31, 16 }
  0xb4   : > { %6480 = vmatpush3.bf16.msra.mxu1 %v7652_v37  ;;  %6403 = vmatprep.mubr.bf16.mxu1 %v6789_v26  ;;  %v7972_v37 = vrot.slane %v2491_v25, 5  ;;  %v2408_v26 = vsel %vm7014_vm2, %v7922_v38, %v7908_v2  ;;  %9935 = vst [vmem:[#allocation10_spill] sm:$0xff] %v7996_v48  ;;  %v6793_v39 = vld [vmem:[%s6973_s6 + $0x3c] sm:$0xff]   ;;  %v2515_v38 = vshll.u32 %v7996_v48, 16  ;;  %v2519_v25 = vshrl.u32 %v7996_v48, 16 }
  0xb5   : > { %6481 = vmatprep.subr.bf16.mxu1 %v6791_v14  ;;  %6530 = vmatpush3.bf16.msra.mxu0 %v6792_v13  ;;  %v7988_v13 = vld [vmem:[%s6973_s6 + $0x98] sm:$0x1]  ;;  %v2474_v2 = vor.u32 %v2473_v36, %v7966_v20  ;;  %v6799_v55 = vld [vmem:[%s9871_s1 + $0x160] sm:$0xff]   ;;  %v2488_v19 = vor.u32 %v2487_v15, %v2484_v30  ;;  %v2508_v31 = vrot.slane %v2506_v56, 4  ;;  %v2511_v50 = vrot.slane %v2509_v34, 5 }
  0xb6   : > { %6531 = vmatprep.subr.bf16.mxu0 %v7932_v12  ;;  %9934 = vst [vmem:[#allocation9_spill] sm:$0xff] %v7988_v13  ;;  %v2501_v36 = vshll.u32 %v7988_v13, 16  ;;  %v2521_v7 = vrot.slane %v2519_v25, 4  ;;  %v2525_v51 = vshll.u32 %v7999_v5, 16  ;;  %v5742_v48 = vld [vmem:[%s6973_s6 + $0xa8] sm:$0xf] }
  0xb7   : > { %v6803_v30 = vld [vmem:[%s9871_s1 + $0x158] sm:$0xff]   ;;  %v8022_v15 = vrot.slane %v2464_v49, 4  ;;  %v2530_v56 = vshrl.u32 %v5742_v48, 16  ;;  %v2533_v34 = vshll.u32 %v5742_v48, 16  ;;  %v8035_v5 = vld [vmem:[%s6973_s6 + $0xb0] sm:$0x1] }
  0xb8   : > { %6452 = vmatmul.mubr.bf16.gmra.mxu0 %v5754_v41  ;;  %6482 = vmatpush3.bf16.msra.mxu1 %v6791_v14  ;;  %v6804_v14 = vld [vmem:[%s9871_s1 + $0x198] sm:$0xff]   ;;  %v2498_v41 = vor.u32 %v2497_v23, %v7972_v37  ;;  %v8024_v23 = vrot.slane %v2477_v8, 5  ;;  %v6794_v49 = vld [vmem:[%s6973_s6 + $0x48] sm:$0xff]   ;;  %v8038_v8 = vrot.slane %v2474_v2, 4  ;;  %v8040_v13 = vrot.slane %v2488_v19, 4 }
  0xb9   : > { %6455 = vmatprep.mubr.bf16.mxu0 %v5755_v21  ;;  %6483 = vmatprep.subr.bf16.mxu1 %v6795_v6  ;;  %v8015_v21 = vrot.slane %v2515_v38, 5  ;;  %v2512_v38 = vor.u32 %v2511_v50, %v2508_v31  ;;  %v8042_v60 = vrot.slane %v2501_v36, 5  ;;  %v6807_v50 = vld [vmem:[%s9871_s1 + $0x150] sm:$0xff]   ;;  %v8059_v19 = vrot.slane %v2533_v34, 5 }
  0xba   : > { %6532 = vmatpush3.bf16.msra.mxu0 %v7932_v12  ;;  %v8027_v12 = vld [vmem:[%s6973_s6 + $0xac] sm:$0xf]  ;;  %v2549_v36 = vshll.u32 %v8035_v5, 16 }
  0xbb   : > { %6404 = vmatmul.mubr.bf16.gmra.mxu1 %v6790_v61  ;;  %6533 = vmatprep.subr.bf16.mxu0 %v6800_v59  ;;  %9937 = vst [vmem:[#allocation12_spill] sm:$0xff] %v8027_v12  ;;  %v2432_v61 = vsel %vm7014_vm2, %v7934_v0, %v7936_v29  ;;  %v2522_v25 = vor.u32 %v2521_v7, %v8015_v21  ;;  %v2539_v48 = vshll.u32 %v8027_v12, 16  ;;  %v6797_v0 = vld [vmem:[%s6973_s6 + $0x54] sm:$0xff]   ;;  %v8049_v29 = vrot.slane %v2498_v41, 4 }
  0xbc   : > { %6407 = vmatprep.mubr.bf16.mxu1 %v6793_v39  ;;  %6484 = vmatpush3.bf16.msra.mxu1 %v6795_v6  ;;  %v6808_v6 = vld [vmem:[%s9871_s1 + $0x190] sm:$0xff]   ;;  %v8051_v7 = vrot.slane %v2525_v51, 5  ;;  %v8053_v39 = vrot.slane %v2530_v56, 4  ;;  %v2543_v2 = vshrl.u32 %v8027_v12, 16  ;;  %v8068_v41 = vrot.slane %v2512_v38, 4 }
  0xbd   : > { %6485 = vmatprep.subr.bf16.mxu1 %v6799_v55  ;;  %v8070_v31 = vrot.slane %v2522_v25, 4  ;;  %v5745_v56 = vld [vmem:[%s6973_s6 + $0xb4] sm:$0xf]  ;;  %v8074_v12 = vld [vmem:[%s6973_s6 + $0xb8] sm:$0xf]  ;;  %v6811_v25 = vld [vmem:[%s9871_s1 + $0x148] sm:$0xff]  }
  0xbe   : > { %6534 = vmatpush3.bf16.msra.mxu0 %v6800_v59  ;;  %v9938_v59 = vsel %vm7014_vm2, %v7872_v47, %v7850_v22  ;;  %9939 = vst [vmem:[#allocation13_spill] sm:$0xff] %v8074_v12  ;;  %v2446_v22 = vsel %vm7014_vm2, %v7949_v10, %v7878_v58  ;;  %v8086_v47 = vrot.slane %v2539_v48, 5  ;;  %v5748_v38 = vld [vmem:[%s6973_s6 + $0xc0] sm:$0xf]  ;;  %v2456_v58 = vsel %vm7014_vm2, %v7957_v16, %v7951_v52  ;;  %v8113_v48 = vld [vmem:[%s6973_s6 + $0xc4] sm:$0xf] }
  0xbf   : > { %6535 = vmatprep.subr.bf16.mxu0 %v6804_v14  ;;  %v5758_v51 = vcombine.low %v9938_v59, %v2408_v26  ;;  %v2554_v26 = vshrl.u32 %v5745_v56, 16  ;;  %v2470_v10 = vsel %vm7014_vm2, %v8022_v15, %v7966_v20  ;;  %9942 = vst [vmem:[#allocation15_spill] sm:$0xff] %v8113_v48  ;;  %v8116_v52 = vld [vmem:[%s6973_s6 + $0xc8] sm:$0x1]  ;;  %v2587_v59 = vshll.u32 %v8113_v48, 16 }
  0xc0   : > { %6456 = vmatmul.mubr.bf16.gmra.mxu0 %v7974_v44  ;;  %6486 = vmatpush3.bf16.msra.mxu1 %v6799_v55  ;;  %v9940_v44 = vsel %vm7014_vm2, %v7924_v3, %v7862_v54  ;;  %v2545_v55 = vrot.slane %v2543_v2, 4  ;;  %v2557_v54 = vshll.u32 %v5745_v56, 16  ;;  %v2563_v3 = vshll.u32 %v8074_v12, 16 }
  0xc1   : > { %6459 = vmatprep.mubr.bf16.mxu0 %v7977_v53  ;;  %v5759_v34 = vcombine.low %v9940_v44, %v2432_v61  ;;  %6487 = vmatprep.subr.bf16.mxu1 %v6803_v30  ;;  %v6812_v53 = vld [vmem:[%s9871_s1 + $0x188] sm:$0xff]   ;;  %v2567_v61 = vshrl.u32 %v8074_v12, 16  ;;  %v2556_v16 = vrot.slane %v2554_v26, 4  ;;  %v9943_v56 = vrot.slane %v7521_v33, 5 }
  0xc2   : > { %6536 = vmatpush3.bf16.msra.mxu0 %v6804_v14  ;;  %v2480_v14 = vsel %vm7014_vm2, %v8038_v8, %v8024_v23  ;;  %v2559_v20 = vrot.slane %v2557_v54, 5  ;;  %v8118_v15 = vrot.slane %v2563_v3, 5  ;;  %v2578_v23 = vshrl.u32 %v5748_v38, 16  ;;  %v6798_v3 = vld [vmem:[%s6973_s6 + $0x60] sm:$0xff]  }
  0xc3   : > { %6408 = vmatmul.mubr.bf16.gmra.mxu1 %v6794_v49  ;;  %6537 = vmatprep.subr.bf16.mxu0 %v6808_v6  ;;  %v8110_v49 = vld [vmem:[%s6973_s6 + $0xbc] sm:$0x1]  ;;  %v2569_v2 = vrot.slane %v2567_v61, 4  ;;  %v2581_v8 = vshll.u32 %v5748_v38, 16  ;;  %v8123_v44 = vrot.slane %v9943_v56, 4  ;;  %v8128_v26 = vrot.slane %v2549_v36, 5 }
  0xc4   : > { %9941 = vst [vmem:[#allocation14_spill] sm:$0xff] %v8110_v49  ;;  %6411 = vmatprep.mubr.bf16.mxu1 %v6797_v0  ;;  %6488 = vmatpush3.bf16.msra.mxu1 %v6803_v30  ;;  %v2536_v0 = vor.u32 %v8059_v19, %v8053_v39  ;;  %v2546_v30 = vor.u32 %v2545_v55, %v8086_v47  ;;  %v2591_v54 = vshrl.u32 %v8113_v48, 16  ;;  %v2573_v61 = vshll.u32 %v8110_v49, 16  ;;  %v6801_v39 = vld [vmem:[%s6973_s6 + $0x6c] sm:$0xff]   ;;  %v8148_v49 = vld [vmem:[%s6973_s6 + $0x18] sm:$0xe] }
  0xc5   : > { %6489 = vmatprep.subr.bf16.mxu1 %v6807_v50  ;;  %v2580_v38 = vrot.slane %v2578_v23, 4  ;;  %v2583_v12 = vrot.slane %v2581_v8, 5  ;;  %v8133_v56 = vrot.slane %v2587_v59, 5  ;;  %v2560_v19 = vor.u32 %v2559_v20, %v2556_v16  ;;  %v6815_v23 = vld [vmem:[%s9871_s1 + $0x140] sm:$0xff]   ;;  %v8145_v59 = vld [vmem:[%s6973_s6 + $0xc] sm:$0xe] }
  0xc6   : > { %6538 = vmatpush3.bf16.msra.mxu0 %v6808_v6  ;;  %v6816_v6 = vld [vmem:[%s9871_s1 + $0x180] sm:$0xff]   ;;  %v2570_v36 = vor.u32 %v2569_v2, %v8118_v15  ;;  %v2593_v55 = vrot.slane %v2591_v54, 4  ;;  %v2597_v48 = vshll.u32 %v8116_v52, 16  ;;  %v5760_v16 = vcombine.low %v2446_v22, %v2456_v58 }
  0xc7   : > { %6539 = vmatprep.subr.bf16.mxu0 %v6812_v53  ;;  %v2584_v8 = vor.u32 %v2583_v12, %v2580_v38  ;;  %v5761_v20 = vcombine.low %v2470_v10, %v2480_v14  ;;  %v8156_v2 = vrot.slane %v2536_v0, 4  ;;  %v8158_v12 = vrot.slane %v2546_v30, 4  ;;  %v6802_v10 = vld [vmem:[%s6973_s6 + $0x78] sm:$0xff]   ;;  %v6805_v38 = vld [vmem:[%s6973_s6 + $0x84] sm:$0xff]  }
  0xc8   : > { %6460 = vmatmul.mubr.bf16.gmra.mxu0 %v5758_v51  ;;  %6490 = vmatpush3.bf16.msra.mxu1 %v6807_v50  ;;  %v8153_v50 = vld [vmem:[%s9871_s1 + $0x238] sm:$0xff]   ;;  %v2594_v51 = vor.u32 %v2593_v55, %v8133_v56  ;;  %v8167_v54 = vrot.slane %v2570_v36, 4  ;;  %v8169_v22 = vrot.slane %v2573_v61, 5  ;;  %v8175_v0 = vrot.slane %v2597_v48, 5  ;;  %v5778_v61 = vld [vmem:[%s6973_s6 + $0x30] sm:$0xe] }
  0xc9   : > { %6463 = vmatprep.mubr.bf16.mxu0 %v5759_v34  ;;  %6491 = vmatprep.subr.bf16.mxu1 %v6811_v25  ;;  %v8163_v34 = vld [vmem:[%s9871_s1 + $0x1f8] sm:$0xff]   ;;  %v8173_v14 = vrot.slane %v2584_v8, 4  ;;  %v2991_v30 = vrot.slane %v7595_v43, 5  ;;  %v9944_v36 = vld [vmem:[#allocation4_spill] sm:$0xff]  ;;  %v5794_v48 = vrot.slane %v5778_v61, 9  ;;  %v9945_v8 = vld [vmem:[#allocation7_spill] sm:$0xff] }
  0xca   : > { %6540 = vmatpush3.bf16.msra.mxu0 %v6812_v53  ;;  %v8165_v53 = vrot.slane %v2560_v19, 4  ;;  %v3009_v58 = vrot.slane %v9945_v8, 5  ;;  %v3012_v19 = vrot.slane %v7678_v1, 5  ;;  %v9947_v61 = vld [vmem:[#allocation5_spill] sm:$0xff]  ;;  %v2528_v1 = vsel %vm7014_vm2, %v8070_v31, %v8051_v7 }
  0xcb   : > { %6412 = vmatmul.mubr.bf16.gmra.mxu1 %v6798_v3  ;;  %6541 = vmatprep.subr.bf16.mxu0 %v6816_v6  ;;  %v9946_v3 = vld [vmem:[#allocation6_spill] sm:$0xff]  ;;  %v3026_v31 = vrot.slane %v7769_v42, 5 }
  0xcc   : > { %6415 = vmatprep.mubr.bf16.mxu1 %v6801_v39  ;;  %6492 = vmatpush3.bf16.msra.mxu1 %v6811_v25  ;;  %v8180_v25 = vrot.slane %v2594_v51, 4  ;;  %v2995_v39 = vrot.slane %v7612_v62, 5  ;;  %v2494_v51 = vsel %vm7014_vm2, %v8040_v13, %v7972_v37  ;;  %v3016_v55 = vrot.slane %v9946_v3, 5  ;;  %v5779_v13 = vld [vmem:[%s6973_s6 + $0x3c] sm:$0xe] }
  0xcd   : > { %6493 = vmatprep.subr.bf16.mxu1 %v6815_v23  ;;  %v8202_v8 = vsel %vm7325_vm5, %v5794_v48, %v3009_v58  ;;  %v3011_v37 = vrot.slane %v3009_v58, 4  ;;  %v5795_v3 = vrot.slane %v5779_v13, 9  ;;  %v6806_v48 = vld [vmem:[%s6973_s6 + $0x90] sm:$0xff]   ;;  %v3033_v13 = vrot.slane %v7789_v35, 5 }
  0xce   : > { %6542 = vmatpush3.bf16.msra.mxu0 %v6816_v6  ;;  %v2504_v6 = vsel %vm7014_vm2, %v8049_v29, %v8042_v60  ;;  %v2518_v60 = vsel %vm7014_vm2, %v8068_v41, %v8015_v21  ;;  %v3018_v29 = vrot.slane %v3016_v55, 4  ;;  %v3023_v21 = vrot.slane %v7728_v40, 5 }
  0xcf   : > { %6623 = vmatprep.subr.bf16.mxu0 %v8153_v50  ;;  %v8216_v58 = vsel %vm7325_vm5, %v3011_v37, %v3012_v19  ;;  %v5763_v19 = vcombine.low %v2518_v60, %v2528_v1  ;;  %v8231_v40 = vsel %vm7325_vm5, %v5795_v3, %v3016_v55  ;;  %v2542_v37 = vsel %vm7014_vm2, %v8156_v2, %v8086_v47  ;;  %v5781_v55 = vld [vmem:[%s6973_s6 + $0x54] sm:$0xe] }
  0xd0   : > { %6464 = vmatmul.mubr.bf16.gmra.mxu0 %v5760_v16  ;;  %6494 = vmatpush3.bf16.msra.mxu1 %v6815_v23  ;;  %v3005_v16 = vrot.slane %v9947_v61, 5  ;;  %v3019_v23 = vrot.slane %v7707_v46, 5  ;;  %v5810_v41 = vcombine.low %v8202_v8, %v8216_v58  ;;  %v5780_v46 = vld [vmem:[%s6973_s6 + $0x48] sm:$0xe]  ;;  %v2552_v47 = vsel %vm7014_vm2, %v8158_v12, %v8128_v26  ;;  %v6826_v8 = vld [vmem:[%s6973_s6 + $0x54] sm:$0xff]  }
  0xd1   : > { %6467 = vmatprep.mubr.bf16.mxu0 %v5761_v20  ;;  %6575 = vmatprep.subr.bf16.mxu1 %v8163_v34  ;;  %v5762_v20 = vcombine.low %v2494_v51, %v2504_v6  ;;  %v3025_v51 = vrot.slane %v3023_v21, 4  ;;  %v6809_v6 = vld [vmem:[%s6973_s6 + $0x9c] sm:$0xff]   ;;  %v3037_v3 = vrot.slane %v7793_v32, 5  ;;  %v2566_v35 = vsel %vm7014_vm2, %v8165_v53, %v8118_v15 }
  0xd2   : > { %v8223_v7 = vsel %vm7325_vm5, %v3018_v29, %v3019_v23  ;;  %v5797_v29 = vrot.slane %v5781_v55, 9  ;;  %v5782_v23 = vld [vmem:[%s6973_s6 + $0x60] sm:$0xe]  ;;  %v3040_v26 = vrot.slane %v7841_v17, 5  ;;  %v2576_v12 = vsel %vm7014_vm2, %v8167_v54, %v8169_v22 }
  0xd3   : > { %6416 = vmatmul.mubr.bf16.gmra.mxu1 %v6802_v10  ;;  %v3030_v10 = vrot.slane %v7763_v11, 5  ;;  %v5811_v42 = vcombine.low %v8231_v40, %v8223_v7  ;;  %v8246_v60 = vsel %vm7325_vm5, %v3025_v51, %v3026_v31  ;;  %v3044_v15 = vrot.slane %v7833_v9, 5  ;;  %v5960_v7 = vld [vmem:[%s6973_s6 + $0x24] sm:$0xe] }
  0xd4   : > { %6419 = vmatprep.mubr.bf16.mxu1 %v6805_v38  ;;  %v5796_v38 = vrot.slane %v5780_v46, 9  ;;  %v3039_v46 = vrot.slane %v3037_v3, 4  ;;  %v5764_v53 = vcombine.low %v2542_v37, %v2552_v47  ;;  %v3047_v9 = vrot.slane %v7854_v63, 5  ;;  %v5784_v37 = vld [vmem:[%s6973_s6 + $0x78] sm:$0xe] }
  0xd5   : > { %v3032_v1 = vrot.slane %v3030_v10, 4  ;;  %v8273_v32 = vsel %vm7325_vm5, %v5797_v29, %v3030_v10  ;;  %v3046_v10 = vrot.slane %v3044_v15, 4  ;;  %v3051_v55 = vrot.slane %v7858_v45, 5 }
  0xd6   : > { %v8242_v11 = vsel %vm7325_vm5, %v5796_v38, %v3023_v21  ;;  %v5798_v21 = vrot.slane %v5782_v23, 9  ;;  %v8285_v54 = vsel %vm7325_vm5, %v3039_v46, %v3040_v26  ;;  %v5765_v38 = vcombine.low %v2566_v35, %v2576_v12 }
  0xd7   : > { %v8301_v47 = vsel %vm7325_vm5, %v3046_v10, %v3047_v9  ;;  %v5800_v63 = vrot.slane %v5784_v37, 9  ;;  %v3058_v29 = vrot.slane %v7901_v4, 5  ;;  %v3053_v45 = vrot.slane %v3051_v55, 4  ;;  %v6817_v9 = vld [vmem:[%s6973_s6 + $0x18] sm:$0xff]  }
  0xd8   : > { %6468 = vmatmul.mubr.bf16.gmra.mxu0 %v5762_v20  ;;  %v8264_v20 = vsel %vm7325_vm5, %v3032_v1, %v3033_v13  ;;  %v8280_v17 = vsel %vm7325_vm5, %v5798_v21, %v3037_v3  ;;  %v3054_v1 = vrot.slane %v7865_v27, 5  ;;  %v3061_v27 = vrot.slane %v7927_v18, 5  ;;  %v5785_v21 = vld [vmem:[%s6973_s6 + $0x84] sm:$0xe]  ;;  %v9952_v37 = vld [vmem:[#allocation10_spill] sm:$0xff] }
  0xd9   : > { %6471 = vmatprep.mubr.bf16.mxu0 %v5763_v19  ;;  %v5783_v19 = vld [vmem:[%s6973_s6 + $0x6c] sm:$0xe]  ;;  %v2590_v3 = vsel %vm7014_vm2, %v8173_v14, %v8133_v56  ;;  %v8313_v35 = vsel %vm7325_vm5, %v5800_v63, %v3051_v55  ;;  %v2600_v4 = vsel %vm7014_vm2, %v8180_v25, %v8175_v0  ;;  %v5801_v26 = vrot.slane %v5785_v21, 9  ;;  %v6829_v63 = vld [vmem:[%s6973_s6 + $0x60] sm:$0xff]  }
  0xda   : > { %v5799_v22 = vrot.slane %v5783_v19, 9  ;;  %v8322_v18 = vsel %vm7325_vm5, %v3053_v45, %v3054_v1  ;;  %v3060_v12 = vrot.slane %v3058_v29, 4  ;;  %v9948_v46 = vrot.slane %v7521_v33, 5  ;;  %v5786_v19 = vld [vmem:[%s6973_s6 + $0x90] sm:$0xe]  ;;  %v9950_v0 = vld [vmem:[#allocation8_spill] sm:$0xff] }
  0xdb   : > { %6420 = vmatmul.mubr.bf16.gmra.mxu1 %v6806_v48  ;;  %v6810_v48 = vld [vmem:[%s6973_s6 + $0xa8] sm:$0xff]   ;;  %v9949_v56 = vrot.slane %v8145_v59, 9  ;;  %v3065_v25 = vrot.slane %v9950_v0, 5  ;;  %v8339_v33 = vsel %vm7325_vm5, %v5801_v26, %v3058_v29  ;;  %v3072_v55 = vrot.slane %v9952_v37, 5 }
  0xdc   : > { %6423 = vmatprep.mubr.bf16.mxu1 %v6809_v6  ;;  %v6813_v6 = vld [vmem:[%s6973_s6 + $0xb4] sm:$0xff]   ;;  %v8297_v13 = vsel %vm7325_vm5, %v5799_v22, %v3044_v15  ;;  %v5777_v15 = vld [vmem:[%s6973_s6 + $0x24] sm:$0xe]  ;;  %v8343_v59 = vsel %vm7325_vm5, %v3060_v12, %v3061_v27  ;;  %v5766_v1 = vcombine.low %v2590_v3, %v2600_v4  ;;  %v2992_v29 = vsel %vm7325_vm5, %v8123_v44, %v2991_v30  ;;  %v5787_v3 = vld [vmem:[%s6973_s6 + $0x9c] sm:$0xe] }
  0xdd   : > { %v2989_v14 = vsel %vm7325_vm5, %v9949_v56, %v9948_v46  ;;  %v9951_v22 = vld [vmem:[#allocation9_spill] sm:$0xff]  ;;  %v3067_v45 = vrot.slane %v3065_v25, 4  ;;  %v6814_v46 = vld [vmem:[%s6973_s6 + $0xc0] sm:$0xff]   ;;  %v2997_v27 = vrot.slane %v2995_v39, 4  ;;  %v3074_v4 = vrot.slane %v3072_v55, 4  ;;  %v9954_v56 = vld [vmem:[#allocation12_spill] sm:$0xff] }
  0xde   : > { %v3068_v10 = vrot.slane %v9951_v22, 5  ;;  %v5803_v12 = vrot.slane %v5787_v3, 9  ;;  %v3079_v43 = vrot.slane %v9954_v56, 5  ;;  %v5788_v0 = vld [vmem:[%s6973_s6 + $0xa8] sm:$0xe]  ;;  %v5807_v22 = vcombine.low %v2989_v14, %v2992_v29 }
  0xdf   : > { %v9958_v29 = vrot.slane %v8148_v49, 9  ;;  %v8487_v44 = vld [vmem:[%s6973_s6 + $0x34] sm:$0xf] }
  0xe0   : > { %6472 = vmatmul.mubr.bf16.gmra.mxu0 %v5764_v53  ;;  %v8364_v26 = vsel %vm7325_vm5, %v3067_v45, %v3068_v10  ;;  %v8377_v10 = vsel %vm7325_vm5, %v5803_v12, %v3072_v55  ;;  %v3081_v37 = vrot.slane %v3079_v43, 4  ;;  %v5789_v55 = vld [vmem:[%s6973_s6 + $0xb4] sm:$0xe]  ;;  %v3911_v40 = vshll.u32 %v8487_v44, 16 }
  0xe1   : > { %6475 = vmatprep.mubr.bf16.mxu0 %v5765_v38  ;;  %v5802_v38 = vrot.slane %v5786_v19, 9  ;;  %v5793_v19 = vrot.slane %v5777_v15, 9  ;;  %v9955_v15 = vrot.slane %v9944_v36, 5  ;;  %v5805_v56 = vrot.slane %v5789_v55, 9 }
  0xe3   : > { %6424 = vmatmul.mubr.bf16.gmra.mxu1 %v6810_v48  ;;  %v9953_v48 = vld [vmem:[#allocation11_spill] sm:$0xff]  ;;  %v3004_v45 = vrot.slane %v9955_v15, 4  ;;  %v9960_v62 = vmov %v9955_v15  ;;  %v3096_v15 = vrot.slane %v8116_v52, 5  ;;  %v5893_v52 = vld [vmem:[%s6973_s6 + $0x30] sm:$0xf] }
  0xe4   : > { %6427 = vmatprep.mubr.bf16.mxu1 %v6813_v6  ;;  %v3075_v21 = vrot.slane %v9953_v48, 5  ;;  %v8359_v6 = vsel %vm7325_vm5, %v5802_v38, %v3065_v25  ;;  %v3082_v25 = vrot.slane %v8035_v5, 5  ;;  %v5804_v38 = vrot.slane %v5788_v0, 9 }
  0xe5   : > { %v9959_v0 = vrot.slane %v7626_v24, 5  ;;  %v3003_v49 = vsel %vm7325_vm5, %v5793_v19, %v9960_v62  ;;  %v3006_v24 = vsel %vm7325_vm5, %v3004_v45, %v3005_v16  ;;  %v8457_v62 = vld [vmem:[%s6973_s6 + $0x28] sm:$0xf] }
  0xe6   : > { %v8371_v30 = vsel %vm7325_vm5, %v3074_v4, %v3075_v21  ;;  %v9956_v21 = vld [vmem:[#allocation13_spill] sm:$0xff]  ;;  %v8386_v5 = vsel %vm7325_vm5, %v5804_v38, %v3079_v43  ;;  %v8390_v14 = vsel %vm7325_vm5, %v3081_v37, %v3082_v25  ;;  %v2996_v4 = vsel %vm7325_vm5, %v9958_v29, %v2995_v39  ;;  %v5790_v38 = vld [vmem:[%s6973_s6 + $0xc0] sm:$0xe] }
  0xe7   : > { %v3086_v3 = vrot.slane %v9956_v21, 5  ;;  %v2999_v25 = vsel %vm7325_vm5, %v2997_v27, %v9959_v0  ;;  %v9961_v39 = vld [vmem:[#allocation15_spill] sm:$0xff]  ;;  %v5806_v19 = vrot.slane %v5790_v38, 9  ;;  %v6824_v21 = vld [vmem:[%s9871_s1 + $0x230] sm:$0xff]   ;;  %v5809_v55 = vcombine.low %v3003_v49, %v3006_v24 }
  0xe8   : > { %6476 = vmatmul.mubr.bf16.gmra.mxu0 %v5766_v1  ;;  %v3093_v37 = vrot.slane %v9961_v39, 5  ;;  %v5808_v16 = vcombine.low %v2996_v4, %v2999_v25  ;;  %v6823_v29 = vld [vmem:[%s9871_s1 + $0x1f0] sm:$0xff]   ;;  %v5890_v0 = vld [vmem:[%s6973_s6 + $0x24] sm:$0xf]  ;;  %v6822_v49 = vld [vmem:[%s6973_s6 + $0x3c] sm:$0xff]   ;;  %v3887_v24 = vshll.u32 %v8457_v62, 16 }
  0xe9   : > { %6543 = vmatprep.mubr.bf16.mxu0 %v6817_v9  ;;  %v9957_v9 = vld [vmem:[#allocation14_spill] sm:$0xff]  ;;  %v3088_v43 = vrot.slane %v3086_v3, 4  ;;  %v8421_v27 = vsel %vm7325_vm5, %v5805_v56, %v3086_v3  ;;  %v6828_v56 = vld [vmem:[%s9871_s1 + $0x228] sm:$0xff]   ;;  %v3878_v38 = vshrl.u32 %v5890_v0, 16 }
  0xea   : > { %v3089_v1 = vrot.slane %v9957_v9, 5  ;;  %v3095_v61 = vrot.slane %v3093_v37, 4  ;;  %v8434_v45 = vsel %vm7325_vm5, %v5806_v19, %v3093_v37  ;;  %v5887_v3 = vld [vmem:[%s6973_s6 + $0x18] sm:$0xf]  ;;  %v6825_v39 = vld [vmem:[%s6973_s6 + $0x48] sm:$0xff]  }
  0xeb   : > { %6428 = vmatmul.mubr.bf16.gmra.mxu1 %v6814_v46  ;;  %v6818_v46 = vld [vmem:[%s6973_s6 + $0x24] sm:$0xff]   ;;  %v3857_v25 = vshll.u32 %v5887_v3, 16  ;;  %v5889_v19 = vld [vmem:[%s6973_s6 + $0x20] sm:$0x1]  ;;  %v3880_v12 = vrot.slane %v3878_v38, 4  ;;  %v3902_v38 = vshrl.u32 %v5893_v52, 16 }
  0xec   : > { %6495 = vmatprep.mubr.bf16.mxu1 %v5807_v22  ;;  %v6821_v22 = vld [vmem:[%s6973_s6 + $0x30] sm:$0xff]   ;;  %v8425_v36 = vsel %vm7325_vm5, %v3088_v43, %v3089_v1  ;;  %v8439_v9 = vsel %vm7325_vm5, %v3095_v61, %v3096_v15  ;;  %v8442_v1 = vld [vmem:[%s6973_s6 + $0x1c] sm:$0xf]  ;;  %v3854_v43 = vshrl.u32 %v5887_v3, 16  ;;  %v6827_v37 = vld [vmem:[%s9871_s1 + $0x1e8] sm:$0xff]   ;;  %v3881_v15 = vshll.u32 %v5890_v0, 16 }
  0xed   : > { %v4624_v4 = vrot.slane %v8442_v1, 5  ;;  %v8477_v0 = vld [vmem:[%s6973_s6 + $0x2c] sm:$0x1] }
  0xee   : > { %v3856_v61 = vrot.slane %v3854_v43, 4  ;;  %v3883_v48 = vrot.slane %v3881_v15, 5  ;;  %v6831_v43 = vld [vmem:[%s9871_s1 + $0x1e0] sm:$0xff]  }
  0xf0   : > { %6544 = vmatmul.mubr.bf16.vlgmr.msra.gmra.mxu0 %v6818_v46  ;;  %v3867_v46 = vshrl.u32 %v8442_v1, 16 }
  0xf1   : > { %6624 = vmatpush3.bf16.msra.mxu0 %v8153_v50  ;;  %6547 = vmatprep.mubr.bf16.mxu0 %v6821_v22  ;;  %v3863_v50 = vshll.u32 %v8442_v1, 16  ;;  %v3891_v22 = vshrl.u32 %v8457_v62, 16 }
  0xf2   : > { %6625 = vmatprep.subr.bf16.mxu0 %v6824_v21 }
  0xf3   : > { %6496 = vmatmul.mubr.bf16.vlgmr.msra.gmra.mxu1 %v5808_v16  ;;  %v5959_v16 = vld [vmem:[%s6973_s6 + $0x18] sm:$0xe]  ;;  %v8472_v3 = vrot.slane %v3863_v50, 5  ;;  %v3873_v50 = vshll.u32 %v5889_v19, 16  ;;  %v3893_v1 = vrot.slane %v3891_v22, 4 }
  0xf4   : > { %6576 = vmatpush3.bf16.msra.mxu1 %v8163_v34  ;;  %6499 = vmatprep.mubr.bf16.mxu1 %v5809_v55  ;;  %v6832_v34 = vld [vmem:[%s9871_s1 + $0x220] sm:$0xff]   ;;  %v3869_v55 = vrot.slane %v3867_v46, 4  ;;  %v8484_v46 = vrot.slane %v3887_v24, 5  ;;  %v6836_v24 = vld [vmem:[%s9871_s1 + $0x218] sm:$0xff]  }
  0xf5   : > { %6577 = vmatprep.subr.bf16.mxu1 %v6823_v29  ;;  %6626 = vmatpush3.bf16.msra.mxu0 %v6824_v21  ;;  %v3859_v21 = vrot.slane %v3857_v25, 5 }
  0xf6   : > { %6627 = vmatprep.subr.bf16.mxu0 %v6828_v56  ;;  %v3870_v22 = vor.u32 %v3869_v55, %v8472_v3  ;;  %v3894_v55 = vor.u32 %v3893_v1, %v8484_v46 }
  0xf8   : > { %6548 = vmatmul.mubr.bf16.gmra.mxu0 %v6822_v49  ;;  %6578 = vmatpush3.bf16.msra.mxu1 %v6823_v29  ;;  %v5975_v49 = vrot.slane %v5959_v16, 9  ;;  %v4627_v29 = vrot.slane %v5889_v19, 5  ;;  %v4626_v19 = vrot.slane %v4624_v4, 4  ;;  %v3897_v16 = vshll.u32 %v8477_v0, 16 }
  0xf9   : > { %6551 = vmatprep.mubr.bf16.mxu0 %v6825_v39  ;;  %6579 = vmatprep.subr.bf16.mxu1 %v6827_v37  ;;  %v3905_v39 = vshll.u32 %v5893_v52, 16  ;;  %v4631_v52 = vrot.slane %v8457_v62, 5  ;;  %v3915_v62 = vshrl.u32 %v8487_v44, 16 }
  0xfa   : > { %6628 = vmatpush3.bf16.msra.mxu0 %v6828_v56  ;;  %v3860_v56 = vor.u32 %v3859_v21, %v3856_v61  ;;  %v6835_v61 = vld [vmem:[%s9871_s1 + $0x1d8] sm:$0xff]   ;;  %v8510_v21 = vrot.slane %v3873_v50, 5  ;;  %v6840_v50 = vld [vmem:[%s9871_s1 + $0x210] sm:$0xff]  }
  0xfb   : > { %6500 = vmatmul.mubr.bf16.gmra.mxu1 %v5810_v41  ;;  %6629 = vmatprep.subr.bf16.mxu0 %v6832_v34  ;;  %v3884_v41 = vor.u32 %v3883_v48, %v3880_v12  ;;  %v3904_v48 = vrot.slane %v3902_v38, 4  ;;  %v3907_v12 = vrot.slane %v3905_v39, 5  ;;  %v8537_v38 = vld [vmem:[%s6973_s6 + $0x40] sm:$0xf]  ;;  %v4633_v51 = vrot.slane %v4631_v52, 4 }
  0xfc   : > { %6503 = vmatprep.mubr.bf16.mxu1 %v5811_v42  ;;  %6580 = vmatpush3.bf16.msra.mxu1 %v6827_v37  ;;  %v8517_v42 = vsel %vm7325_vm5, %v5975_v49, %v4624_v4  ;;  %v5896_v37 = vld [vmem:[%s6973_s6 + $0x3c] sm:$0xf]  ;;  %v8526_v1 = vrot.slane %v3860_v56, 4  ;;  %v8532_v4 = vsel %vm7325_vm5, %v4626_v19, %v4627_v29  ;;  %v8534_v49 = vrot.slane %v3897_v16, 5  ;;  %v6839_v56 = vld [vmem:[%s9871_s1 + $0x1d0] sm:$0xff]  }
  0xfd   : > { %v8482_v25 = vpop.f32.mrf.mxu0  ;;  %v8492_v15 = vpop.f32.mrf.mxu1  ;;  %6581 = vmatprep.subr.bf16.mxu1 %v6831_v43  ;;  %v8544_v23 = vrot.slane %v3884_v41, 4  ;;  %v4634_v29 = vrot.slane %v8477_v0, 5  ;;  %v3895_v19 = vrot.slane %v3894_v55, 4  ;;  %v8548_v16 = vld [vmem:[%s6973_s6 + $0x38] sm:$0x1]  ;;  %v3929_v31 = vshll.u32 %v5896_v37, 16 }
  0xfe   : > { %9962 = vst [vmem:[#allocation4_spill] sm:$0xff] %v8492_v15  ;;  %6630 = vmatpush3.bf16.msra.mxu0 %v6832_v34  ;;  %v8528_v34 = vrot.slane %v3870_v22, 4  ;;  %v5976_v22 = vrot.slane %v5960_v7, 9  ;;  %v3908_v2 = vor.u32 %v3907_v12, %v3904_v48  ;;  %v5961_v41 = vld [vmem:[%s6973_s6 + $0x30] sm:$0xe]  ;;  %v3935_v7 = vshll.u32 %v8537_v38, 16 }
  0xff   : > { %v8503_v58 = vpop.f32.mrf.mxu0  ;;  %v8521_v53 = vpop.f32.mrf.mxu1  ;;  %6631 = vmatprep.subr.bf16.mxu0 %v6836_v24  ;;  %v3939_v0 = vshrl.u32 %v8537_v38, 16  ;;  %v9966_v12 = vcombine.low %v8273_v32, %v8264_v20  ;;  %v8593_v20 = vsel %vm7325_vm5, %v4633_v51, %v4634_v29  ;;  %v3921_v32 = vshll.u32 %v8548_v16, 16  ;;  %v8611_v29 = vld [vmem:[%s6973_s6 + $0x44] sm:$0x1]  ;;  %v5962_v15 = vld [vmem:[%s6973_s6 + $0x3c] sm:$0xe] }
 0x100   : > { %9963 = vst [vmem:[#allocation7_spill] sm:$0xff] %v8521_v53  ;;  %6552 = vmatmul.mubr.bf16.gmra.mxu0 %v6826_v8  ;;  %6582 = vmatpush3.bf16.msra.mxu1 %v6831_v43  ;;  %v8550_v8 = vrot.slane %v3911_v40, 5  ;;  %v3926_v43 = vshrl.u32 %v5896_v37, 16  ;;  %v8552_v53 = vrot.slane %v3915_v62, 4  ;;  %v3866_v40 = vsel %vm7014_vm2, %v8526_v1, %v8472_v3  ;;  %v6830_v62 = vld [vmem:[%s6973_s6 + $0x6c] sm:$0xff]   ;;  %v6833_v37 = vld [vmem:[%s6973_s6 + $0x78] sm:$0xff]  }
 0x101   : > { %v8539_v39 = vpop.f32.mrf.mxu0  ;;  %6555 = vmatprep.mubr.bf16.mxu0 %v6829_v63  ;;  %6583 = vmatprep.subr.bf16.mxu1 %v6835_v61  ;;  %v9964_v63 = vcombine.low %v8242_v11, %v8246_v60  ;;  %v8560_v55 = vpop.f32.mrf.mxu1  ;;  %v3876_v48 = vsel %vm7014_vm2, %v8528_v34, %v8510_v21  ;;  %v4638_v60 = vrot.slane %v8487_v44, 5  ;;  %v3890_v3 = vsel %vm7014_vm2, %v8544_v23, %v8484_v46  ;;  %v5899_v44 = vld [vmem:[%s6973_s6 + $0x48] sm:$0xf]  ;;  %v8604_v34 = vld [vmem:[%s6973_s6 + $0x4c] sm:$0xf] }
 0x102   : > { %6632 = vmatpush3.bf16.msra.mxu0 %v6836_v24  ;;  %9965 = vst [vmem:[#allocation6_spill] sm:$0xff] %v8560_v55  ;;  %v6844_v24 = vld [vmem:[%s9871_s1 + $0x208] sm:$0xff]   ;;  %v8589_v21 = vsel %vm7325_vm5, %v5976_v22, %v4631_v52  ;;  %v3900_v23 = vsel %vm7014_vm2, %v3895_v19, %v8534_v49  ;;  %v5977_v46 = vrot.slane %v5961_v41, 9  ;;  %v3928_v1 = vrot.slane %v3926_v43, 4  ;;  %v6847_v43 = vld [vmem:[%s9871_s1 + $0x1c0] sm:$0xff]  }
 0x103   : > { %6504 = vmatmul.mubr.bf16.gmra.mxu1 %v9964_v63  ;;  %6633 = vmatprep.subr.bf16.mxu0 %v6840_v50  ;;  %v8581_v63 = vpop.f32.mrf.mxu0  ;;  %v3931_v52 = vrot.slane %v3929_v31, 5  ;;  %v8606_v51 = vrot.slane %v3908_v2, 4  ;;  %v3918_v22 = vor.u32 %v8552_v53, %v8550_v8  ;;  %v3941_v11 = vrot.slane %v3939_v0, 4  ;;  %v8615_v55 = vpop.f32.mrf.mxu1  ;;  %v6848_v31 = vld [vmem:[%s9871_s1 + $0x200] sm:$0xff]  }
 0x104   : > { %6507 = vmatprep.mubr.bf16.mxu1 %v9966_v12  ;;  %6584 = vmatpush3.bf16.msra.mxu1 %v6835_v61  ;;  %9967 = vst [vmem:[#allocation5_spill] sm:$0xff] %v8581_v63  ;;  %v6843_v61 = vld [vmem:[%s9871_s1 + $0x1c8] sm:$0xff]   ;;  %v8613_v12 = vrot.slane %v3935_v7, 5  ;;  %9968 = vst [vmem:[#allocation8_spill] sm:$0xff] %v8615_v55  ;;  %v4640_v49 = vrot.slane %v4638_v60, 4  ;;  %v3950_v2 = vshrl.u32 %v5899_v44, 16  ;;  %v8626_v41 = vcombine.low %v3866_v40, %v3876_v48 }
 0x105   : > { %6585 = vmatprep.subr.bf16.mxu1 %v6839_v56  ;;  %v3953_v19 = vshll.u32 %v5899_v44, 16  ;;  %v3963_v0 = vshrl.u32 %v8604_v34, 16  ;;  %v8634_v44 = vrot.slane %v3921_v32, 5  ;;  %v3945_v55 = vshll.u32 %v8611_v29, 16  ;;  %v5902_v40 = vld [vmem:[%s6973_s6 + $0x54] sm:$0xf] }
 0x106   : > { %6634 = vmatpush3.bf16.msra.mxu0 %v6840_v50  ;;  %v4641_v50 = vrot.slane %v8548_v16, 5  ;;  %v3959_v16 = vshll.u32 %v8604_v34, 16  ;;  %v4645_v32 = vrot.slane %v8537_v38, 5  ;;  %v9972_v38 = vcombine.low %v8297_v13, %v8301_v47  ;;  %v6834_v7 = vld [vmem:[%s6973_s6 + $0x84] sm:$0xff]   ;;  %v6837_v48 = vld [vmem:[%s6973_s6 + $0x90] sm:$0xff]  }
 0x107   : > { %6635 = vmatprep.subr.bf16.mxu0 %v6844_v24 }
 0x108   : > { %6556 = vmatmul.mubr.bf16.gmra.mxu0 %v6830_v62  ;;  %v8621_v53 = vpop.f32.mrf.mxu0  ;;  %6586 = vmatpush3.bf16.msra.mxu1 %v6839_v56  ;;  %v8632_v62 = vcombine.low %v3890_v3, %v3900_v23  ;;  %v3932_v56 = vor.u32 %v3931_v52, %v3928_v1  ;;  %v3942_v3 = vor.u32 %v3941_v11, %v8613_v12  ;;  %v8650_v23 = vld [vmem:[%s6973_s6 + $0x58] sm:$0xf]  ;;  %v8657_v52 = vrot.slane %v3918_v22, 4 }
 0x109   : > { %9969 = vst [vmem:[#allocation9_spill] sm:$0xff] %v8621_v53  ;;  %6559 = vmatprep.mubr.bf16.mxu0 %v6833_v37  ;;  %6587 = vmatprep.subr.bf16.mxu1 %v6843_v61  ;;  %v8645_v37 = vsel %vm7325_vm5, %v5977_v46, %v4638_v60  ;;  %v9970_v1 = vcombine.low %v8280_v17, %v8285_v54  ;;  %v3952_v46 = vrot.slane %v3950_v2, 4  ;;  %v3955_v11 = vrot.slane %v3953_v19, 5  ;;  %v5901_v2 = vld [vmem:[%s6973_s6 + $0x50] sm:$0x1] }
 0x10a   : > { %6636 = vmatpush3.bf16.msra.mxu0 %v6844_v24  ;;  %v8655_v24 = vpop.f32.mrf.mxu1  ;;  %v8661_v60 = vsel %vm7325_vm5, %v4640_v49, %v4641_v50  ;;  %v8668_v17 = vpop.f32.mrf.mxu0  ;;  %v5978_v54 = vrot.slane %v5962_v15, 9  ;;  %v3965_v22 = vrot.slane %v3963_v0, 4  ;;  %v3933_v49 = vrot.slane %v3932_v56, 4  ;;  %v5905_v56 = vld [vmem:[%s6973_s6 + $0x60] sm:$0xf] }
 0x10b   : > { %6508 = vmatmul.mubr.bf16.gmra.mxu1 %v9970_v1  ;;  %9971 = vst [vmem:[#allocation10_spill] sm:$0xff] %v8655_v24  ;;  %6637 = vmatprep.subr.bf16.mxu0 %v6848_v31  ;;  %9973 = vst [vmem:[#allocation11_spill] sm:$0xff] %v8668_v17  ;;  %v8670_v1 = vrot.slane %v3959_v16, 5  ;;  %v3974_v24 = vshrl.u32 %v5902_v40, 16  ;;  %v3947_v50 = vrot.slane %v3945_v55, 5  ;;  %v3977_v19 = vshll.u32 %v5902_v40, 16 }
 0x10c   : > { %6511 = vmatprep.mubr.bf16.mxu1 %v9972_v38  ;;  %6588 = vmatpush3.bf16.msra.mxu1 %v6843_v61  ;;  %v3983_v53 = vshll.u32 %v8650_v23, 16  ;;  %v3943_v13 = vrot.slane %v3942_v3, 4  ;;  %v4647_v47 = vrot.slane %v4645_v32, 4  ;;  %v4648_v38 = vrot.slane %v8611_v29, 5  ;;  %v8676_v61 = vpop.f32.mrf.mxu1  ;;  %v8686_v40 = vpop.f32.mrf.mxu0 }
 0x10d   : > { %6589 = vmatprep.subr.bf16.mxu1 %v6847_v43  ;;  %v3987_v15 = vshrl.u32 %v8650_v23, 16  ;;  %9974 = vst [vmem:[#allocation12_spill] sm:$0xff] %v8676_v61  ;;  %v3924_v16 = vsel %vm7014_vm2, %v8657_v52, %v8634_v44  ;;  %v3956_v0 = vor.u32 %v3955_v11, %v3952_v46  ;;  %v3966_v29 = vor.u32 %v3965_v22, %v8670_v1  ;;  %v5963_v61 = vld [vmem:[%s6973_s6 + $0x48] sm:$0xe] }
 0x10e   : > { %6638 = vmatpush3.bf16.msra.mxu0 %v6848_v31  ;;  %v4652_v31 = vrot.slane %v8604_v34, 5  ;;  %v3969_v3 = vshll.u32 %v5901_v2, 16  ;;  %v3976_v17 = vrot.slane %v3974_v24, 4  ;;  %v3979_v63 = vrot.slane %v3977_v19, 5  ;;  %v8711_v11 = vpop.f32.mrf.mxu1 }
 0x10f   : > { %v3938_v44 = vsel %vm7014_vm2, %v3933_v49, %v8613_v12  ;;  %v8695_v34 = vsel %vm7325_vm5, %v5978_v54, %v4645_v32  ;;  %v3948_v52 = vsel %vm7014_vm2, %v3943_v13, %v3947_v50  ;;  %v8703_v24 = vsel %vm7325_vm5, %v4647_v47, %v4648_v38  ;;  %9976 = vst [vmem:[#allocation13_spill] sm:$0xff] %v8711_v11  ;;  %v8714_v50 = vld [vmem:[%s6973_s6 + $0x64] sm:$0xf]  ;;  %v6838_v13 = vld [vmem:[%s6973_s6 + $0x9c] sm:$0xff]   ;;  %v8720_v47 = vpop.f32.mrf.mxu0 }
 0x110   : > { %6560 = vmatmul.mubr.bf16.gmra.mxu0 %v6834_v7  ;;  %6590 = vmatpush3.bf16.msra.mxu1 %v6847_v43  ;;  %v8697_v7 = vrot.slane %v3983_v53, 5  ;;  %v3989_v43 = vrot.slane %v3987_v15, 4  ;;  %v3998_v46 = vshrl.u32 %v5905_v56, 16  ;;  %v4001_v12 = vshll.u32 %v5905_v56, 16  ;;  %v6841_v56 = vld [vmem:[%s6973_s6 + $0xa8] sm:$0xff]  }
 0x111   : > { %6563 = vmatprep.mubr.bf16.mxu0 %v6837_v48  ;;  %v8706_v48 = vld [vmem:[%s6973_s6 + $0x5c] sm:$0x1]  ;;  %v9975_v32 = vcombine.low %v8313_v35, %v8322_v18  ;;  %v3957_v53 = vrot.slane %v3956_v0, 4  ;;  %v5979_v54 = vrot.slane %v5963_v61, 9  ;;  %v4654_v22 = vrot.slane %v4652_v31, 4 }
 0x112   : > { %v4655_v49 = vrot.slane %v5901_v2, 5  ;;  %v9977_v19 = vcombine.low %v8339_v33, %v8343_v59  ;;  %v3967_v38 = vrot.slane %v3966_v29, 4  ;;  %v3971_v15 = vrot.slane %v3969_v3, 5  ;;  %v5964_v0 = vld [vmem:[%s6973_s6 + $0x54] sm:$0xe]  ;;  %v8738_v29 = vpop.f32.mrf.mxu1 }
 0x113   : > { %6512 = vmatmul.mubr.bf16.gmra.mxu1 %v9975_v32  ;;  %v3980_v35 = vor.u32 %v3979_v63, %v3976_v17  ;;  %v4659_v18 = vrot.slane %v8650_v23, 5  ;;  %v3990_v61 = vor.u32 %v3989_v43, %v8697_v7  ;;  %v3993_v2 = vshll.u32 %v8706_v48, 16  ;;  %9979 = vst [vmem:[#allocation14_spill] sm:$0xff] %v8738_v29  ;;  %v5965_v63 = vld [vmem:[%s6973_s6 + $0x60] sm:$0xe] }
 0x114   : > { %6515 = vmatprep.mubr.bf16.mxu1 %v9977_v19  ;;  %v4000_v32 = vrot.slane %v3998_v46, 4  ;;  %v4003_v55 = vrot.slane %v4001_v12, 5  ;;  %v9978_v33 = vsel %vm7014_vm2, %v8606_v51, %v8550_v8  ;;  %v4007_v23 = vshll.u32 %v8714_v50, 16 }
 0x115   : > { %v8732_v59 = vcombine.low %v9978_v33, %v3924_v16  ;;  %v4011_v17 = vshrl.u32 %v8714_v50, 16  ;;  %v8740_v3 = vcombine.low %v3938_v44, %v3948_v52  ;;  %v3962_v43 = vsel %vm7014_vm2, %v3957_v53, %v8670_v1  ;;  %v5908_v16 = vld [vmem:[%s6973_s6 + $0x6c] sm:$0xf]  ;;  %v8758_v33 = vld [vmem:[%s6973_s6 + $0x70] sm:$0xf] }
 0x116   : > { %v8747_v8 = vsel %vm7325_vm5, %v5979_v54, %v4652_v31  ;;  %v8751_v51 = vsel %vm7325_vm5, %v4654_v22, %v4655_v49  ;;  %v3981_v44 = vrot.slane %v3980_v35, 4  ;;  %v5980_v52 = vrot.slane %v5964_v0, 9  ;;  %v5907_v54 = vld [vmem:[%s6973_s6 + $0x68] sm:$0x1] }
 0x117   : > { %v4661_v12 = vrot.slane %v4659_v18, 4  ;;  %v4662_v19 = vrot.slane %v8706_v48, 5  ;;  %v3972_v1 = vsel %vm7014_vm2, %v3967_v38, %v3971_v15  ;;  %v3991_v31 = vrot.slane %v3990_v61, 4 }
 0x118   : > { %6564 = vmatmul.mubr.bf16.gmra.mxu0 %v6838_v13  ;;  %v8754_v46 = vpop.f32.mrf.mxu0  ;;  %v3995_v53 = vrot.slane %v3993_v2, 5  ;;  %v4004_v22 = vor.u32 %v4003_v55, %v4000_v32  ;;  %v8763_v49 = vrot.slane %v4007_v23, 5  ;;  %v4013_v13 = vrot.slane %v4011_v17, 4  ;;  %v6842_v32 = vld [vmem:[%s6973_s6 + $0xb4] sm:$0xff]  }
 0x119   : > { %9980 = vst [vmem:[#allocation15_spill] sm:$0xff] %v8754_v46  ;;  %6567 = vmatprep.mubr.bf16.mxu0 %v6841_v56  ;;  %v4022_v35 = vshrl.u32 %v5908_v16, 16  ;;  %v4025_v0 = vshll.u32 %v5908_v16, 16  ;;  %v9981_v48 = vcombine.low %v8359_v6, %v8364_v26  ;;  %v4666_v15 = vrot.slane %v8714_v50, 5  ;;  %v5967_v46 = vld [vmem:[%s6973_s6 + $0x78] sm:$0xe] }
 0x11a   : > { %v4031_v55 = vshll.u32 %v8758_v33, 16  ;;  %v4035_v61 = vshrl.u32 %v8758_v33, 16  ;;  %v9983_v2 = vcombine.low %v8377_v10, %v8371_v30  ;;  %v8780_v6 = vpop.f32.mrf.mxu0  ;;  %v8782_v26 = vcombine.low %v3962_v43, %v3972_v1  ;;  %v5911_v30 = vld [vmem:[%s6973_s6 + $0x78] sm:$0xf]  ;;  %v6845_v10 = vld [vmem:[%s6973_s6 + $0xc0] sm:$0xff]  }
 0x11b   : > { %6516 = vmatmul.mubr.bf16.gmra.mxu1 %v9981_v48  ;;  %9984 = vst [vmem:[#allocation17_spill] sm:$0xff] %v8780_v6  ;;  %v3986_v23 = vsel %vm7014_vm2, %v3981_v44, %v8697_v7  ;;  %v8789_v50 = vsel %vm7325_vm5, %v5980_v52, %v4659_v18  ;;  %v8793_v17 = vsel %vm7325_vm5, %v4661_v12, %v4662_v19  ;;  %v8799_v48 = vrot.slane %v4004_v22, 4  ;;  %v8806_v44 = vld [vmem:[%s6973_s6 + $0x74] sm:$0x1]  ;;  %v8863_v6 = vld [vmem:[%s6973_s6 + $0x8c] sm:$0x1] }
 0x11c   : > { %6519 = vmatprep.mubr.bf16.mxu1 %v9983_v2  ;;  %v3996_v16 = vsel %vm7014_vm2, %v3991_v31, %v3995_v53  ;;  %v4017_v43 = vshll.u32 %v5907_v54, 16  ;;  %v5981_v1 = vrot.slane %v5965_v63, 9  ;;  %v8802_v2 = vld [vmem:[%s6973_s6 + $0x7c] sm:$0xf]  ;;  %v4014_v7 = vor.u32 %v4013_v13, %v8763_v49  ;;  %v8812_v22 = vpop.f32.mrf.mxu0  ;;  %v5914_v63 = vld [vmem:[%s6973_s6 + $0x84] sm:$0xf] }
 0x11d   : > { %v8769_v56 = vpop.f32.mrf.mxu1  ;;  %v4669_v18 = vrot.slane %v5907_v54, 5  ;;  %v4024_v52 = vrot.slane %v4022_v35, 4  ;;  %v4027_v12 = vrot.slane %v4025_v0, 5  ;;  %v4668_v38 = vrot.slane %v4666_v15, 4  ;;  %9986 = vst [vmem:[#allocation19_spill] sm:$0xff] %v8812_v22 }
 0x11e   : > { %9982 = vst [vmem:[#allocation16_spill] sm:$0xff] %v8769_v56  ;;  %v8810_v56 = vrot.slane %v4031_v55, 5  ;;  %v4037_v31 = vrot.slane %v4035_v61, 4  ;;  %v4046_v53 = vshrl.u32 %v5911_v30, 16  ;;  %v5966_v54 = vld [vmem:[%s6973_s6 + $0x6c] sm:$0xe]  ;;  %v8825_v61 = vsel %vm7325_vm5, %v5981_v1, %v4666_v15 }
 0x11f   : > { %v8808_v19 = vpop.f32.mrf.mxu1  ;;  %v4049_v13 = vshll.u32 %v5911_v30, 16  ;;  %v4055_v35 = vshll.u32 %v8802_v2, 16  ;;  %v4059_v0 = vshrl.u32 %v8802_v2, 16  ;;  %v8821_v55 = vrot.slane %v4017_v43, 5  ;;  %v6846_v1 = vld [vmem:[%s6973_s6 + $0xcc] sm:$0xff]  }
 0x120   : > { %9985 = vst [vmem:[#allocation18_spill] sm:$0xff] %v8808_v19  ;;  %6568 = vmatmul.mubr.bf16.gmra.mxu0 %v6842_v32  ;;  %v8819_v19 = vcombine.low %v3986_v23, %v3996_v16  ;;  %v4041_v32 = vshll.u32 %v8806_v44, 16  ;;  %v8833_v29 = vrot.slane %v4014_v7, 4  ;;  %v4673_v23 = vrot.slane %v8758_v33, 5  ;;  %v8837_v16 = vld [vmem:[%s6973_s6 + $0x88] sm:$0xf] }
 0x121   : > { %6571 = vmatprep.mubr.bf16.mxu0 %v6845_v10  ;;  %v4028_v10 = vor.u32 %v4027_v12, %v4024_v52  ;;  %v9988_v15 = vcombine.low %v8386_v5, %v8390_v14  ;;  %v8842_v43 = vpop.f32.mrf.mxu1  ;;  %v8847_v11 = vsel %vm7325_vm5, %v4668_v38, %v4669_v18  ;;  %v4038_v30 = vor.u32 %v4037_v31, %v8810_v56  ;;  %v8850_v12 = vpop.f32.mrf.mxu0  ;;  %v8856_v5 = vld [vmem:[%s6973_s6 + $0x80] sm:$0x1] }
 0x122   : > { %9987 = vst [vmem:[#allocation20_spill] sm:$0xff] %v8819_v19  ;;  %9989 = vst [vmem:[#allocation21_spill] sm:$0xff] %v8842_v43  ;;  %v5982_v7 = vrot.slane %v5966_v54, 9  ;;  %v4048_v52 = vrot.slane %v4046_v53, 4  ;;  %v9991_v33 = vcombine.low %v8421_v27, %v8425_v36  ;;  %v4051_v14 = vrot.slane %v4049_v13, 5 }
 0x123   : > { %6520 = vmatmul.mubr.bf16.gmra.mxu1 %v9988_v15  ;;  %9990 = vst [vmem:[#allocation22_spill] sm:$0xff] %v8850_v12  ;;  %v8858_v15 = vrot.slane %v4055_v35, 5  ;;  %v4061_v43 = vrot.slane %v4059_v0, 4  ;;  %v4070_v22 = vshrl.u32 %v5914_v63, 16  ;;  %v4043_v38 = vrot.slane %v4041_v32, 5 }
 0x124   : > { %6523 = vmatprep.mubr.bf16.mxu1 %v9991_v33  ;;  %v4676_v18 = vrot.slane %v8806_v44, 5  ;;  %v4073_v31 = vshll.u32 %v5914_v63, 16  ;;  %v4079_v53 = vshll.u32 %v8837_v16, 16  ;;  %v4029_v54 = vrot.slane %v4028_v10, 4  ;;  %v8866_v33 = vpop.f32.mrf.mxu1 }
 0x125   : > { %v4675_v12 = vrot.slane %v4673_v23, 4  ;;  %v4072_v27 = vrot.slane %v4070_v22, 4  ;;  %v4083_v36 = vshrl.u32 %v8837_v16, 16  ;;  %v4039_v13 = vrot.slane %v4038_v30, 4 }
 0x126   : > { %v4065_v35 = vshll.u32 %v8856_v5, 16  ;;  %v4075_v0 = vrot.slane %v4073_v31, 5  ;;  %v8869_v32 = vrot.slane %v4079_v53, 5  ;;  %v4052_v63 = vor.u32 %v4051_v14, %v4048_v52  ;;  %v5968_v53 = vld [vmem:[%s6973_s6 + $0x84] sm:$0xe] }
 0x127   : > { %v8871_v44 = vpop.f32.mrf.mxu0  ;;  %v4062_v10 = vor.u32 %v4061_v43, %v8858_v15  ;;  %v4680_v22 = vrot.slane %v8802_v2, 5  ;;  %v4085_v19 = vrot.slane %v4083_v36, 4  ;;  %v9992_v30 = vcombine.low %v8517_v42, %v8532_v4 }
 0x128   : > { %6572 = vmatmul.mubr.bf16.gmra.mxu0 %v6846_v1  ;;  %v4020_v31 = vsel %vm7014_vm2, %v8833_v29, %v8821_v55  ;;  %v8887_v52 = vsel %vm7325_vm5, %v5982_v7, %v4673_v23  ;;  %v4089_v43 = vshll.u32 %v8863_v6, 16  ;;  %v4034_v42 = vsel %vm7014_vm2, %v4029_v54, %v8810_v56  ;;  %v5917_v55 = vld [vmem:[%s6973_s6 + $0x90] sm:$0xf] }
 0x129   : > { %6639 = vmatprep.mubr.bf16.mxu0 %v9992_v30  ;;  %v8890_v2 = vpop.f32.mrf.mxu0  ;;  %v4076_v4 = vor.u32 %v4075_v0, %v4072_v27  ;;  %v4086_v14 = vor.u32 %v4085_v19, %v8869_v32  ;;  %v4687_v29 = vrot.slane %v8837_v16, 5  ;;  %v9994_v23 = vcombine.low %v8434_v45, %v8439_v9 }
 0x12a   : > { %v4044_v7 = vsel %vm7014_vm2, %v4039_v13, %v4043_v38  ;;  %v8908_v56 = vsel %vm7325_vm5, %v4675_v12, %v4676_v18  ;;  %v4067_v54 = vrot.slane %v4065_v35, 5  ;;  %v5983_v19 = vrot.slane %v5967_v46, 9  ;;  %v8917_v13 = vld [vmem:[%s6973_s6 + $0x94] sm:$0xf] }
 0x12b   : > { %v8899_v36 = vpop.f32.mrf.mxu1  ;;  %6524 = vmatmul.mubr.bf16.gmra.mxu1 %v9994_v23  ;;  %v8910_v27 = vpop.f32.mrf.mxu0  ;;  %v4053_v16 = vrot.slane %v4052_v63, 4  ;;  %v4063_v0 = vrot.slane %v4062_v10, 4  ;;  %v4682_v30 = vrot.slane %v4680_v22, 4  ;;  %v4683_v1 = vrot.slane %v8856_v5, 5 }
 0x12c   : > { %9993 = vst [vmem:[#allocation23_spill] sm:$0xff] %v8899_v36  ;;  %6591 = vmatprep.mubr.bf16.mxu1 %v8626_v41  ;;  %v4091_v9 = vrot.slane %v4089_v43, 5  ;;  %v5984_v38 = vrot.slane %v5968_v53, 9  ;;  %v4094_v12 = vshrl.u32 %v5917_v55, 16  ;;  %v4097_v18 = vshll.u32 %v5917_v55, 16 }
 0x12d   : > { %v8914_v45 = vpop.f32.mrf.mxu1  ;;  %v8919_v35 = vpop.f32.mrf.mxu0  ;;  %v4077_v46 = vrot.slane %v4076_v4, 4  ;;  %v4087_v23 = vrot.slane %v4086_v14, 4  ;;  %v4689_v41 = vrot.slane %v4687_v29, 4  ;;  %v4690_v63 = vrot.slane %v8863_v6, 5  ;;  %v8940_v55 = vld [vmem:[%s6973_s6 + $0x98] sm:$0x1] }
 0x12e   : > { %9995 = vst [vmem:[#allocation24_spill] sm:$0xff] %v8914_v45  ;;  %v9997_v5 = vsel %vm7014_vm2, %v8799_v48, %v8763_v49  ;;  %v8931_v53 = vcombine.low %v4034_v42, %v4044_v7  ;;  %v8937_v14 = vsel %vm7325_vm5, %v5983_v19, %v4680_v22  ;;  %v4058_v49 = vsel %vm7014_vm2, %v4053_v16, %v8858_v15  ;;  %v5920_v42 = vld [vmem:[%s6973_s6 + $0x9c] sm:$0xf]  ;;  %v8957_v7 = vld [vmem:[%s6973_s6 + $0xa0] sm:$0xf] }
 0x12f   : > { %v8922_v10 = vpop.f32.mrf.mxu1  ;;  %v8929_v43 = vcombine.low %v9997_v5, %v4020_v31  ;;  %v6353_v6 = vpop.f32.mrf.mxu0  ;;  %v4068_v48 = vsel %vm7014_vm2, %v4063_v0, %v4067_v54  ;;  %v8952_v31 = vsel %vm7325_vm5, %v4682_v30, %v4683_v1  ;;  %v4103_v22 = vshll.u32 %v8917_v13, 16  ;;  %v9044_v36 = vld [vmem:[%s6973_s6 + $0xb0] sm:$0x1] }
 0x130   : > { %9996 = vst [vmem:[#allocation25_spill] sm:$0xff] %v8922_v10  ;;  %v9998_v10 = vcombine.low %v8589_v21, %v8593_v20  ;;  %v10000_v21 = vcombine.low %v8645_v37, %v8661_v60  ;;  %v8966_v20 = vsel %vm7325_vm5, %v5984_v38, %v4687_v29  ;;  %v4096_v15 = vrot.slane %v4094_v12, 4  ;;  %v8981_v38 = vld [vmem:[%s6973_s6 + $0x90] sm:$0xe] }
 0x131   : > { %v8959_v19 = vpop.f32.mrf.mxu1  ;;  %v4099_v54 = vrot.slane %v4097_v18, 5  ;;  %v4107_v1 = vshrl.u32 %v8917_v13, 16  ;;  %v1624_v16 = vpop.f32.mrf.mxu0  ;;  %v4082_v0 = vsel %vm7014_vm2, %v4077_v46, %v8869_v32  ;;  %v4092_v30 = vsel %vm7014_vm2, %v4087_v23, %v4091_v9 }
 0x132   : > { %6640 = vmatmul.mubr.bf16.vlgmr.msra.gmra.mxu0 %v9998_v10  ;;  %9999 = vst [vmem:[#allocation26_spill] sm:$0xff] %v8959_v19  ;;  %v8976_v37 = vsel %vm7325_vm5, %v4689_v41, %v4690_v63  ;;  %v4113_v60 = vshll.u32 %v8940_v55, 16  ;;  %v4118_v12 = vshrl.u32 %v5920_v42, 16  ;;  %v4121_v18 = vshll.u32 %v5920_v42, 16 }
 0x133   : > { %6643 = vmatprep.mubr.bf16.mxu0 %v10000_v21  ;;  %v6305_v29 = vpop.f32.mrf.mxu1  ;;  %6592 = vmatmul.mubr.bf16.vlgmr.msra.gmra.mxu1 %v8632_v62  ;;  %v4127_v10 = vshll.u32 %v8957_v7, 16  ;;  %v4131_v32 = vshrl.u32 %v8957_v7, 16  ;;  %v6354_v46 = vpop.f32.mrf.mxu0  ;;  %v8987_v23 = vcombine.low %v4058_v49, %v4068_v48  ;;  %v8991_v41 = vrot.slane %v4103_v22, 5  ;;  %v9005_v62 = vld [vmem:[%s6973_s6 + $0xa4] sm:$0x1] }
 0x134   : > { %v1181_v9 = vadd.f32 %v6305_v29, %v8482_v25  ;;  %6595 = vmatprep.mubr.bf16.mxu1 %v8732_v59  ;;  %v8993_v5 = vcombine.low %v4082_v0, %v4092_v30  ;;  %v4100_v21 = vor.u32 %v4099_v54, %v4096_v15  ;;  %v4109_v25 = vrot.slane %v4107_v1, 4  ;;  %v5923_v29 = vld [vmem:[%s6973_s6 + $0xa8] sm:$0xf]  ;;  %v9010_v15 = vld [vmem:[%s6973_s6 + $0xac] sm:$0xf] }
 0x135   : > { %v1172_v63 = vpop.f32.mrf.mxu1  ;;  %v1627_v49 = vpop.f32.mrf.mxu0  ;;  %v9001_v48 = vrot.slane %v4113_v60, 5  ;;  %v5985_v22 = vrot.slane %v8981_v38, 9  ;;  %v4120_v30 = vrot.slane %v4118_v12, 4  ;;  %v4123_v19 = vrot.slane %v4121_v18, 5 }
 0x136   : > { %v8998_v4 = vadd.f32 %v6353_v6, %v1181_v9  ;;  %v1173_v59 = vadd.f32 %v1172_v63, %v8503_v58  ;;  %v9007_v45 = vrot.slane %v4127_v10, 5  ;;  %v4133_v42 = vrot.slane %v4131_v32, 4  ;;  %v10006_v63 = vld [vmem:[#allocation5_spill] sm:$0xff] }
 0x137   : > { %v6306_v0 = vpop.f32.mrf.mxu1  ;;  %v6357_v6 = vpop.f32.mrf.mxu0  ;;  %v10003_v1 = vcombine.low %v8695_v34, %v8703_v24  ;;  %v4142_v60 = vshrl.u32 %v5923_v29, 16  ;;  %v4145_v38 = vshll.u32 %v5923_v29, 16  ;;  %v10004_v12 = vcombine.low %v8747_v8, %v8751_v51 }
 0x138   : > { %10001 = vst [vmem:[#allocation27_spill] sm:$0xff] %v8998_v4  ;;  %v9012_v54 = vadd.f32 %v1624_v16, %v1173_v59  ;;  %v1184_v58 = vadd.f32 %v6306_v0, %v8539_v39  ;;  %v9021_v18 = vrot.slane %v4100_v21, 4  ;;  %v4110_v16 = vor.u32 %v4109_v25, %v8991_v41  ;;  %v5970_v59 = vld [vmem:[%s6973_s6 + $0x9c] sm:$0xe] }
 0x139   : > { %v1175_v9 = vpop.f32.mrf.mxu1  ;;  %v4694_v10 = vrot.slane %v8917_v13, 5  ;;  %v4137_v39 = vshll.u32 %v9005_v62, 16  ;;  %v1640_v24 = vpop.f32.mrf.mxu0  ;;  %v4697_v29 = vrot.slane %v8940_v55, 5  ;;  %v4151_v0 = vshll.u32 %v9010_v15, 16 }
 0x13a   : > { %10002 = vst [vmem:[#allocation28_spill] sm:$0xff] %v9012_v54  ;;  %6644 = vmatmul.mubr.bf16.gmra.mxu0 %v10003_v1  ;;  %v9026_v32 = vadd.f32 %v6354_v46, %v1184_v58  ;;  %v1176_v34 = vadd.f32 %v1175_v9, %v10006_v63  ;;  %v4124_v51 = vor.u32 %v4123_v19, %v4120_v30  ;;  %v4701_v13 = vrot.slane %v8957_v7, 5  ;;  %v10007_v58 = vld [vmem:[#allocation9_spill] sm:$0xff]  ;;  %v10008_v7 = vld [vmem:[#allocation11_spill] sm:$0xff] }
 0x13b   : > { %6647 = vmatprep.mubr.bf16.mxu0 %v10004_v12  ;;  %v6309_v8 = vpop.f32.mrf.mxu1  ;;  %6596 = vmatmul.mubr.bf16.gmra.mxu1 %v8740_v3  ;;  %v4134_v21 = vor.u32 %v4133_v42, %v9007_v45  ;;  %v4155_v46 = vshrl.u32 %v9010_v15, 16  ;;  %v6358_v9 = vpop.f32.mrf.mxu0  ;;  %v4144_v55 = vrot.slane %v4142_v60, 4  ;;  %v4147_v12 = vrot.slane %v4145_v38, 5 }
 0x13c   : > { %10005 = vst [vmem:[#allocation29_spill] sm:$0xff] %v9026_v32  ;;  %v9036_v25 = vadd.f32 %v1627_v49, %v1176_v34  ;;  %v1197_v1 = vadd.f32 %v6309_v8, %v10007_v58  ;;  %6599 = vmatprep.mubr.bf16.mxu1 %v8782_v26  ;;  %v4111_v32 = vrot.slane %v4110_v16, 4  ;;  %v4696_v3 = vrot.slane %v4694_v10, 4 }
 0x13d   : > { %v1188_v63 = vpop.f32.mrf.mxu1  ;;  %v4139_v19 = vrot.slane %v4137_v39, 5  ;;  %v5986_v30 = vrot.slane %v5970_v59, 9  ;;  %v1643_v4 = vpop.f32.mrf.mxu0  ;;  %v9046_v49 = vrot.slane %v4151_v0, 5  ;;  %v4157_v34 = vrot.slane %v4155_v46, 4 }
 0x13e   : > { %v9040_v42 = vadd.f32 %v6357_v6, %v1197_v1  ;;  %v1189_v54 = vadd.f32 %v1188_v63, %v10008_v7  ;;  %v4125_v58 = vrot.slane %v4124_v51, 4  ;;  %v4135_v26 = vrot.slane %v4134_v21, 4 }
 0x13f   : > { %v6310_v8 = vpop.f32.mrf.mxu1  ;;  %v4703_v60 = vrot.slane %v4701_v13, 4  ;;  %v4704_v38 = vrot.slane %v9005_v62, 5  ;;  %v6361_v39 = vpop.f32.mrf.mxu0  ;;  %v10009_v59 = vcombine.low %v8789_v50, %v8793_v17  ;;  %v9057_v0 = vsel %vm7325_vm5, %v5985_v22, %v4694_v10  ;;  %v5971_v22 = vld [vmem:[%s6973_s6 + $0xa8] sm:$0xe] }
 0x140   : > { %v9049_v16 = vadd.f32 %v1640_v24, %v1189_v54  ;;  %v1200_v6 = vadd.f32 %v6310_v8, %v8686_v40  ;;  %v4148_v51 = vor.u32 %v4147_v12, %v4144_v55  ;;  %v10010_v21 = vcombine.low %v8825_v61, %v8847_v11 }
 0x141   : > { %v1191_v46 = vpop.f32.mrf.mxu1  ;;  %v4106_v40 = vsel %vm7014_vm2, %v9021_v18, %v8991_v41  ;;  %v4116_v50 = vsel %vm7014_vm2, %v4111_v32, %v9001_v48  ;;  %v9071_v17 = vsel %vm7325_vm5, %v4696_v3, %v4697_v29  ;;  %v4161_v62 = vshll.u32 %v9044_v36, 16  ;;  %v1656_v61 = vpop.f32.mrf.mxu0  ;;  %v5926_v18 = vld [vmem:[%s6973_s6 + $0xb4] sm:$0xf]  ;;  %v10011_v48 = vld [vmem:[#allocation20_spill] sm:$0xff]  ;;  %v9100_v3 = vld [vmem:[%s6973_s6 + $0xb8] sm:$0xf] }
 0x142   : > { %6648 = vmatmul.mubr.bf16.gmra.mxu0 %v10009_v59  ;;  %v9075_v54 = vadd.f32 %v6358_v9, %v1200_v6  ;;  %v1192_v11 = vadd.f32 %v1191_v46, %v8720_v47  ;;  %v4158_v10 = vor.u32 %v4157_v34, %v9046_v49  ;;  %v4708_v41 = vrot.slane %v9010_v15, 5  ;;  %v10012_v9 = vld [vmem:[#allocation15_spill] sm:$0xff] }
 0x143   : > { %6651 = vmatprep.mubr.bf16.mxu0 %v10010_v21  ;;  %v6313_v24 = vpop.f32.mrf.mxu1  ;;  %6600 = vmatmul.mubr.bf16.gmra.mxu1 %v10011_v48  ;;  %v4130_v32 = vsel %vm7014_vm2, %v4125_v58, %v9007_v45  ;;  %v4140_v29 = vsel %vm7014_vm2, %v4135_v26, %v4139_v19  ;;  %v9089_v47 = vsel %vm7325_vm5, %v5986_v30, %v4701_v13  ;;  %v6362_v12 = vpop.f32.mrf.mxu0  ;;  %v4149_v63 = vrot.slane %v4148_v51, 4  ;;  %v10013_v58 = vld [vmem:[#allocation17_spill] sm:$0xff]  ;;  %v10017_v48 = vld [vmem:[#allocation22_spill] sm:$0xff] }
 0x144   : > { %v9093_v1 = vsel %vm7325_vm5, %v4703_v60, %v4704_v38  ;;  %v9095_v15 = vadd.f32 %v1643_v4, %v1192_v11  ;;  %v1213_v55 = vadd.f32 %v6313_v24, %v10012_v9  ;;  %6603 = vmatprep.mubr.bf16.mxu1 %v8929_v43  ;;  %v5987_v45 = vrot.slane %v5971_v22, 9 }
 0x145   : > { %v1204_v19 = vpop.f32.mrf.mxu1  ;;  %v4163_v7 = vrot.slane %v4161_v62, 5  ;;  %v4711_v13 = vrot.slane %v9044_v36, 5  ;;  %v4166_v30 = vshrl.u32 %v5926_v18, 16  ;;  %v4169_v34 = vshll.u32 %v5926_v18, 16  ;;  %v1659_v26 = vpop.f32.mrf.mxu0 }
 0x146   : > { %v9103_v8 = vadd.f32 %v6361_v39, %v1213_v55  ;;  %v1205_v4 = vadd.f32 %v1204_v19, %v10013_v58  ;;  %v4159_v60 = vrot.slane %v4158_v10, 4  ;;  %v4710_v38 = vrot.slane %v4708_v41, 4  ;;  %v10014_v39 = vld [vmem:[#allocation19_spill] sm:$0xff] }
 0x147   : > { %v6314_v43 = vpop.f32.mrf.mxu1  ;;  %v9106_v6 = vcombine.low %v4106_v40, %v4116_v50  ;;  %v6001_v59 = vcombine.low %v9057_v0, %v9071_v17  ;;  %v9110_v51 = vcombine.low %v4130_v32, %v4140_v29  ;;  %v4175_v36 = vshll.u32 %v9100_v3, 16  ;;  %v6365_v62 = vpop.f32.mrf.mxu0  ;;  %v5929_v50 = vld [vmem:[%s6973_s6 + $0xc0] sm:$0xf]  ;;  %v9124_v17 = vld [vmem:[%s6973_s6 + $0xc4] sm:$0xf] }
 0x148   : > { %v9113_v46 = vadd.f32 %v1656_v61, %v1205_v4  ;;  %v1216_v21 = vadd.f32 %v6314_v43, %v10014_v39  ;;  %v10015_v22 = vcombine.low %v8887_v52, %v8908_v56  ;;  %v6002_v40 = vcombine.low %v9089_v47, %v9093_v1  ;;  %v10022_v47 = vld [vmem:[#allocation8_spill] sm:$0xff] }
 0x149   : > { %v4179_v0 = vshrl.u32 %v9100_v3, 16  ;;  %v1207_v11 = vpop.f32.mrf.mxu1  ;;  %v10016_v61 = vcombine.low %v8937_v14, %v8952_v31  ;;  %v4154_v52 = vsel %vm7014_vm2, %v4149_v63, %v9046_v49  ;;  %v9134_v56 = vsel %vm7325_vm5, %v5987_v45, %v4708_v41  ;;  %v1672_v29 = vpop.f32.mrf.mxu0  ;;  %v9146_v31 = vld [vmem:[%s6973_s6 + $0xbc] sm:$0x1]  ;;  %v5972_v49 = vld [vmem:[%s6973_s6 + $0xb4] sm:$0xe] }
 0x14a   : > { %6652 = vmatmul.mubr.bf16.gmra.mxu0 %v10015_v22  ;;  %v4168_v10 = vrot.slane %v4166_v30, 4  ;;  %v4171_v18 = vrot.slane %v4169_v34, 5  ;;  %v9136_v24 = vadd.f32 %v6362_v12, %v1216_v21  ;;  %v1208_v32 = vadd.f32 %v1207_v11, %v10017_v48  ;;  %v9168_v21 = vld [vmem:[%s6973_s6 + $0xc8] sm:$0x1] }
 0x14b   : > { %6655 = vmatprep.mubr.bf16.mxu0 %v10016_v61  ;;  %v4164_v9 = vsel %vm7014_vm2, %v4159_v60, %v4163_v7  ;;  %v9143_v14 = vsel %vm7325_vm5, %v4710_v38, %v4711_v13  ;;  %v6317_v55 = vpop.f32.mrf.mxu1  ;;  %6604 = vmatmul.mubr.bf16.gmra.mxu1 %v8931_v53  ;;  %v9150_v41 = vrot.slane %v4175_v36, 5  ;;  %v4190_v12 = vshrl.u32 %v5929_v50, 16  ;;  %v6366_v30 = vpop.f32.mrf.mxu0 }
 0x14c   : > { %v4193_v63 = vshll.u32 %v5929_v50, 16  ;;  %v4199_v45 = vshll.u32 %v9124_v17, 16  ;;  %v9153_v19 = vadd.f32 %v1659_v26, %v1208_v32  ;;  %v1229_v7 = vadd.f32 %v6317_v55, %v8871_v44  ;;  %6607 = vmatprep.mubr.bf16.mxu1 %v8987_v23 }
 0x14d   : > { %v4181_v13 = vrot.slane %v4179_v0, 4  ;;  %v4203_v34 = vshrl.u32 %v9124_v17, 16  ;;  %v1220_v58 = vpop.f32.mrf.mxu1  ;;  %v4172_v4 = vor.u32 %v4171_v18, %v4168_v10  ;;  %v4185_v53 = vshll.u32 %v9146_v31, 16  ;;  %v1675_v44 = vpop.f32.mrf.mxu0  ;;  %v5932_v10 = vld [vmem:[%s6973_s6 + $0xcc] sm:$0xf] }
 0x14e   : > { %v5988_v60 = vrot.slane %v5972_v49, 9  ;;  %v4715_v38 = vrot.slane %v9100_v3, 5  ;;  %v9160_v43 = vadd.f32 %v6365_v62, %v1229_v7  ;;  %v1221_v26 = vadd.f32 %v1220_v58, %v8890_v2  ;;  %v5973_v49 = vld [vmem:[%s6973_s6 + $0xc0] sm:$0xe] }
 0x14f   : > { %v9163_v36 = vcombine.low %v4154_v52, %v4164_v9  ;;  %v6003_v23 = vcombine.low %v9134_v56, %v9143_v14  ;;  %v6318_v39 = vpop.f32.mrf.mxu1  ;;  %v4192_v22 = vrot.slane %v4190_v12, 4  ;;  %v4195_v0 = vrot.slane %v4193_v63, 5  ;;  %v6369_v11 = vpop.f32.mrf.mxu0  ;;  %v9190_v9 = vld [vmem:[%s6973_s6 + $0xd0] sm:$0xf] }
 0x150   : > { %v9170_v50 = vrot.slane %v4199_v45, 5  ;;  %v4205_v3 = vrot.slane %v4203_v34, 4  ;;  %v9172_v62 = vadd.f32 %v1672_v29, %v1221_v26  ;;  %v1232_v2 = vadd.f32 %v6318_v39, %v8910_v27 }
 0x151   : > { %v10018_v61 = vcombine.low %v8966_v20, %v8976_v37  ;;  %v4182_v52 = vor.u32 %v4181_v13, %v9150_v41  ;;  %v4718_v56 = vrot.slane %v9146_v31, 5  ;;  %v1223_v18 = vpop.f32.mrf.mxu1  ;;  %v9181_v48 = vrot.slane %v4172_v4, 4  ;;  %v1688_v14 = vpop.f32.mrf.mxu0 }
 0x152   : > { %v9183_v32 = vrot.slane %v4185_v53, 5  ;;  %v9187_v27 = vsel %vm7325_vm5, %v5988_v60, %v4715_v38  ;;  %v4717_v29 = vrot.slane %v4715_v38, 4  ;;  %v9192_v20 = vadd.f32 %v6366_v30, %v1232_v2  ;;  %v10019_v30 = vld [vmem:[#allocation4_spill] sm:$0xff] }
 0x153   : > { %6656 = vmatmul.mubr.bf16.gmra.mxu0 %v10018_v61  ;;  %v1224_v37 = vadd.f32 %v1223_v18, %v8919_v35  ;;  %v4209_v31 = vshll.u32 %v9168_v21, 16  ;;  %v6321_v55 = vpop.f32.mrf.mxu1  ;;  %6608 = vmatmul.mubr.bf16.gmra.mxu1 %v8993_v5  ;;  %v4196_v12 = vor.u32 %v4195_v0, %v4192_v22  ;;  %v4206_v63 = vor.u32 %v4205_v3, %v9170_v50  ;;  %v6370_v58 = vpop.f32.mrf.mxu0 }
 0x154   : > { %6659 = vmatprep.mubr.bf16.mxu0 %v6001_v59  ;;  %v4722_v59 = vrot.slane %v9124_v17, 5  ;;  %v4214_v45 = vshrl.u32 %v5932_v10, 16  ;;  %v4217_v7 = vshll.u32 %v5932_v10, 16  ;;  %v1245_v34 = vadd.f32 %v6321_v55, %v10019_v30  ;;  %6611 = vmatprep.mubr.bf16.mxu1 %v9106_v6 }
 0x155   : > { %v9200_v13 = vadd.f32 %v1675_v44, %v1224_v37  ;;  %v4223_v35 = vshll.u32 %v9190_v9, 16  ;;  %v4227_v4 = vshrl.u32 %v9190_v9, 16  ;;  %v1236_v17 = vpop.f32.mrf.mxu1  ;;  %v4183_v53 = vrot.slane %v4182_v52, 4  ;;  %v10020_v44 = vld [vmem:[#allocation7_spill] sm:$0xff]  ;;  %v1691_v22 = vpop.f32.mrf.mxu0  ;;  %v10021_v37 = vld [vmem:[#allocation6_spill] sm:$0xff] }
 0x156   : > { %v4719_v5 = vsel %vm7325_vm5, %v4717_v29, %v4718_v56  ;;  %v5989_v60 = vrot.slane %v5973_v49, 9  ;;  %v4725_v38 = vrot.slane %v9168_v21, 5  ;;  %v9209_v26 = vadd.f32 %v6369_v11, %v1245_v34  ;;  %v5934_v21 = vld [vmem:[%s6973_s6 + $0xd4] sm:$0x1] }
 0x157   : > { %v1237_v39 = vadd.f32 %v1236_v17, %v10020_v44  ;;  %v4211_v0 = vrot.slane %v4209_v31, 5  ;;  %v4724_v6 = vrot.slane %v4722_v59, 4  ;;  %v6322_v3 = vpop.f32.mrf.mxu1  ;;  %v4197_v2 = vrot.slane %v4196_v12, 4 }
 0x158   : > { %v4207_v61 = vrot.slane %v4206_v63, 4  ;;  %v4216_v10 = vrot.slane %v4214_v45, 4  ;;  %v4219_v18 = vrot.slane %v4217_v7, 5  ;;  %v1248_v56 = vadd.f32 %v6322_v3, %v10021_v37  ;;  %v6373_v29 = vpop.f32.mrf.mxu0  ;;  %v5974_v7 = vld [vmem:[%s6973_s6 + $0xcc] sm:$0xe]  ;;  %s6016_s6 = sshll.u32 %s6882_s18, 8 }
 0x159   : > { %v9212_v52 = vadd.f32 %v1688_v14, %v1237_v39  ;;  %v9219_v11 = vrot.slane %v4223_v35, 5  ;;  %v4229_v31 = vrot.slane %v4227_v4, 4  ;;  %v1239_v49 = vpop.f32.mrf.mxu1  ;;  %v4178_v14 = vsel %vm7014_vm2, %v9181_v48, %v9150_v41  ;;  %s9529_s17 = scalar_lea.vmem [#allocation2], %s6016_s6 }
 0x15a   : > { %v4188_v55 = vsel %vm7014_vm2, %v4183_v53, %v9183_v32  ;;  %v4729_v12 = vrot.slane %v9190_v9, 5  ;;  %v9229_v63 = vadd.f32 %v6370_v58, %v1248_v56  ;;  %v1240_v1 = vadd.f32 %v1239_v49, %v10022_v47  ;;  %v10023_v58 = vld [vmem:[#allocation10_spill] sm:$0xff] }
 0x15b   : > { %6660 = vmatmul.mubr.bf16.gmra.mxu0 %v6002_v40  ;;  %v1704_v40 = vpop.f32.mrf.mxu0  ;;  %v4723_v45 = vsel %vm7325_vm5, %v5989_v60, %v4722_v59  ;;  %v6325_v30 = vpop.f32.mrf.mxu1  ;;  %6612 = vmatmul.mubr.bf16.gmra.mxu1 %v9110_v51  ;;  %v6004_v41 = vcombine.low %v9187_v27, %v4719_v5  ;;  %v4202_v48 = vsel %vm7014_vm2, %v4197_v2, %v9170_v50  ;;  %v4233_v9 = vshll.u32 %v5934_v21, 16  ;;  %v10026_v49 = vld [vmem:[#allocation14_spill] sm:$0xff] }
 0x15c   : > { %6663 = vmatprep.mubr.bf16.mxu0 %v6003_v23  ;;  %v4726_v23 = vsel %vm7325_vm5, %v4724_v6, %v4725_v38  ;;  %v4220_v32 = vor.u32 %v4219_v18, %v4216_v10  ;;  %v9242_v34 = vadd.f32 %v1691_v22, %v1240_v1  ;;  %v1261_v35 = vadd.f32 %v6325_v30, %v10023_v58  ;;  %v10024_v38 = vld [vmem:[#allocation12_spill] sm:$0xff]  ;;  %v10025_v10 = vld [vmem:[#allocation13_spill] sm:$0xff] }
 0x15d   : > { %v6374_v59 = vpop.f32.mrf.mxu0  ;;  %6615 = vmatprep.mubr.bf16.mxu1 %v9163_v36  ;;  %v4212_v4 = vsel %vm7014_vm2, %v4207_v61, %v4211_v0  ;;  %v4230_v51 = vor.u32 %v4229_v31, %v9219_v11  ;;  %v1252_v17 = vpop.f32.mrf.mxu1  ;;  %v6005_v27 = vcombine.low %v4723_v45, %v4726_v23  ;;  %v5990_v53 = vrot.slane %v5974_v7, 9  ;;  %v10027_v45 = vld [vmem:[#allocation16_spill] sm:$0xff] }
 0x15e   : > { %v4731_v5 = vrot.slane %v4729_v12, 4  ;;  %v4732_v60 = vrot.slane %v5934_v21, 5  ;;  %v9249_v50 = vadd.f32 %v6373_v29, %v1261_v35  ;;  %v1253_v44 = vadd.f32 %v1252_v17, %v10024_v38  ;;  %v10030_v38 = vld [vmem:[#allocation23_spill] sm:$0xff] }
 0x15f   : > { %v1707_v39 = vpop.f32.mrf.mxu0  ;;  %v6326_v22 = vpop.f32.mrf.mxu1  ;;  %v5948_v6 = vcombine.low %v4178_v14, %v4188_v55  ;;  %v5949_v3 = vcombine.low %v4202_v48, %v4212_v4  ;;  %v4221_v2 = vrot.slane %v4220_v32, 4  ;;  %v4231_v18 = vrot.slane %v4230_v51, 4  ;;  %v10028_v48 = vld [vmem:[#allocation18_spill] sm:$0xff] }
 0x160   : > { %v9252_v36 = vadd.f32 %v1704_v40, %v1253_v44  ;;  %v1264_v0 = vadd.f32 %v6326_v22, %v10025_v10  ;;  %v4235_v37 = vrot.slane %v4233_v9, 5  ;;  %v4730_v29 = vsel %vm7325_vm5, %v5990_v53, %v4729_v12 }
 0x161   : > { %v6377_v61 = vpop.f32.mrf.mxu0  ;;  %v1255_v56 = vpop.f32.mrf.mxu1  ;;  %v4733_v21 = vsel %vm7325_vm5, %v4731_v5, %v4732_v60  ;;  %v4226_v1 = vsel %vm7014_vm2, %v4221_v2, %v9219_v11  ;;  %v10029_v11 = vld [vmem:[#allocation21_spill] sm:$0xff] }
 0x162   : > { %v9259_v31 = vadd.f32 %v6374_v59, %v1264_v0  ;;  %v1256_v14 = vadd.f32 %v1255_v56, %v10026_v49  ;;  %v4236_v57 = vsel %vm7014_vm2, %v4231_v18, %v4235_v37  ;;  %v6006_v12 = vcombine.low %v4730_v29, %v4733_v21  ;;  %v10032_v18 = vld [vmem:[#allocation25_spill] sm:$0xff]  ;;  %v10033_v21 = vld [vmem:[#allocation26_spill] sm:$0xff] }
 0x163   : > { %6664 = vmatmul.mubr.bf16.gmra.mxu0 %v6004_v41  ;;  %v1720_v55 = vpop.f32.mrf.mxu0  ;;  %v6329_v47 = vpop.f32.mrf.mxu1  ;;  %6616 = vmatmul.mubr.bf16.gmra.mxu1 %v5948_v6  ;;  %v5950_v35 = vcombine.low %v4226_v1, %v4236_v57  ;;  %v10034_v1 = vld [vmem:[#allocation27_spill] sm:$0xff] }
 0x164   : > { %6667 = vmatprep.mubr.bf16.mxu0 %v6005_v27  ;;  %v9265_v40 = vadd.f32 %v1707_v39, %v1256_v14  ;;  %v1277_v23 = vadd.f32 %v6329_v47, %v10027_v45  ;;  %6619 = vmatprep.mubr.bf16.mxu1 %v5949_v3  ;;  %v10031_v3 = vld [vmem:[#allocation24_spill] sm:$0xff] }
 0x165   : > { %v6378_v7 = vpop.f32.mrf.mxu0  ;;  %v1268_v30 = vpop.f32.mrf.mxu1 }
 0x166   : > { %v9270_v41 = vadd.f32 %v6377_v61, %v1277_v23  ;;  %v1269_v32 = vadd.f32 %v1268_v30, %v10028_v48 }
 0x167   : > { %v1723_v9 = vpop.f32.mrf.mxu0  ;;  %v6330_v58 = vpop.f32.mrf.mxu1 }
 0x168   : > { %v9273_v59 = vadd.f32 %v1720_v55, %v1269_v32  ;;  %v1280_v4 = vadd.f32 %v6330_v58, %v10029_v11  ;;  %v10036_v58 = vld [vmem:[#allocation29_spill] sm:$0xff] }
 0x169   : > { %v6381_v51 = vpop.f32.mrf.mxu0  ;;  %v1271_v17 = vpop.f32.mrf.mxu1 }
 0x16a   : > { %v9276_v27 = vadd.f32 %v6378_v7, %v1280_v4  ;;  %v1272_v28 = vadd.f32 %v1271_v17, %v8866_v33 }
 0x16b   : > { %6668 = vmatmul.mubr.bf16.gmra.mxu0 %v6006_v12  ;;  %v1736_v53 = vpop.f32.mrf.mxu0  ;;  %v6333_v5 = vpop.f32.mrf.mxu1  ;;  %6620 = vmatmul.mubr.bf16.gmra.mxu1 %v5950_v35  ;;  %v10035_v12 = vld [vmem:[#allocation28_spill] sm:$0xff] }
 0x16c   : > { %v9279_v60 = vadd.f32 %v1723_v9, %v1272_v28  ;;  %v1293_v44 = vadd.f32 %v6333_v5, %v10030_v38 }
 0x16d   : > { %v6382_v39 = vpop.f32.mrf.mxu0  ;;  %v1284_v22 = vpop.f32.mrf.mxu1 }
 0x16e   : > { %v9282_v6 = vadd.f32 %v6381_v51, %v1293_v44  ;;  %v1285_v2 = vadd.f32 %v1284_v22, %v10031_v3 }
 0x16f   : > { %v1739_v10 = vpop.f32.mrf.mxu0  ;;  %v6334_v0 = vpop.f32.mrf.mxu1 }
 0x170   : > { %v9285_v61 = vadd.f32 %v1736_v53, %v1285_v2  ;;  %v1296_v37 = vadd.f32 %v6334_v0, %v10032_v18 }
 0x171   : > { %v6449_v33 = vpop.f32.mrf.mxu0  ;;  %v1287_v56 = vpop.f32.mrf.mxu1 }
 0x172   : > { %v9288_v29 = vadd.f32 %v6382_v39, %v1296_v37  ;;  %v1288_v49 = vadd.f32 %v1287_v56, %v10033_v21 }
 0x173   : > { %v2763_v14 = vpop.f32.mrf.mxu0  ;;  %v6401_v55 = vpop.f32.mrf.mxu1 }
 0x174   : > { %v9291_v47 = vadd.f32 %v1739_v10, %v1288_v49  ;;  %v2139_v45 = vadd.f32 %v6401_v55, %v10034_v1 }
 0x175   : > { %v6450_v23 = vpop.f32.mrf.mxu0  ;;  %v2010_v7 = vpop.f32.mrf.mxu1 }
 0x176   : > { %v9294_v57 = vadd.f32 %v6449_v33, %v2139_v45  ;;  %v2137_v30 = vadd.f32 %v2010_v7, %v10035_v12 }
 0x177   : > { %v2766_v48 = vpop.f32.mrf.mxu0  ;;  %v6402_v32 = vpop.f32.mrf.mxu1 }
 0x178   : > { %v9297_v9 = vadd.f32 %v2763_v14, %v2137_v30  ;;  %v2140_v35 = vadd.f32 %v6402_v32, %v10036_v58 }
 0x179   : > { %v6453_v11 = vpop.f32.mrf.mxu0  ;;  %v2013_v4 = vpop.f32.mrf.mxu1 }
 0x17a   : > { %v9300_v51 = vadd.f32 %v6450_v23, %v2140_v35  ;;  %v2138_v17 = vadd.f32 %v2013_v4, %v9036_v25 }
 0x17b   : > { %v2779_v28 = vpop.f32.mrf.mxu0  ;;  %v6405_v53 = vpop.f32.mrf.mxu1 }
 0x17c   : > { %v9303_v5 = vadd.f32 %v2766_v48, %v2138_v17  ;;  %v2143_v38 = vadd.f32 %v6405_v53, %v9040_v42 }
 0x17d   : > { %v6454_v44 = vpop.f32.mrf.mxu0  ;;  %v2026_v39 = vpop.f32.mrf.mxu1 }
 0x17e   : > { %v9306_v22 = vadd.f32 %v6453_v11, %v2143_v38  ;;  %v2141_v3 = vadd.f32 %v2026_v39, %v9049_v16 }
 0x17f   : > { %v2782_v2 = vpop.f32.mrf.mxu0  ;;  %v6406_v10 = vpop.f32.mrf.mxu1 }
 0x180   : > { %v9309_v0 = vadd.f32 %v2779_v28, %v2141_v3  ;;  %v2144_v18 = vadd.f32 %v6406_v10, %v9075_v54 }
 0x181   : > { %v6457_v37 = vpop.f32.mrf.mxu0  ;;  %v2029_v25 = vpop.f32.mrf.mxu1 }
 0x182   : > { %v9312_v33 = vadd.f32 %v6454_v44, %v2144_v18  ;;  %v2142_v56 = vadd.f32 %v2029_v25, %v9095_v15 }
 0x183   : > { %v2795_v21 = vpop.f32.mrf.mxu0  ;;  %v6409_v42 = vpop.f32.mrf.mxu1 }
 0x184   : > { %v9315_v49 = vadd.f32 %v2782_v2, %v2142_v56  ;;  %v2147_v14 = vadd.f32 %v6409_v42, %v9103_v8 }
 0x185   : > { %v6458_v55 = vpop.f32.mrf.mxu0  ;;  %v2042_v16 = vpop.f32.mrf.mxu1 }
 0x186   : > { %v9318_v1 = vadd.f32 %v6457_v37, %v2147_v14  ;;  %v2145_v45 = vadd.f32 %v2042_v16, %v9113_v46 }
 0x187   : > { %v2798_v23 = vpop.f32.mrf.mxu0  ;;  %v6410_v54 = vpop.f32.mrf.mxu1 }
 0x188   : > { %v9321_v7 = vadd.f32 %v2795_v21, %v2145_v45  ;;  %v2148_v12 = vadd.f32 %v6410_v54, %v9136_v24 }
 0x189   : > { %v6461_v30 = vpop.f32.mrf.mxu0  ;;  %v2045_v15 = vpop.f32.mrf.mxu1 }
 0x18a   : > { %v9324_v48 = vadd.f32 %v6458_v55, %v2148_v12  ;;  %v2146_v32 = vadd.f32 %v2045_v15, %v9153_v19 }
 0x18b   : > { %v2811_v58 = vpop.f32.mrf.mxu0  ;;  %v6413_v8 = vpop.f32.mrf.mxu1 }
 0x18c   : > { %v9327_v35 = vadd.f32 %v2798_v23, %v2146_v32  ;;  %v2151_v11 = vadd.f32 %v6413_v8, %v9160_v43 }
 0x18d   : > { %v6462_v4 = vpop.f32.mrf.mxu0  ;;  %v2058_v46 = vpop.f32.mrf.mxu1 }
 0x18e   : > { %v9330_v17 = vadd.f32 %v6461_v30, %v2151_v11  ;;  %v2149_v28 = vadd.f32 %v2058_v46, %v9172_v62 }
 0x18f   : > { %v2814_v53 = vpop.f32.mrf.mxu0  ;;  %v6414_v24 = vpop.f32.mrf.mxu1 }
 0x190   : > { %v9333_v38 = vadd.f32 %v2811_v58, %v2149_v28  ;;  %v2152_v44 = vadd.f32 %v6414_v24, %v9192_v20 }
 0x191   : > { %v6465_v39 = vpop.f32.mrf.mxu0  ;;  %v2061_v19 = vpop.f32.mrf.mxu1 }
 0x192   : > { %v9336_v3 = vadd.f32 %v6462_v4, %v2152_v44  ;;  %v2150_v2 = vadd.f32 %v2061_v19, %v9200_v13 }
 0x193   : > { %v2827_v10 = vpop.f32.mrf.mxu0  ;;  %v6417_v43 = vpop.f32.mrf.mxu1 }
 0x194   : > { %v9339_v18 = vadd.f32 %v2814_v53, %v2150_v2  ;;  %v2155_v37 = vadd.f32 %v6417_v43, %v9209_v26 }
 0x195   : > { %v6466_v25 = vpop.f32.mrf.mxu0  ;;  %v2074_v62 = vpop.f32.mrf.mxu1 }
 0x196   : > { %v9342_v56 = vadd.f32 %v6465_v39, %v2155_v37  ;;  %v2153_v21 = vadd.f32 %v2074_v62, %v9212_v52 }
 0x197   : > { %v2830_v42 = vpop.f32.mrf.mxu0  ;;  %v6418_v20 = vpop.f32.mrf.mxu1 }
 0x198   : > { %v9345_v14 = vadd.f32 %v2827_v10, %v2153_v21  ;;  %v2156_v55 = vadd.f32 %v6418_v20, %v9229_v63 }
 0x199   : > { %v6469_v16 = vpop.f32.mrf.mxu0  ;;  %v2077_v13 = vpop.f32.mrf.mxu1 }
 0x19a   : > { %v9348_v45 = vadd.f32 %v6466_v25, %v2156_v55  ;;  %v2154_v23 = vadd.f32 %v2077_v13, %v9242_v34 }
 0x19b   : > { %v2843_v54 = vpop.f32.mrf.mxu0  ;;  %v6421_v26 = vpop.f32.mrf.mxu1 }
 0x19c   : > { %10037 = vst [vmem:[#allocation5_spill] sm:$0xff] %v9348_v45  ;;  %v9351_v12 = vadd.f32 %v2830_v42, %v2154_v23  ;;  %v2159_v30 = vadd.f32 %v6421_v26, %v9249_v50 }
 0x19d   : > { %v6470_v15 = vpop.f32.mrf.mxu0  ;;  %v2090_v52 = vpop.f32.mrf.mxu1 }
 0x19e   : > { %10038 = vst [vmem:[#allocation9_spill] sm:$0xff] %v9351_v12  ;;  %v9354_v32 = vadd.f32 %v6469_v16, %v2159_v30  ;;  %v2157_v58 = vadd.f32 %v2090_v52, %v9252_v36 }
 0x19f   : > { %v2846_v8 = vpop.f32.mrf.mxu0  ;;  %v6422_v63 = vpop.f32.mrf.mxu1 }
 0x1a0   : > { %10039 = vst [vmem:[#allocation11_spill] sm:$0xff] %v9354_v32  ;;  %v9357_v11 = vadd.f32 %v2843_v54, %v2157_v58  ;;  %v2160_v4 = vadd.f32 %v6422_v63, %v9259_v31 }
 0x1a1   : > { %v6473_v46 = vpop.f32.mrf.mxu0  ;;  %v2093_v34 = vpop.f32.mrf.mxu1 }
 0x1a2   : > { %10040 = vst [vmem:[#allocation20_spill] sm:$0xff] %v9357_v11  ;;  %v9360_v28 = vadd.f32 %v6470_v15, %v2160_v4  ;;  %v2158_v53 = vadd.f32 %v2093_v34, %v9265_v40 }
 0x1a3   : > { %v2859_v24 = vpop.f32.mrf.mxu0  ;;  %v6425_v50 = vpop.f32.mrf.mxu1 }
 0x1a4   : > { %10041 = vst [vmem:[#allocation15_spill] sm:$0xff] %v9360_v28  ;;  %v9363_v44 = vadd.f32 %v2846_v8, %v2158_v53  ;;  %v2163_v39 = vadd.f32 %v6425_v50, %v9270_v41 }
 0x1a5   : > { %v6474_v19 = vpop.f32.mrf.mxu0  ;;  %v2106_v36 = vpop.f32.mrf.mxu1 }
 0x1a6   : > { %10042 = vst [vmem:[#allocation17_spill] sm:$0xff] %v9363_v44  ;;  %v9366_v2 = vadd.f32 %v6473_v46, %v2163_v39  ;;  %v2161_v10 = vadd.f32 %v2106_v36, %v9273_v59 }
 0x1a7   : > { %v2862_v43 = vpop.f32.mrf.mxu0  ;;  %v6426_v31 = vpop.f32.mrf.mxu1 }
 0x1a8   : > { %10043 = vst [vmem:[#allocation19_spill] sm:$0xff] %v9366_v2  ;;  %v9369_v37 = vadd.f32 %v2859_v24, %v2161_v10  ;;  %v2164_v25 = vadd.f32 %v6426_v31, %v9276_v27 }
 0x1a9   : > { %v6477_v62 = vpop.f32.mrf.mxu0  ;;  %v2109_v40 = vpop.f32.mrf.mxu1 }
 0x1aa   : > { %10044 = vst [vmem:[#allocation22_spill] sm:$0xff] %v9369_v37  ;;  %v9372_v21 = vadd.f32 %v6474_v19, %v2164_v25  ;;  %v2162_v42 = vadd.f32 %v2109_v40, %v9279_v60 }
 0x1ab   : > { %v2875_v20 = vpop.f32.mrf.mxu0  ;;  %v6429_v41 = vpop.f32.mrf.mxu1 }
 0x1ac   : > { %10045 = vst [vmem:[#allocation4_spill] sm:$0xff] %v9372_v21  ;;  %v9375_v55 = vadd.f32 %v2862_v43, %v2162_v42  ;;  %v2167_v16 = vadd.f32 %v6429_v41, %v9282_v6 }
 0x1ad   : > { %v6478_v13 = vpop.f32.mrf.mxu0  ;;  %v2122_v59 = vpop.f32.mrf.mxu1 }
 0x1ae   : > { %10046 = vst [vmem:[#allocation7_spill] sm:$0xff] %v9375_v55  ;;  %v9378_v23 = vadd.f32 %v6477_v62, %v2167_v16  ;;  %v2165_v54 = vadd.f32 %v2122_v59, %v9285_v61 }
 0x1af   : > { %v2878_v26 = vpop.f32.mrf.mxu0  ;;  %v6430_v27 = vpop.f32.mrf.mxu1 }
 0x1b0   : > { %10047 = vst [vmem:[#allocation6_spill] sm:$0xff] %v9378_v23  ;;  %v9381_v30 = vadd.f32 %v2875_v20, %v2165_v54  ;;  %v2168_v15 = vadd.f32 %v6430_v27, %v9288_v29 }
 0x1b1   : > { %v9384_v52 = vpop.f32.mrf.mxu0  ;;  %v2125_v60 = vpop.f32.mrf.mxu1 }
 0x1b2   : > { %10048 = vst [vmem:[#allocation8_spill] sm:$0xff] %v9381_v30  ;;  %v9386_v58 = vadd.f32 %v6478_v13, %v2168_v15  ;;  %v2166_v8 = vadd.f32 %v2125_v60, %v9291_v47 }
 0x1b3   : > { %v9389_v6 = vpop.f32.mrf.mxu0  ;;  %v6497_v63 = vpop.f32.mrf.mxu1 }
 0x1b4   : > { %10049 = vst [vmem:[#allocation10_spill] sm:$0xff] %v9386_v58  ;;  %v9391_v4 = vadd.f32 %v2878_v26, %v2166_v8 }
 0x1b5   : > { %v9393_v46 = vpop.f32.mrf.mxu0  ;;  %v3260_v61 = vpop.f32.mrf.mxu1 }
 0x1b6   : > { %10050 = vst [vmem:[#allocation12_spill] sm:$0xff] %v9391_v4 }
 0x1b7   : > { %v9395_v34 = vpop.f32.mrf.mxu0  ;;  %v6498_v53 = vpop.f32.mrf.mxu1 }
 0x1b9   : > { %v9397_v24 = vpop.f32.mrf.mxu0  ;;  %v3263_v29 = vpop.f32.mrf.mxu1 }
 0x1bb   : > { %v9399_v50 = vpop.f32.mrf.mxu0  ;;  %v9401_v39 = vpop.f32.mrf.mxu1 }
 0x1bd   : > { %v9403_v19 = vpop.f32.mrf.mxu0  ;;  %v9405_v47 = vpop.f32.mrf.mxu1 }
 0x1bf   : > { %v9407_v36 = vpop.f32.mrf.mxu0  ;;  %v9409_v10 = vpop.f32.mrf.mxu1 }
 0x1c1   : > { %v9411_v43 = vpop.f32.mrf.mxu0  ;;  %v9413_v31 = vpop.f32.mrf.mxu1 }
 0x1c3   : > { %v9415_v25 = vpop.f32.mrf.mxu0  ;;  %v9417_v62 = vpop.f32.mrf.mxu1 }
 0x1c5   : > { %v9419_v40 = vpop.f32.mrf.mxu0  ;;  %v9421_v42 = vpop.f32.mrf.mxu1 }
 0x1c7   : > { %v9423_v20 = vpop.f32.mrf.mxu0  ;;  %v9425_v41 = vpop.f32.mrf.mxu1 }
 0x1c9   : > { %v9427_v16 = vpop.f32.mrf.mxu0  ;;  %v9429_v13 = vpop.f32.mrf.mxu1 }
 0x1cb   : > { %v9431_v59 = vpop.f32.mrf.mxu0  ;;  %v9433_v54 = vpop.f32.mrf.mxu1 }
 0x1cd   : > { %v9435_v26 = vpop.f32.mrf.mxu0  ;;  %v9437_v27 = vpop.f32.mrf.mxu1 }
 0x1cf   : > { %v9439_v15 = vpop.f32.mrf.mxu0  ;;  %v9441_v60 = vpop.f32.mrf.mxu1 }
 0x1d1   : > { %v9443_v8 = vpop.f32.mrf.mxu0  ;;  %v9445_v4 = vpop.f32.mrf.mxu1 }
 0x1d2   : > { %10051 = vst [vmem:[#allocation13_spill] sm:$0xff] %v9443_v8 }
 0x1d3   : > { %v9447_v58 = vpop.f32.mrf.mxu0  ;;  %v9449_v30 = vpop.f32.mrf.mxu1 }
 0x1d4   : > { %10052 = vst [vmem:[#allocation14_spill] sm:$0xff] %v9447_v58 }
 0x1d5   : > { %v9451_v23 = vpop.f32.mrf.mxu0  ;;  %v9453_v55 = vpop.f32.mrf.mxu1 }
 0x1d6   : > { %10053 = vst [vmem:[#allocation16_spill] sm:$0xff] %v9451_v23 }
 0x1d7   : > { %v9455_v21 = vpop.f32.mrf.mxu0  ;;  %v9457_v37 = vpop.f32.mrf.mxu1 }
 0x1d8   : > { %10054 = vst [vmem:[#allocation18_spill] sm:$0xff] %v9455_v21  ;;  %10055 = vst [vmem:[#allocation21_spill] sm:$0xff] %v9457_v37 }
 0x1d9   : > { %v9459_v2 = vpop.f32.mrf.mxu0  ;;  %v9461_v44 = vpop.f32.mrf.mxu1 }
 0x1da   : > { %10056 = vst [vmem:[#allocation23_spill] sm:$0xff] %v9459_v2  ;;  %10057 = vst [vmem:[#allocation24_spill] sm:$0xff] %v9461_v44 }
 0x1db   : > { %v9463_v28 = vpop.f32.mrf.mxu0  ;;  %v9465_v11 = vpop.f32.mrf.mxu1 }
 0x1dc   : > { %10058 = vst [vmem:[#allocation25_spill] sm:$0xff] %v9463_v28  ;;  %10059 = vst [vmem:[#allocation26_spill] sm:$0xff] %v9465_v11 }
 0x1dd   : > { %v9467_v32 = vpop.f32.mrf.mxu0  ;;  %v9469_v58 = vpop.f32.mrf.mxu1 }
 0x1de   : > { %10060 = vst [vmem:[#allocation27_spill] sm:$0xff] %v9467_v32  ;;  %10061 = vst [vmem:[#allocation28_spill] sm:$0xff] %v9469_v58 }
 0x1df   : > { %v9471_v8 = vpop.f32.mrf.mxu0  ;;  %v9473_v23 = vpop.f32.mrf.mxu1 }
 0x1e0   : > { %10062 = vst [vmem:[#allocation29_spill] sm:$0xff] %v9471_v8  ;;  %10063 = vst [vmem:[#allocation30_spill] sm:$0xff] %v9473_v23 }
 0x1e1   : > { %v9475_v12 = vpop.f32.mrf.mxu0  ;;  %v9477_v21 = vpop.f32.mrf.mxu1 }
 0x1e2   : > { %10064 = vst [vmem:[#allocation31_spill] sm:$0xff] %v9475_v12  ;;  %10065 = vst [vmem:[#allocation32_spill] sm:$0xff] %v9477_v21 }
 0x1e3   : > { %v9479_v37 = vpop.f32.mrf.mxu0  ;;  %v9481_v2 = vpop.f32.mrf.mxu1 }
 0x1e4   : > { %10066 = vst [vmem:[#allocation33_spill] sm:$0xff] %v9479_v37  ;;  %10067 = vst [vmem:[#allocation34_spill] sm:$0xff] %v9481_v2 }
 0x1e5   : > { %v9483_v44 = vpop.f32.mrf.mxu0  ;;  %v9485_v28 = vpop.f32.mrf.mxu1 }
 0x1e6   : > { %10068 = vst [vmem:[#allocation35_spill] sm:$0xff] %v9483_v44  ;;  %10069 = vst [vmem:[#allocation36_spill] sm:$0xff] %v9485_v28  ;;  %v3389_v44 = vadd.f32 %v6497_v63, %v9294_v57 }
 0x1e7   : > { %v9487_v11 = vpop.f32.mrf.mxu0  ;;  %v9489_v32 = vpop.f32.mrf.mxu1 }
 0x1e8   : > { %10070 = vst [vmem:[#allocation37_spill] sm:$0xff] %v9487_v11  ;;  %10071 = vst [vmem:[#allocation38_spill] sm:$0xff] %v9489_v32  ;;  %v3387_v32 = vadd.f32 %v3260_v61, %v9297_v9  ;;  %v9519_v9 = vld [vmem:[%s9872_s2] ss:$0 sm:$0xff] }
 0x1e9   : > { %v9491_v58 = vpop.f32.mrf.mxu0  ;;  %v9493_v8 = vpop.f32.mrf.mxu1 }
 0x1ea   : > { %10072 = vst [vmem:[#allocation39_spill] sm:$0xff] %v9491_v58  ;;  %10073 = vst [vmem:[#allocation40_spill] sm:$0xff] %v9493_v8 }
 0x1eb   : > { %v9495_v23 = vpop.f32.mrf.mxu0  ;;  %v9497_v12 = vpop.f32.mrf.mxu1 }
 0x1ec   : > { %10074 = vst [vmem:[#allocation41_spill] sm:$0xff] %v9495_v23  ;;  %10075 = vst [vmem:[#allocation42_spill] sm:$0xff] %v9497_v12  ;;  %v3775_v23 = vadd.f32 %v9384_v52, %v3389_v44  ;;  %v3390_v12 = vadd.f32 %v6498_v53, %v9300_v51  ;;  %v3393_v51 = vadd.f32 %v9401_v39, %v9306_v22 }
 0x1ed   : > { %v9499_v37 = vpop.f32.mrf.mxu0  ;;  %v9501_v2 = vpop.f32.mrf.mxu1 }
 0x1ee   : > { %10076 = vst [vmem:[#allocation43_spill] sm:$0xff] %v9499_v37  ;;  %10077 = vst [vmem:[#allocation44_spill] sm:$0xff] %v9501_v2  ;;  %v3388_v37 = vadd.f32 %v3263_v29, %v9303_v5  ;;  %v3773_v2 = vadd.f32 %v9389_v6, %v3387_v32 }
 0x1ef   : > { %v9504_v28 = vpop.f32.mrf.mxu0  ;;  %v9506_v11 = vpop.f32.mrf.mxu1 }
 0x1f0   : > { %10078 = vst [vmem:[#allocation45_spill] sm:$0xff] %v9504_v28  ;;  %10079 = vst [vmem:[#allocation46_spill] sm:$0xff] %v9506_v11  ;;  %v3776_v28 = vadd.f32 %v9393_v46, %v3390_v12  ;;  %v3774_v53 = vadd.f32 %v9395_v34, %v3388_v37  ;;  %v3779_v12 = vadd.f32 %v9397_v24, %v3393_v51 }
 0x1f1   : > { %v9509_v21 = vpop.f32.mrf.mxu1  ;;  %v3397_v46 = vadd.f32 %v9417_v62, %v9318_v1 }
 0x1f2   : > { %v6641_v58 = vpop.f32.mrf.mxu0  ;;  %10080 = vst [vmem:[#allocation47_spill] sm:$0xff] %v9509_v21 }
 0x1f3   : > { %v6593_v45 = vpop.f32.mrf.mxu1 }
 0x1f4   : > { %v4896_v8 = vpop.f32.mrf.mxu0  ;;  %v4528_v57 = vadd.f32 %v6593_v45, %v3775_v23  ;;  %v3391_v45 = vadd.f32 %v9405_v47, %v9309_v0  ;;  %v3394_v0 = vadd.f32 %v9409_v10, %v9312_v33  ;;  %v3398_v33 = vadd.f32 %v9425_v41, %v9324_v48 }
 0x1f5   : > { %v4399_v61 = vpop.f32.mrf.mxu1 }
 0x1f6   : > { %v6642_v63 = vpop.f32.mrf.mxu0  ;;  %v5025_v44 = vadd.f32 %v6641_v58, %v4528_v57  ;;  %v4526_v52 = vadd.f32 %v4399_v61, %v3773_v2  ;;  %v3777_v24 = vadd.f32 %v9399_v50, %v3391_v45  ;;  %v3395_v57 = vadd.f32 %v9421_v42, %v9321_v7 }
 0x1f7   : > { %v6594_v32 = vpop.f32.mrf.mxu1  ;;  %v3780_v62 = vadd.f32 %v9403_v19, %v3394_v0  ;;  %v3783_v61 = vadd.f32 %v9411_v43, %v3397_v46  ;;  %v3396_v19 = vadd.f32 %v9429_v13, %v9327_v35  ;;  %v3402_v0 = vadd.f32 %v9441_v60, %v9336_v3 }
 0x1f8   : > { %v4899_v5 = vpop.f32.mrf.mxu0  ;;  %v5064_v23 = vadd.f32 %v9519_v9, %v5025_v44  ;;  %v5023_v6 = vadd.f32 %v4896_v8, %v4526_v52  ;;  %v4529_v29 = vadd.f32 %v6594_v32, %v3776_v28  ;;  %v3392_v28 = vadd.f32 %v9413_v31, %v9315_v49 }
 0x1f9   : > { %v4402_v11 = vpop.f32.mrf.mxu1 }
 0x1fa   : > { %v6645_v21 = vpop.f32.mrf.mxu0  ;;  %5098 = vst [vmem:[%s9529_s17 + $0x10] sm:$0xff] %v5064_v23  ;;  %v5062_v22 = vadd.f32 %v9519_v9, %v5023_v6  ;;  %v5026_v2 = vadd.f32 %v6642_v63, %v4529_v29  ;;  %v4527_v37 = vadd.f32 %v4402_v11, %v3774_v53  ;;  %v3778_v63 = vadd.f32 %v9407_v36, %v3392_v28 }
 0x1fb   : > { %v6597_v34 = vpop.f32.mrf.mxu1  ;;  %v5171_v53 = vmul.f32 %v5064_v23, %v5064_v23 }
 0x1fc   : > { %v4912_v58 = vpop.f32.mrf.mxu0  ;;  %5096 = vst [vmem:[%s9529_s17] sm:$0xff] %v5062_v22  ;;  %v5065_v39 = vadd.f32 %v9519_v9, %v5026_v2  ;;  %v5024_v47 = vadd.f32 %v4899_v5, %v4527_v37  ;;  %v4532_v8 = vadd.f32 %v6597_v34, %v3779_v12  ;;  %v5169_v51 = vmul.f32 %v5062_v22, %v5062_v22 }
 0x1fd   : > { %v4415_v49 = vpop.f32.mrf.mxu1  ;;  %v3784_v5 = vadd.f32 %v9419_v40, %v3398_v33  ;;  %v3401_v12 = vadd.f32 %v9433_v54, %v9330_v17 }
 0x1fe   : > { %v6646_v11 = vpop.f32.mrf.mxu0  ;;  %5099 = vst [vmem:[%s9529_s17 + $0x18] sm:$0xff] %v5065_v39  ;;  %v5063_v1 = vadd.f32 %v9519_v9, %v5024_v47  ;;  %v5029_v10 = vadd.f32 %v6645_v21, %v4532_v8  ;;  %v4530_v31 = vadd.f32 %v4415_v49, %v3777_v24  ;;  %v3781_v21 = vadd.f32 %v9415_v25, %v3395_v57 }
 0x1ff   : > { %v6598_v44 = vpop.f32.mrf.mxu1  ;;  %v3399_v25 = vadd.f32 %v9437_v27, %v9333_v38  ;;  %v5172_v35 = vmul.f32 %v5065_v39, %v5065_v39  ;;  %v3782_v8 = vadd.f32 %v9423_v20, %v3396_v19  ;;  %v3403_v19 = vadd.f32 %v9453_v55, %v9345_v14 }
 0x200   : > { %v4915_v50 = vpop.f32.mrf.mxu0  ;;  %5097 = vst [vmem:[%s9529_s17 + $0x8] sm:$0xff] %v5063_v1  ;;  %v5129_v7 = vadd.f32 %v5063_v1, %v5062_v22  ;;  %v5170_v42 = vmul.f32 %v5063_v1, %v5063_v1  ;;  %v5068_v48 = vadd.f32 %v9519_v9, %v5029_v10  ;;  %v5027_v41 = vadd.f32 %v4912_v58, %v4530_v31 }
 0x201   : > { %v4533_v36 = vadd.f32 %v6598_v44, %v3780_v62  ;;  %v4418_v43 = vpop.f32.mrf.mxu1  ;;  %v3787_v10 = vadd.f32 %v9427_v16, %v3401_v12  ;;  %v3785_v31 = vadd.f32 %v9431_v59, %v3399_v25  ;;  %v10083_v12 = vld [vmem:[#allocation9_spill] sm:$0xff]  ;;  %v10084_v25 = vld [vmem:[#allocation24_spill] sm:$0xff] }
 0x202   : > { %v6649_v52 = vpop.f32.mrf.mxu0  ;;  %v5130_v32 = vadd.f32 %v5129_v7, %v5064_v23  ;;  %v5201_v45 = vadd.f32 %v5170_v42, %v5169_v51  ;;  %5102 = vst [vmem:[%s9529_s17 + $0x30] sm:$0xff] %v5068_v48  ;;  %v5066_v6 = vadd.f32 %v9519_v9, %v5027_v41  ;;  %v4531_v22 = vadd.f32 %v4418_v43, %v3778_v63 }
 0x203   : > { %v5030_v40 = vadd.f32 %v6646_v11, %v4533_v36  ;;  %v6601_v2 = vpop.f32.mrf.mxu1  ;;  %v5175_v7 = vmul.f32 %v5068_v48, %v5068_v48  ;;  %v3405_v41 = vadd.f32 %v9449_v30, %v9342_v56 }
 0x204   : > { %v4928_v29 = vpop.f32.mrf.mxu0  ;;  %v5202_v13 = vadd.f32 %v5201_v45, %v5171_v53  ;;  %5100 = vst [vmem:[%s9529_s17 + $0x20] sm:$0xff] %v5066_v6  ;;  %v5131_v37 = vadd.f32 %v5130_v32, %v5065_v39  ;;  %v4536_v23 = vadd.f32 %v6601_v2, %v3783_v61  ;;  %v5173_v28 = vmul.f32 %v5066_v6, %v5066_v6  ;;  %v10082_v32 = vld [vmem:[#allocation21_spill] sm:$0xff] }
 0x205   : > { %v5069_v46 = vadd.f32 %v9519_v9, %v5030_v40  ;;  %v5028_v17 = vadd.f32 %v4915_v50, %v4531_v22  ;;  %v4431_v54 = vpop.f32.mrf.mxu1  ;;  %v3400_v39 = vadd.f32 %v9445_v4, %v9339_v18  ;;  %v3788_v4 = vadd.f32 %v9435_v26, %v3402_v0  ;;  %v10085_v0 = vld [vmem:[#allocation13_spill] sm:$0xff] }
 0x206   : > { %v6650_v58 = vpop.f32.mrf.mxu0  ;;  %v5132_v34 = vadd.f32 %v5131_v37, %v5066_v6  ;;  %v5203_v38 = vadd.f32 %v5202_v13, %v5172_v35  ;;  %v5033_v27 = vadd.f32 %v6649_v52, %v4536_v23  ;;  %v4534_v24 = vadd.f32 %v4431_v54, %v3781_v21 }
 0x207   : > { %5103 = vst [vmem:[%s9529_s17 + $0x38] sm:$0xff] %v5069_v46  ;;  %v5067_v3 = vadd.f32 %v9519_v9, %v5028_v17  ;;  %v6602_v60 = vpop.f32.mrf.mxu1  ;;  %v3786_v44 = vadd.f32 %v9439_v15, %v3400_v39  ;;  %v5176_v36 = vmul.f32 %v5069_v46, %v5069_v46  ;;  %v3404_v40 = vadd.f32 %v10084_v25, %v10083_v12  ;;  %v10097_v25 = vld [vmem:[#allocation23_spill] sm:$0xff] }
 0x208   : > { %v4931_v47 = vpop.f32.mrf.mxu0  ;;  %v5204_v11 = vadd.f32 %v5203_v38, %v5173_v28  ;;  %v5072_v57 = vadd.f32 %v9519_v9, %v5033_v27  ;;  %v5031_v33 = vadd.f32 %v4928_v29, %v4534_v24  ;;  %v4537_v49 = vadd.f32 %v6602_v60, %v3784_v5  ;;  %v10087_v27 = vld [vmem:[#allocation16_spill] sm:$0xff]  ;;  %v10088_v60 = vld [vmem:[#allocation18_spill] sm:$0xff] }
 0x209   : > { %5101 = vst [vmem:[%s9529_s17 + $0x28] sm:$0xff] %v5067_v3  ;;  %v5133_v20 = vadd.f32 %v5132_v34, %v5067_v3  ;;  %v5174_v50 = vmul.f32 %v5067_v3, %v5067_v3  ;;  %v4434_v18 = vpop.f32.mrf.mxu1  ;;  %v3791_v28 = vadd.f32 %v10085_v0, %v3405_v41  ;;  %v10094_v41 = vld [vmem:[#allocation30_spill] sm:$0xff] }
 0x20a   : > { %v6653_v1 = vpop.f32.mrf.mxu0  ;;  %5106 = vst [vmem:[%s9529_s17 + $0x50] sm:$0xff] %v5072_v57  ;;  %v5070_v62 = vadd.f32 %v9519_v9, %v5031_v33  ;;  %v5034_v63 = vadd.f32 %v6650_v58, %v4537_v49  ;;  %v4535_v61 = vadd.f32 %v4434_v18, %v3782_v8  ;;  %v5179_v33 = vmul.f32 %v5072_v57, %v5072_v57 }
 0x20b   : > { %v5134_v16 = vadd.f32 %v5133_v20, %v5068_v48  ;;  %v5205_v42 = vadd.f32 %v5204_v11, %v5174_v50  ;;  %v6605_v59 = vpop.f32.mrf.mxu1  ;;  %v10081_v48 = vld [vmem:[#allocation5_spill] sm:$0xff]  ;;  %v3790_v11 = vadd.f32 %v10088_v60, %v3404_v40  ;;  %v10090_v20 = vld [vmem:[#allocation26_spill] sm:$0xff]  ;;  %v10101_v60 = vld [vmem:[#allocation19_spill] sm:$0xff] }
 0x20c   : > { %v4944_v51 = vpop.f32.mrf.mxu0  ;;  %5104 = vst [vmem:[%s9529_s17 + $0x40] sm:$0xff] %v5070_v62  ;;  %v5073_v52 = vadd.f32 %v9519_v9, %v5034_v63  ;;  %v5032_v26 = vadd.f32 %v4931_v47, %v4535_v61  ;;  %v4540_v21 = vadd.f32 %v6605_v59, %v3787_v10  ;;  %v3406_v45 = vadd.f32 %v10082_v32, %v10081_v48  ;;  %v10091_v61 = vld [vmem:[#allocation20_spill] sm:$0xff] }
 0x20d   : > { %v5206_v15 = vadd.f32 %v5205_v42, %v5175_v7  ;;  %v5135_v43 = vadd.f32 %v5134_v16, %v5069_v46  ;;  %v4447_v53 = vpop.f32.mrf.mxu1  ;;  %v5177_v14 = vmul.f32 %v5070_v62, %v5070_v62  ;;  %v10086_v46 = vld [vmem:[#allocation14_spill] sm:$0xff] }
 0x20e   : > { %v6654_v5 = vpop.f32.mrf.mxu0  ;;  %5107 = vst [vmem:[%s9529_s17 + $0x58] sm:$0xff] %v5073_v52  ;;  %v5071_v56 = vadd.f32 %v9519_v9, %v5032_v26  ;;  %v5037_v30 = vadd.f32 %v6653_v1, %v4540_v21  ;;  %v4538_v6 = vadd.f32 %v4447_v53, %v3785_v31  ;;  %v3789_v17 = vadd.f32 %v10086_v46, %v3403_v19  ;;  %v10089_v31 = vld [vmem:[#allocation11_spill] sm:$0xff] }
 0x20f   : > { %v5136_v22 = vadd.f32 %v5135_v43, %v5070_v62  ;;  %v5207_v55 = vadd.f32 %v5206_v15, %v5176_v36  ;;  %v6606_v2 = vpop.f32.mrf.mxu1  ;;  %v3792_v24 = vadd.f32 %v10087_v27, %v3406_v45  ;;  %v3409_v50 = vadd.f32 %v10090_v20, %v10089_v31  ;;  %v10095_v15 = vld [vmem:[#allocation17_spill] sm:$0xff]  ;;  %v10096_v43 = vld [vmem:[#allocation32_spill] sm:$0xff]  ;;  %v10103_v20 = vld [vmem:[#allocation22_spill] sm:$0xff] }
 0x210   : > { %v4947_v29 = vpop.f32.mrf.mxu0  ;;  %5105 = vst [vmem:[%s9529_s17 + $0x48] sm:$0xff] %v5071_v56  ;;  %v5178_v35 = vmul.f32 %v5071_v56, %v5071_v56  ;;  %v5076_v13 = vadd.f32 %v9519_v9, %v5037_v30  ;;  %v5035_v37 = vadd.f32 %v4944_v51, %v4538_v6  ;;  %v4541_v23 = vadd.f32 %v6606_v2, %v3788_v4  ;;  %v10092_v51 = vld [vmem:[#allocation28_spill] sm:$0xff]  ;;  %v10098_v2 = vld [vmem:[#allocation25_spill] sm:$0xff] }
 0x211   : > { %v5208_v54 = vadd.f32 %v5207_v55, %v5177_v14  ;;  %v5137_v34 = vadd.f32 %v5136_v22, %v5071_v56  ;;  %v4450_v38 = vpop.f32.mrf.mxu1  ;;  %v5180_v7 = vmul.f32 %v5073_v52, %v5073_v52  ;;  %v3408_v53 = vadd.f32 %v10096_v43, %v10095_v15  ;;  %v10100_v27 = vld [vmem:[#allocation29_spill] sm:$0xff] }
 0x212   : > { %5110 = vst [vmem:[%s9529_s17 + $0x70] sm:$0xff] %v5076_v13  ;;  %v5074_v47 = vadd.f32 %v9519_v9, %v5035_v37  ;;  %v5038_v8 = vadd.f32 %v6654_v5, %v4541_v23  ;;  %v4539_v39 = vadd.f32 %v4450_v38, %v3786_v44  ;;  %v3407_v44 = vadd.f32 %v10092_v51, %v10091_v61  ;;  %v10105_v51 = vld [vmem:[#allocation4_spill] sm:$0xff] }
 0x213   : > { %v6657_v58 = vpop.f32.mrf.mxu0  ;;  %v5138_v49 = vadd.f32 %v5137_v34, %v5072_v57  ;;  %v5209_v1 = vadd.f32 %v5208_v54, %v5178_v35  ;;  %v6609_v10 = vpop.f32.mrf.mxu1  ;;  %v10093_v57 = vld [vmem:[#allocation15_spill] sm:$0xff]  ;;  %v3795_v40 = vadd.f32 %v10097_v25, %v3409_v50 }
 0x214   : > { %5108 = vst [vmem:[%s9529_s17 + $0x60] sm:$0xff] %v5074_v47  ;;  %v5077_v18 = vadd.f32 %v9519_v9, %v5038_v8  ;;  %v5036_v4 = vadd.f32 %v4947_v29, %v4539_v39  ;;  %v4544_v62 = vadd.f32 %v6609_v10, %v3791_v28  ;;  %v3410_v26 = vadd.f32 %v10094_v41, %v10093_v57  ;;  %v10099_v28 = vld [vmem:[#allocation27_spill] sm:$0xff] }
 0x215   : > { %v4960_v3 = vpop.f32.mrf.mxu0  ;;  %v5210_v16 = vadd.f32 %v5209_v1, %v5179_v33  ;;  %v5139_v42 = vadd.f32 %v5138_v49, %v5073_v52  ;;  %v4463_v59 = vpop.f32.mrf.mxu1  ;;  %v5181_v32 = vmul.f32 %v5074_v47, %v5074_v47  ;;  %v3793_v35 = vadd.f32 %v10098_v2, %v3407_v44  ;;  %v10102_v33 = vld [vmem:[#allocation34_spill] sm:$0xff]  ;;  %v10111_v2 = vld [vmem:[#allocation35_spill] sm:$0xff] }
 0x216   : > { %5111 = vst [vmem:[%s9529_s17 + $0x78] sm:$0xff] %v5077_v18  ;;  %v5075_v21 = vadd.f32 %v9519_v9, %v5036_v4  ;;  %v5041_v5 = vadd.f32 %v6657_v58, %v4544_v62  ;;  %v4542_v19 = vadd.f32 %v4463_v59, %v3789_v17  ;;  %v3796_v46 = vadd.f32 %v10099_v28, %v3410_v26  ;;  %v10106_v44 = vld [vmem:[#allocation38_spill] sm:$0xff] }
 0x217   : > { %v6658_v63 = vpop.f32.mrf.mxu0  ;;  %v5140_v48 = vadd.f32 %v5139_v42, %v5074_v47  ;;  %v5211_v45 = vadd.f32 %v5210_v16, %v5180_v7  ;;  %v6610_v56 = vpop.f32.mrf.mxu1  ;;  %v5183_v17 = vmul.f32 %v5076_v13, %v5076_v13  ;;  %v3413_v49 = vadd.f32 %v10102_v33, %v10101_v60  ;;  %v10112_v28 = vld [vmem:[#allocation6_spill] sm:$0xff]  ;;  %v10115_v33 = vld [vmem:[#allocation8_spill] sm:$0xff] }
 0x218   : > { %5109 = vst [vmem:[%s9529_s17 + $0x68] sm:$0xff] %v5075_v21  ;;  %v5182_v52 = vmul.f32 %v5075_v21, %v5075_v21  ;;  %v5080_v30 = vadd.f32 %v9519_v9, %v5041_v5  ;;  %v5039_v6 = vadd.f32 %v4960_v3, %v4542_v19  ;;  %v4545_v29 = vadd.f32 %v6610_v56, %v3792_v24  ;;  %v10107_v19 = vld [vmem:[#allocation31_spill] sm:$0xff] }
 0x219   : > { %v4963_v36 = vpop.f32.mrf.mxu0  ;;  %v5212_v22 = vadd.f32 %v5211_v45, %v5181_v32  ;;  %v5141_v14 = vadd.f32 %v5140_v48, %v5075_v21  ;;  %v4466_v55 = vpop.f32.mrf.mxu1  ;;  %v3794_v24 = vadd.f32 %v10100_v27, %v3408_v53  ;;  %v3414_v7 = vadd.f32 %v10106_v44, %v10105_v51  ;;  %v10108_v48 = vld [vmem:[#allocation7_spill] sm:$0xff]  ;;  %v10109_v32 = vld [vmem:[#allocation40_spill] sm:$0xff] }
 0x21a   : > { %5114 = vst [vmem:[%s9529_s17 + $0x90] sm:$0xff] %v5080_v30  ;;  %v5078_v37 = vadd.f32 %v9519_v9, %v5039_v6  ;;  %v5042_v23 = vadd.f32 %v6658_v63, %v4545_v29  ;;  %v4543_v58 = vadd.f32 %v4466_v55, %v3790_v11  ;;  %v5184_v11 = vmul.f32 %v5077_v18, %v5077_v18 }
 0x21b   : > { %v6661_v12 = vpop.f32.mrf.mxu0  ;;  %v5142_v54 = vadd.f32 %v5141_v14, %v5076_v13  ;;  %v5213_v34 = vadd.f32 %v5212_v22, %v5182_v52  ;;  %v6613_v38 = vpop.f32.mrf.mxu1  ;;  %v10104_v13 = vld [vmem:[#allocation36_spill] sm:$0xff]  ;;  %v3412_v45 = vadd.f32 %v10109_v32, %v10108_v48  ;;  %v10122_v32 = vld [vmem:[#allocation41_spill] sm:$0xff] }
 0x21c   : > { %5112 = vst [vmem:[%s9529_s17 + $0x80] sm:$0xff] %v5078_v37  ;;  %v5081_v47 = vadd.f32 %v9519_v9, %v5042_v23  ;;  %v5040_v8 = vadd.f32 %v4963_v36, %v4543_v58  ;;  %v4548_v39 = vadd.f32 %v6613_v38, %v3795_v40  ;;  %v3411_v50 = vadd.f32 %v10104_v13, %v10103_v20 }
 0x21d   : > { %v4976_v0 = vpop.f32.mrf.mxu0  ;;  %v5214_v1 = vadd.f32 %v5213_v34, %v5183_v17  ;;  %v5143_v10 = vadd.f32 %v5142_v54, %v5077_v18  ;;  %v4479_v31 = vpop.f32.mrf.mxu1  ;;  %v5185_v42 = vmul.f32 %v5078_v37, %v5078_v37  ;;  %v3799_v36 = vadd.f32 %v10107_v19, %v3413_v49  ;;  %v10116_v49 = vld [vmem:[#allocation44_spill] sm:$0xff] }
 0x21e   : > { %5115 = vst [vmem:[%s9529_s17 + $0x98] sm:$0xff] %v5081_v47  ;;  %v5079_v4 = vadd.f32 %v9519_v9, %v5040_v8  ;;  %v5045_v62 = vadd.f32 %v6661_v12, %v4548_v39  ;;  %v4546_v63 = vadd.f32 %v4479_v31, %v3793_v35  ;;  %v10110_v12 = vld [vmem:[#allocation33_spill] sm:$0xff]  ;;  %v5187_v40 = vmul.f32 %v5080_v30, %v5080_v30 }
 0x21f   : > { %v6662_v3 = vpop.f32.mrf.mxu0  ;;  %v5144_v16 = vadd.f32 %v5143_v10, %v5078_v37  ;;  %v5215_v59 = vadd.f32 %v5214_v1, %v5184_v11  ;;  %v6614_v57 = vpop.f32.mrf.mxu1  ;;  %v3797_v25 = vadd.f32 %v10110_v12, %v3411_v50  ;;  %v3800_v35 = vadd.f32 %v10111_v2, %v3414_v7 }
 0x220   : > { %5113 = vst [vmem:[%s9529_s17 + $0x88] sm:$0xff] %v5079_v4  ;;  %v5186_v18 = vmul.f32 %v5079_v4, %v5079_v4  ;;  %v5084_v41 = vadd.f32 %v9519_v9, %v5045_v62  ;;  %v5043_v26 = vadd.f32 %v4976_v0, %v4546_v63  ;;  %v4549_v21 = vadd.f32 %v6614_v57, %v3796_v46  ;;  %v10113_v46 = vld [vmem:[#allocation42_spill] sm:$0xff]  ;;  %v10117_v63 = vld [vmem:[#allocation39_spill] sm:$0xff] }
 0x221   : > { %v4979_v61 = vpop.f32.mrf.mxu0  ;;  %v5216_v15 = vadd.f32 %v5215_v59, %v5185_v42  ;;  %v5145_v43 = vadd.f32 %v5144_v16, %v5079_v4  ;;  %v4482_v53 = vpop.f32.mrf.mxu1  ;;  %v3417_v17 = vadd.f32 %v10113_v46, %v10112_v28  ;;  %v5188_v54 = vmul.f32 %v5081_v47, %v5081_v47  ;;  %v10118_v16 = vld [vmem:[#allocation10_spill] sm:$0xff] }
 0x222   : > { %5118 = vst [vmem:[%s9529_s17 + $0xb0] sm:$0xff] %v5084_v41  ;;  %v5082_v56 = vadd.f32 %v9519_v9, %v5043_v26  ;;  %v5046_v52 = vadd.f32 %v6662_v3, %v4549_v21  ;;  %v4547_v6 = vadd.f32 %v4482_v53, %v3794_v24  ;;  %v10114_v24 = vld [vmem:[#allocation37_spill] sm:$0xff]  ;;  %v3415_v11 = vadd.f32 %v10116_v49, %v10115_v33  ;;  %v10119_v42 = vld [vmem:[#allocation46_spill] sm:$0xff]  ;;  %v10120_v21 = vld [vmem:[#allocation12_spill] sm:$0xff] }
 0x223   : > { %v6665_v5 = vpop.f32.mrf.mxu0  ;;  %v5146_v22 = vadd.f32 %v5145_v43, %v5080_v30  ;;  %v5217_v14 = vadd.f32 %v5216_v15, %v5186_v18  ;;  %v6617_v55 = vpop.f32.mrf.mxu1  ;;  %v3798_v30 = vadd.f32 %v10114_v24, %v3412_v45  ;;  %v3418_v59 = vadd.f32 %v10119_v42, %v10118_v16 }
 0x224   : > { %5116 = vst [vmem:[%s9529_s17 + $0xa0] sm:$0xff] %v5082_v56  ;;  %v5085_v37 = vadd.f32 %v9519_v9, %v5046_v52  ;;  %v5044_v23 = vadd.f32 %v4979_v61, %v4547_v6  ;;  %v4552_v58 = vadd.f32 %v6617_v55, %v3799_v36  ;;  %v5189_v10 = vmul.f32 %v5082_v56, %v5082_v56 }
 0x225   : > { %v4992_v29 = vpop.f32.mrf.mxu0  ;;  %v5218_v34 = vadd.f32 %v5217_v14, %v5187_v40  ;;  %v5147_v38 = vadd.f32 %v5146_v22, %v5081_v47  ;;  %v4495_v27 = vpop.f32.mrf.mxu1  ;;  %v3803_v61 = vadd.f32 %v10117_v63, %v3417_v17  ;;  %v5191_v36 = vmul.f32 %v5084_v41, %v5084_v41  ;;  %v10123_v22 = vld [vmem:[#allocation43_spill] sm:$0xff] }
 0x226   : > { %5119 = vst [vmem:[%s9529_s17 + $0xb8] sm:$0xff] %v5085_v37  ;;  %v5083_v8 = vadd.f32 %v9519_v9, %v5044_v23  ;;  %v5049_v39 = vadd.f32 %v6665_v5, %v4552_v58  ;;  %v4550_v3 = vadd.f32 %v4495_v27, %v3797_v25  ;;  %v10121_v5 = vld [vmem:[#allocation47_spill] sm:$0xff]  ;;  %v3801_v45 = vadd.f32 %v10122_v32, %v3415_v11 }
 0x227   : > { %v6666_v0 = vpop.f32.mrf.mxu0  ;;  %v5148_v1 = vadd.f32 %v5147_v38, %v5082_v56  ;;  %v5219_v31 = vadd.f32 %v5218_v34, %v5188_v54  ;;  %v6618_v20 = vpop.f32.mrf.mxu1  ;;  %v3416_v19 = vadd.f32 %v10121_v5, %v10120_v21  ;;  %v3804_v14 = vadd.f32 %v10123_v22, %v3418_v59 }
 0x228   : > { %5117 = vst [vmem:[%s9529_s17 + $0xa8] sm:$0xff] %v5083_v8  ;;  %v5190_v13 = vmul.f32 %v5083_v8, %v5083_v8  ;;  %v5088_v47 = vadd.f32 %v9519_v9, %v5049_v39  ;;  %v5047_v50 = vadd.f32 %v4992_v29, %v4550_v3  ;;  %v4553_v4 = vadd.f32 %v6618_v20, %v3800_v35  ;;  %v10124_v35 = vld [vmem:[#allocation45_spill] sm:$0xff] }
 0x229   : > { %v4995_v60 = vpop.f32.mrf.mxu0  ;;  %v5220_v51 = vadd.f32 %v5219_v31, %v5189_v10  ;;  %v5149_v44 = vadd.f32 %v5148_v1, %v5083_v8  ;;  %v4498_v7 = vpop.f32.mrf.mxu1  ;;  %v5192_v29 = vmul.f32 %v5085_v37, %v5085_v37  ;;  %v3802_v23 = vadd.f32 %v10124_v35, %v3416_v19 }
 0x22a   : > { %5122 = vst [vmem:[%s9529_s17 + $0xd0] sm:$0xff] %v5088_v47  ;;  %v5086_v57 = vadd.f32 %v9519_v9, %v5047_v50  ;;  %v5050_v18 = vadd.f32 %v6666_v0, %v4553_v4  ;;  %v4551_v26 = vadd.f32 %v4498_v7, %v3798_v30 }
 0x22b   : > { %v6669_v62 = vpop.f32.mrf.mxu0  ;;  %v5150_v15 = vadd.f32 %v5149_v44, %v5084_v41  ;;  %v5221_v43 = vadd.f32 %v5220_v51, %v5190_v13  ;;  %v6621_v53 = vpop.f32.mrf.mxu1 }
 0x22c   : > { %5120 = vst [vmem:[%s9529_s17 + $0xc0] sm:$0xff] %v5086_v57  ;;  %v5089_v56 = vadd.f32 %v9519_v9, %v5050_v18  ;;  %v5048_v52 = vadd.f32 %v4995_v60, %v4551_v26  ;;  %v4556_v6 = vadd.f32 %v6621_v53, %v3803_v61  ;;  %v5193_v0 = vmul.f32 %v5086_v57, %v5086_v57 }
 0x22d   : > { %v5008_v48 = vpop.f32.mrf.mxu0  ;;  %v5222_v12 = vadd.f32 %v5221_v43, %v5191_v36  ;;  %v5151_v25 = vadd.f32 %v5150_v15, %v5085_v37  ;;  %v4511_v40 = vpop.f32.mrf.mxu1  ;;  %v5195_v60 = vmul.f32 %v5088_v47, %v5088_v47 }
 0x22e   : > { %5123 = vst [vmem:[%s9529_s17 + $0xd8] sm:$0xff] %v5089_v56  ;;  %v5087_v41 = vadd.f32 %v9519_v9, %v5048_v52  ;;  %v5053_v55 = vadd.f32 %v6669_v62, %v4556_v6  ;;  %v4554_v2 = vadd.f32 %v4511_v40, %v3801_v45  ;;  %v5196_v31 = vmul.f32 %v5089_v56, %v5089_v56 }
 0x22f   : > { %v5152_v58 = vadd.f32 %v5151_v25, %v5086_v57  ;;  %v5223_v28 = vadd.f32 %v5222_v12, %v5192_v29  ;;  %v6622_v46 = vpop.f32.mrf.mxu1  ;;  %v6670_v17 = vpop.f32.mrf.mxu0 }
 0x230   : > { %5121 = vst [vmem:[%s9529_s17 + $0xc8] sm:$0xff] %v5087_v41  ;;  %v5194_v54 = vmul.f32 %v5087_v41, %v5087_v41  ;;  %v5092_v37 = vadd.f32 %v9519_v9, %v5053_v55  ;;  %v5051_v34 = vadd.f32 %v5008_v48, %v4554_v2  ;;  %v4557_v38 = vadd.f32 %v6622_v46, %v3804_v14  ;;  %v5128_v48 = vld [vmem:[#allocation3] sm:$0x1] }
 0x231   : > { %v5224_v27 = vadd.f32 %v5223_v28, %v5193_v0  ;;  %v5153_v24 = vadd.f32 %v5152_v58, %v5087_v41  ;;  %v4514_v30 = vpop.f32.mrf.mxu1  ;;  %v5011_v11 = vpop.f32.mrf.mxu0 }
 0x232   : > { %5126 = vst [vmem:[%s9529_s17 + $0xf0] sm:$0xff] %v5092_v37  ;;  %v5090_v8 = vadd.f32 %v9519_v9, %v5051_v34  ;;  %v5054_v39 = vadd.f32 %v6670_v17, %v4557_v38  ;;  %v4555_v3 = vadd.f32 %v4514_v30, %v3802_v23 }
 0x233   : > { %v5154_v33 = vadd.f32 %v5153_v24, %v5088_v47  ;;  %v5225_v49 = vadd.f32 %v5224_v27, %v5194_v54  ;;  %v5199_v47 = vmul.f32 %v5092_v37, %v5092_v37 }
 0x234   : > { %5124 = vst [vmem:[%s9529_s17 + $0xe0] sm:$0xff] %v5090_v8  ;;  %v5093_v1 = vadd.f32 %v9519_v9, %v5054_v39  ;;  %v5052_v10 = vadd.f32 %v5011_v11, %v4555_v3  ;;  %v5197_v62 = vmul.f32 %v5090_v8, %v5090_v8 }
 0x235   : > { %v5226_v20 = vadd.f32 %v5225_v49, %v5195_v60  ;;  %v5155_v13 = vadd.f32 %v5154_v33, %v5089_v56  ;;  %v5168_v56 = vld [vmem:[#allocation3 + $0x1] sm:$0x1] }
 0x236   : > { %5127 = vst [vmem:[%s9529_s17 + $0xf8] sm:$0xff] %v5093_v1  ;;  %v5091_v50 = vadd.f32 %v9519_v9, %v5052_v10  ;;  %v5200_v42 = vmul.f32 %v5093_v1, %v5093_v1 }
 0x237   : > { %v5156_v4 = vadd.f32 %v5155_v13, %v5090_v8  ;;  %v5227_v63 = vadd.f32 %v5226_v20, %v5196_v31 }
 0x238   : > { %5125 = vst [vmem:[%s9529_s17 + $0xe8] sm:$0xff] %v5091_v50  ;;  %v5198_v61 = vmul.f32 %v5091_v50, %v5091_v50 }
 0x239   : > { %v5228_v51 = vadd.f32 %v5227_v63, %v5197_v62  ;;  %v5157_v44 = vadd.f32 %v5156_v4, %v5091_v50 }
 0x23b   : > { %v5158_v7 = vadd.f32 %v5157_v44, %v5092_v37  ;;  %v5229_v16 = vadd.f32 %v5228_v51, %v5198_v61 }
 0x23d   : > { %v5159_v59 = vadd.f32 %v5158_v7, %v5093_v1  ;;  %v5230_v57 = vadd.f32 %v5229_v16, %v5199_v47 }
 0x23f   : > { %v5160_v18 = vrot.slane %v5159_v59, 4  ;;  %v5231_v26 = vadd.f32 %v5230_v57, %v5200_v42 }
 0x241   : > { %v5161_v21 = vadd.f32 %v5160_v18, %v5159_v59  ;;  %v5232_v5 = vrot.slane %v5231_v26, 4 }
 0x243   : > { %v5162_v19 = vrot.slane %v5161_v21, 2  ;;  %v5233_v36 = vadd.f32 %v5232_v5, %v5231_v26 }
 0x245   : > { %v5163_v9 = vadd.f32 %v5162_v19, %v5161_v21  ;;  %v5234_v15 = vrot.slane %v5233_v36, 2 }
 0x247   : > { %v5164_v43 = vrot.slane %v5163_v9, 1  ;;  %v5235_v53 = vadd.f32 %v5234_v15, %v5233_v36 }
 0x249   : > { %v5165_v32 = vadd.f32 %v5164_v43, %v5163_v9  ;;  %v5236_v45 = vrot.slane %v5235_v53, 1 }
 0x24b   : > { %v5166_v52 = vadd.f32 %v5165_v32, %v5128_v48  ;;  %v5237_v6 = vadd.f32 %v5236_v45, %v5235_v53 }
 0x24d   : > { %5167 = vst [vmem:[#allocation3] sm:$0x1] %v5166_v52  ;;  %v5238_v29 = vadd.f32 %v5237_v6, %v5168_v56 }
 0x24f   : > { %5239 = vst [vmem:[#allocation3 + $0x1] sm:$0x1] %v5238_v29 }
 0x250 PF: > { %p6017_p10 = scmp.ne.s32.totalorder %s6886_s19, 1 }
 0x251   : > { %s6018_s25 = sshll.u32 (!%p6017_p10), %s6882_s18, 8  ;;  %s5507_s8 = scalar_lea.vmem (!%p6017_p10), %s9875_s5, %s6882_s18 }
 0x252   : > { %5243 = sbr.rel (%p6017_p10) target bundleno = 711 (0x2c7), region = 52  ;;  %s9677_s26 = scalar_lea.vmem (!%p6017_p10), [#allocation2], %s6018_s25 }
 0x257   : > { %v5278_v12 = vld [vmem:[#allocation3] sm:$0x1]  ;;  %v5280_v40 = vld [vmem:[#allocation3 + $0x1] sm:$0x1]  ;;  %v5285_v35 = vlaneseq  ;;  %v5247_v17 = vld [vmem:[%s9677_s26 + $0x8] sm:$0xff] }
 0x258   : > { %v5279_v25 = vmul.f32 0.001953125, %v5278_v12  ;;  %v5281_v22 = vmul.f32 0.001953125, %v5280_v40  ;;  %v5246_v46 = vld [vmem:[%s9677_s26] sm:$0xff]  ;;  %v5248_v54 = vld [vmem:[%s9677_s26 + $0x10] sm:$0xff]  ;;  %v5249_v27 = vld [vmem:[%s9677_s26 + $0x18] sm:$0xff] }
 0x259   : > { %v5286_v23 = vshrl.u32 %v5285_v35, 7  ;;  %v5250_v30 = vld [vmem:[%s9677_s26 + $0x20] sm:$0xff]  ;;  %v5251_v60 = vld [vmem:[%s9677_s26 + $0x28] sm:$0xff]  ;;  %v5252_v1 = vld [vmem:[%s9677_s26 + $0x30] sm:$0xff] }
 0x25a   : > { %v5282_v14 = vmul.f32 %v5279_v25, %v5279_v25  ;;  %v9696_v33 = vld [vmem:[%s9873_s3] ss:$0 sm:$0xff]  ;;  %v5253_v10 = vld [vmem:[%s9677_s26 + $0x38] sm:$0xff]  ;;  %v5255_v47 = vld [vmem:[%s9677_s26 + $0x48] sm:$0xff] }
 0x25b   : > { %v5287_v58 = vsub.s32 0, %v5286_v23  ;;  %v9709_v4 = vld [vmem:[%s9874_s4] ss:$0 sm:$0xff]  ;;  %v5256_v57 = vld [vmem:[%s9677_s26 + $0x50] sm:$0xff]  ;;  %v5257_v9 = vld [vmem:[%s9677_s26 + $0x58] sm:$0xff] }
 0x25c   : > { %v5283_v41 = vsub.f32 %v5281_v22, %v5282_v14  ;;  %v5254_v51 = vld [vmem:[%s9677_s26 + $0x40] sm:$0xff]  ;;  %v5259_v40 = vld [vmem:[%s9677_s26 + $0x68] sm:$0xff]  ;;  %v5260_v23 = vld [vmem:[%s9677_s26 + $0x70] sm:$0xff] }
 0x25d   : > { %v9675_v0 = vrot.slane %v5279_v25, %v5287_v58  ;;  %v5258_v45 = vld [vmem:[%s9677_s26 + $0x60] sm:$0xff] }
 0x25e   : > { %v5284_v55 = vmax.f32 %v5283_v41, 0.0 }
 0x25f   : > { %v5289_v37 = vsub.f32 %v5246_v46, %v9675_v0  ;;  %v5290_v34 = vsub.f32 %v5247_v17, %v9675_v0  ;;  %v5291_v24 = vsub.f32 %v5248_v54, %v9675_v0  ;;  %v5292_v8 = vsub.f32 %v5249_v27, %v9675_v0 }
 0x260   : > { %v5321_v2 = vadd.f32 1e-05, %v5284_v55  ;;  %v5293_v49 = vsub.f32 %v5250_v30, %v9675_v0  ;;  %v5294_v31 = vsub.f32 %v5251_v60, %v9675_v0  ;;  %v5295_v62 = vsub.f32 %v5252_v1, %v9675_v0  ;;  %v5262_v60 = vld [vmem:[%s9677_s26 + $0x80] sm:$0xff] }
 0x261   : > { %v5296_v44 = vsub.f32 %v5253_v10, %v9675_v0  ;;  %v5297_v18 = vsub.f32 %v5254_v51, %v9675_v0  ;;  %v5298_v19 = vsub.f32 %v5255_v47, %v9675_v0  ;;  %v5299_v32 = vsub.f32 %v5256_v57, %v9675_v0  ;;  %v5264_v47 = vld [vmem:[%s9677_s26 + $0x90] sm:$0xff] }
 0x262   : > { %6858 = vrsqrt.f32 %v5321_v2  ;;  %v5300_v12 = vsub.f32 %v5257_v9, %v9675_v0  ;;  %v5301_v2 = vsub.f32 %v5258_v45, %v9675_v0  ;;  %v5302_v54 = vsub.f32 %v5259_v40, %v9675_v0 }
 0x263   : > { %v5305_v51 = vsub.f32 %v5262_v60, %v9675_v0  ;;  %v5307_v9 = vsub.f32 %v5264_v47, %v9675_v0 }
 0x26f   : > { %v6859_v28 = vpop.eup %6858 }
 0x270   : > { %v9684_v38 = vrot.slane %v6859_v28, %v5287_v58 }
 0x272   : > { %v5327_v39 = vmul.f32 %v9684_v38, %v5289_v37  ;;  %v5328_v3 = vmul.f32 %v9684_v38, %v5290_v34  ;;  %v5329_v11 = vmul.f32 %v9684_v38, %v5291_v24  ;;  %v5330_v20 = vmul.f32 %v9684_v38, %v5292_v8  ;;  %v5261_v34 = vld [vmem:[%s9677_s26 + $0x78] sm:$0xff] }
 0x273   : > { %v5331_v63 = vmul.f32 %v9684_v38, %v5293_v49  ;;  %v5332_v7 = vmul.f32 %v9684_v38, %v5294_v31  ;;  %v5333_v26 = vmul.f32 %v9684_v38, %v5295_v62  ;;  %v5334_v36 = vmul.f32 %v9684_v38, %v5296_v44 }
 0x274   : > { %v5366_v13 = vmul.f32 %v9696_v33, %v5327_v39  ;;  %v5367_v50 = vmul.f32 %v9696_v33, %v5328_v3  ;;  %v5368_v61 = vmul.f32 %v9696_v33, %v5329_v11  ;;  %v5369_v16 = vmul.f32 %v9696_v33, %v5330_v20 }
 0x275   : > { %v5370_v21 = vmul.f32 %v9696_v33, %v5331_v63  ;;  %v5371_v15 = vmul.f32 %v9696_v33, %v5332_v7  ;;  %v5335_v56 = vmul.f32 %v9684_v38, %v5297_v18  ;;  %v5372_v52 = vmul.f32 %v9696_v33, %v5333_v26  ;;  %v5265_v26 = vld [vmem:[%s9677_s26 + $0x98] sm:$0xff] }
 0x276   : > { %v5405_v42 = vadd.f32 %v9709_v4, %v5366_v13  ;;  %v5406_v59 = vadd.f32 %v9709_v4, %v5367_v50  ;;  %v5407_v5 = vadd.f32 %v9709_v4, %v5368_v61  ;;  %v5408_v43 = vadd.f32 %v9709_v4, %v5369_v16  ;;  %v5263_v13 = vld [vmem:[%s9677_s26 + $0x88] sm:$0xff] }
 0x277   : > { %v5409_v6 = vadd.f32 %v9709_v4, %v5370_v21  ;;  %v5336_v25 = vmul.f32 %v9684_v38, %v5298_v19  ;;  %v5373_v22 = vmul.f32 %v9696_v33, %v5334_v36  ;;  %v5410_v14 = vadd.f32 %v9709_v4, %v5371_v15 }
 0x278   : > { %v5437_v53 = vmax.f32 %v5405_v42, 0.0  ;;  %v5438_v48 = vmax.f32 %v5406_v59, 0.0  ;;  %v5439_v29 = vmax.f32 %v5407_v5, 0.0  ;;  %v5440_v41 = vmax.f32 %v5408_v43, 0.0  ;;  %v5266_v43 = vld [vmem:[%s9677_s26 + $0xa0] sm:$0xff] }
 0x279   : > { %v5337_v35 = vmul.f32 %v9684_v38, %v5299_v32  ;;  %v5374_v58 = vmul.f32 %v9696_v33, %v5335_v56  ;;  %v5411_v28 = vadd.f32 %v9709_v4, %v5372_v52  ;;  %v5441_v46 = vmax.f32 %v5409_v6, 0.0  ;;  %v5267_v6 = vld [vmem:[%s9677_s26 + $0xa8] sm:$0xff] }
 0x27a   : > { %v5469_v55 = vadd.f32 %v5438_v48, %v5437_v53  ;;  %v5338_v37 = vmul.f32 %v9684_v38, %v5300_v12  ;;  %v5375_v27 = vmul.f32 %v9696_v33, %v5336_v25  ;;  %v5412_v24 = vadd.f32 %v9709_v4, %v5373_v22 }
 0x27b   : > { %v5442_v30 = vmax.f32 %v5410_v14, 0.0  ;;  %v5303_v39 = vsub.f32 %v5260_v23, %v9675_v0  ;;  %v5339_v3 = vmul.f32 %v9684_v38, %v5301_v2  ;;  %v5376_v49 = vmul.f32 %v9696_v33, %v5337_v35 }
 0x27c   : > { %v5470_v17 = vadd.f32 %v5469_v55, %v5439_v29  ;;  %v5413_v11 = vadd.f32 %v9709_v4, %v5374_v58  ;;  %v5443_v1 = vmax.f32 %v5411_v28, 0.0  ;;  %v5304_v31 = vsub.f32 %v5261_v34, %v9675_v0 }
 0x27d   : > { %v5340_v20 = vmul.f32 %v9684_v38, %v5302_v54  ;;  %v5377_v50 = vmul.f32 %v9696_v33, %v5338_v37  ;;  %v5414_v62 = vadd.f32 %v9709_v4, %v5375_v27  ;;  %v5444_v63 = vmax.f32 %v5412_v24, 0.0 }
 0x27e   : > { %v5471_v8 = vadd.f32 %v5470_v17, %v5440_v41  ;;  %v5341_v44 = vmul.f32 %v9684_v38, %v5303_v39  ;;  %v5378_v7 = vmul.f32 %v9696_v33, %v5339_v3  ;;  %v5415_v16 = vadd.f32 %v9709_v4, %v5376_v49  ;;  %v5268_v41 = vld [vmem:[%s9677_s26 + $0xb0] sm:$0xff] }
 0x27f   : > { %v5445_v42 = vmax.f32 %v5413_v11, 0.0  ;;  %v5306_v57 = vsub.f32 %v5263_v13, %v9675_v0  ;;  %v5342_v18 = vmul.f32 %v9684_v38, %v5304_v31  ;;  %v5379_v21 = vmul.f32 %v9696_v33, %v5340_v20 }
 0x280   : > { %v5472_v10 = vadd.f32 %v5471_v8, %v5441_v46  ;;  %v5416_v5 = vadd.f32 %v9709_v4, %v5377_v50  ;;  %v5446_v19 = vmax.f32 %v5414_v62, 0.0  ;;  %v5343_v15 = vmul.f32 %v9684_v38, %v5305_v51  ;;  %v5269_v46 = vld [vmem:[%s9677_s26 + $0xb8] sm:$0xff] }
 0x281   : > { %v5380_v53 = vmul.f32 %v9696_v33, %v5341_v44  ;;  %v5417_v48 = vadd.f32 %v9709_v4, %v5378_v7  ;;  %v5447_v32 = vmax.f32 %v5415_v16, 0.0  ;;  %v5308_v56 = vsub.f32 %v5265_v26, %v9675_v0 }
 0x282   : > { %v5473_v61 = vadd.f32 %v5472_v10, %v5442_v30  ;;  %v5344_v52 = vmul.f32 %v9684_v38, %v5306_v57  ;;  %v5381_v29 = vmul.f32 %v9696_v33, %v5342_v18  ;;  %v5418_v12 = vadd.f32 %v9709_v4, %v5379_v21  ;;  %v5270_v30 = vld [vmem:[%s9677_s26 + $0xc0] sm:$0xff] }
 0x283   : > { %v5448_v25 = vmax.f32 %v5416_v5, 0.0  ;;  %v5309_v22 = vsub.f32 %v5266_v43, %v9675_v0  ;;  %v5345_v14 = vmul.f32 %v9684_v38, %v5307_v9  ;;  %v5382_v55 = vmul.f32 %v9696_v33, %v5343_v15 }
 0x284   : > { %v5474_v59 = vadd.f32 %v5473_v61, %v5443_v1  ;;  %v5419_v2 = vadd.f32 %v9709_v4, %v5380_v53  ;;  %v5449_v35 = vmax.f32 %v5417_v48, 0.0  ;;  %v5310_v58 = vsub.f32 %v5267_v6, %v9675_v0  ;;  %v5271_v1 = vld [vmem:[%s9677_s26 + $0xc8] sm:$0xff] }
 0x285   : > { %v5346_v28 = vmul.f32 %v9684_v38, %v5308_v56  ;;  %v5383_v17 = vmul.f32 %v9696_v33, %v5344_v52  ;;  %v5420_v54 = vadd.f32 %v9709_v4, %v5381_v29  ;;  %v5450_v37 = vmax.f32 %v5418_v12, 0.0 }
 0x286   : > { %v5475_v36 = vadd.f32 %v5474_v59, %v5444_v63  ;;  %v5311_v27 = vsub.f32 %v5268_v41, %v9675_v0  ;;  %v5347_v24 = vmul.f32 %v9684_v38, %v5309_v22  ;;  %v5384_v8 = vmul.f32 %v9696_v33, %v5345_v14  ;;  %v5272_v63 = vld [vmem:[%s9677_s26 + $0xd0] sm:$0xff] }
 0x287   : > { %v5421_v39 = vadd.f32 %v9709_v4, %v5382_v55  ;;  %v5451_v3 = vmax.f32 %v5419_v2, 0.0  ;;  %v5312_v49 = vsub.f32 %v5269_v46, %v9675_v0  ;;  %v5348_v11 = vmul.f32 %v9684_v38, %v5310_v58 }
 0x288   : > { %v5476_v45 = vadd.f32 %v5475_v36, %v5445_v42  ;;  %v5385_v10 = vmul.f32 %v9696_v33, %v5346_v28  ;;  %v5422_v31 = vadd.f32 %v9709_v4, %v5383_v17  ;;  %v5452_v20 = vmax.f32 %v5420_v54, 0.0  ;;  %v5273_v42 = vld [vmem:[%s9677_s26 + $0xd8] sm:$0xff] }
 0x289   : > { %v5313_v50 = vsub.f32 %v5270_v30, %v9675_v0  ;;  %v5349_v62 = vmul.f32 %v9684_v38, %v5311_v27  ;;  %v5386_v61 = vmul.f32 %v9696_v33, %v5347_v24  ;;  %v5423_v51 = vadd.f32 %v9709_v4, %v5384_v8 }
 0x28a   : > { %v5477_v40 = vadd.f32 %v5476_v45, %v5446_v19  ;;  %v5453_v44 = vmax.f32 %v5421_v39, 0.0  ;;  %v5314_v7 = vsub.f32 %v5271_v1, %v9675_v0  ;;  %v5350_v16 = vmul.f32 %v9684_v38, %v5312_v49  ;;  %v5274_v19 = vld [vmem:[%s9677_s26 + $0xe0] sm:$0xff] }
 0x28b   : > { %v5387_v59 = vmul.f32 %v9696_v33, %v5348_v11  ;;  %v5424_v57 = vadd.f32 %v9709_v4, %v5385_v10  ;;  %v5454_v18 = vmax.f32 %v5422_v31, 0.0  ;;  %v5315_v21 = vsub.f32 %v5272_v63, %v9675_v0 }
 0x28c   : > { %v5478_v23 = vadd.f32 %v5477_v40, %v5447_v32  ;;  %v5351_v5 = vmul.f32 %v9684_v38, %v5313_v50  ;;  %v5388_v36 = vmul.f32 %v9696_v33, %v5349_v62  ;;  %v5425_v9 = vadd.f32 %v9709_v4, %v5386_v61  ;;  %v5275_v32 = vld [vmem:[%s9677_s26 + $0xe8] sm:$0xff] }
 0x28d   : > { %v5455_v15 = vmax.f32 %v5423_v51, 0.0  ;;  %v5316_v53 = vsub.f32 %v5273_v42, %v9675_v0  ;;  %v5352_v48 = vmul.f32 %v9684_v38, %v5314_v7  ;;  %v5389_v45 = vmul.f32 %v9696_v33, %v5350_v16 }
 0x28e   : > { %v5479_v34 = vadd.f32 %v5478_v23, %v5448_v25  ;;  %v5426_v56 = vadd.f32 %v9709_v4, %v5387_v59  ;;  %v5456_v52 = vmax.f32 %v5424_v57, 0.0  ;;  %v5317_v29 = vsub.f32 %v5274_v19, %v9675_v0  ;;  %v5276_v25 = vld [vmem:[%s9677_s26 + $0xf0] sm:$0xff] }
 0x28f   : > { %v5353_v12 = vmul.f32 %v9684_v38, %v5315_v21  ;;  %v5390_v40 = vmul.f32 %v9696_v33, %v5351_v5  ;;  %v5427_v22 = vadd.f32 %v9709_v4, %v5388_v36  ;;  %v5457_v14 = vmax.f32 %v5425_v9, 0.0 }
 0x290   : > { %v5480_v60 = vadd.f32 %v5479_v34, %v5449_v35  ;;  %v5318_v55 = vsub.f32 %v5275_v32, %v9675_v0  ;;  %v5354_v2 = vmul.f32 %v9684_v38, %v5316_v53  ;;  %v5277_v35 = vld [vmem:[%s9677_s26 + $0xf8] sm:$0xff]  ;;  %v5391_v23 = vmul.f32 %v9696_v33, %v5352_v48 }
 0x291   : > { %v5428_v58 = vadd.f32 %v9709_v4, %v5389_v45  ;;  %v5458_v28 = vmax.f32 %v5426_v56, 0.0  ;;  %v5319_v17 = vsub.f32 %v5276_v25, %v9675_v0  ;;  %v5355_v54 = vmul.f32 %v9684_v38, %v5317_v29 }
 0x292   : > { %v5481_v13 = vadd.f32 %v5480_v60, %v5450_v37  ;;  %v5392_v37 = vmul.f32 %v9696_v33, %v5353_v12  ;;  %v5429_v34 = vadd.f32 %v9709_v4, %v5390_v40  ;;  %v5459_v27 = vmax.f32 %v5427_v22, 0.0 }
 0x293   : > { %v5320_v30 = vsub.f32 %v5277_v35, %v9675_v0  ;;  %v5356_v8 = vmul.f32 %v9684_v38, %v5318_v55  ;;  %v5393_v39 = vmul.f32 %v9696_v33, %v5354_v2  ;;  %v5460_v60 = vmax.f32 %v5428_v58, 0.0 }
 0x294   : > { %v5482_v47 = vadd.f32 %v5481_v13, %v5451_v3  ;;  %v5430_v3 = vadd.f32 %v9709_v4, %v5391_v23  ;;  %v5357_v11 = vmul.f32 %v9684_v38, %v5319_v17  ;;  %v5394_v1 = vmul.f32 %v9696_v33, %v5355_v54 }
 0x295   : > { %v5431_v10 = vadd.f32 %v9709_v4, %v5392_v37  ;;  %v5461_v31 = vmax.f32 %v5429_v34, 0.0  ;;  %v5358_v13 = vmul.f32 %v9684_v38, %v5320_v30  ;;  %v5395_v0 = vmul.f32 %v9696_v33, %v5356_v8 }
 0x296   : > { %v5483_v26 = vadd.f32 %v5482_v47, %v5452_v20  ;;  %v5432_v50 = vadd.f32 %v9709_v4, %v5393_v39  ;;  %v5462_v62 = vmax.f32 %v5430_v3, 0.0  ;;  %v5396_v61 = vmul.f32 %v9696_v33, %v5357_v11 }
 0x297   : > { %v5433_v51 = vadd.f32 %v9709_v4, %v5394_v1  ;;  %v5397_v7 = vmul.f32 %v9696_v33, %v5358_v13  ;;  %v5434_v16 = vadd.f32 %v9709_v4, %v5395_v0 }
 0x298   : > { %v5484_v43 = vadd.f32 %v5483_v26, %v5453_v44  ;;  %v5463_v44 = vmax.f32 %v5431_v10, 0.0  ;;  %v5464_v42 = vmax.f32 %v5432_v50, 0.0  ;;  %v5435_v38 = vadd.f32 %v9709_v4, %v5396_v61 }
 0x299   : > { %v5465_v57 = vmax.f32 %v5433_v51, 0.0  ;;  %v5436_v26 = vadd.f32 %v9709_v4, %v5397_v7  ;;  %v5466_v21 = vmax.f32 %v5434_v16, 0.0 }
 0x29a   : > { %v5485_v6 = vadd.f32 %v5484_v43, %v5454_v18  ;;  %v5467_v19 = vmax.f32 %v5435_v38, 0.0 }
 0x29b   : > { %v5468_v9 = vmax.f32 %v5436_v26, 0.0 }
 0x29c   : > { %v5486_v41 = vadd.f32 %v5485_v6, %v5455_v15 }
 0x29e   : > { %v5487_v46 = vadd.f32 %v5486_v41, %v5456_v52 }
 0x2a0   : > { %v5488_v24 = vadd.f32 %v5487_v46, %v5457_v14 }
 0x2a2   : > { %v5489_v49 = vadd.f32 %v5488_v24, %v5458_v28 }
 0x2a4   : > { %v5490_v20 = vadd.f32 %v5489_v49, %v5459_v27 }
 0x2a6   : > { %v5491_v63 = vadd.f32 %v5490_v20, %v5460_v60 }
 0x2a8   : > { %v5492_v47 = vadd.f32 %v5491_v63, %v5461_v31 }
 0x2aa   : > { %v5493_v59 = vadd.f32 %v5492_v47, %v5462_v62 }
 0x2ac   : > { %v5494_v18 = vadd.f32 %v5493_v59, %v5463_v44 }
 0x2ae   : > { %v5495_v5 = vadd.f32 %v5494_v18, %v5464_v42 }
 0x2b0   : > { %v5496_v36 = vadd.f32 %v5495_v5, %v5465_v57 }
 0x2b2   : > { %v5497_v15 = vadd.f32 %v5496_v36, %v5466_v21 }
 0x2b4   : > { %v5498_v43 = vadd.f32 %v5497_v15, %v5467_v19 }
 0x2b6   : > { %v5499_v53 = vadd.f32 %v5498_v43, %v5468_v9 }
 0x2b8   : > { %v5500_v33 = vrot.slane %v5499_v53, 4 }
 0x2ba   : > { %v5501_v48 = vadd.f32 %v5500_v33, %v5499_v53 }
 0x2bc   : > { %v5502_v32 = vrot.slane %v5501_v48, 2 }
 0x2be   : > { %v5503_v45 = vadd.f32 %v5502_v32, %v5501_v48 }
 0x2c0   : > { %v5504_v56 = vrot.slane %v5503_v45, 1 }
 0x2c2   : > { %v5505_v52 = vadd.f32 %v5504_v56, %v5503_v45 }
 0x2c4   : > { %v5506_v6 = vmul.f32 0.00390625, %v5505_v52 }
 0x2c6   : > { %5508 = vst [vmem:[%s5507_s8] sm:$0x1] %v5506_v6 }
 0x2c7 PF: > { %s15_s22 = sadd.s32 1, %s6898_s22   ;;  %s10125_s18 = smov %s6890_s20 }
 0x2c8   : > { %p12_p11 = scmp.ge.s32.totalorder %s15_s22, 6   ;;  %s10126_s19 = smov %s6894_s21 }
 0x2c9   : > { %s10127_s20 = smov %s10130_s23  ;;  %s10128_s21 = smov %s10134_s24 }
 0x2ca   :  { %14 = sbr.rel (!%p12_p11) target bundleno = 3 (0x3), region = 83 }

// kernel: discriminator_forward.3
= control target key start
LH: loop header
LB: loop body
LE: loop exit
PB: predicated region body
PF: predicated region fallthrough
CT: control target
= control target key end

     0   :  { %s7264_s18 = smov 0   ;;  %s7266_s19 = smov 0   ;;  %s10393_s0 = inlined_call_operand.vmem [shape: bf16[2,18,18,128], index: 0, kind: input, shape index: {}]   ;;  %s10394_s1 = inlined_call_operand.vmem [shape: bf16[1152,128], index: 1, kind: input, shape index: {}]   ;;  %s10395_s2 = inlined_call_operand.vmem [shape: f32[1,128], index: 2, kind: input, shape index: {}]   ;;  %s10396_s3 = inlined_call_operand.vmem [shape: f32[1,128], index: 3, kind: input, shape index: {}]   ;;  %s10397_s4 = inlined_call_operand.vmem [shape: f32[1,128], index: 4, kind: input, shape index: {}]   ;;  %s10398_s5 = inlined_call_operand.vmem [shape: bf16[2,16,16,128], index: 5, kind: output, shape index: {}]  }
   0x1   :  { %s7268_s20 = smov 0   ;;  %s7270_s21 = smov 0  }
   0x2   :  { %s7272_s22 = smov 0  }
   0x3 LB: > { %s24_s23 = sadd.s32 1, %s7223_s20  ;;  %s27_s24 = sadd.s32 1, %s7227_s21  ;;  %s7231_s22 = sphi %s7272_s22, %s15_s22   ;;  %s7227_s21 = sphi %s7270_s21, %s10660_s21   ;;  %s7223_s20 = sphi %s7268_s20, %s10659_s20   ;;  %s7219_s19 = sphi %s7266_s19, %s10658_s19   ;;  %s7215_s18 = sphi %s7264_s18, %s10657_s18  }
   0x4   : > { %p25_p0 = scmp.ge.s32.totalorder %s24_s23, 2  ;;  %p5727_p1 = scmp.ge.s32.totalorder %s7231_s22, 1 }
   0x5   : > { %p213_p2 = scmp.lt.s32.totalorder %s7231_s22, 5 }
   0x6   : > { %s10662_s23 = smov (%p25_p0, %s24_s23), 0  ;;  %s10664_s24 = smov (!%p25_p0, %s27_s24), %s7227_s21 }
   0x7   : > { %p214_p3 = pnand %p5727_p1, %p213_p2  ;;  %p29_p4 = scmp.ge.s32.totalorder %s10664_s24, 2 }
   0x8   : > { %s245_s25 = ssub.s32 (!%p214_p3), 1, %s7219_s19  ;;  %s256_s26 = smul.u32 (!%p214_p3), %s7215_s18, %s7219_s19 }
   0x9   : > { %s10666_s24 = smov (%p29_p4, %s10664_s24), 0  ;;  %217 = sbr.rel (%p214_p3) target bundleno = 676 (0x2a4), region = 40 }
   0xa   : > { %s246_s27 = smul.u32 (!%p214_p3), %s7215_s18, %s245_s25  ;;  %p264_p5 = scmp.eq.s32.totalorder (!%p214_p3), %s7219_s19, 0 }
   0xb   : > { %p257_p6 = scmp.lt.s32.totalorder (!%p214_p3), %s256_s26, 1  ;;  %p265_p7 = scmp.eq.s32.totalorder (!%p214_p3), %s7215_s18, 0 }
   0xc   : > { %s247_s28 = sadd.s32 (!%p214_p3), %s7219_s19, %s246_s27 }
   0xd   : > { %p248_p8 = scmp.lt.s32.totalorder (!%p214_p3), %s247_s28, 1  ;;  %p266_p9 = pnand (!%p214_p3), %p265_p7, %p264_p5 }
   0xe   : > { %s10668_s26 = smov (!%p257_p6, %s256_s26), 1 }
   0xf   : > { %s10670_s28 = smov (!%p248_p8, %s247_s28), 1  ;;  %s6228_s29 = sshll.u32 %s10668_s26, 7 }
  0x10   : > { %s7020_s30 = smul.u32 216, %s10670_s28  ;;  %s7308_s8 = scalar_lea.vmem %s10398_s5, %s6228_s29 }
  0x11   : > { %269 = sbr.rel (%p266_p9) target bundleno = 24 (0x18), region = 44 }
  0x12   : > { %s7313_s11 = scalar_lea.vmem %s10393_s0, %s7020_s30 }
  0x16   : > { %v7233_v0 = vmov 0.0  }
  0x17   : > { %270 = vst [vmem:[#allocation3] sm:$0xff] %v7233_v0 }
  0x18 PF: > { %p5731_p10 = scmp.ne.s32.totalorder %s7219_s19, 0 }
  0x1a   : > { %273 = sbr.rel (%p5731_p10) target bundleno = 595 (0x253), region = 48 }
  0x1f   : > { %v7062_v1 = vld [vmem:[%s10394_s1 + $0x78] sm:$0xff]   ;;  %v7063_v2 = vld [vmem:[%s10394_s1 + $0x70] sm:$0xff]   ;;  %v7064_v3 = vld [vmem:[%s10394_s1 + $0x68] sm:$0xff]   ;;  %vm338_vm0 = vsmask.f32 3328  ;;  %vm1367_vm3 = vcmask 1042432  }
  0x20   : > { %6572 = vmatprep.subr.bf16.mxu0 %v7062_v1  ;;  %7004 = vmatprep.subr.bf16.mxu1 %v7062_v1  ;;  %v7065_v4 = vld [vmem:[%s10394_s1 + $0x60] sm:$0xff]   ;;  %v7335_v7 = vld [vmem:[%s7313_s11 + $0x8] sm:$0x1]  ;;  %vm339_vm1 = vsmask.f32 7440  ;;  %v7066_v18 = vld [vmem:[%s10394_s1 + $0x58] sm:$0xff]  }
  0x21   : > { %6573 = vmatpush3.bf16.msra.mxu0 %v7062_v1  ;;  %7012 = vmatpush3.bf16.msra.mxu1 %v7062_v1  ;;  %v7329_v5 = vld [vmem:[%s7313_s11] sm:$0xf]  ;;  %v7332_v6 = vld [vmem:[%s7313_s11 + $0x4] sm:$0xf]  ;;  %v361_v12 = vshll.u32 %v7335_v7, 16  ;;  %vm7354_vm2 = vmor %vm338_vm0, %vm339_vm1  ;;  %vm1368_vm4 = vcmask 1046532  }
  0x22   : > { %6574 = vmatprep.subr.bf16.mxu0 %v7063_v2  ;;  %7005 = vmatprep.subr.bf16.mxu1 %v7063_v2  ;;  %v342_v8 = vshrl.u32 %v7329_v5, 16  ;;  %v345_v9 = vshll.u32 %v7329_v5, 16  ;;  %v351_v10 = vshll.u32 %v7332_v6, 16  ;;  %v355_v11 = vshrl.u32 %v7332_v6, 16  ;;  %v290_v13 = vld [vmem:[%s7313_s11 + $0x60] sm:$0xf]  ;;  %vm7665_vm5 = vmor %vm1367_vm3, %vm1368_vm4 }
  0x23   : > { %v291_v16 = vld [vmem:[%s7313_s11 + $0x64] sm:$0xf]  ;;  %v330_v17 = vld [vmem:[%s7313_s11 + $0x68] sm:$0x1]  ;;  %v534_v22 = vshrl.u32 %v290_v13, 16  ;;  %v537_v24 = vshll.u32 %v290_v13, 16 }
  0x24   : > { %v344_v14 = vrot.slane %v342_v8, 4  ;;  %v347_v15 = vrot.slane %v345_v9, 5  ;;  %v353_v19 = vrot.slane %v351_v10, 5  ;;  %v357_v20 = vrot.slane %v355_v11, 4  ;;  %v7350_v27 = vld [vmem:[%s7313_s11 + $0xc] sm:$0xf] }
  0x25   : > { %6575 = vmatpush3.bf16.msra.mxu0 %v7063_v2  ;;  %7013 = vmatpush3.bf16.msra.mxu1 %v7063_v2  ;;  %v543_v25 = vshll.u32 %v291_v16, 16  ;;  %v547_v26 = vshrl.u32 %v291_v16, 16  ;;  %v363_v30 = vrot.slane %v361_v12, 5  ;;  %v536_v31 = vrot.slane %v534_v22, 4  ;;  %v7359_v33 = vld [vmem:[%s7313_s11 + $0x10] sm:$0xf] }
  0x26   : > { %6576 = vmatprep.subr.bf16.mxu0 %v7064_v3  ;;  %7006 = vmatprep.subr.bf16.mxu1 %v7064_v3  ;;  %v348_v23 = vor.u32 %v347_v15, %v344_v14  ;;  %v358_v29 = vor.u32 %v357_v20, %v353_v19  ;;  %v553_v32 = vshll.u32 %v330_v17, 16  ;;  %v7067_v34 = vld [vmem:[%s10394_s1 + $0x50] sm:$0xff]   ;;  %v539_v36 = vrot.slane %v537_v24, 5  ;;  %v292_v48 = vld [vmem:[%s7313_s11 + $0x6c] sm:$0xf]  ;;  %v7069_v16 = vld [vmem:[%s10394_s1 + $0x40] sm:$0xff]  }
  0x27   : > { %v545_v37 = vrot.slane %v543_v25, 5  ;;  %v549_v38 = vrot.slane %v547_v26, 4  ;;  %v7365_v41 = vld [vmem:[%s7313_s11 + $0x14] sm:$0x1]  ;;  %v366_v42 = vshrl.u32 %v7350_v27, 16  ;;  %v369_v43 = vshll.u32 %v7350_v27, 16 }
  0x28   : > { %v349_v35 = vrot.slane %v348_v23, 4  ;;  %v359_v39 = vrot.slane %v358_v29, 4  ;;  %v555_v40 = vrot.slane %v553_v32, 5  ;;  %v540_v45 = vor.u32 %v539_v36, %v536_v31  ;;  %v293_v53 = vld [vmem:[%s7313_s11 + $0x70] sm:$0xf]  ;;  %v7068_v59 = vld [vmem:[%s10394_s1 + $0x48] sm:$0xff]  }
  0x29   : > { %6577 = vmatpush3.bf16.msra.mxu0 %v7064_v3  ;;  %7014 = vmatpush3.bf16.msra.mxu1 %v7064_v3  ;;  %v550_v46 = vor.u32 %v549_v38, %v545_v37  ;;  %v375_v47 = vshll.u32 %v7359_v33, 16  ;;  %v368_v50 = vrot.slane %v366_v42, 4  ;;  %v371_v51 = vrot.slane %v369_v43, 5  ;;  %v331_v58 = vld [vmem:[%s7313_s11 + $0x74] sm:$0x1]  ;;  %v7070_v42 = vld [vmem:[%s10394_s1 + $0x38] sm:$0xff]  }
  0x2a   : > { %6578 = vmatprep.subr.bf16.mxu0 %v7065_v4  ;;  %7007 = vmatprep.subr.bf16.mxu1 %v7065_v4  ;;  %v354_v44 = vsel %vm7354_vm2, %v349_v35, %v353_v19  ;;  %v364_v49 = vsel %vm7354_vm2, %v359_v39, %v363_v30  ;;  %v379_v52 = vshrl.u32 %v7359_v33, 16  ;;  %v541_v55 = vrot.slane %v540_v45, 4  ;;  %v7388_v15 = vld [vmem:[%s7313_s11 + $0x18] sm:$0xf]  ;;  %v7396_v20 = vld [vmem:[%s7313_s11 + $0x1c] sm:$0xf] }
  0x2b   : > { %v5732_v54 = vcombine.low %v354_v44, %v364_v49  ;;  %v551_v56 = vrot.slane %v550_v46, 4  ;;  %v377_v57 = vrot.slane %v375_v47, 5  ;;  %v372_v60 = vor.u32 %v371_v51, %v368_v50  ;;  %v7401_v26 = vld [vmem:[%s7313_s11 + $0x20] sm:$0x1]  ;;  %v294_v35 = vld [vmem:[%s7313_s11 + $0x78] sm:$0xf] }
  0x2c   : > { %v381_v61 = vrot.slane %v379_v52, 4  ;;  %v385_v62 = vshll.u32 %v7365_v41, 16  ;;  %v546_v0 = vsel %vm7354_vm2, %v541_v55, %v545_v37  ;;  %v558_v2 = vshrl.u32 %v292_v48, 16  ;;  %v7071_v43 = vld [vmem:[%s10394_s1 + $0xb8] sm:$0xff]   ;;  %v332_v50 = vld [vmem:[%s7313_s11 + $0x80] sm:$0x1] }
  0x2d   : > { %6579 = vmatpush3.bf16.msra.mxu0 %v7065_v4  ;;  %7015 = vmatpush3.bf16.msra.mxu1 %v7065_v4  ;;  %v556_v1 = vsel %vm7354_vm2, %v551_v56, %v555_v40  ;;  %v561_v3 = vshll.u32 %v292_v48, 16  ;;  %v373_v8 = vrot.slane %v372_v60, 4  ;;  %v567_v13 = vshll.u32 %v293_v53, 16  ;;  %v7410_v40 = vld [vmem:[%s7313_s11 + $0x7c] sm:$0xf]  ;;  %v7073_v60 = vld [vmem:[%s10394_s1 + $0xb0] sm:$0xff]  }
  0x2e   : > { %6580 = vmatprep.subr.bf16.mxu0 %v7066_v18  ;;  %7008 = vmatprep.subr.bf16.mxu1 %v7066_v18  ;;  %v5740_v4 = vcombine.low %v546_v0, %v556_v1  ;;  %v382_v9 = vor.u32 %v381_v61, %v377_v57  ;;  %v387_v10 = vrot.slane %v385_v62, 5  ;;  %v560_v11 = vrot.slane %v558_v2, 4  ;;  %v7437_v1 = vld [vmem:[%s7313_s11 + $0x28] sm:$0xf] }
  0x2f   : > { %6588 = vmatprep.mubr.bf16.mxu0 %v5732_v54  ;;  %v563_v12 = vrot.slane %v561_v3, 5  ;;  %v571_v14 = vshrl.u32 %v293_v53, 16  ;;  %v378_v17 = vsel %vm7354_vm2, %v373_v8, %v377_v57  ;;  %v577_v19 = vshll.u32 %v331_v58, 16  ;;  %v7072_v53 = vld [vmem:[%s10394_s1 + $0x30] sm:$0xff]   ;;  %v7428_v58 = vld [vmem:[%s7313_s11 + $0x24] sm:$0xf] }
  0x30   : > { %6604 = vmatprep.mubr.bf16.mxu1 %v5740_v4  ;;  %v569_v24 = vrot.slane %v567_v13, 5  ;;  %v390_v29 = vshrl.u32 %v7388_v15, 16  ;;  %v393_v32 = vshll.u32 %v7388_v15, 16  ;;  %v403_v46 = vshrl.u32 %v7396_v20, 16 }
  0x31   : > { %6581 = vmatpush3.bf16.msra.mxu0 %v7066_v18  ;;  %7016 = vmatpush3.bf16.msra.mxu1 %v7066_v18  ;;  %v383_v18 = vrot.slane %v382_v9, 4  ;;  %v564_v23 = vor.u32 %v563_v12, %v560_v11  ;;  %v573_v25 = vrot.slane %v571_v14, 4  ;;  %v579_v31 = vrot.slane %v577_v19, 5  ;;  %v7440_v9 = vld [vmem:[%s7313_s11 + $0x2c] sm:$0x1] }
  0x32   : > { %6582 = vmatprep.subr.bf16.mxu0 %v7067_v34  ;;  %7009 = vmatprep.subr.bf16.mxu1 %v7067_v34  ;;  %v392_v39 = vrot.slane %v390_v29, 4  ;;  %v395_v44 = vrot.slane %v393_v32, 5  ;;  %v409_v47 = vshll.u32 %v7401_v26, 16  ;;  %v582_v51 = vshrl.u32 %v294_v35, 16  ;;  %v7444_v14 = vld [vmem:[%s7313_s11 + $0x84] sm:$0xf] }
  0x33   : > { %v388_v30 = vsel %vm7354_vm2, %v383_v18, %v387_v10  ;;  %v565_v37 = vrot.slane %v564_v23, 4  ;;  %v574_v38 = vor.u32 %v573_v25, %v569_v24  ;;  %v585_v52 = vshll.u32 %v294_v35, 16  ;;  %v7451_v23 = vld [vmem:[%s7313_s11 + $0x88] sm:$0xf] }
  0x34   : > { %v5733_v36 = vcombine.low %v378_v17, %v388_v30  ;;  %v396_v54 = vor.u32 %v395_v44, %v392_v39  ;;  %v405_v55 = vrot.slane %v403_v46, 4  ;;  %v411_v56 = vrot.slane %v409_v47, 5 }
  0x35   : > { %6583 = vmatpush3.bf16.msra.mxu0 %v7067_v34  ;;  %7017 = vmatpush3.bf16.msra.mxu1 %v7067_v34  ;;  %v399_v34 = vshll.u32 %v7396_v20, 16  ;;  %v570_v48 = vsel %vm7354_vm2, %v565_v37, %v569_v24  ;;  %v575_v49 = vrot.slane %v574_v38, 4  ;;  %v591_v57 = vshll.u32 %v7410_v40, 16  ;;  %v7460_v37 = vld [vmem:[%s7313_s11 + $0x8c] sm:$0x1] }
  0x36   : > { %6584 = vmatprep.subr.bf16.mxu0 %v7068_v59  ;;  %7010 = vmatprep.subr.bf16.mxu1 %v7068_v59  ;;  %v584_v61 = vrot.slane %v582_v51, 4  ;;  %v587_v62 = vrot.slane %v585_v52, 5  ;;  %v595_v0 = vshrl.u32 %v7410_v40, 16  ;;  %v397_v3 = vrot.slane %v396_v54, 4  ;;  %v7075_v38 = vld [vmem:[%s10394_s1 + $0xa8] sm:$0xff]  }
  0x37   : > { %v401_v45 = vrot.slane %v399_v34, 5  ;;  %v593_v8 = vrot.slane %v591_v57, 5  ;;  %v601_v12 = vshll.u32 %v332_v50, 16  ;;  %v414_v13 = vshrl.u32 %v7428_v58, 16  ;;  %v7475_v54 = vld [vmem:[%s7313_s11 + $0x30] sm:$0xf] }
  0x38   : > { %v588_v10 = vor.u32 %v587_v62, %v584_v61  ;;  %v597_v11 = vrot.slane %v595_v0, 4  ;;  %v417_v18 = vshll.u32 %v7428_v58, 16  ;;  %v423_v19 = vshll.u32 %v7437_v1, 16  ;;  %v7484_v61 = vld [vmem:[%s7313_s11 + $0x34] sm:$0xf] }
  0x39   : > { %6585 = vmatpush3.bf16.msra.mxu0 %v7068_v59  ;;  %7018 = vmatpush3.bf16.msra.mxu1 %v7068_v59  ;;  %v580_v59 = vsel %vm7354_vm2, %v575_v49, %v579_v31  ;;  %v406_v4 = vor.u32 %v405_v55, %v401_v45  ;;  %v603_v29 = vrot.slane %v601_v12, 5  ;;  %v416_v30 = vrot.slane %v414_v13, 4  ;;  %v7074_v31 = vld [vmem:[%s10394_s1 + $0x28] sm:$0xff]  }
  0x3a   : > { %6586 = vmatprep.subr.bf16.mxu0 %v7069_v16  ;;  %7011 = vmatprep.subr.bf16.mxu1 %v7069_v16  ;;  %v5741_v2 = vcombine.low %v570_v48, %v580_v59  ;;  %v589_v24 = vrot.slane %v588_v10, 4  ;;  %v598_v25 = vor.u32 %v597_v11, %v593_v8  ;;  %v419_v34 = vrot.slane %v417_v18, 5 }
  0x3b   : > { %v407_v17 = vrot.slane %v406_v4, 4  ;;  %v425_v35 = vrot.slane %v423_v19, 5  ;;  %v433_v44 = vshll.u32 %v7440_v9, 16  ;;  %v606_v47 = vshrl.u32 %v7444_v14, 16  ;;  %v7496_v19 = vld [vmem:[%s7313_s11 + $0x90] sm:$0xf] }
  0x3c   : > { %v609_v48 = vshll.u32 %v7444_v14, 16  ;;  %v615_v51 = vshll.u32 %v7451_v23, 16  ;;  %v619_v52 = vshrl.u32 %v7451_v23, 16  ;;  %v438_v10 = vshrl.u32 %v7475_v54, 16 }
  0x3d   : > { %6587 = vmatpush3.bf16.msra.mxu0 %v7069_v16  ;;  %7019 = vmatpush3.bf16.msra.mxu1 %v7069_v16  ;;  %v402_v16 = vsel %vm7354_vm2, %v397_v3, %v401_v45  ;;  %v412_v32 = vsel %vm7354_vm2, %v407_v17, %v411_v56  ;;  %v420_v45 = vor.u32 %v419_v34, %v416_v30  ;;  %v435_v50 = vrot.slane %v433_v44, 5  ;;  %v7492_v17 = vld [vmem:[%s7313_s11 + $0x38] sm:$0x1] }
  0x3e   : > { %6620 = vmatprep.subr.bf16.mxu1 %v7070_v42  ;;  %6668 = vmatprep.subr.bf16.mxu0 %v7071_v43  ;;  %v5734_v39 = vcombine.low %v402_v16, %v412_v32  ;;  %v608_v59 = vrot.slane %v606_v47, 4  ;;  %v611_v62 = vrot.slane %v609_v48, 5  ;;  %v617_v0 = vrot.slane %v615_v51, 5  ;;  %v7502_v32 = vld [vmem:[%s7313_s11 + $0x94] sm:$0xf] }
  0x3f   : > { %v421_v56 = vrot.slane %v420_v45, 4  ;;  %v625_v3 = vshll.u32 %v7460_v37, 16  ;;  %v441_v11 = vshll.u32 %v7475_v54, 16  ;;  %v447_v18 = vshll.u32 %v7484_v61, 16  ;;  %v7512_v45 = vld [vmem:[%s7313_s11 + $0x98] sm:$0x1] }
  0x40   : > { %6589 = vmatmul.mubr.bf16.vlgmr.msra.gmra.mxu0 %v5733_v36  ;;  %6605 = vmatmul.mubr.bf16.vlgmr.msra.gmra.mxu1 %v5741_v2  ;;  %v427_v36 = vshrl.u32 %v7437_v1, 16  ;;  %v621_v2 = vrot.slane %v619_v52, 4  ;;  %v612_v12 = vor.u32 %v611_v62, %v608_v59  ;;  %v451_v30 = vshrl.u32 %v7484_v61, 16  ;;  %v7080_v47 = vld [vmem:[%s10394_s1 + $0x10] sm:$0xff]   ;;  %v7525_v52 = vld [vmem:[%s7313_s11 + $0x3c] sm:$0xf] }
  0x41   : > { %6621 = vmatpush3.bf16.msra.mxu1 %v7070_v42  ;;  %6669 = vmatpush3.bf16.msra.mxu0 %v7071_v43  ;;  %v594_v42 = vsel %vm7354_vm2, %v589_v24, %v593_v8  ;;  %v599_v43 = vrot.slane %v598_v25, 4  ;;  %v426_v4 = vsel %vm7354_vm2, %v421_v56, %v425_v35  ;;  %v627_v16 = vrot.slane %v625_v3, 5  ;;  %v7081_v56 = vld [vmem:[%s10394_s1 + $0x90] sm:$0xff]  }
  0x42   : > { %6622 = vmatprep.subr.bf16.mxu1 %v7072_v53  ;;  %6670 = vmatprep.subr.bf16.mxu0 %v7073_v60  ;;  %v429_v46 = vrot.slane %v427_v36, 4  ;;  %v622_v13 = vor.u32 %v621_v2, %v617_v0  ;;  %v440_v25 = vrot.slane %v438_v10, 4  ;;  %v457_v44 = vshll.u32 %v7492_v17, 16  ;;  %v7538_v10 = vld [vmem:[%s7313_s11 + $0x9c] sm:$0xf] }
  0x43   : > { %v604_v49 = vsel %vm7354_vm2, %v599_v43, %v603_v29  ;;  %6592 = vmatprep.mubr.bf16.mxu0 %v5734_v39  ;;  %v443_v29 = vrot.slane %v441_v11, 5  ;;  %v7079_v39 = vld [vmem:[%s10394_s1 + $0x98] sm:$0xff]   ;;  %v453_v43 = vrot.slane %v451_v30, 4  ;;  %v639_v51 = vshll.u32 %v7502_v32, 16  ;;  %v7082_v30 = vld [vmem:[%s10394_s1 + $0x8] sm:$0xff]  }
  0x44   : > { %v5742_v55 = vcombine.low %v594_v42, %v604_v49  ;;  %v430_v57 = vor.u32 %v429_v46, %v425_v35  ;;  %v613_v35 = vrot.slane %v612_v12, 4  ;;  %v623_v36 = vrot.slane %v622_v13, 4 }
  0x45   : > { %6623 = vmatpush3.bf16.msra.mxu1 %v7072_v53  ;;  %6671 = vmatpush3.bf16.msra.mxu0 %v7073_v60  ;;  %v7076_v53 = vld [vmem:[%s10394_s1 + $0x20] sm:$0xff]   ;;  %v444_v42 = vor.u32 %v443_v29, %v440_v25  ;;  %v630_v46 = vshrl.u32 %v7496_v19, 16  ;;  %v641_v3 = vrot.slane %v639_v51, 5  ;;  %v649_v12 = vshll.u32 %v7512_v45, 16 }
  0x46   : > { %6624 = vmatprep.subr.bf16.mxu1 %v7074_v31  ;;  %v7077_v60 = vld [vmem:[%s10394_s1 + $0xa0] sm:$0xff]   ;;  %6672 = vmatprep.subr.bf16.mxu0 %v7075_v38  ;;  %v431_v8 = vrot.slane %v430_v57, 4  ;;  %v618_v48 = vsel %vm7354_vm2, %v613_v35, %v617_v0  ;;  %v628_v49 = vsel %vm7354_vm2, %v623_v36, %v627_v16  ;;  %v459_v0 = vrot.slane %v457_v44, 5 }
  0x47   : > { %6608 = vmatprep.mubr.bf16.mxu1 %v5742_v55  ;;  %v7528_v55 = vld [vmem:[%s7313_s11 + $0x40] sm:$0xf]  ;;  %v5743_v57 = vcombine.low %v618_v48, %v628_v49  ;;  %v445_v59 = vrot.slane %v444_v42, 4  ;;  %v462_v13 = vshrl.u32 %v7525_v52, 16  ;;  %v651_v35 = vrot.slane %v649_v12, 5  ;;  %v7083_v42 = vld [vmem:[%s10394_s1 + $0x88] sm:$0xff]  }
  0x48   : > { %v436_v24 = vsel %vm7354_vm2, %v431_v8, %v435_v50  ;;  %v633_v50 = vshll.u32 %v7496_v19, 16  ;;  %v7535_v8 = vld [vmem:[%s7313_s11 + $0x44] sm:$0x1]  ;;  %v471_v25 = vshll.u32 %v7528_v55, 16  ;;  %v7547_v29 = vld [vmem:[%s7313_s11 + $0xa0] sm:$0xf] }
  0x49   : > { %6625 = vmatpush3.bf16.msra.mxu1 %v7074_v31  ;;  %6673 = vmatpush3.bf16.msra.mxu0 %v7075_v38  ;;  %v7078_v31 = vld [vmem:[%s10394_s1 + $0x18] sm:$0xff]   ;;  %v5735_v34 = vcombine.low %v426_v4, %v436_v24  ;;  %v449_v38 = vrot.slane %v447_v18, 5  ;;  %v643_v4 = vshrl.u32 %v7502_v32, 16  ;;  %v465_v24 = vshll.u32 %v7525_v52, 16 }
  0x4a   : > { %6626 = vmatprep.subr.bf16.mxu1 %v7076_v53  ;;  %6674 = vmatprep.subr.bf16.mxu0 %v7077_v60  ;;  %v635_v2 = vrot.slane %v633_v50, 5  ;;  %v464_v36 = vrot.slane %v462_v13, 4  ;;  %v473_v48 = vrot.slane %v471_v25, 5  ;;  %v481_v50 = vshll.u32 %v7535_v8, 16 }
  0x4b   : > { %6593 = vmatmul.mubr.bf16.gmra.mxu0 %v5735_v34  ;;  %v454_v62 = vor.u32 %v453_v43, %v449_v38  ;;  %6609 = vmatmul.mubr.bf16.gmra.mxu1 %v5743_v57  ;;  %v450_v11 = vsel %vm7354_vm2, %v445_v59, %v449_v38  ;;  %v645_v18 = vrot.slane %v643_v4, 4  ;;  %v475_v38 = vshrl.u32 %v7528_v55, 16 }
  0x4c   : > { %v654_v51 = vshrl.u32 %v7538_v10, 16 }
  0x4d   : > { %6627 = vmatpush3.bf16.msra.mxu1 %v7076_v53  ;;  %6675 = vmatpush3.bf16.msra.mxu0 %v7077_v60  ;;  %v632_v53 = vrot.slane %v630_v46, 4  ;;  %v455_v60 = vrot.slane %v454_v62, 4  ;;  %v646_v44 = vor.u32 %v645_v18, %v641_v3  ;;  %v467_v46 = vrot.slane %v465_v24, 5  ;;  %v7563_v62 = vld [vmem:[%s7313_s11 + $0xa4] sm:$0x1] }
  0x4e   : > { %6628 = vmatprep.subr.bf16.mxu1 %v7078_v31  ;;  %6676 = vmatprep.subr.bf16.mxu0 %v7079_v39  ;;  %v477_v49 = vrot.slane %v475_v38, 4  ;;  %v656_v4 = vrot.slane %v654_v51, 4  ;;  %v7577_v18 = vld [vmem:[%s7313_s11 + $0x4c] sm:$0xf] }
  0x4f   : > { %v636_v16 = vor.u32 %v635_v2, %v632_v53  ;;  %v460_v34 = vsel %vm7354_vm2, %v455_v60, %v459_v0  ;;  %v647_v57 = vrot.slane %v646_v44, 4  ;;  %v468_v59 = vor.u32 %v467_v46, %v464_v36  ;;  %v7568_v60 = vld [vmem:[%s7313_s11 + $0x48] sm:$0xf] }
  0x50   : > { %v5736_v43 = vcombine.low %v450_v11, %v460_v34  ;;  %v657_v0 = vshll.u32 %v7538_v10, 16  ;;  %v478_v53 = vor.u32 %v477_v49, %v473_v48  ;;  %v483_v2 = vrot.slane %v481_v50, 5 }
  0x51   : > { %6629 = vmatpush3.bf16.msra.mxu1 %v7078_v31  ;;  %6677 = vmatpush3.bf16.msra.mxu0 %v7079_v39  ;;  %v637_v31 = vrot.slane %v636_v16, 4  ;;  %v663_v11 = vshll.u32 %v7547_v29, 16  ;;  %v652_v12 = vsel %vm7354_vm2, %v647_v57, %v651_v35  ;;  %v469_v13 = vrot.slane %v468_v59, 4 }
  0x52   : > { %6630 = vmatprep.subr.bf16.mxu1 %v7080_v47  ;;  %6678 = vmatprep.subr.bf16.mxu0 %v7081_v56  ;;  %v659_v16 = vrot.slane %v657_v0, 5  ;;  %v479_v25 = vrot.slane %v478_v53, 4  ;;  %v673_v36 = vshll.u32 %v7563_v62, 16  ;;  %v486_v44 = vshrl.u32 %v7568_v60, 16  ;;  %v7602_v53 = vld [vmem:[%s7313_s11 + $0xac] sm:$0xf] }
  0x53   : > { %6596 = vmatprep.mubr.bf16.mxu0 %v5736_v43  ;;  %v642_v39 = vsel %vm7354_vm2, %v637_v31, %v641_v3  ;;  %v7084_v3 = vld [vmem:[%s10394_s1] sm:$0xff]   ;;  %v665_v34 = vrot.slane %v663_v11, 5  ;;  %v474_v35 = vsel %vm7354_vm2, %v469_v13, %v473_v48  ;;  %v7586_v31 = vld [vmem:[%s7313_s11 + $0x50] sm:$0x1]  ;;  %v489_v50 = vshll.u32 %v7568_v60, 16  ;;  %v7599_v48 = vld [vmem:[%s10394_s1 + $0xf8] sm:$0xff]  }
  0x54   : > { %v5744_v24 = vcombine.low %v642_v39, %v652_v12  ;;  %v660_v38 = vor.u32 %v659_v16, %v656_v4  ;;  %v484_v46 = vsel %vm7354_vm2, %v479_v25, %v483_v2  ;;  %v675_v49 = vrot.slane %v673_v36, 5  ;;  %v7594_v39 = vld [vmem:[%s7313_s11 + $0xa8] sm:$0xf]  ;;  %v7607_v2 = vld [vmem:[%s10394_s1 + $0x138] sm:$0xff]   ;;  %v7612_v13 = vld [vmem:[%s7313_s11 + $0xb0] sm:$0x1] }
  0x55   : > { %6631 = vmatpush3.bf16.msra.mxu1 %v7080_v47  ;;  %6679 = vmatpush3.bf16.msra.mxu0 %v7081_v56  ;;  %v667_v47 = vshrl.u32 %v7547_v29, 16  ;;  %v7085_v56 = vld [vmem:[%s10394_s1 + $0x80] sm:$0xff]   ;;  %v495_v51 = vshll.u32 %v7577_v18, 16  ;;  %10425 = vst [vmem:[#allocation4_spill] sm:$0xff] %v7594_v39  ;;  %v488_v0 = vrot.slane %v486_v44, 4  ;;  %v499_v11 = vshrl.u32 %v7577_v18, 16 }
  0x56   : > { %6632 = vmatprep.subr.bf16.mxu1 %v7082_v30  ;;  %6680 = vmatprep.subr.bf16.mxu0 %v7083_v42  ;;  %v661_v57 = vrot.slane %v660_v38, 4  ;;  %v505_v12 = vshll.u32 %v7586_v31, 16  ;;  %10426 = vst [vmem:[#allocation5_spill] sm:$0xff] %v7612_v13  ;;  %v7615_v16 = vld [vmem:[%s7313_s11 + $0x54] sm:$0xf]  ;;  %v678_v25 = vshrl.u32 %v7594_v39, 16 }
  0x57   : > { %v669_v43 = vrot.slane %v667_v47, 4  ;;  %6612 = vmatprep.mubr.bf16.mxu1 %v5744_v24  ;;  %v497_v4 = vrot.slane %v495_v51, 5  ;;  %v681_v36 = vshll.u32 %v7594_v39, 16  ;;  %v510_v22 = vshrl.u32 %v7615_v16, 16 }
  0x58   : > { %v666_v47 = vsel %vm7354_vm2, %v661_v57, %v665_v34  ;;  %v507_v44 = vrot.slane %v505_v12, 5  ;;  %v697_v12 = vshll.u32 %v7612_v13, 16 }
  0x59   : > { %6633 = vmatpush3.bf16.msra.mxu1 %v7082_v30  ;;  %6681 = vmatpush3.bf16.msra.mxu0 %v7083_v42  ;;  %v5737_v30 = vcombine.low %v474_v35, %v484_v46  ;;  %v670_v59 = vor.u32 %v669_v43, %v665_v34  ;;  %v491_v42 = vrot.slane %v489_v50, 5  ;;  %v7622_v35 = vld [vmem:[%s7313_s11 + $0x58] sm:$0xf]  ;;  %v501_v43 = vrot.slane %v499_v11, 4 }
  0x5a   : > { %6634 = vmatprep.subr.bf16.mxu1 %v7084_v3  ;;  %6682 = vmatprep.subr.bf16.mxu0 %v7085_v56  ;;  %v687_v46 = vshll.u32 %v7602_v53, 16  ;;  %v680_v50 = vrot.slane %v678_v25, 4  ;;  %v683_v51 = vrot.slane %v681_v36, 5  ;;  %v519_v36 = vshll.u32 %v7622_v35, 16 }
  0x5b   : > { %6597 = vmatmul.mubr.bf16.gmra.mxu0 %v5737_v30  ;;  %v671_v24 = vrot.slane %v670_v59, 4  ;;  %v492_v38 = vor.u32 %v491_v42, %v488_v0  ;;  %v691_v30 = vshrl.u32 %v7602_v53, 16  ;;  %v502_v59 = vor.u32 %v501_v43, %v497_v4 }
  0x5c   : > { %v689_v0 = vrot.slane %v687_v46, 5  ;;  %v684_v42 = vor.u32 %v683_v51, %v680_v50  ;;  %v512_v50 = vrot.slane %v510_v22, 4  ;;  %v523_v63 = vshrl.u32 %v7622_v35, 16 }
  0x5d   : > { %6635 = vmatpush3.bf16.msra.mxu1 %v7084_v3  ;;  %6683 = vmatpush3.bf16.msra.mxu0 %v7085_v56  ;;  %v676_v34 = vsel %vm7354_vm2, %v671_v24, %v675_v49  ;;  %v493_v57 = vrot.slane %v492_v38, 4  ;;  %v7631_v56 = vld [vmem:[%s7313_s11 + $0x5c] sm:$0x1]  ;;  %v693_v11 = vrot.slane %v691_v30, 4  ;;  %v7636_v49 = vld [vmem:[%s7313_s11 + $0xb4] sm:$0xf] }
  0x5e   : > { %6716 = vmatprep.subr.bf16.mxu1 %v7599_v48  ;;  %6764 = vmatprep.subr.bf16.mxu0 %v7607_v2  ;;  %v5745_v3 = vcombine.low %v666_v47, %v676_v34  ;;  %10427 = vst [vmem:[#allocation6_spill] sm:$0xff] %v7636_v49  ;;  %v503_v25 = vrot.slane %v502_v59, 4  ;;  %v513_v47 = vshll.u32 %v7615_v16, 16  ;;  %v7643_v38 = vld [vmem:[%s7313_s11 + $0xb8] sm:$0xf]  ;;  %v685_v43 = vrot.slane %v684_v42, 4 }
  0x5f   : > { %v498_v24 = vsel %vm7354_vm2, %v493_v57, %v497_v4  ;;  %10428 = vst [vmem:[#allocation7_spill] sm:$0xff] %v7643_v38  ;;  %v694_v46 = vor.u32 %v693_v11, %v689_v0  ;;  %v699_v34 = vrot.slane %v697_v12, 5  ;;  %v7649_v4 = vld [vmem:[%s7313_s11 + $0xbc] sm:$0x1]  ;;  %v529_v42 = vshll.u32 %v7631_v56, 16 }
  0x60   : > { %6613 = vmatmul.mubr.bf16.gmra.mxu1 %v5745_v3  ;;  %v508_v51 = vsel %vm7354_vm2, %v503_v25, %v507_v44  ;;  %v515_v30 = vrot.slane %v513_v47, 5  ;;  %v521_v3 = vrot.slane %v519_v36, 5  ;;  %10429 = vst [vmem:[#allocation8_spill] sm:$0xff] %v7649_v4  ;;  %v690_v59 = vsel %vm7354_vm2, %v685_v43, %v689_v0  ;;  %v1319_v11 = vld [vmem:[%s7313_s11] sm:$0xe] }
  0x61   : > { %v5738_v57 = vcombine.low %v498_v24, %v508_v51  ;;  %v695_v21 = vrot.slane %v694_v46, 4  ;;  %v525_v22 = vrot.slane %v523_v63, 4  ;;  %v702_v13 = vshrl.u32 %v7636_v49, 16 }
  0x62   : > { %v516_v12 = vor.u32 %v515_v30, %v512_v50  ;;  %v705_v44 = vshll.u32 %v7636_v49, 16  ;;  %v531_v24 = vrot.slane %v529_v42, 5  ;;  %v711_v47 = vshll.u32 %v7643_v38, 16  ;;  %v1320_v50 = vld [vmem:[%s7313_s11 + $0xc] sm:$0xe] }
  0x63   : > { %6600 = vmatprep.mubr.bf16.mxu0 %v5738_v57  ;;  %v700_v25 = vsel %vm7354_vm2, %v695_v21, %v699_v34  ;;  %v715_v0 = vshrl.u32 %v7643_v38, 16  ;;  %v526_v46 = vor.u32 %v525_v22, %v521_v3  ;;  %v704_v51 = vrot.slane %v702_v13, 4  ;;  %v1321_v21 = vld [vmem:[%s7313_s11 + $0x18] sm:$0xe] }
  0x64   : > { %v5746_v36 = vcombine.low %v690_v59, %v700_v25  ;;  %v517_v43 = vrot.slane %v516_v12, 4  ;;  %v707_v63 = vrot.slane %v705_v44, 5  ;;  %v713_v30 = vrot.slane %v711_v47, 5 }
  0x65   : > { %v717_v39 = vrot.slane %v715_v0, 4  ;;  %v721_v49 = vshll.u32 %v7649_v4, 16  ;;  %v527_v59 = vrot.slane %v526_v46, 4  ;;  %v5780_v42 = vrot.slane %v1319_v11, 9 }
  0x66   : > { %6616 = vmatprep.mubr.bf16.mxu1 %v5746_v36  ;;  %v522_v34 = vsel %vm7354_vm2, %v517_v43, %v521_v3  ;;  %v1372_v13 = vrot.slane %v7332_v6, 5  ;;  %v708_v12 = vor.u32 %v707_v63, %v704_v51  ;;  %v5781_v25 = vrot.slane %v1320_v50, 9 }
  0x67   : > { %v718_v22 = vor.u32 %v717_v39, %v713_v30  ;;  %v723_v44 = vrot.slane %v721_v49, 5  ;;  %v532_v47 = vsel %vm7354_vm2, %v527_v59, %v531_v24  ;;  %v1379_v36 = vrot.slane %v7359_v33, 5 }
  0x68   : > { %v1373_v0 = vsel %vm7665_vm5, %v5780_v42, %v1372_v13  ;;  %v1374_v4 = vrot.slane %v1372_v13, 4  ;;  %v5739_v38 = vcombine.low %v522_v34, %v532_v47  ;;  %v709_v3 = vrot.slane %v708_v12, 4  ;;  %v1323_v13 = vld [vmem:[%s7313_s11 + $0x30] sm:$0xe]  ;;  %v1325_v47 = vld [vmem:[%s7313_s11 + $0x48] sm:$0xe] }
  0x69   : > { %v719_v43 = vrot.slane %v718_v22, 4  ;;  %v5756_v11 = vcombine.low %v7329_v5, %v7332_v6  ;;  %v10432_v39 = vrot.slane %v7335_v7, 5  ;;  %v1381_v46 = vrot.slane %v1379_v36, 4 }
  0x6a   : > { %v5782_v24 = vrot.slane %v1321_v21, 9  ;;  %6601 = vmatmul.mubr.bf16.gmra.mxu0 %v5739_v38  ;;  %v714_v51 = vsel %vm7354_vm2, %v709_v3, %v713_v30  ;;  %v1386_v34 = vrot.slane %v7396_v20, 5  ;;  %v1380_v5 = vsel %vm7665_vm5, %v5781_v25, %v1379_v36  ;;  %v1324_v25 = vld [vmem:[%s7313_s11 + $0x3c] sm:$0xe] }
  0x6b   : > { %v1376_v49 = vsel %vm7665_vm5, %v1374_v4, %v10432_v39  ;;  %v724_v50 = vsel %vm7354_vm2, %v719_v43, %v723_v44  ;;  %v10433_v6 = vrot.slane %v7365_v41, 5  ;;  %v1389_v38 = vrot.slane %v7401_v26, 5  ;;  %v1322_v4 = vld [vmem:[%s7313_s11 + $0x24] sm:$0xe]  ;;  %v7093_v26 = vld [vmem:[%s10394_s1 + $0x130] sm:$0xff]  }
  0x6c   : > { %v5796_v63 = vcombine.low %v1373_v0, %v1376_v49  ;;  %v5747_v59 = vcombine.low %v714_v51, %v724_v50  ;;  %v1387_v30 = vsel %vm7665_vm5, %v5782_v24, %v1386_v34  ;;  %v1388_v21 = vrot.slane %v1386_v34, 4  ;;  %v7092_v24 = vld [vmem:[%s10394_s1 + $0xf0] sm:$0xff]  }
  0x6d   : > { %v1383_v7 = vsel %vm7665_vm5, %v1381_v46, %v10433_v6  ;;  %v1393_v42 = vrot.slane %v7437_v1, 5  ;;  %v5783_v22 = vrot.slane %v1322_v4, 9  ;;  %v1400_v44 = vrot.slane %v7484_v61, 5  ;;  %v7740_v4 = vld [vmem:[%s7313_s11 + $0x68] sm:$0x1] }
  0x6e   : > { %6684 = vmatprep.mubr.bf16.mxu0 %v5796_v63  ;;  %6617 = vmatmul.mubr.bf16.gmra.mxu1 %v5747_v59  ;;  %v5797_v12 = vcombine.low %v1380_v5, %v1383_v7  ;;  %v1390_v41 = vsel %vm7665_vm5, %v1388_v21, %v1389_v38  ;;  %v1396_v3 = vrot.slane %v7440_v9, 5  ;;  %v5784_v43 = vrot.slane %v1323_v13, 9  ;;  %v1326_v38 = vld [vmem:[%s7313_s11 + $0x54] sm:$0xe]  ;;  %v7764_v13 = vld [vmem:[%s7313_s11 + $0x60] sm:$0xe] }
  0x6f   : > { %6636 = vmatprep.mubr.bf16.mxu1 %v5756_v11  ;;  %v5798_v0 = vcombine.low %v1387_v30, %v1390_v41  ;;  %v1395_v36 = vrot.slane %v1393_v42, 4  ;;  %v1402_v39 = vrot.slane %v1400_v44, 4  ;;  %v1403_v11 = vrot.slane %v7492_v17, 5 }
  0x70   : > { %v1407_v49 = vrot.slane %v7528_v55, 5  ;;  %v5758_v46 = vcombine.low %v7388_v15, %v7396_v20  ;;  %v1414_v51 = vrot.slane %v7577_v18, 5  ;;  %v5785_v50 = vrot.slane %v1324_v25, 9  ;;  %v7101_v25 = vld [vmem:[%s10394_s1 + $0x120] sm:$0xff]  }
  0x71   : > { %v1410_v9 = vrot.slane %v7535_v8, 5  ;;  %v5786_v34 = vrot.slane %v1325_v47, 9  ;;  %v1394_v15 = vsel %vm7665_vm5, %v5783_v22, %v1393_v42  ;;  %v1397_v20 = vsel %vm7665_vm5, %v1395_v36, %v1396_v3  ;;  %v7776_v47 = vld [vmem:[%s7313_s11 + $0x78] sm:$0xe]  ;;  %v7100_v3 = vld [vmem:[%s10394_s1 + $0xe0] sm:$0xff]  }
  0x72   : > { %6685 = vmatmul.mubr.bf16.vlgmr.msra.gmra.mxu0 %v5797_v12  ;;  %v1409_v63 = vrot.slane %v1407_v49, 4  ;;  %v1416_v17 = vrot.slane %v1414_v51, 4  ;;  %v1417_v59 = vrot.slane %v7586_v31, 5  ;;  %v1401_v5 = vsel %vm7665_vm5, %v5784_v43, %v1400_v44  ;;  %v7767_v12 = vld [vmem:[%s7313_s11 + $0x6c] sm:$0xe] }
  0x73   : > { %6765 = vmatpush3.bf16.msra.mxu0 %v7607_v2  ;;  %6688 = vmatprep.mubr.bf16.mxu0 %v5798_v0  ;;  %v1404_v8 = vsel %vm7665_vm5, %v1402_v39, %v1403_v11  ;;  %v7097_v2 = vld [vmem:[%s10394_s1 + $0x128] sm:$0xff]   ;;  %v1421_v6 = vrot.slane %v7622_v35, 5  ;;  %v10434_v7 = vcombine.low %v7350_v27, %v7359_v33  ;;  %v5759_v31 = vcombine.low %v7428_v58, %v7437_v1  ;;  %v1330_v0 = vld [vmem:[%s7313_s11 + $0x84] sm:$0xe]  ;;  %v1331_v43 = vld [vmem:[%s7313_s11 + $0x90] sm:$0xe] }
  0x74   : > { %6766 = vmatprep.subr.bf16.mxu0 %v7093_v26  ;;  %v1431_v30 = vrot.slane %v7740_v4, 5  ;;  %v5799_v21 = vcombine.low %v1394_v15, %v1397_v20  ;;  %v7746_v42 = vsel %vm7665_vm5, %v5785_v50, %v1407_v49  ;;  %v7750_v27 = vsel %vm7665_vm5, %v1409_v63, %v1410_v9  ;;  %v7096_v33 = vld [vmem:[%s10394_s1 + $0xe8] sm:$0xff]   ;;  %v7795_v49 = vld [vmem:[%s7313_s11 + $0x64] sm:$0xf]  ;;  %v1332_v50 = vld [vmem:[%s7313_s11 + $0x9c] sm:$0xe] }
  0x75   : > { %v5800_v58 = vcombine.low %v1401_v5, %v1404_v8  ;;  %v7757_v1 = vsel %vm7665_vm5, %v5786_v34, %v1414_v51  ;;  %v5760_v41 = vcombine.low %v7475_v54, %v7484_v61  ;;  %v5787_v22 = vrot.slane %v1326_v38, 9  ;;  %v7817_v5 = vld [vmem:[%s7313_s11 + $0x74] sm:$0x1] }
  0x76   : > { %6637 = vmatmul.mubr.bf16.vlgmr.msra.gmra.mxu1 %v10434_v7  ;;  %v1424_v44 = vrot.slane %v7631_v56, 5  ;;  %v5761_v36 = vcombine.low %v7525_v52, %v7528_v55  ;;  %v5801_v54 = vcombine.low %v7746_v42, %v7750_v27  ;;  %v5762_v61 = vcombine.low %v7568_v60, %v7577_v18  ;;  %v7186_v55 = vld [vmem:[%s7313_s11 + $0x80] sm:$0x1] }
  0x77   : > { %6717 = vmatpush3.bf16.msra.mxu1 %v7599_v48  ;;  %6640 = vmatprep.mubr.bf16.mxu1 %v5758_v46  ;;  %v7761_v48 = vsel %vm7665_vm5, %v1416_v17, %v1417_v59  ;;  %v5763_v56 = vcombine.low %v7615_v16, %v7622_v35  ;;  %v5788_v11 = vrot.slane %v7764_v13, 9  ;;  %v1428_v46 = vrot.slane %v7795_v49, 5  ;;  %v7813_v17 = vld [vmem:[%s7313_s11 + $0x70] sm:$0xf]  ;;  %v7187_v18 = vld [vmem:[%s7313_s11 + $0x60] sm:$0xf] }
  0x78   : > { %6718 = vmatprep.subr.bf16.mxu1 %v7092_v24  ;;  %6767 = vmatpush3.bf16.msra.mxu0 %v7093_v26  ;;  %v1423_v26 = vrot.slane %v1421_v6, 4  ;;  %v5802_v39 = vcombine.low %v7757_v1, %v7761_v48  ;;  %v5789_v63 = vrot.slane %v7767_v12, 9  ;;  %v1449_v9 = vrot.slane %v7451_v23, 5  ;;  %v1333_v1 = vld [vmem:[%s7313_s11 + $0xa8] sm:$0xe]  ;;  %v7997_v16 = vld [vmem:[%s10394_s1 + $0x1b8] sm:$0xff]  }
  0x79   : > { %6768 = vmatprep.subr.bf16.mxu0 %v7097_v2  ;;  %v1452_v34 = vrot.slane %v7460_v37, 5  ;;  %v7806_v15 = vsel %vm7665_vm5, %v5787_v22, %v1421_v6  ;;  %v1435_v59 = vrot.slane %v7813_v17, 5  ;;  %v1438_v8 = vrot.slane %v7817_v5, 5  ;;  %v7104_v37 = vld [vmem:[%s10394_s1 + $0xd8] sm:$0xff]  }
  0x7a   : > { %6689 = vmatmul.mubr.bf16.gmra.mxu0 %v5799_v21  ;;  %v7810_v20 = vsel %vm7665_vm5, %v1423_v26, %v1424_v44  ;;  %v5790_v6 = vrot.slane %v7776_v47, 9  ;;  %v1451_v38 = vrot.slane %v1449_v9, 4  ;;  %v5792_v42 = vrot.slane %v1331_v43, 9  ;;  %v5876_v43 = vld [vmem:[%s7313_s11 + $0xc] sm:$0xf] }
  0x7b   : > { %6719 = vmatpush3.bf16.msra.mxu1 %v7092_v24  ;;  %6692 = vmatprep.mubr.bf16.mxu0 %v5800_v58  ;;  %v5791_v24 = vrot.slane %v1330_v0, 9  ;;  %v1456_v27 = vrot.slane %v7502_v32, 5  ;;  %v1459_v58 = vrot.slane %v7512_v45, 5  ;;  %v1442_v48 = vrot.slane %v7410_v40, 5 }
  0x7c   : > { %6720 = vmatprep.subr.bf16.mxu1 %v7096_v33  ;;  %6769 = vmatpush3.bf16.msra.mxu0 %v7097_v2  ;;  %v7105_v2 = vld [vmem:[%s10394_s1 + $0x118] sm:$0xff]   ;;  %v7841_v22 = vsel %vm7665_vm5, %v1451_v38, %v1452_v34  ;;  %v1463_v0 = vrot.slane %v7547_v29, 5  ;;  %v5794_v34 = vrot.slane %v1333_v1, 9  ;;  %v1470_v38 = vrot.slane %v7602_v53, 5  ;;  %v7108_v1 = vld [vmem:[%s10394_s1 + $0xd0] sm:$0xff]  }
  0x7d   : > { %6770 = vmatprep.subr.bf16.mxu0 %v7101_v25  ;;  %v7829_v7 = vsel %vm7665_vm5, %v5791_v24, %v1449_v9  ;;  %v7849_v45 = vsel %vm7665_vm5, %v5792_v42, %v1456_v27  ;;  %v1458_v44 = vrot.slane %v1456_v27, 4  ;;  %v7109_v24 = vld [vmem:[%s10394_s1 + $0x110] sm:$0xff]   ;;  %v1466_v9 = vrot.slane %v7563_v62, 5 }
  0x7e   : > { %6641 = vmatmul.mubr.bf16.gmra.mxu1 %v5759_v31  ;;  %v1430_v31 = vrot.slane %v1428_v46, 4  ;;  %v1465_v21 = vrot.slane %v1463_v0, 4  ;;  %v10436_v62 = vld [vmem:[#allocation5_spill] sm:$0xff]  ;;  %v2238_v13 = vshrl.u32 %v5876_v43, 16  ;;  %v1437_v52 = vrot.slane %v1435_v59, 4 }
  0x7f   : > { %6644 = vmatprep.mubr.bf16.mxu1 %v5760_v41  ;;  %6721 = vmatpush3.bf16.msra.mxu1 %v7096_v33  ;;  %v5793_v41 = vrot.slane %v1332_v50, 9  ;;  %v7861_v33 = vld [vmem:[%s7313_s11 + $0x10] sm:$0xf]  ;;  %v7865_v42 = vsel %vm7665_vm5, %v1458_v44, %v1459_v58  ;;  %v1473_v51 = vrot.slane %v10436_v62, 5  ;;  %v1472_v58 = vrot.slane %v1470_v38, 4  ;;  %v10438_v44 = vld [vmem:[#allocation6_spill] sm:$0xff] }
  0x80   : > { %6722 = vmatprep.subr.bf16.mxu1 %v7100_v3  ;;  %6771 = vmatpush3.bf16.msra.mxu0 %v7101_v25  ;;  %v10435_v25 = vld [vmem:[#allocation4_spill] sm:$0xff]  ;;  %v1429_v62 = vsel %vm7665_vm5, %v5788_v11, %v1428_v46  ;;  %v2241_v11 = vshll.u32 %v5876_v43, 16  ;;  %v5879_v46 = vld [vmem:[%s7313_s11 + $0x18] sm:$0xf]  ;;  %v2247_v60 = vshll.u32 %v7861_v33, 16  ;;  %v1439_v12 = vsel %vm7665_vm5, %v1437_v52, %v1438_v8 }
  0x81   : > { %6772 = vmatprep.subr.bf16.mxu0 %v7105_v2  ;;  %v7869_v27 = vsel %vm7665_vm5, %v5793_v41, %v1463_v0  ;;  %v10437_v41 = vld [vmem:[#allocation7_spill] sm:$0xff]  ;;  %v7935_v43 = vld [vmem:[%s7313_s11 + $0x14] sm:$0x1]  ;;  %v2240_v0 = vrot.slane %v2238_v13, 4  ;;  %v1443_v5 = vsel %vm7665_vm5, %v5790_v6, %v1442_v48  ;;  %v10440_v6 = vld [vmem:[#allocation8_spill] sm:$0xff] }
  0x82   : > { %6693 = vmatmul.mubr.bf16.gmra.mxu0 %v5801_v54  ;;  %v2243_v50 = vrot.slane %v2241_v11, 5  ;;  %v5882_v54 = vld [vmem:[%s7313_s11 + $0x24] sm:$0xf] }
  0x83   : > { %6723 = vmatpush3.bf16.msra.mxu1 %v7100_v3  ;;  %6696 = vmatprep.mubr.bf16.mxu0 %v5802_v39  ;;  %v7879_v3 = vsel %vm7665_vm5, %v5794_v34, %v1470_v38  ;;  %v5803_v39 = vcombine.low %v7806_v15, %v7810_v20  ;;  %v1432_v34 = vsel %vm7665_vm5, %v1430_v31, %v1431_v30  ;;  %v7113_v15 = vld [vmem:[%s10394_s1 + $0x108] sm:$0xff]   ;;  %v7117_v31 = vld [vmem:[%s10394_s1 + $0x100] sm:$0xff]   ;;  %v7954_v20 = vrot.slane %v2247_v60, 5 }
  0x84   : > { %6724 = vmatprep.subr.bf16.mxu1 %v7104_v37  ;;  %6773 = vmatpush3.bf16.msra.mxu0 %v7105_v2  ;;  %v7897_v38 = vsel %vm7665_vm5, %v1465_v21, %v1466_v9  ;;  %v7909_v30 = vsel %vm7665_vm5, %v1472_v58, %v1473_v51  ;;  %v7112_v51 = vld [vmem:[%s10394_s1 + $0xc8] sm:$0xff]   ;;  %v7924_v2 = vld [vmem:[%s7313_s11 + $0xb4] sm:$0xe]  ;;  %v5804_v21 = vcombine.low %v1429_v62, %v1432_v34  ;;  %v2251_v9 = vshrl.u32 %v7861_v33, 16  ;;  %v7952_v62 = vld [vmem:[%s7313_s11 + $0x1c] sm:$0xf] }
  0x85   : > { %6774 = vmatprep.subr.bf16.mxu0 %v7109_v24  ;;  %v7939_v58 = vld [vmem:[%s7313_s11 + $0x6c] sm:$0xf]  ;;  %v2262_v34 = vshrl.u32 %v5879_v46, 16  ;;  %v2271_v52 = vshll.u32 %v7952_v62, 16  ;;  %v2275_v40 = vshrl.u32 %v7952_v62, 16  ;;  %v2286_v60 = vshrl.u32 %v5882_v54, 16 }
  0x86   : > { %6645 = vmatmul.mubr.bf16.gmra.mxu1 %v5761_v36  ;;  %v1445_v36 = vrot.slane %v7186_v55, 5  ;;  %v5765_v55 = vcombine.low %v7939_v58, %v7813_v17  ;;  %v2253_v4 = vrot.slane %v2251_v9, 4  ;;  %v2289_v47 = vshll.u32 %v5882_v54, 16  ;;  %v7190_v9 = vld [vmem:[%s7313_s11 + $0x7c] sm:$0xf] }
  0x87   : > { %6648 = vmatprep.mubr.bf16.mxu1 %v5762_v61  ;;  %6725 = vmatpush3.bf16.msra.mxu1 %v7104_v37  ;;  %v5764_v61 = vcombine.low %v7187_v18, %v7795_v49  ;;  %v1444_v37 = vrot.slane %v1442_v48, 4  ;;  %v7949_v49 = vsel %vm7665_vm5, %v5789_v63, %v1435_v59  ;;  %v2265_v18 = vshll.u32 %v5879_v46, 16  ;;  %v7116_v59 = vld [vmem:[%s10394_s1 + $0xc0] sm:$0xff]   ;;  %v7979_v46 = vld [vmem:[%s7313_s11 + $0x28] sm:$0xf] }
  0x88   : > { %6726 = vmatprep.subr.bf16.mxu1 %v7108_v1  ;;  %6775 = vmatpush3.bf16.msra.mxu0 %v7109_v24  ;;  %v10408_v63 = vrot.slane %v10437_v41, 5  ;;  %v7966_v24 = vld [vmem:[%s7313_s11 + $0x20] sm:$0x1]  ;;  %v2264_v13 = vrot.slane %v2262_v34, 4  ;;  %10439 = vst [vmem:[#allocation4_spill] sm:$0xff] %v7979_v46  ;;  %v5805_v35 = vcombine.low %v7949_v49, %v1439_v12  ;;  %v2295_v54 = vshll.u32 %v7979_v46, 16 }
  0x89   : > { %6776 = vmatprep.subr.bf16.mxu0 %v7113_v15  ;;  %v2267_v11 = vrot.slane %v2265_v18, 5  ;;  %v1446_v8 = vsel %vm7665_vm5, %v1444_v37, %v1445_v36  ;;  %v2244_v36 = vor.u32 %v2243_v50, %v2240_v0  ;;  %v7992_v37 = vld [vmem:[%s10394_s1 + $0x178] sm:$0xff]   ;;  %v5885_v0 = vld [vmem:[%s7313_s11 + $0x30] sm:$0xf]  ;;  %v8013_v49 = vld [vmem:[%s7313_s11 + $0x34] sm:$0xf] }
  0x8a   : > { %6697 = vmatmul.mubr.bf16.gmra.mxu0 %v5803_v39  ;;  %v2257_v39 = vshll.u32 %v7935_v43, 16  ;;  %v5806_v18 = vcombine.low %v1443_v5, %v1446_v8  ;;  %10442 = vst [vmem:[#allocation7_spill] sm:$0xff] %v8013_v49  ;;  %v8015_v12 = vrot.slane %v2271_v52, 5  ;;  %v2291_v48 = vrot.slane %v2289_v47, 5  ;;  %v8034_v47 = vld [vmem:[%s7313_s11 + $0x40] sm:$0xf] }
  0x8b   : > { %6727 = vmatpush3.bf16.msra.mxu1 %v7108_v1  ;;  %6700 = vmatprep.mubr.bf16.mxu0 %v5804_v21  ;;  %v2254_v21 = vor.u32 %v2253_v4, %v7954_v20  ;;  %v2268_v50 = vor.u32 %v2267_v11, %v2264_v13  ;;  %v7189_v4 = vld [vmem:[%s7313_s11 + $0x78] sm:$0xf]  ;;  %v2277_v13 = vrot.slane %v2275_v40, 4  ;;  %v2288_v11 = vrot.slane %v2286_v60, 4  ;;  %10443 = vst [vmem:[#allocation6_spill] sm:$0xff] %v8034_v47 }
  0x8c   : > { %6728 = vmatprep.subr.bf16.mxu1 %v7112_v51  ;;  %6777 = vmatpush3.bf16.msra.mxu0 %v7113_v15  ;;  %v2281_v15 = vshll.u32 %v7966_v24, 16  ;;  %v5766_v34 = vcombine.low %v7189_v4, %v7190_v9  ;;  %v8006_v26 = vrot.slane %v2257_v39, 5  ;;  %v8018_v1 = vld [vmem:[%s7313_s11 + $0x38] sm:$0x1]  ;;  %v8020_v5 = vrot.slane %v2244_v36, 4 }
  0x8d   : > { %6778 = vmatprep.subr.bf16.mxu0 %v7117_v31  ;;  %v8022_v8 = vrot.slane %v2254_v21, 4  ;;  %v2310_v4 = vshrl.u32 %v5885_v0, 16  ;;  %v5888_v9 = vld [vmem:[%s7313_s11 + $0x3c] sm:$0xf]  ;;  %v8030_v52 = vrot.slane %v2295_v54, 5  ;;  %v2313_v40 = vshll.u32 %v5885_v0, 16 }
  0x8e   : > { %6649 = vmatmul.mubr.bf16.gmra.mxu1 %v5763_v56  ;;  %v1479_v56 = vrot.slane %v10408_v63, 4  ;;  %v8024_v39 = vrot.slane %v2281_v15, 5  ;;  %v2319_v60 = vshll.u32 %v8013_v49, 16  ;;  %v2323_v21 = vshrl.u32 %v8013_v49, 16 }
  0x8f   : > { %6652 = vmatprep.mubr.bf16.mxu1 %v5764_v61  ;;  %6729 = vmatpush3.bf16.msra.mxu1 %v7112_v51  ;;  %v8009_v61 = vld [vmem:[%s7313_s11 + $0x2c] sm:$0x1]  ;;  %v2299_v51 = vshrl.u32 %v7979_v46, 16  ;;  %v2278_v15 = vor.u32 %v2277_v13, %v8015_v12  ;;  %v2312_v54 = vrot.slane %v2310_v4, 4  ;;  %v2315_v0 = vrot.slane %v2313_v40, 5 }
  0x90   : > { %6730 = vmatprep.subr.bf16.mxu1 %v7116_v59  ;;  %10441 = vst [vmem:[#allocation5_spill] sm:$0xff] %v8009_v61  ;;  %6779 = vmatpush3.bf16.msra.mxu0 %v7117_v31  ;;  %v8028_v31 = vrot.slane %v2268_v50, 4  ;;  %v2334_v50 = vshrl.u32 %v5888_v9, 16  ;;  %v2337_v63 = vshll.u32 %v5888_v9, 16  ;;  %v2325_v49 = vrot.slane %v2323_v21, 4 }
  0x91   : > { %6860 = vmatprep.subr.bf16.mxu0 %v7997_v16  ;;  %v2301_v36 = vrot.slane %v2299_v51, 4  ;;  %v8044_v51 = vrot.slane %v2319_v60, 5  ;;  %v8047_v46 = vld [vmem:[%s7313_s11 + $0x44] sm:$0x1]  ;;  %v2347_v13 = vshrl.u32 %v8034_v47, 16  ;;  %v10444_v17 = vrot.slane %v10437_v41, 5 }
  0x92   : > { %6701 = vmatmul.mubr.bf16.gmra.mxu0 %v5805_v35  ;;  %v2305_v35 = vshll.u32 %v8009_v61, 16  ;;  %v10445_v58 = vrot.slane %v7924_v2, 9  ;;  %v8068_v40 = vld [vmem:[%s7313_s11 + $0x4c] sm:$0xf]  ;;  %v2336_v60 = vrot.slane %v2334_v50, 4  ;;  %v2339_v21 = vrot.slane %v2337_v63, 5 }
  0x93   : > { %6731 = vmatpush3.bf16.msra.mxu1 %v7116_v59  ;;  %6704 = vmatprep.mubr.bf16.mxu0 %v5806_v18  ;;  %v2292_v59 = vor.u32 %v2291_v48, %v2288_v11  ;;  %v2329_v18 = vshll.u32 %v8018_v1, 16  ;;  %v2343_v48 = vshll.u32 %v8034_v47, 16  ;;  %v5891_v11 = vld [vmem:[%s7313_s11 + $0x48] sm:$0xf]  ;;  %v2302_v9 = vor.u32 %v2301_v36, %v8030_v52 }
  0x94   : > { %6812 = vmatprep.subr.bf16.mxu1 %v7992_v37  ;;  %v2349_v2 = vrot.slane %v2347_v13, 4  ;;  %v8072_v47 = vrot.slane %v2278_v15, 4  ;;  %v2250_v63 = vsel %vm7354_vm2, %v8020_v5, %v7954_v20  ;;  %v2260_v36 = vsel %vm7354_vm2, %v8022_v8, %v8006_v26  ;;  %v5894_v5 = vld [vmem:[%s7313_s11 + $0x54] sm:$0xf] }
  0x95   : > { %v8070_v61 = vrot.slane %v2343_v48, 5  ;;  %v2361_v15 = vshll.u32 %v5891_v11, 16  ;;  %v2353_v50 = vshll.u32 %v8047_v46, 16  ;;  %v2371_v20 = vshrl.u32 %v8068_v40, 16 }
  0x96   : > { %6653 = vmatmul.mubr.bf16.gmra.mxu1 %v5765_v55  ;;  %v8058_v55 = vsel %vm7665_vm5, %v10445_v58, %v10444_v17  ;;  %v8074_v17 = vrot.slane %v2292_v59, 4  ;;  %v8076_v58 = vrot.slane %v2305_v35, 5  ;;  %v2367_v59 = vshll.u32 %v8068_v40, 16 }
  0x97   : > { %6656 = vmatprep.mubr.bf16.mxu1 %v5766_v34  ;;  %v10446_v34 = vrot.slane %v10440_v6, 5  ;;  %v2358_v6 = vshrl.u32 %v5891_v11, 16  ;;  %v10448_v35 = vcombine.low %v7849_v45, %v7865_v42  ;;  %v8097_v48 = vrot.slane %v2302_v9, 4  ;;  %v8103_v11 = vld [vmem:[%s7313_s11 + $0x58] sm:$0xf] }
  0x98   : > { %v8099_v13 = vrot.slane %v2329_v18, 5  ;;  %v2340_v26 = vor.u32 %v2339_v21, %v2336_v60  ;;  %v2350_v8 = vor.u32 %v2349_v2, %v8070_v61  ;;  %v10449_v45 = vcombine.low %v7444_v14, %v7451_v23  ;;  %v8109_v42 = vld [vmem:[%s7313_s11 + $0x50] sm:$0x1] }
  0x99   : > { %v8064_v4 = vsel %vm7665_vm5, %v1479_v56, %v10446_v34  ;;  %v10447_v56 = vcombine.low %v7829_v7, %v7841_v22  ;;  %v2316_v7 = vor.u32 %v2315_v0, %v2312_v54  ;;  %v2326_v22 = vor.u32 %v2325_v49, %v8044_v51 }
  0x9a   : > { %v2360_v49 = vrot.slane %v2358_v6, 4  ;;  %v2363_v54 = vrot.slane %v2361_v15, 5  ;;  %v8111_v0 = vrot.slane %v2367_v59, 5  ;;  %v2373_v18 = vrot.slane %v2371_v20, 4  ;;  %v5897_v6 = vld [vmem:[%s7313_s11 + $0x60] sm:$0xf] }
  0x9b   : > { %6705 = vmatmul.mubr.bf16.gmra.mxu0 %v10447_v56  ;;  %v10450_v34 = vcombine.low %v7496_v19, %v7502_v32  ;;  %v2382_v9 = vshrl.u32 %v5894_v5, 16  ;;  %v2385_v60 = vshll.u32 %v5894_v5, 16  ;;  %v8116_v21 = vrot.slane %v2316_v7, 4  ;;  %v8133_v32 = vld [vmem:[%s7313_s11 + $0x64] sm:$0xf] }
  0x9c   : > { %6708 = vmatprep.mubr.bf16.mxu0 %v10448_v35  ;;  %v8118_v2 = vrot.slane %v2326_v22, 4  ;;  %v8120_v14 = vrot.slane %v2353_v50, 5  ;;  %v2391_v23 = vshll.u32 %v8103_v11, 16  ;;  %v5811_v56 = vcombine.low %v8058_v55, %v8064_v4  ;;  %v8129_v35 = vld [vmem:[%s7313_s11 + $0x5c] sm:$0x1] }
  0x9d   : > { %v5924_v15 = vcombine.low %v2250_v63, %v2260_v36  ;;  %v8126_v59 = vrot.slane %v2340_v26, 4  ;;  %v2395_v19 = vshrl.u32 %v8103_v11, 16  ;;  %v8135_v7 = vrot.slane %v2350_v8, 4 }
  0x9e   : > { %6657 = vmatmul.mubr.bf16.gmra.mxu1 %v10449_v45  ;;  %v2377_v22 = vshll.u32 %v8109_v42, 16  ;;  %v2406_v50 = vshrl.u32 %v5897_v6, 16  ;;  %v2409_v20 = vshll.u32 %v5897_v6, 16  ;;  %v10451_v5 = vcombine.low %v7869_v27, %v7897_v38 }
  0x9f   : > { %6660 = vmatprep.mubr.bf16.mxu1 %v10450_v34  ;;  %v2364_v55 = vor.u32 %v2363_v54, %v2360_v49  ;;  %v2374_v4 = vor.u32 %v2373_v18, %v8111_v0  ;;  %v2384_v63 = vrot.slane %v2382_v9, 4  ;;  %v2387_v36 = vrot.slane %v2385_v60, 5  ;;  %v8173_v9 = vld [vmem:[%s7313_s11 + $0x70] sm:$0xf] }
  0xa0   : > { %v10452_v26 = vcombine.low %v7879_v3, %v7909_v30  ;;  %v8145_v8 = vrot.slane %v2391_v23, 5  ;;  %v2397_v45 = vrot.slane %v2395_v19, 4  ;;  %v2401_v34 = vshll.u32 %v8129_v35, 16 }
  0xa1   : > { %v2415_v27 = vshll.u32 %v8133_v32, 16  ;;  %v2274_v38 = vsel %vm7354_vm2, %v8028_v31, %v8015_v12  ;;  %v2284_v3 = vsel %vm7354_vm2, %v8072_v47, %v8024_v39  ;;  %v2408_v30 = vrot.slane %v2406_v50, 4  ;;  %v5900_v47 = vld [vmem:[%s7313_s11 + $0x6c] sm:$0xf] }
  0xa2   : > { %v2411_v49 = vrot.slane %v2409_v20, 5  ;;  %v10453_v54 = vcombine.low %v7538_v10, %v7547_v29  ;;  %v2298_v18 = vsel %vm7354_vm2, %v8074_v17, %v8030_v52  ;;  %v2308_v12 = vsel %vm7354_vm2, %v8097_v48, %v8076_v58  ;;  %v8181_v17 = vld [vmem:[%s7313_s11 + $0x68] sm:$0x1] }
  0xa3   : > { %6709 = vmatmul.mubr.bf16.gmra.mxu0 %v10451_v5  ;;  %v8168_v31 = vrot.slane %v2377_v22, 5  ;;  %v2419_v39 = vshrl.u32 %v8133_v32, 16  ;;  %v10454_v10 = vcombine.low %v10435_v25, %v7602_v53  ;;  %v8178_v29 = vrot.slane %v2364_v55, 4  ;;  %v7118_v53 = vld [vmem:[%s7313_s11 + $0xc] sm:$0xff]  }
  0xa4   : > { %6712 = vmatprep.mubr.bf16.mxu0 %v10452_v26  ;;  %v2388_v52 = vor.u32 %v2387_v36, %v2384_v63  ;;  %v2430_v60 = vshrl.u32 %v5900_v47, 16  ;;  %v2433_v58 = vshll.u32 %v5900_v47, 16  ;;  %v8183_v48 = vrot.slane %v2374_v4, 4  ;;  %v8194_v63 = vld [vmem:[%s7313_s11 + $0x74] sm:$0x1] }
  0xa5   : > { %v2398_v23 = vor.u32 %v2397_v45, %v8145_v8  ;;  %v8186_v6 = vrot.slane %v2401_v34, 5  ;;  %v2439_v19 = vshll.u32 %v8173_v9, 16  ;;  %v2412_v25 = vor.u32 %v2411_v49, %v2408_v30  ;;  %v5903_v26 = vld [vmem:[%s7313_s11 + $0x78] sm:$0xf]  ;;  %v8198_v45 = vld [vmem:[%s7313_s11 + $0x7c] sm:$0xf] }
  0xa6   : > { %6661 = vmatmul.mubr.bf16.gmra.mxu1 %v10453_v54  ;;  %v8190_v22 = vrot.slane %v2415_v27, 5  ;;  %v2421_v50 = vrot.slane %v2419_v39, 4  ;;  %v2443_v20 = vshrl.u32 %v8173_v9, 16  ;;  %v5925_v5 = vcombine.low %v2274_v38, %v2284_v3  ;;  %v8205_v27 = vld [vmem:[%s7313_s11 + $0x80] sm:$0x1] }
  0xa7   : > { %6664 = vmatprep.mubr.bf16.mxu1 %v10454_v10  ;;  %v5926_v55 = vcombine.low %v2298_v18, %v2308_v12  ;;  %v2432_v4 = vrot.slane %v2430_v60, 4  ;;  %v2435_v36 = vrot.slane %v2433_v58, 5  ;;  %v8200_v34 = vrot.slane %v2388_v52, 4 }
  0xa8   : > { %v8202_v54 = vrot.slane %v2439_v19, 5  ;;  %v2445_v30 = vrot.slane %v2443_v20, 4  ;;  %v2454_v49 = vshrl.u32 %v5903_v26, 16  ;;  %v2425_v38 = vshll.u32 %v8181_v17, 16  ;;  %v5906_v20 = vld [vmem:[%s7313_s11 + $0x84] sm:$0xf] }
  0xa9   : > { %v2457_v3 = vshll.u32 %v5903_v26, 16  ;;  %v2463_v18 = vshll.u32 %v8198_v45, 16  ;;  %v2467_v12 = vshrl.u32 %v8198_v45, 16  ;;  %v8210_v39 = vrot.slane %v2398_v23, 4  ;;  %v7122_v26 = vld [vmem:[%s7313_s11 + $0x24] sm:$0xff]  }
  0xaa   : > { %v8212_v47 = vrot.slane %v2412_v25, 4  ;;  %v2456_v10 = vrot.slane %v2454_v49, 4  ;;  %v10455_v52 = vcombine.low %v10438_v44, %v10437_v41  ;;  %v2322_v23 = vsel %vm7354_vm2, %v8116_v21, %v8044_v51 }
  0xab   : > { %6713 = vmatmul.mubr.bf16.gmra.mxu0 %v5811_v56  ;;  %v2422_v56 = vor.u32 %v2421_v50, %v8190_v22  ;;  %v2459_v60 = vrot.slane %v2457_v3, 5  ;;  %v8218_v58 = vrot.slane %v2463_v18, 5  ;;  %v2469_v19 = vrot.slane %v2467_v12, 4  ;;  %v8267_v18 = vld [vmem:[%s7313_s11 + $0x8c] sm:$0x1] }
  0xac   : > { %6780 = vmatprep.mubr.bf16.mxu0 %v5924_v15  ;;  %v2436_v15 = vor.u32 %v2435_v36, %v2432_v4  ;;  %v2446_v25 = vor.u32 %v2445_v30, %v8202_v54  ;;  %v2449_v50 = vshll.u32 %v8194_v63, 16  ;;  %v2473_v41 = vshll.u32 %v8205_v27, 16  ;;  %v8241_v4 = vld [vmem:[%s7313_s11 + $0x88] sm:$0xf]  ;;  %v7119_v36 = vld [vmem:[%s7313_s11 + $0x18] sm:$0xff]  }
  0xad   : > { %v2332_v44 = vsel %vm7354_vm2, %v8118_v2, %v8099_v13  ;;  %v2356_v51 = vsel %vm7354_vm2, %v8135_v7, %v8120_v14  ;;  %v2460_v21 = vor.u32 %v2459_v60, %v2456_v10  ;;  %v7125_v13 = vld [vmem:[%s10394_s1 + $0x1b0] sm:$0xff]   ;;  %v8248_v2 = vrot.slane %v2425_v38, 5  ;;  %v8272_v12 = vld [vmem:[%s10394_s1 + $0x1a8] sm:$0xff]  }
  0xae   : > { %6665 = vmatmul.mubr.bf16.gmra.mxu1 %v10455_v52  ;;  %v2481_v30 = vshll.u32 %v5906_v20, 16  ;;  %v7124_v14 = vld [vmem:[%s10394_s1 + $0x170] sm:$0xff]   ;;  %v2370_v7 = vsel %vm7354_vm2, %v8178_v29, %v8111_v0  ;;  %v2380_v49 = vsel %vm7354_vm2, %v8183_v48, %v8168_v31  ;;  %v8262_v38 = vrot.slane %v2422_v56, 4 }
  0xaf   : > { %6732 = vmatprep.mubr.bf16.mxu1 %v7118_v53  ;;  %v2346_v53 = vsel %vm7354_vm2, %v8126_v59, %v8070_v61  ;;  %v2470_v61 = vor.u32 %v2469_v19, %v8218_v58  ;;  %v2478_v59 = vshrl.u32 %v5906_v20, 16  ;;  %v8264_v3 = vrot.slane %v2436_v15, 4  ;;  %v5909_v15 = vld [vmem:[%s7313_s11 + $0x90] sm:$0xf]  ;;  %v8295_v60 = vld [vmem:[%s7313_s11 + $0x94] sm:$0xf] }
  0xb0   : > { %v8274_v0 = vrot.slane %v2446_v25, 4  ;;  %v8276_v29 = vrot.slane %v2449_v50, 5  ;;  %v2487_v31 = vshll.u32 %v8241_v4, 16  ;;  %v2491_v48 = vshrl.u32 %v8241_v4, 16  ;;  %10456 = vst [vmem:[#allocation8_spill] sm:$0xff] %v8295_v60 }
  0xb1   : > { %v2404_v56 = vsel %vm7354_vm2, %v8210_v39, %v8186_v6  ;;  %v8289_v10 = vrot.slane %v2460_v21, 4  ;;  %v8291_v52 = vrot.slane %v2473_v41, 5  ;;  %v2483_v19 = vrot.slane %v2481_v30, 5  ;;  %v7128_v6 = vld [vmem:[%s10394_s1 + $0x168] sm:$0xff]  }
  0xb2   : > { %v2505_v39 = vshll.u32 %v5909_v15, 16  ;;  %v2511_v25 = vshll.u32 %v8295_v60, 16  ;;  %v2515_v50 = vshrl.u32 %v8295_v60, 16  ;;  %v5927_v41 = vcombine.low %v2322_v23, %v2332_v44 }
  0xb3   : > { %6781 = vmatmul.mubr.bf16.vlgmr.msra.gmra.mxu0 %v5925_v5  ;;  %v2394_v5 = vsel %vm7354_vm2, %v8200_v34, %v8145_v8  ;;  %v2497_v8 = vshll.u32 %v8267_v18, 16  ;;  %v2502_v34 = vshrl.u32 %v5909_v15, 16  ;;  %v5928_v21 = vcombine.low %v2346_v53, %v2356_v51 }
  0xb4   : > { %6861 = vmatpush3.bf16.msra.mxu0 %v7997_v16  ;;  %6784 = vmatprep.mubr.bf16.mxu0 %v5926_v55  ;;  %v8297_v16 = vrot.slane %v2470_v61, 4  ;;  %v2480_v55 = vrot.slane %v2478_v59, 4  ;;  %v8306_v20 = vrot.slane %v2487_v31, 5  ;;  %v7123_v61 = vld [vmem:[%s7313_s11 + $0x30] sm:$0xff]   ;;  %v7133_v59 = vld [vmem:[%s10394_s1 + $0x1a0] sm:$0xff]   ;;  %v2507_v15 = vrot.slane %v2505_v39, 5 }
  0xb5   : > { %6862 = vmatprep.subr.bf16.mxu0 %v7125_v13  ;;  %v2504_v30 = vrot.slane %v2502_v34, 4  ;;  %v2517_v23 = vrot.slane %v2515_v50, 4  ;;  %v8314_v44 = vcombine.low %v2370_v7, %v2380_v49  ;;  %v8317_v53 = vcombine.low %v2394_v5, %v2404_v56  ;;  %v5912_v31 = vld [vmem:[%s7313_s11 + $0x9c] sm:$0xf]  ;;  %v8339_v5 = vld [vmem:[%s7313_s11 + $0xa4] sm:$0x1] }
  0xb6   : > { %6733 = vmatmul.mubr.bf16.vlgmr.msra.gmra.mxu1 %v7119_v36  ;;  %v2493_v36 = vrot.slane %v2491_v48, 4  ;;  %v2484_v49 = vor.u32 %v2483_v19, %v2480_v55  ;;  %v8336_v48 = vld [vmem:[%s7313_s11 + $0xa0] sm:$0xf]  ;;  %10459 = vst [vmem:[#allocation11_spill] sm:$0xff] %v8339_v5  ;;  %v2526_v56 = vshrl.u32 %v5912_v31, 16  ;;  %v2529_v34 = vshll.u32 %v5912_v31, 16 }
  0xb7   : > { %6813 = vmatpush3.bf16.msra.mxu1 %v7992_v37  ;;  %6736 = vmatprep.mubr.bf16.mxu1 %v7122_v26  ;;  %v8312_v37 = vrot.slane %v2511_v25, 5  ;;  %v2428_v26 = vsel %vm7354_vm2, %v8262_v38, %v8248_v2  ;;  %10458 = vst [vmem:[#allocation10_spill] sm:$0xff] %v8336_v48  ;;  %v7126_v39 = vld [vmem:[%s7313_s11 + $0x3c] sm:$0xff]   ;;  %v2535_v38 = vshll.u32 %v8336_v48, 16  ;;  %v2539_v25 = vshrl.u32 %v8336_v48, 16 }
  0xb8   : > { %6814 = vmatprep.subr.bf16.mxu1 %v7124_v14  ;;  %6863 = vmatpush3.bf16.msra.mxu0 %v7125_v13  ;;  %v8328_v13 = vld [vmem:[%s7313_s11 + $0x98] sm:$0x1]  ;;  %v2494_v2 = vor.u32 %v2493_v36, %v8306_v20  ;;  %v7132_v55 = vld [vmem:[%s10394_s1 + $0x160] sm:$0xff]   ;;  %v2508_v19 = vor.u32 %v2507_v15, %v2504_v30  ;;  %v2528_v31 = vrot.slane %v2526_v56, 4  ;;  %v2531_v50 = vrot.slane %v2529_v34, 5 }
  0xb9   : > { %6864 = vmatprep.subr.bf16.mxu0 %v8272_v12  ;;  %10457 = vst [vmem:[#allocation9_spill] sm:$0xff] %v8328_v13  ;;  %v2521_v36 = vshll.u32 %v8328_v13, 16  ;;  %v2541_v7 = vrot.slane %v2539_v25, 4  ;;  %v2545_v51 = vshll.u32 %v8339_v5, 16  ;;  %v5915_v48 = vld [vmem:[%s7313_s11 + $0xa8] sm:$0xf] }
  0xba   : > { %v7136_v30 = vld [vmem:[%s10394_s1 + $0x158] sm:$0xff]   ;;  %v8362_v15 = vrot.slane %v2484_v49, 4  ;;  %v2550_v56 = vshrl.u32 %v5915_v48, 16  ;;  %v2553_v34 = vshll.u32 %v5915_v48, 16  ;;  %v8375_v5 = vld [vmem:[%s7313_s11 + $0xb0] sm:$0x1] }
  0xbb   : > { %6785 = vmatmul.mubr.bf16.gmra.mxu0 %v5927_v41  ;;  %6815 = vmatpush3.bf16.msra.mxu1 %v7124_v14  ;;  %v7137_v14 = vld [vmem:[%s10394_s1 + $0x198] sm:$0xff]   ;;  %v2518_v41 = vor.u32 %v2517_v23, %v8312_v37  ;;  %v8364_v23 = vrot.slane %v2497_v8, 5  ;;  %v7127_v49 = vld [vmem:[%s7313_s11 + $0x48] sm:$0xff]   ;;  %v8378_v8 = vrot.slane %v2494_v2, 4  ;;  %v8380_v13 = vrot.slane %v2508_v19, 4 }
  0xbc   : > { %6788 = vmatprep.mubr.bf16.mxu0 %v5928_v21  ;;  %6816 = vmatprep.subr.bf16.mxu1 %v7128_v6  ;;  %v8355_v21 = vrot.slane %v2535_v38, 5  ;;  %v2532_v38 = vor.u32 %v2531_v50, %v2528_v31  ;;  %v8382_v60 = vrot.slane %v2521_v36, 5  ;;  %v7140_v50 = vld [vmem:[%s10394_s1 + $0x150] sm:$0xff]   ;;  %v8399_v19 = vrot.slane %v2553_v34, 5 }
  0xbd   : > { %6865 = vmatpush3.bf16.msra.mxu0 %v8272_v12  ;;  %v8367_v12 = vld [vmem:[%s7313_s11 + $0xac] sm:$0xf]  ;;  %v2569_v36 = vshll.u32 %v8375_v5, 16 }
  0xbe   : > { %6737 = vmatmul.mubr.bf16.gmra.mxu1 %v7123_v61  ;;  %6866 = vmatprep.subr.bf16.mxu0 %v7133_v59  ;;  %10460 = vst [vmem:[#allocation12_spill] sm:$0xff] %v8367_v12  ;;  %v2452_v61 = vsel %vm7354_vm2, %v8274_v0, %v8276_v29  ;;  %v2542_v25 = vor.u32 %v2541_v7, %v8355_v21  ;;  %v2559_v48 = vshll.u32 %v8367_v12, 16  ;;  %v7130_v0 = vld [vmem:[%s7313_s11 + $0x54] sm:$0xff]   ;;  %v8389_v29 = vrot.slane %v2518_v41, 4 }
  0xbf   : > { %6740 = vmatprep.mubr.bf16.mxu1 %v7126_v39  ;;  %6817 = vmatpush3.bf16.msra.mxu1 %v7128_v6  ;;  %v7141_v6 = vld [vmem:[%s10394_s1 + $0x190] sm:$0xff]   ;;  %v8391_v7 = vrot.slane %v2545_v51, 5  ;;  %v8393_v39 = vrot.slane %v2550_v56, 4  ;;  %v2563_v2 = vshrl.u32 %v8367_v12, 16  ;;  %v8408_v41 = vrot.slane %v2532_v38, 4 }
  0xc0   : > { %6818 = vmatprep.subr.bf16.mxu1 %v7132_v55  ;;  %v8410_v31 = vrot.slane %v2542_v25, 4  ;;  %v5918_v56 = vld [vmem:[%s7313_s11 + $0xb4] sm:$0xf]  ;;  %v8414_v12 = vld [vmem:[%s7313_s11 + $0xb8] sm:$0xf]  ;;  %v7144_v25 = vld [vmem:[%s10394_s1 + $0x148] sm:$0xff]  }
  0xc1   : > { %6867 = vmatpush3.bf16.msra.mxu0 %v7133_v59  ;;  %v10461_v59 = vsel %vm7354_vm2, %v8212_v47, %v8190_v22  ;;  %10462 = vst [vmem:[#allocation13_spill] sm:$0xff] %v8414_v12  ;;  %v2466_v22 = vsel %vm7354_vm2, %v8289_v10, %v8218_v58  ;;  %v8426_v47 = vrot.slane %v2559_v48, 5  ;;  %v5921_v38 = vld [vmem:[%s7313_s11 + $0xc0] sm:$0xf]  ;;  %v2476_v58 = vsel %vm7354_vm2, %v8297_v16, %v8291_v52  ;;  %v8453_v48 = vld [vmem:[%s7313_s11 + $0xc4] sm:$0xf] }
  0xc2   : > { %6868 = vmatprep.subr.bf16.mxu0 %v7137_v14  ;;  %v5931_v51 = vcombine.low %v10461_v59, %v2428_v26  ;;  %v2574_v26 = vshrl.u32 %v5918_v56, 16  ;;  %v2490_v10 = vsel %vm7354_vm2, %v8362_v15, %v8306_v20  ;;  %10465 = vst [vmem:[#allocation15_spill] sm:$0xff] %v8453_v48  ;;  %v8456_v52 = vld [vmem:[%s7313_s11 + $0xc8] sm:$0x1]  ;;  %v2607_v59 = vshll.u32 %v8453_v48, 16 }
  0xc3   : > { %6789 = vmatmul.mubr.bf16.gmra.mxu0 %v8314_v44  ;;  %6819 = vmatpush3.bf16.msra.mxu1 %v7132_v55  ;;  %v10463_v44 = vsel %vm7354_vm2, %v8264_v3, %v8202_v54  ;;  %v2565_v55 = vrot.slane %v2563_v2, 4  ;;  %v2577_v54 = vshll.u32 %v5918_v56, 16  ;;  %v2583_v3 = vshll.u32 %v8414_v12, 16 }
  0xc4   : > { %6792 = vmatprep.mubr.bf16.mxu0 %v8317_v53  ;;  %v5932_v34 = vcombine.low %v10463_v44, %v2452_v61  ;;  %6820 = vmatprep.subr.bf16.mxu1 %v7136_v30  ;;  %v7145_v53 = vld [vmem:[%s10394_s1 + $0x188] sm:$0xff]   ;;  %v2587_v61 = vshrl.u32 %v8414_v12, 16  ;;  %v2576_v16 = vrot.slane %v2574_v26, 4  ;;  %v10466_v56 = vrot.slane %v7861_v33, 5 }
  0xc5   : > { %6869 = vmatpush3.bf16.msra.mxu0 %v7137_v14  ;;  %v2500_v14 = vsel %vm7354_vm2, %v8378_v8, %v8364_v23  ;;  %v2579_v20 = vrot.slane %v2577_v54, 5  ;;  %v8458_v15 = vrot.slane %v2583_v3, 5  ;;  %v2598_v23 = vshrl.u32 %v5921_v38, 16  ;;  %v7131_v3 = vld [vmem:[%s7313_s11 + $0x60] sm:$0xff]  }
  0xc6   : > { %6741 = vmatmul.mubr.bf16.gmra.mxu1 %v7127_v49  ;;  %6870 = vmatprep.subr.bf16.mxu0 %v7141_v6  ;;  %v8450_v49 = vld [vmem:[%s7313_s11 + $0xbc] sm:$0x1]  ;;  %v2589_v2 = vrot.slane %v2587_v61, 4  ;;  %v2601_v8 = vshll.u32 %v5921_v38, 16  ;;  %v8463_v44 = vrot.slane %v10466_v56, 4  ;;  %v8468_v26 = vrot.slane %v2569_v36, 5 }
  0xc7   : > { %10464 = vst [vmem:[#allocation14_spill] sm:$0xff] %v8450_v49  ;;  %6744 = vmatprep.mubr.bf16.mxu1 %v7130_v0  ;;  %6821 = vmatpush3.bf16.msra.mxu1 %v7136_v30  ;;  %v2556_v0 = vor.u32 %v8399_v19, %v8393_v39  ;;  %v2566_v30 = vor.u32 %v2565_v55, %v8426_v47  ;;  %v2611_v54 = vshrl.u32 %v8453_v48, 16  ;;  %v2593_v61 = vshll.u32 %v8450_v49, 16  ;;  %v7134_v39 = vld [vmem:[%s7313_s11 + $0x6c] sm:$0xff]   ;;  %v8488_v49 = vld [vmem:[%s7313_s11 + $0x18] sm:$0xe] }
  0xc8   : > { %6822 = vmatprep.subr.bf16.mxu1 %v7140_v50  ;;  %v2600_v38 = vrot.slane %v2598_v23, 4  ;;  %v2603_v12 = vrot.slane %v2601_v8, 5  ;;  %v8473_v56 = vrot.slane %v2607_v59, 5  ;;  %v2580_v19 = vor.u32 %v2579_v20, %v2576_v16  ;;  %v7148_v23 = vld [vmem:[%s10394_s1 + $0x140] sm:$0xff]   ;;  %v8485_v59 = vld [vmem:[%s7313_s11 + $0xc] sm:$0xe] }
  0xc9   : > { %6871 = vmatpush3.bf16.msra.mxu0 %v7141_v6  ;;  %v7149_v6 = vld [vmem:[%s10394_s1 + $0x180] sm:$0xff]   ;;  %v2590_v36 = vor.u32 %v2589_v2, %v8458_v15  ;;  %v2613_v55 = vrot.slane %v2611_v54, 4  ;;  %v2617_v48 = vshll.u32 %v8456_v52, 16  ;;  %v5933_v16 = vcombine.low %v2466_v22, %v2476_v58 }
  0xca   : > { %6872 = vmatprep.subr.bf16.mxu0 %v7145_v53  ;;  %v2604_v8 = vor.u32 %v2603_v12, %v2600_v38  ;;  %v5934_v20 = vcombine.low %v2490_v10, %v2500_v14  ;;  %v8496_v2 = vrot.slane %v2556_v0, 4  ;;  %v8498_v12 = vrot.slane %v2566_v30, 4  ;;  %v7135_v10 = vld [vmem:[%s7313_s11 + $0x78] sm:$0xff]   ;;  %v7138_v38 = vld [vmem:[%s7313_s11 + $0x84] sm:$0xff]  }
  0xcb   : > { %6793 = vmatmul.mubr.bf16.gmra.mxu0 %v5931_v51  ;;  %6823 = vmatpush3.bf16.msra.mxu1 %v7140_v50  ;;  %v8493_v50 = vld [vmem:[%s10394_s1 + $0x238] sm:$0xff]   ;;  %v2614_v51 = vor.u32 %v2613_v55, %v8473_v56  ;;  %v8507_v54 = vrot.slane %v2590_v36, 4  ;;  %v8509_v22 = vrot.slane %v2593_v61, 5  ;;  %v8515_v0 = vrot.slane %v2617_v48, 5  ;;  %v5951_v61 = vld [vmem:[%s7313_s11 + $0x30] sm:$0xe] }
  0xcc   : > { %6796 = vmatprep.mubr.bf16.mxu0 %v5932_v34  ;;  %6824 = vmatprep.subr.bf16.mxu1 %v7144_v25  ;;  %v8503_v34 = vld [vmem:[%s10394_s1 + $0x1f8] sm:$0xff]   ;;  %v8513_v14 = vrot.slane %v2604_v8, 4  ;;  %v3011_v30 = vrot.slane %v7935_v43, 5  ;;  %v10467_v36 = vld [vmem:[#allocation4_spill] sm:$0xff]  ;;  %v5967_v48 = vrot.slane %v5951_v61, 9  ;;  %v10468_v8 = vld [vmem:[#allocation7_spill] sm:$0xff] }
  0xcd   : > { %6873 = vmatpush3.bf16.msra.mxu0 %v7145_v53  ;;  %v8505_v53 = vrot.slane %v2580_v19, 4  ;;  %v3029_v58 = vrot.slane %v10468_v8, 5  ;;  %v3032_v19 = vrot.slane %v8018_v1, 5  ;;  %v10470_v61 = vld [vmem:[#allocation5_spill] sm:$0xff]  ;;  %v2548_v1 = vsel %vm7354_vm2, %v8410_v31, %v8391_v7 }
  0xce   : > { %6745 = vmatmul.mubr.bf16.gmra.mxu1 %v7131_v3  ;;  %6874 = vmatprep.subr.bf16.mxu0 %v7149_v6  ;;  %v10469_v3 = vld [vmem:[#allocation6_spill] sm:$0xff]  ;;  %v3046_v31 = vrot.slane %v8109_v42, 5 }
  0xcf   : > { %6748 = vmatprep.mubr.bf16.mxu1 %v7134_v39  ;;  %6825 = vmatpush3.bf16.msra.mxu1 %v7144_v25  ;;  %v8520_v25 = vrot.slane %v2614_v51, 4  ;;  %v3015_v39 = vrot.slane %v7952_v62, 5  ;;  %v2514_v51 = vsel %vm7354_vm2, %v8380_v13, %v8312_v37  ;;  %v3036_v55 = vrot.slane %v10469_v3, 5  ;;  %v5952_v13 = vld [vmem:[%s7313_s11 + $0x3c] sm:$0xe] }
  0xd0   : > { %6826 = vmatprep.subr.bf16.mxu1 %v7148_v23  ;;  %v8542_v8 = vsel %vm7665_vm5, %v5967_v48, %v3029_v58  ;;  %v3031_v37 = vrot.slane %v3029_v58, 4  ;;  %v5968_v3 = vrot.slane %v5952_v13, 9  ;;  %v7139_v48 = vld [vmem:[%s7313_s11 + $0x90] sm:$0xff]   ;;  %v3053_v13 = vrot.slane %v8129_v35, 5 }
  0xd1   : > { %6875 = vmatpush3.bf16.msra.mxu0 %v7149_v6  ;;  %v2524_v6 = vsel %vm7354_vm2, %v8389_v29, %v8382_v60  ;;  %v2538_v60 = vsel %vm7354_vm2, %v8408_v41, %v8355_v21  ;;  %v3038_v29 = vrot.slane %v3036_v55, 4  ;;  %v3043_v21 = vrot.slane %v8068_v40, 5 }
  0xd2   : > { %6956 = vmatprep.subr.bf16.mxu0 %v8493_v50  ;;  %v8556_v58 = vsel %vm7665_vm5, %v3031_v37, %v3032_v19  ;;  %v5936_v19 = vcombine.low %v2538_v60, %v2548_v1  ;;  %v8571_v40 = vsel %vm7665_vm5, %v5968_v3, %v3036_v55  ;;  %v2562_v37 = vsel %vm7354_vm2, %v8496_v2, %v8426_v47  ;;  %v5954_v55 = vld [vmem:[%s7313_s11 + $0x54] sm:$0xe] }
  0xd3   : > { %6797 = vmatmul.mubr.bf16.gmra.mxu0 %v5933_v16  ;;  %6827 = vmatpush3.bf16.msra.mxu1 %v7148_v23  ;;  %v3025_v16 = vrot.slane %v10470_v61, 5  ;;  %v3039_v23 = vrot.slane %v8047_v46, 5  ;;  %v5983_v41 = vcombine.low %v8542_v8, %v8556_v58  ;;  %v5953_v46 = vld [vmem:[%s7313_s11 + $0x48] sm:$0xe]  ;;  %v2572_v47 = vsel %vm7354_vm2, %v8498_v12, %v8468_v26  ;;  %v7159_v8 = vld [vmem:[%s7313_s11 + $0x54] sm:$0xff]  }
  0xd4   : > { %6800 = vmatprep.mubr.bf16.mxu0 %v5934_v20  ;;  %6908 = vmatprep.subr.bf16.mxu1 %v8503_v34  ;;  %v5935_v20 = vcombine.low %v2514_v51, %v2524_v6  ;;  %v3045_v51 = vrot.slane %v3043_v21, 4  ;;  %v7142_v6 = vld [vmem:[%s7313_s11 + $0x9c] sm:$0xff]   ;;  %v3057_v3 = vrot.slane %v8133_v32, 5  ;;  %v2586_v35 = vsel %vm7354_vm2, %v8505_v53, %v8458_v15 }
  0xd5   : > { %v8563_v7 = vsel %vm7665_vm5, %v3038_v29, %v3039_v23  ;;  %v5970_v29 = vrot.slane %v5954_v55, 9  ;;  %v5955_v23 = vld [vmem:[%s7313_s11 + $0x60] sm:$0xe]  ;;  %v3060_v26 = vrot.slane %v8181_v17, 5  ;;  %v2596_v12 = vsel %vm7354_vm2, %v8507_v54, %v8509_v22 }
  0xd6   : > { %6749 = vmatmul.mubr.bf16.gmra.mxu1 %v7135_v10  ;;  %v3050_v10 = vrot.slane %v8103_v11, 5  ;;  %v5984_v42 = vcombine.low %v8571_v40, %v8563_v7  ;;  %v8586_v60 = vsel %vm7665_vm5, %v3045_v51, %v3046_v31  ;;  %v3064_v15 = vrot.slane %v8173_v9, 5  ;;  %v6133_v7 = vld [vmem:[%s7313_s11 + $0x24] sm:$0xe] }
  0xd7   : > { %6752 = vmatprep.mubr.bf16.mxu1 %v7138_v38  ;;  %v5969_v38 = vrot.slane %v5953_v46, 9  ;;  %v3059_v46 = vrot.slane %v3057_v3, 4  ;;  %v5937_v53 = vcombine.low %v2562_v37, %v2572_v47  ;;  %v3067_v9 = vrot.slane %v8194_v63, 5  ;;  %v5957_v37 = vld [vmem:[%s7313_s11 + $0x78] sm:$0xe] }
  0xd8   : > { %v3052_v1 = vrot.slane %v3050_v10, 4  ;;  %v8613_v32 = vsel %vm7665_vm5, %v5970_v29, %v3050_v10  ;;  %v3066_v10 = vrot.slane %v3064_v15, 4  ;;  %v3071_v55 = vrot.slane %v8198_v45, 5 }
  0xd9   : > { %v8582_v11 = vsel %vm7665_vm5, %v5969_v38, %v3043_v21  ;;  %v5971_v21 = vrot.slane %v5955_v23, 9  ;;  %v8625_v54 = vsel %vm7665_vm5, %v3059_v46, %v3060_v26  ;;  %v5938_v38 = vcombine.low %v2586_v35, %v2596_v12 }
  0xda   : > { %v8641_v47 = vsel %vm7665_vm5, %v3066_v10, %v3067_v9  ;;  %v5973_v63 = vrot.slane %v5957_v37, 9  ;;  %v3078_v29 = vrot.slane %v8241_v4, 5  ;;  %v3073_v45 = vrot.slane %v3071_v55, 4  ;;  %v7150_v9 = vld [vmem:[%s7313_s11 + $0x18] sm:$0xff]  }
  0xdb   : > { %6801 = vmatmul.mubr.bf16.gmra.mxu0 %v5935_v20  ;;  %v8604_v20 = vsel %vm7665_vm5, %v3052_v1, %v3053_v13  ;;  %v8620_v17 = vsel %vm7665_vm5, %v5971_v21, %v3057_v3  ;;  %v3074_v1 = vrot.slane %v8205_v27, 5  ;;  %v3081_v27 = vrot.slane %v8267_v18, 5  ;;  %v5958_v21 = vld [vmem:[%s7313_s11 + $0x84] sm:$0xe]  ;;  %v10475_v37 = vld [vmem:[#allocation10_spill] sm:$0xff] }
  0xdc   : > { %6804 = vmatprep.mubr.bf16.mxu0 %v5936_v19  ;;  %v5956_v19 = vld [vmem:[%s7313_s11 + $0x6c] sm:$0xe]  ;;  %v2610_v3 = vsel %vm7354_vm2, %v8513_v14, %v8473_v56  ;;  %v8653_v35 = vsel %vm7665_vm5, %v5973_v63, %v3071_v55  ;;  %v2620_v4 = vsel %vm7354_vm2, %v8520_v25, %v8515_v0  ;;  %v5974_v26 = vrot.slane %v5958_v21, 9  ;;  %v7162_v63 = vld [vmem:[%s7313_s11 + $0x60] sm:$0xff]  }
  0xdd   : > { %v5972_v22 = vrot.slane %v5956_v19, 9  ;;  %v8662_v18 = vsel %vm7665_vm5, %v3073_v45, %v3074_v1  ;;  %v3080_v12 = vrot.slane %v3078_v29, 4  ;;  %v10471_v46 = vrot.slane %v7861_v33, 5  ;;  %v5959_v19 = vld [vmem:[%s7313_s11 + $0x90] sm:$0xe]  ;;  %v10473_v0 = vld [vmem:[#allocation8_spill] sm:$0xff] }
  0xde   : > { %6753 = vmatmul.mubr.bf16.gmra.mxu1 %v7139_v48  ;;  %v7143_v48 = vld [vmem:[%s7313_s11 + $0xa8] sm:$0xff]   ;;  %v10472_v56 = vrot.slane %v8485_v59, 9  ;;  %v3085_v25 = vrot.slane %v10473_v0, 5  ;;  %v8679_v33 = vsel %vm7665_vm5, %v5974_v26, %v3078_v29  ;;  %v3092_v55 = vrot.slane %v10475_v37, 5 }
  0xdf   : > { %6756 = vmatprep.mubr.bf16.mxu1 %v7142_v6  ;;  %v7146_v6 = vld [vmem:[%s7313_s11 + $0xb4] sm:$0xff]   ;;  %v8637_v13 = vsel %vm7665_vm5, %v5972_v22, %v3064_v15  ;;  %v5950_v15 = vld [vmem:[%s7313_s11 + $0x24] sm:$0xe]  ;;  %v8683_v59 = vsel %vm7665_vm5, %v3080_v12, %v3081_v27  ;;  %v5939_v1 = vcombine.low %v2610_v3, %v2620_v4  ;;  %v3012_v29 = vsel %vm7665_vm5, %v8463_v44, %v3011_v30  ;;  %v5960_v3 = vld [vmem:[%s7313_s11 + $0x9c] sm:$0xe] }
  0xe0   : > { %v3009_v14 = vsel %vm7665_vm5, %v10472_v56, %v10471_v46  ;;  %v10474_v22 = vld [vmem:[#allocation9_spill] sm:$0xff]  ;;  %v3087_v45 = vrot.slane %v3085_v25, 4  ;;  %v7147_v46 = vld [vmem:[%s7313_s11 + $0xc0] sm:$0xff]   ;;  %v3017_v27 = vrot.slane %v3015_v39, 4  ;;  %v3094_v4 = vrot.slane %v3092_v55, 4  ;;  %v10477_v56 = vld [vmem:[#allocation12_spill] sm:$0xff] }
  0xe1   : > { %v3088_v10 = vrot.slane %v10474_v22, 5  ;;  %v5976_v12 = vrot.slane %v5960_v3, 9  ;;  %v3099_v43 = vrot.slane %v10477_v56, 5  ;;  %v5961_v0 = vld [vmem:[%s7313_s11 + $0xa8] sm:$0xe]  ;;  %v5980_v22 = vcombine.low %v3009_v14, %v3012_v29 }
  0xe2   : > { %v10481_v29 = vrot.slane %v8488_v49, 9  ;;  %v8827_v44 = vld [vmem:[%s7313_s11 + $0x34] sm:$0xf] }
  0xe3   : > { %6805 = vmatmul.mubr.bf16.gmra.mxu0 %v5937_v53  ;;  %v8704_v26 = vsel %vm7665_vm5, %v3087_v45, %v3088_v10  ;;  %v8717_v10 = vsel %vm7665_vm5, %v5976_v12, %v3092_v55  ;;  %v3101_v37 = vrot.slane %v3099_v43, 4  ;;  %v5962_v55 = vld [vmem:[%s7313_s11 + $0xb4] sm:$0xe]  ;;  %v3931_v40 = vshll.u32 %v8827_v44, 16 }
  0xe4   : > { %6808 = vmatprep.mubr.bf16.mxu0 %v5938_v38  ;;  %v5975_v38 = vrot.slane %v5959_v19, 9  ;;  %v5966_v19 = vrot.slane %v5950_v15, 9  ;;  %v10478_v15 = vrot.slane %v10467_v36, 5  ;;  %v5978_v56 = vrot.slane %v5962_v55, 9 }
  0xe6   : > { %6757 = vmatmul.mubr.bf16.gmra.mxu1 %v7143_v48  ;;  %v10476_v48 = vld [vmem:[#allocation11_spill] sm:$0xff]  ;;  %v3024_v45 = vrot.slane %v10478_v15, 4  ;;  %v10483_v62 = vmov %v10478_v15  ;;  %v3116_v15 = vrot.slane %v8456_v52, 5  ;;  %v6066_v52 = vld [vmem:[%s7313_s11 + $0x30] sm:$0xf] }
  0xe7   : > { %6760 = vmatprep.mubr.bf16.mxu1 %v7146_v6  ;;  %v3095_v21 = vrot.slane %v10476_v48, 5  ;;  %v8699_v6 = vsel %vm7665_vm5, %v5975_v38, %v3085_v25  ;;  %v3102_v25 = vrot.slane %v8375_v5, 5  ;;  %v5977_v38 = vrot.slane %v5961_v0, 9 }
  0xe8   : > { %v10482_v0 = vrot.slane %v7966_v24, 5  ;;  %v3023_v49 = vsel %vm7665_vm5, %v5966_v19, %v10483_v62  ;;  %v3026_v24 = vsel %vm7665_vm5, %v3024_v45, %v3025_v16  ;;  %v8797_v62 = vld [vmem:[%s7313_s11 + $0x28] sm:$0xf] }
  0xe9   : > { %v8711_v30 = vsel %vm7665_vm5, %v3094_v4, %v3095_v21  ;;  %v10479_v21 = vld [vmem:[#allocation13_spill] sm:$0xff]  ;;  %v8726_v5 = vsel %vm7665_vm5, %v5977_v38, %v3099_v43  ;;  %v8730_v14 = vsel %vm7665_vm5, %v3101_v37, %v3102_v25  ;;  %v3016_v4 = vsel %vm7665_vm5, %v10481_v29, %v3015_v39  ;;  %v5963_v38 = vld [vmem:[%s7313_s11 + $0xc0] sm:$0xe] }
  0xea   : > { %v3106_v3 = vrot.slane %v10479_v21, 5  ;;  %v3019_v25 = vsel %vm7665_vm5, %v3017_v27, %v10482_v0  ;;  %v10484_v39 = vld [vmem:[#allocation15_spill] sm:$0xff]  ;;  %v5979_v19 = vrot.slane %v5963_v38, 9  ;;  %v7157_v21 = vld [vmem:[%s10394_s1 + $0x230] sm:$0xff]   ;;  %v5982_v55 = vcombine.low %v3023_v49, %v3026_v24 }
  0xeb   : > { %6809 = vmatmul.mubr.bf16.gmra.mxu0 %v5939_v1  ;;  %v3113_v37 = vrot.slane %v10484_v39, 5  ;;  %v5981_v16 = vcombine.low %v3016_v4, %v3019_v25  ;;  %v7156_v29 = vld [vmem:[%s10394_s1 + $0x1f0] sm:$0xff]   ;;  %v6063_v0 = vld [vmem:[%s7313_s11 + $0x24] sm:$0xf]  ;;  %v7155_v49 = vld [vmem:[%s7313_s11 + $0x3c] sm:$0xff]   ;;  %v3907_v24 = vshll.u32 %v8797_v62, 16 }
  0xec   : > { %6876 = vmatprep.mubr.bf16.mxu0 %v7150_v9  ;;  %v10480_v9 = vld [vmem:[#allocation14_spill] sm:$0xff]  ;;  %v3108_v43 = vrot.slane %v3106_v3, 4  ;;  %v8761_v27 = vsel %vm7665_vm5, %v5978_v56, %v3106_v3  ;;  %v7161_v56 = vld [vmem:[%s10394_s1 + $0x228] sm:$0xff]   ;;  %v3898_v38 = vshrl.u32 %v6063_v0, 16 }
  0xed   : > { %v3109_v1 = vrot.slane %v10480_v9, 5  ;;  %v3115_v61 = vrot.slane %v3113_v37, 4  ;;  %v8774_v45 = vsel %vm7665_vm5, %v5979_v19, %v3113_v37  ;;  %v6060_v3 = vld [vmem:[%s7313_s11 + $0x18] sm:$0xf]  ;;  %v7158_v39 = vld [vmem:[%s7313_s11 + $0x48] sm:$0xff]  }
  0xee   : > { %6761 = vmatmul.mubr.bf16.gmra.mxu1 %v7147_v46  ;;  %v7151_v46 = vld [vmem:[%s7313_s11 + $0x24] sm:$0xff]   ;;  %v3877_v25 = vshll.u32 %v6060_v3, 16  ;;  %v6062_v19 = vld [vmem:[%s7313_s11 + $0x20] sm:$0x1]  ;;  %v3900_v12 = vrot.slane %v3898_v38, 4  ;;  %v3922_v38 = vshrl.u32 %v6066_v52, 16 }
  0xef   : > { %6828 = vmatprep.mubr.bf16.mxu1 %v5980_v22  ;;  %v7154_v22 = vld [vmem:[%s7313_s11 + $0x30] sm:$0xff]   ;;  %v8765_v36 = vsel %vm7665_vm5, %v3108_v43, %v3109_v1  ;;  %v8779_v9 = vsel %vm7665_vm5, %v3115_v61, %v3116_v15  ;;  %v8782_v1 = vld [vmem:[%s7313_s11 + $0x1c] sm:$0xf]  ;;  %v3874_v43 = vshrl.u32 %v6060_v3, 16  ;;  %v7160_v37 = vld [vmem:[%s10394_s1 + $0x1e8] sm:$0xff]   ;;  %v3901_v15 = vshll.u32 %v6063_v0, 16 }
  0xf0   : > { %v4644_v4 = vrot.slane %v8782_v1, 5  ;;  %v8817_v0 = vld [vmem:[%s7313_s11 + $0x2c] sm:$0x1] }
  0xf1   : > { %v3876_v61 = vrot.slane %v3874_v43, 4  ;;  %v3903_v48 = vrot.slane %v3901_v15, 5  ;;  %v7164_v43 = vld [vmem:[%s10394_s1 + $0x1e0] sm:$0xff]  }
  0xf3   : > { %6877 = vmatmul.mubr.bf16.vlgmr.msra.gmra.mxu0 %v7151_v46  ;;  %v3887_v46 = vshrl.u32 %v8782_v1, 16 }
  0xf4   : > { %6957 = vmatpush3.bf16.msra.mxu0 %v8493_v50  ;;  %6880 = vmatprep.mubr.bf16.mxu0 %v7154_v22  ;;  %v3883_v50 = vshll.u32 %v8782_v1, 16  ;;  %v3911_v22 = vshrl.u32 %v8797_v62, 16 }
  0xf5   : > { %6958 = vmatprep.subr.bf16.mxu0 %v7157_v21 }
  0xf6   : > { %6829 = vmatmul.mubr.bf16.vlgmr.msra.gmra.mxu1 %v5981_v16  ;;  %v6132_v16 = vld [vmem:[%s7313_s11 + $0x18] sm:$0xe]  ;;  %v8812_v3 = vrot.slane %v3883_v50, 5  ;;  %v3893_v50 = vshll.u32 %v6062_v19, 16  ;;  %v3913_v1 = vrot.slane %v3911_v22, 4 }
  0xf7   : > { %6909 = vmatpush3.bf16.msra.mxu1 %v8503_v34  ;;  %6832 = vmatprep.mubr.bf16.mxu1 %v5982_v55  ;;  %v7165_v34 = vld [vmem:[%s10394_s1 + $0x220] sm:$0xff]   ;;  %v3889_v55 = vrot.slane %v3887_v46, 4  ;;  %v8824_v46 = vrot.slane %v3907_v24, 5  ;;  %v7169_v24 = vld [vmem:[%s10394_s1 + $0x218] sm:$0xff]  }
  0xf8   : > { %6910 = vmatprep.subr.bf16.mxu1 %v7156_v29  ;;  %6959 = vmatpush3.bf16.msra.mxu0 %v7157_v21  ;;  %v3879_v21 = vrot.slane %v3877_v25, 5 }
  0xf9   : > { %6960 = vmatprep.subr.bf16.mxu0 %v7161_v56  ;;  %v3890_v22 = vor.u32 %v3889_v55, %v8812_v3  ;;  %v3914_v55 = vor.u32 %v3913_v1, %v8824_v46 }
  0xfb   : > { %6881 = vmatmul.mubr.bf16.gmra.mxu0 %v7155_v49  ;;  %6911 = vmatpush3.bf16.msra.mxu1 %v7156_v29  ;;  %v6148_v49 = vrot.slane %v6132_v16, 9  ;;  %v4647_v29 = vrot.slane %v6062_v19, 5  ;;  %v4646_v19 = vrot.slane %v4644_v4, 4  ;;  %v3917_v16 = vshll.u32 %v8817_v0, 16 }
  0xfc   : > { %6884 = vmatprep.mubr.bf16.mxu0 %v7158_v39  ;;  %6912 = vmatprep.subr.bf16.mxu1 %v7160_v37  ;;  %v3925_v39 = vshll.u32 %v6066_v52, 16  ;;  %v4651_v52 = vrot.slane %v8797_v62, 5  ;;  %v3935_v62 = vshrl.u32 %v8827_v44, 16 }
  0xfd   : > { %6961 = vmatpush3.bf16.msra.mxu0 %v7161_v56  ;;  %v3880_v56 = vor.u32 %v3879_v21, %v3876_v61  ;;  %v7168_v61 = vld [vmem:[%s10394_s1 + $0x1d8] sm:$0xff]   ;;  %v8850_v21 = vrot.slane %v3893_v50, 5  ;;  %v7173_v50 = vld [vmem:[%s10394_s1 + $0x210] sm:$0xff]  }
  0xfe   : > { %6833 = vmatmul.mubr.bf16.gmra.mxu1 %v5983_v41  ;;  %6962 = vmatprep.subr.bf16.mxu0 %v7165_v34  ;;  %v3904_v41 = vor.u32 %v3903_v48, %v3900_v12  ;;  %v3924_v48 = vrot.slane %v3922_v38, 4  ;;  %v3927_v12 = vrot.slane %v3925_v39, 5  ;;  %v8877_v38 = vld [vmem:[%s7313_s11 + $0x40] sm:$0xf]  ;;  %v4653_v51 = vrot.slane %v4651_v52, 4 }
  0xff   : > { %6836 = vmatprep.mubr.bf16.mxu1 %v5984_v42  ;;  %6913 = vmatpush3.bf16.msra.mxu1 %v7160_v37  ;;  %v8857_v42 = vsel %vm7665_vm5, %v6148_v49, %v4644_v4  ;;  %v6069_v37 = vld [vmem:[%s7313_s11 + $0x3c] sm:$0xf]  ;;  %v8866_v1 = vrot.slane %v3880_v56, 4  ;;  %v8872_v4 = vsel %vm7665_vm5, %v4646_v19, %v4647_v29  ;;  %v8874_v49 = vrot.slane %v3917_v16, 5  ;;  %v7172_v56 = vld [vmem:[%s10394_s1 + $0x1d0] sm:$0xff]  }
 0x100   : > { %v8822_v25 = vpop.f32.mrf.mxu0  ;;  %v8832_v15 = vpop.f32.mrf.mxu1  ;;  %6914 = vmatprep.subr.bf16.mxu1 %v7164_v43  ;;  %v8884_v23 = vrot.slane %v3904_v41, 4  ;;  %v4654_v29 = vrot.slane %v8817_v0, 5  ;;  %v3915_v19 = vrot.slane %v3914_v55, 4  ;;  %v8888_v16 = vld [vmem:[%s7313_s11 + $0x38] sm:$0x1]  ;;  %v3949_v31 = vshll.u32 %v6069_v37, 16 }
 0x101   : > { %10485 = vst [vmem:[#allocation4_spill] sm:$0xff] %v8832_v15  ;;  %6963 = vmatpush3.bf16.msra.mxu0 %v7165_v34  ;;  %v8868_v34 = vrot.slane %v3890_v22, 4  ;;  %v6149_v22 = vrot.slane %v6133_v7, 9  ;;  %v3928_v2 = vor.u32 %v3927_v12, %v3924_v48  ;;  %v6134_v41 = vld [vmem:[%s7313_s11 + $0x30] sm:$0xe]  ;;  %v3955_v7 = vshll.u32 %v8877_v38, 16 }
 0x102   : > { %v8843_v58 = vpop.f32.mrf.mxu0  ;;  %v8861_v53 = vpop.f32.mrf.mxu1  ;;  %6964 = vmatprep.subr.bf16.mxu0 %v7169_v24  ;;  %v3959_v0 = vshrl.u32 %v8877_v38, 16  ;;  %v10489_v12 = vcombine.low %v8613_v32, %v8604_v20  ;;  %v8933_v20 = vsel %vm7665_vm5, %v4653_v51, %v4654_v29  ;;  %v3941_v32 = vshll.u32 %v8888_v16, 16  ;;  %v8951_v29 = vld [vmem:[%s7313_s11 + $0x44] sm:$0x1]  ;;  %v6135_v15 = vld [vmem:[%s7313_s11 + $0x3c] sm:$0xe] }
 0x103   : > { %10486 = vst [vmem:[#allocation7_spill] sm:$0xff] %v8861_v53  ;;  %6885 = vmatmul.mubr.bf16.gmra.mxu0 %v7159_v8  ;;  %6915 = vmatpush3.bf16.msra.mxu1 %v7164_v43  ;;  %v8890_v8 = vrot.slane %v3931_v40, 5  ;;  %v3946_v43 = vshrl.u32 %v6069_v37, 16  ;;  %v8892_v53 = vrot.slane %v3935_v62, 4  ;;  %v3886_v40 = vsel %vm7354_vm2, %v8866_v1, %v8812_v3  ;;  %v7163_v62 = vld [vmem:[%s7313_s11 + $0x6c] sm:$0xff]   ;;  %v7166_v37 = vld [vmem:[%s7313_s11 + $0x78] sm:$0xff]  }
 0x104   : > { %v8879_v39 = vpop.f32.mrf.mxu0  ;;  %6888 = vmatprep.mubr.bf16.mxu0 %v7162_v63  ;;  %6916 = vmatprep.subr.bf16.mxu1 %v7168_v61  ;;  %v10487_v63 = vcombine.low %v8582_v11, %v8586_v60  ;;  %v8900_v55 = vpop.f32.mrf.mxu1  ;;  %v3896_v48 = vsel %vm7354_vm2, %v8868_v34, %v8850_v21  ;;  %v4658_v60 = vrot.slane %v8827_v44, 5  ;;  %v3910_v3 = vsel %vm7354_vm2, %v8884_v23, %v8824_v46  ;;  %v6072_v44 = vld [vmem:[%s7313_s11 + $0x48] sm:$0xf]  ;;  %v8944_v34 = vld [vmem:[%s7313_s11 + $0x4c] sm:$0xf] }
 0x105   : > { %6965 = vmatpush3.bf16.msra.mxu0 %v7169_v24  ;;  %10488 = vst [vmem:[#allocation6_spill] sm:$0xff] %v8900_v55  ;;  %v7177_v24 = vld [vmem:[%s10394_s1 + $0x208] sm:$0xff]   ;;  %v8929_v21 = vsel %vm7665_vm5, %v6149_v22, %v4651_v52  ;;  %v3920_v23 = vsel %vm7354_vm2, %v3915_v19, %v8874_v49  ;;  %v6150_v46 = vrot.slane %v6134_v41, 9  ;;  %v3948_v1 = vrot.slane %v3946_v43, 4  ;;  %v7180_v43 = vld [vmem:[%s10394_s1 + $0x1c0] sm:$0xff]  }
 0x106   : > { %6837 = vmatmul.mubr.bf16.gmra.mxu1 %v10487_v63  ;;  %6966 = vmatprep.subr.bf16.mxu0 %v7173_v50  ;;  %v8921_v63 = vpop.f32.mrf.mxu0  ;;  %v3951_v52 = vrot.slane %v3949_v31, 5  ;;  %v8946_v51 = vrot.slane %v3928_v2, 4  ;;  %v3938_v22 = vor.u32 %v8892_v53, %v8890_v8  ;;  %v3961_v11 = vrot.slane %v3959_v0, 4  ;;  %v8955_v55 = vpop.f32.mrf.mxu1  ;;  %v7181_v31 = vld [vmem:[%s10394_s1 + $0x200] sm:$0xff]  }
 0x107   : > { %6840 = vmatprep.mubr.bf16.mxu1 %v10489_v12  ;;  %6917 = vmatpush3.bf16.msra.mxu1 %v7168_v61  ;;  %10490 = vst [vmem:[#allocation5_spill] sm:$0xff] %v8921_v63  ;;  %v7176_v61 = vld [vmem:[%s10394_s1 + $0x1c8] sm:$0xff]   ;;  %v8953_v12 = vrot.slane %v3955_v7, 5  ;;  %10491 = vst [vmem:[#allocation8_spill] sm:$0xff] %v8955_v55  ;;  %v4660_v49 = vrot.slane %v4658_v60, 4  ;;  %v3970_v2 = vshrl.u32 %v6072_v44, 16  ;;  %v8966_v41 = vcombine.low %v3886_v40, %v3896_v48 }
 0x108   : > { %6918 = vmatprep.subr.bf16.mxu1 %v7172_v56  ;;  %v3973_v19 = vshll.u32 %v6072_v44, 16  ;;  %v3983_v0 = vshrl.u32 %v8944_v34, 16  ;;  %v8974_v44 = vrot.slane %v3941_v32, 5  ;;  %v3965_v55 = vshll.u32 %v8951_v29, 16  ;;  %v6075_v40 = vld [vmem:[%s7313_s11 + $0x54] sm:$0xf] }
 0x109   : > { %6967 = vmatpush3.bf16.msra.mxu0 %v7173_v50  ;;  %v4661_v50 = vrot.slane %v8888_v16, 5  ;;  %v3979_v16 = vshll.u32 %v8944_v34, 16  ;;  %v4665_v32 = vrot.slane %v8877_v38, 5  ;;  %v10495_v38 = vcombine.low %v8637_v13, %v8641_v47  ;;  %v7167_v7 = vld [vmem:[%s7313_s11 + $0x84] sm:$0xff]   ;;  %v7170_v48 = vld [vmem:[%s7313_s11 + $0x90] sm:$0xff]  }
 0x10a   : > { %6968 = vmatprep.subr.bf16.mxu0 %v7177_v24 }
 0x10b   : > { %6889 = vmatmul.mubr.bf16.gmra.mxu0 %v7163_v62  ;;  %v8961_v53 = vpop.f32.mrf.mxu0  ;;  %6919 = vmatpush3.bf16.msra.mxu1 %v7172_v56  ;;  %v8972_v62 = vcombine.low %v3910_v3, %v3920_v23  ;;  %v3952_v56 = vor.u32 %v3951_v52, %v3948_v1  ;;  %v3962_v3 = vor.u32 %v3961_v11, %v8953_v12  ;;  %v8990_v23 = vld [vmem:[%s7313_s11 + $0x58] sm:$0xf]  ;;  %v8997_v52 = vrot.slane %v3938_v22, 4 }
 0x10c   : > { %10492 = vst [vmem:[#allocation9_spill] sm:$0xff] %v8961_v53  ;;  %6892 = vmatprep.mubr.bf16.mxu0 %v7166_v37  ;;  %6920 = vmatprep.subr.bf16.mxu1 %v7176_v61  ;;  %v8985_v37 = vsel %vm7665_vm5, %v6150_v46, %v4658_v60  ;;  %v10493_v1 = vcombine.low %v8620_v17, %v8625_v54  ;;  %v3972_v46 = vrot.slane %v3970_v2, 4  ;;  %v3975_v11 = vrot.slane %v3973_v19, 5  ;;  %v6074_v2 = vld [vmem:[%s7313_s11 + $0x50] sm:$0x1] }
 0x10d   : > { %6969 = vmatpush3.bf16.msra.mxu0 %v7177_v24  ;;  %v8995_v24 = vpop.f32.mrf.mxu1  ;;  %v9001_v60 = vsel %vm7665_vm5, %v4660_v49, %v4661_v50  ;;  %v9008_v17 = vpop.f32.mrf.mxu0  ;;  %v6151_v54 = vrot.slane %v6135_v15, 9  ;;  %v3985_v22 = vrot.slane %v3983_v0, 4  ;;  %v3953_v49 = vrot.slane %v3952_v56, 4  ;;  %v6078_v56 = vld [vmem:[%s7313_s11 + $0x60] sm:$0xf] }
 0x10e   : > { %6841 = vmatmul.mubr.bf16.gmra.mxu1 %v10493_v1  ;;  %10494 = vst [vmem:[#allocation10_spill] sm:$0xff] %v8995_v24  ;;  %6970 = vmatprep.subr.bf16.mxu0 %v7181_v31  ;;  %10496 = vst [vmem:[#allocation11_spill] sm:$0xff] %v9008_v17  ;;  %v9010_v1 = vrot.slane %v3979_v16, 5  ;;  %v3994_v24 = vshrl.u32 %v6075_v40, 16  ;;  %v3967_v50 = vrot.slane %v3965_v55, 5  ;;  %v3997_v19 = vshll.u32 %v6075_v40, 16 }
 0x10f   : > { %6844 = vmatprep.mubr.bf16.mxu1 %v10495_v38  ;;  %6921 = vmatpush3.bf16.msra.mxu1 %v7176_v61  ;;  %v4003_v53 = vshll.u32 %v8990_v23, 16  ;;  %v3963_v13 = vrot.slane %v3962_v3, 4  ;;  %v4667_v47 = vrot.slane %v4665_v32, 4  ;;  %v4668_v38 = vrot.slane %v8951_v29, 5  ;;  %v9016_v61 = vpop.f32.mrf.mxu1  ;;  %v9026_v40 = vpop.f32.mrf.mxu0 }
 0x110   : > { %6922 = vmatprep.subr.bf16.mxu1 %v7180_v43  ;;  %v4007_v15 = vshrl.u32 %v8990_v23, 16  ;;  %10497 = vst [vmem:[#allocation12_spill] sm:$0xff] %v9016_v61  ;;  %v3944_v16 = vsel %vm7354_vm2, %v8997_v52, %v8974_v44  ;;  %v3976_v0 = vor.u32 %v3975_v11, %v3972_v46  ;;  %v3986_v29 = vor.u32 %v3985_v22, %v9010_v1  ;;  %v6136_v61 = vld [vmem:[%s7313_s11 + $0x48] sm:$0xe] }
 0x111   : > { %6971 = vmatpush3.bf16.msra.mxu0 %v7181_v31  ;;  %v4672_v31 = vrot.slane %v8944_v34, 5  ;;  %v3989_v3 = vshll.u32 %v6074_v2, 16  ;;  %v3996_v17 = vrot.slane %v3994_v24, 4  ;;  %v3999_v63 = vrot.slane %v3997_v19, 5  ;;  %v9051_v11 = vpop.f32.mrf.mxu1 }
 0x112   : > { %v3958_v44 = vsel %vm7354_vm2, %v3953_v49, %v8953_v12  ;;  %v9035_v34 = vsel %vm7665_vm5, %v6151_v54, %v4665_v32  ;;  %v3968_v52 = vsel %vm7354_vm2, %v3963_v13, %v3967_v50  ;;  %v9043_v24 = vsel %vm7665_vm5, %v4667_v47, %v4668_v38  ;;  %10499 = vst [vmem:[#allocation13_spill] sm:$0xff] %v9051_v11  ;;  %v9054_v50 = vld [vmem:[%s7313_s11 + $0x64] sm:$0xf]  ;;  %v7171_v13 = vld [vmem:[%s7313_s11 + $0x9c] sm:$0xff]   ;;  %v9060_v47 = vpop.f32.mrf.mxu0 }
 0x113   : > { %6893 = vmatmul.mubr.bf16.gmra.mxu0 %v7167_v7  ;;  %6923 = vmatpush3.bf16.msra.mxu1 %v7180_v43  ;;  %v9037_v7 = vrot.slane %v4003_v53, 5  ;;  %v4009_v43 = vrot.slane %v4007_v15, 4  ;;  %v4018_v46 = vshrl.u32 %v6078_v56, 16  ;;  %v4021_v12 = vshll.u32 %v6078_v56, 16  ;;  %v7174_v56 = vld [vmem:[%s7313_s11 + $0xa8] sm:$0xff]  }
 0x114   : > { %6896 = vmatprep.mubr.bf16.mxu0 %v7170_v48  ;;  %v9046_v48 = vld [vmem:[%s7313_s11 + $0x5c] sm:$0x1]  ;;  %v10498_v32 = vcombine.low %v8653_v35, %v8662_v18  ;;  %v3977_v53 = vrot.slane %v3976_v0, 4  ;;  %v6152_v54 = vrot.slane %v6136_v61, 9  ;;  %v4674_v22 = vrot.slane %v4672_v31, 4 }
 0x115   : > { %v4675_v49 = vrot.slane %v6074_v2, 5  ;;  %v10500_v19 = vcombine.low %v8679_v33, %v8683_v59  ;;  %v3987_v38 = vrot.slane %v3986_v29, 4  ;;  %v3991_v15 = vrot.slane %v3989_v3, 5  ;;  %v6137_v0 = vld [vmem:[%s7313_s11 + $0x54] sm:$0xe]  ;;  %v9078_v29 = vpop.f32.mrf.mxu1 }
 0x116   : > { %6845 = vmatmul.mubr.bf16.gmra.mxu1 %v10498_v32  ;;  %v4000_v35 = vor.u32 %v3999_v63, %v3996_v17  ;;  %v4679_v18 = vrot.slane %v8990_v23, 5  ;;  %v4010_v61 = vor.u32 %v4009_v43, %v9037_v7  ;;  %v4013_v2 = vshll.u32 %v9046_v48, 16  ;;  %10502 = vst [vmem:[#allocation14_spill] sm:$0xff] %v9078_v29  ;;  %v6138_v63 = vld [vmem:[%s7313_s11 + $0x60] sm:$0xe] }
 0x117   : > { %6848 = vmatprep.mubr.bf16.mxu1 %v10500_v19  ;;  %v4020_v32 = vrot.slane %v4018_v46, 4  ;;  %v4023_v55 = vrot.slane %v4021_v12, 5  ;;  %v10501_v33 = vsel %vm7354_vm2, %v8946_v51, %v8890_v8  ;;  %v4027_v23 = vshll.u32 %v9054_v50, 16 }
 0x118   : > { %v9072_v59 = vcombine.low %v10501_v33, %v3944_v16  ;;  %v4031_v17 = vshrl.u32 %v9054_v50, 16  ;;  %v9080_v3 = vcombine.low %v3958_v44, %v3968_v52  ;;  %v3982_v43 = vsel %vm7354_vm2, %v3977_v53, %v9010_v1  ;;  %v6081_v16 = vld [vmem:[%s7313_s11 + $0x6c] sm:$0xf]  ;;  %v9098_v33 = vld [vmem:[%s7313_s11 + $0x70] sm:$0xf] }
 0x119   : > { %v9087_v8 = vsel %vm7665_vm5, %v6152_v54, %v4672_v31  ;;  %v9091_v51 = vsel %vm7665_vm5, %v4674_v22, %v4675_v49  ;;  %v4001_v44 = vrot.slane %v4000_v35, 4  ;;  %v6153_v52 = vrot.slane %v6137_v0, 9  ;;  %v6080_v54 = vld [vmem:[%s7313_s11 + $0x68] sm:$0x1] }
 0x11a   : > { %v4681_v12 = vrot.slane %v4679_v18, 4  ;;  %v4682_v19 = vrot.slane %v9046_v48, 5  ;;  %v3992_v1 = vsel %vm7354_vm2, %v3987_v38, %v3991_v15  ;;  %v4011_v31 = vrot.slane %v4010_v61, 4 }
 0x11b   : > { %6897 = vmatmul.mubr.bf16.gmra.mxu0 %v7171_v13  ;;  %v9094_v46 = vpop.f32.mrf.mxu0  ;;  %v4015_v53 = vrot.slane %v4013_v2, 5  ;;  %v4024_v22 = vor.u32 %v4023_v55, %v4020_v32  ;;  %v9103_v49 = vrot.slane %v4027_v23, 5  ;;  %v4033_v13 = vrot.slane %v4031_v17, 4  ;;  %v7175_v32 = vld [vmem:[%s7313_s11 + $0xb4] sm:$0xff]  }
 0x11c   : > { %10503 = vst [vmem:[#allocation15_spill] sm:$0xff] %v9094_v46  ;;  %6900 = vmatprep.mubr.bf16.mxu0 %v7174_v56  ;;  %v4042_v35 = vshrl.u32 %v6081_v16, 16  ;;  %v4045_v0 = vshll.u32 %v6081_v16, 16  ;;  %v10504_v48 = vcombine.low %v8699_v6, %v8704_v26  ;;  %v4686_v15 = vrot.slane %v9054_v50, 5  ;;  %v6140_v46 = vld [vmem:[%s7313_s11 + $0x78] sm:$0xe] }
 0x11d   : > { %v4051_v55 = vshll.u32 %v9098_v33, 16  ;;  %v4055_v61 = vshrl.u32 %v9098_v33, 16  ;;  %v10506_v2 = vcombine.low %v8717_v10, %v8711_v30  ;;  %v9120_v6 = vpop.f32.mrf.mxu0  ;;  %v9122_v26 = vcombine.low %v3982_v43, %v3992_v1  ;;  %v6084_v30 = vld [vmem:[%s7313_s11 + $0x78] sm:$0xf]  ;;  %v7178_v10 = vld [vmem:[%s7313_s11 + $0xc0] sm:$0xff]  }
 0x11e   : > { %6849 = vmatmul.mubr.bf16.gmra.mxu1 %v10504_v48  ;;  %10507 = vst [vmem:[#allocation17_spill] sm:$0xff] %v9120_v6  ;;  %v4006_v23 = vsel %vm7354_vm2, %v4001_v44, %v9037_v7  ;;  %v9129_v50 = vsel %vm7665_vm5, %v6153_v52, %v4679_v18  ;;  %v9133_v17 = vsel %vm7665_vm5, %v4681_v12, %v4682_v19  ;;  %v9139_v48 = vrot.slane %v4024_v22, 4  ;;  %v9146_v44 = vld [vmem:[%s7313_s11 + $0x74] sm:$0x1]  ;;  %v9203_v6 = vld [vmem:[%s7313_s11 + $0x8c] sm:$0x1] }
 0x11f   : > { %6852 = vmatprep.mubr.bf16.mxu1 %v10506_v2  ;;  %v4016_v16 = vsel %vm7354_vm2, %v4011_v31, %v4015_v53  ;;  %v4037_v43 = vshll.u32 %v6080_v54, 16  ;;  %v6154_v1 = vrot.slane %v6138_v63, 9  ;;  %v9142_v2 = vld [vmem:[%s7313_s11 + $0x7c] sm:$0xf]  ;;  %v4034_v7 = vor.u32 %v4033_v13, %v9103_v49  ;;  %v9152_v22 = vpop.f32.mrf.mxu0  ;;  %v6087_v63 = vld [vmem:[%s7313_s11 + $0x84] sm:$0xf] }
 0x120   : > { %v9109_v56 = vpop.f32.mrf.mxu1  ;;  %v4689_v18 = vrot.slane %v6080_v54, 5  ;;  %v4044_v52 = vrot.slane %v4042_v35, 4  ;;  %v4047_v12 = vrot.slane %v4045_v0, 5  ;;  %v4688_v38 = vrot.slane %v4686_v15, 4  ;;  %10509 = vst [vmem:[#allocation19_spill] sm:$0xff] %v9152_v22 }
 0x121   : > { %10505 = vst [vmem:[#allocation16_spill] sm:$0xff] %v9109_v56  ;;  %v9150_v56 = vrot.slane %v4051_v55, 5  ;;  %v4057_v31 = vrot.slane %v4055_v61, 4  ;;  %v4066_v53 = vshrl.u32 %v6084_v30, 16  ;;  %v6139_v54 = vld [vmem:[%s7313_s11 + $0x6c] sm:$0xe]  ;;  %v9165_v61 = vsel %vm7665_vm5, %v6154_v1, %v4686_v15 }
 0x122   : > { %v9148_v19 = vpop.f32.mrf.mxu1  ;;  %v4069_v13 = vshll.u32 %v6084_v30, 16  ;;  %v4075_v35 = vshll.u32 %v9142_v2, 16  ;;  %v4079_v0 = vshrl.u32 %v9142_v2, 16  ;;  %v9161_v55 = vrot.slane %v4037_v43, 5  ;;  %v7179_v1 = vld [vmem:[%s7313_s11 + $0xcc] sm:$0xff]  }
 0x123   : > { %10508 = vst [vmem:[#allocation18_spill] sm:$0xff] %v9148_v19  ;;  %6901 = vmatmul.mubr.bf16.gmra.mxu0 %v7175_v32  ;;  %v9159_v19 = vcombine.low %v4006_v23, %v4016_v16  ;;  %v4061_v32 = vshll.u32 %v9146_v44, 16  ;;  %v9173_v29 = vrot.slane %v4034_v7, 4  ;;  %v4693_v23 = vrot.slane %v9098_v33, 5  ;;  %v9177_v16 = vld [vmem:[%s7313_s11 + $0x88] sm:$0xf] }
 0x124   : > { %6904 = vmatprep.mubr.bf16.mxu0 %v7178_v10  ;;  %v4048_v10 = vor.u32 %v4047_v12, %v4044_v52  ;;  %v10511_v15 = vcombine.low %v8726_v5, %v8730_v14  ;;  %v9182_v43 = vpop.f32.mrf.mxu1  ;;  %v9187_v11 = vsel %vm7665_vm5, %v4688_v38, %v4689_v18  ;;  %v4058_v30 = vor.u32 %v4057_v31, %v9150_v56  ;;  %v9190_v12 = vpop.f32.mrf.mxu0  ;;  %v9196_v5 = vld [vmem:[%s7313_s11 + $0x80] sm:$0x1] }
 0x125   : > { %10510 = vst [vmem:[#allocation20_spill] sm:$0xff] %v9159_v19  ;;  %10512 = vst [vmem:[#allocation21_spill] sm:$0xff] %v9182_v43  ;;  %v6155_v7 = vrot.slane %v6139_v54, 9  ;;  %v4068_v52 = vrot.slane %v4066_v53, 4  ;;  %v10514_v33 = vcombine.low %v8761_v27, %v8765_v36  ;;  %v4071_v14 = vrot.slane %v4069_v13, 5 }
 0x126   : > { %6853 = vmatmul.mubr.bf16.gmra.mxu1 %v10511_v15  ;;  %10513 = vst [vmem:[#allocation22_spill] sm:$0xff] %v9190_v12  ;;  %v9198_v15 = vrot.slane %v4075_v35, 5  ;;  %v4081_v43 = vrot.slane %v4079_v0, 4  ;;  %v4090_v22 = vshrl.u32 %v6087_v63, 16  ;;  %v4063_v38 = vrot.slane %v4061_v32, 5 }
 0x127   : > { %6856 = vmatprep.mubr.bf16.mxu1 %v10514_v33  ;;  %v4696_v18 = vrot.slane %v9146_v44, 5  ;;  %v4093_v31 = vshll.u32 %v6087_v63, 16  ;;  %v4099_v53 = vshll.u32 %v9177_v16, 16  ;;  %v4049_v54 = vrot.slane %v4048_v10, 4  ;;  %v9206_v33 = vpop.f32.mrf.mxu1 }
 0x128   : > { %v4695_v12 = vrot.slane %v4693_v23, 4  ;;  %v4092_v27 = vrot.slane %v4090_v22, 4  ;;  %v4103_v36 = vshrl.u32 %v9177_v16, 16  ;;  %v4059_v13 = vrot.slane %v4058_v30, 4 }
 0x129   : > { %v4085_v35 = vshll.u32 %v9196_v5, 16  ;;  %v4095_v0 = vrot.slane %v4093_v31, 5  ;;  %v9209_v32 = vrot.slane %v4099_v53, 5  ;;  %v4072_v63 = vor.u32 %v4071_v14, %v4068_v52  ;;  %v6141_v53 = vld [vmem:[%s7313_s11 + $0x84] sm:$0xe] }
 0x12a   : > { %v9211_v44 = vpop.f32.mrf.mxu0  ;;  %v4082_v10 = vor.u32 %v4081_v43, %v9198_v15  ;;  %v4700_v22 = vrot.slane %v9142_v2, 5  ;;  %v4105_v19 = vrot.slane %v4103_v36, 4  ;;  %v10515_v30 = vcombine.low %v8857_v42, %v8872_v4 }
 0x12b   : > { %6905 = vmatmul.mubr.bf16.gmra.mxu0 %v7179_v1  ;;  %v4040_v31 = vsel %vm7354_vm2, %v9173_v29, %v9161_v55  ;;  %v9227_v52 = vsel %vm7665_vm5, %v6155_v7, %v4693_v23  ;;  %v4109_v43 = vshll.u32 %v9203_v6, 16  ;;  %v4054_v42 = vsel %vm7354_vm2, %v4049_v54, %v9150_v56  ;;  %v6090_v55 = vld [vmem:[%s7313_s11 + $0x90] sm:$0xf] }
 0x12c   : > { %6972 = vmatprep.mubr.bf16.mxu0 %v10515_v30  ;;  %v9230_v2 = vpop.f32.mrf.mxu0  ;;  %v4096_v4 = vor.u32 %v4095_v0, %v4092_v27  ;;  %v4106_v14 = vor.u32 %v4105_v19, %v9209_v32  ;;  %v4707_v29 = vrot.slane %v9177_v16, 5  ;;  %v10517_v23 = vcombine.low %v8774_v45, %v8779_v9 }
 0x12d   : > { %v4064_v7 = vsel %vm7354_vm2, %v4059_v13, %v4063_v38  ;;  %v9248_v56 = vsel %vm7665_vm5, %v4695_v12, %v4696_v18  ;;  %v4087_v54 = vrot.slane %v4085_v35, 5  ;;  %v6156_v19 = vrot.slane %v6140_v46, 9  ;;  %v9257_v13 = vld [vmem:[%s7313_s11 + $0x94] sm:$0xf] }
 0x12e   : > { %v9239_v36 = vpop.f32.mrf.mxu1  ;;  %6857 = vmatmul.mubr.bf16.gmra.mxu1 %v10517_v23  ;;  %v9250_v27 = vpop.f32.mrf.mxu0  ;;  %v4073_v16 = vrot.slane %v4072_v63, 4  ;;  %v4083_v0 = vrot.slane %v4082_v10, 4  ;;  %v4702_v30 = vrot.slane %v4700_v22, 4  ;;  %v4703_v1 = vrot.slane %v9196_v5, 5 }
 0x12f   : > { %10516 = vst [vmem:[#allocation23_spill] sm:$0xff] %v9239_v36  ;;  %6924 = vmatprep.mubr.bf16.mxu1 %v8966_v41  ;;  %v4111_v9 = vrot.slane %v4109_v43, 5  ;;  %v6157_v38 = vrot.slane %v6141_v53, 9  ;;  %v4114_v12 = vshrl.u32 %v6090_v55, 16  ;;  %v4117_v18 = vshll.u32 %v6090_v55, 16 }
 0x130   : > { %v9254_v45 = vpop.f32.mrf.mxu1  ;;  %v9259_v35 = vpop.f32.mrf.mxu0  ;;  %v4097_v46 = vrot.slane %v4096_v4, 4  ;;  %v4107_v23 = vrot.slane %v4106_v14, 4  ;;  %v4709_v41 = vrot.slane %v4707_v29, 4  ;;  %v4710_v63 = vrot.slane %v9203_v6, 5  ;;  %v9280_v55 = vld [vmem:[%s7313_s11 + $0x98] sm:$0x1] }
 0x131   : > { %10518 = vst [vmem:[#allocation24_spill] sm:$0xff] %v9254_v45  ;;  %v10520_v5 = vsel %vm7354_vm2, %v9139_v48, %v9103_v49  ;;  %v9271_v53 = vcombine.low %v4054_v42, %v4064_v7  ;;  %v9277_v14 = vsel %vm7665_vm5, %v6156_v19, %v4700_v22  ;;  %v4078_v49 = vsel %vm7354_vm2, %v4073_v16, %v9198_v15  ;;  %v6093_v42 = vld [vmem:[%s7313_s11 + $0x9c] sm:$0xf]  ;;  %v9297_v7 = vld [vmem:[%s7313_s11 + $0xa0] sm:$0xf] }
 0x132   : > { %v9262_v10 = vpop.f32.mrf.mxu1  ;;  %v9269_v43 = vcombine.low %v10520_v5, %v4040_v31  ;;  %v6686_v6 = vpop.f32.mrf.mxu0  ;;  %v4088_v48 = vsel %vm7354_vm2, %v4083_v0, %v4087_v54  ;;  %v9292_v31 = vsel %vm7665_vm5, %v4702_v30, %v4703_v1  ;;  %v4123_v22 = vshll.u32 %v9257_v13, 16  ;;  %v9384_v36 = vld [vmem:[%s7313_s11 + $0xb0] sm:$0x1] }
 0x133   : > { %10519 = vst [vmem:[#allocation25_spill] sm:$0xff] %v9262_v10  ;;  %v10521_v10 = vcombine.low %v8929_v21, %v8933_v20  ;;  %v10523_v21 = vcombine.low %v8985_v37, %v9001_v60  ;;  %v9306_v20 = vsel %vm7665_vm5, %v6157_v38, %v4707_v29  ;;  %v4116_v15 = vrot.slane %v4114_v12, 4  ;;  %v9321_v38 = vld [vmem:[%s7313_s11 + $0x90] sm:$0xe] }
 0x134   : > { %v9299_v19 = vpop.f32.mrf.mxu1  ;;  %v4119_v54 = vrot.slane %v4117_v18, 5  ;;  %v4127_v1 = vshrl.u32 %v9257_v13, 16  ;;  %v1644_v16 = vpop.f32.mrf.mxu0  ;;  %v4102_v0 = vsel %vm7354_vm2, %v4097_v46, %v9209_v32  ;;  %v4112_v30 = vsel %vm7354_vm2, %v4107_v23, %v4111_v9 }
 0x135   : > { %6973 = vmatmul.mubr.bf16.vlgmr.msra.gmra.mxu0 %v10521_v10  ;;  %10522 = vst [vmem:[#allocation26_spill] sm:$0xff] %v9299_v19  ;;  %v9316_v37 = vsel %vm7665_vm5, %v4709_v41, %v4710_v63  ;;  %v4133_v60 = vshll.u32 %v9280_v55, 16  ;;  %v4138_v12 = vshrl.u32 %v6093_v42, 16  ;;  %v4141_v18 = vshll.u32 %v6093_v42, 16 }
 0x136   : > { %6976 = vmatprep.mubr.bf16.mxu0 %v10523_v21  ;;  %v6638_v29 = vpop.f32.mrf.mxu1  ;;  %6925 = vmatmul.mubr.bf16.vlgmr.msra.gmra.mxu1 %v8972_v62  ;;  %v4147_v10 = vshll.u32 %v9297_v7, 16  ;;  %v4151_v32 = vshrl.u32 %v9297_v7, 16  ;;  %v6687_v46 = vpop.f32.mrf.mxu0  ;;  %v9327_v23 = vcombine.low %v4078_v49, %v4088_v48  ;;  %v9331_v41 = vrot.slane %v4123_v22, 5  ;;  %v9345_v62 = vld [vmem:[%s7313_s11 + $0xa4] sm:$0x1] }
 0x137   : > { %v1201_v9 = vadd.f32 %v6638_v29, %v8822_v25  ;;  %6928 = vmatprep.mubr.bf16.mxu1 %v9072_v59  ;;  %v9333_v5 = vcombine.low %v4102_v0, %v4112_v30  ;;  %v4120_v21 = vor.u32 %v4119_v54, %v4116_v15  ;;  %v4129_v25 = vrot.slane %v4127_v1, 4  ;;  %v6096_v29 = vld [vmem:[%s7313_s11 + $0xa8] sm:$0xf]  ;;  %v9350_v15 = vld [vmem:[%s7313_s11 + $0xac] sm:$0xf] }
 0x138   : > { %v1192_v63 = vpop.f32.mrf.mxu1  ;;  %v1647_v49 = vpop.f32.mrf.mxu0  ;;  %v9341_v48 = vrot.slane %v4133_v60, 5  ;;  %v6158_v22 = vrot.slane %v9321_v38, 9  ;;  %v4140_v30 = vrot.slane %v4138_v12, 4  ;;  %v4143_v19 = vrot.slane %v4141_v18, 5 }
 0x139   : > { %v9338_v4 = vadd.f32 %v6686_v6, %v1201_v9  ;;  %v1193_v59 = vadd.f32 %v1192_v63, %v8843_v58  ;;  %v9347_v45 = vrot.slane %v4147_v10, 5  ;;  %v4153_v42 = vrot.slane %v4151_v32, 4  ;;  %v10529_v63 = vld [vmem:[#allocation5_spill] sm:$0xff] }
 0x13a   : > { %v6639_v0 = vpop.f32.mrf.mxu1  ;;  %v6690_v6 = vpop.f32.mrf.mxu0  ;;  %v10526_v1 = vcombine.low %v9035_v34, %v9043_v24  ;;  %v4162_v60 = vshrl.u32 %v6096_v29, 16  ;;  %v4165_v38 = vshll.u32 %v6096_v29, 16  ;;  %v10527_v12 = vcombine.low %v9087_v8, %v9091_v51 }
 0x13b   : > { %10524 = vst [vmem:[#allocation27_spill] sm:$0xff] %v9338_v4  ;;  %v9352_v54 = vadd.f32 %v1644_v16, %v1193_v59  ;;  %v1204_v58 = vadd.f32 %v6639_v0, %v8879_v39  ;;  %v9361_v18 = vrot.slane %v4120_v21, 4  ;;  %v4130_v16 = vor.u32 %v4129_v25, %v9331_v41  ;;  %v6143_v59 = vld [vmem:[%s7313_s11 + $0x9c] sm:$0xe] }
 0x13c   : > { %v1195_v9 = vpop.f32.mrf.mxu1  ;;  %v4714_v10 = vrot.slane %v9257_v13, 5  ;;  %v4157_v39 = vshll.u32 %v9345_v62, 16  ;;  %v1660_v24 = vpop.f32.mrf.mxu0  ;;  %v4717_v29 = vrot.slane %v9280_v55, 5  ;;  %v4171_v0 = vshll.u32 %v9350_v15, 16 }
 0x13d   : > { %10525 = vst [vmem:[#allocation28_spill] sm:$0xff] %v9352_v54  ;;  %6977 = vmatmul.mubr.bf16.gmra.mxu0 %v10526_v1  ;;  %v9366_v32 = vadd.f32 %v6687_v46, %v1204_v58  ;;  %v1196_v34 = vadd.f32 %v1195_v9, %v10529_v63  ;;  %v4144_v51 = vor.u32 %v4143_v19, %v4140_v30  ;;  %v4721_v13 = vrot.slane %v9297_v7, 5  ;;  %v10530_v58 = vld [vmem:[#allocation9_spill] sm:$0xff]  ;;  %v10531_v7 = vld [vmem:[#allocation11_spill] sm:$0xff] }
 0x13e   : > { %6980 = vmatprep.mubr.bf16.mxu0 %v10527_v12  ;;  %v6642_v8 = vpop.f32.mrf.mxu1  ;;  %6929 = vmatmul.mubr.bf16.gmra.mxu1 %v9080_v3  ;;  %v4154_v21 = vor.u32 %v4153_v42, %v9347_v45  ;;  %v4175_v46 = vshrl.u32 %v9350_v15, 16  ;;  %v6691_v9 = vpop.f32.mrf.mxu0  ;;  %v4164_v55 = vrot.slane %v4162_v60, 4  ;;  %v4167_v12 = vrot.slane %v4165_v38, 5 }
 0x13f   : > { %10528 = vst [vmem:[#allocation29_spill] sm:$0xff] %v9366_v32  ;;  %v9376_v25 = vadd.f32 %v1647_v49, %v1196_v34  ;;  %v1217_v1 = vadd.f32 %v6642_v8, %v10530_v58  ;;  %6932 = vmatprep.mubr.bf16.mxu1 %v9122_v26  ;;  %v4131_v32 = vrot.slane %v4130_v16, 4  ;;  %v4716_v3 = vrot.slane %v4714_v10, 4 }
 0x140   : > { %v1208_v63 = vpop.f32.mrf.mxu1  ;;  %v4159_v19 = vrot.slane %v4157_v39, 5  ;;  %v6159_v30 = vrot.slane %v6143_v59, 9  ;;  %v1663_v4 = vpop.f32.mrf.mxu0  ;;  %v9386_v49 = vrot.slane %v4171_v0, 5  ;;  %v4177_v34 = vrot.slane %v4175_v46, 4 }
 0x141   : > { %v9380_v42 = vadd.f32 %v6690_v6, %v1217_v1  ;;  %v1209_v54 = vadd.f32 %v1208_v63, %v10531_v7  ;;  %v4145_v58 = vrot.slane %v4144_v51, 4  ;;  %v4155_v26 = vrot.slane %v4154_v21, 4 }
 0x142   : > { %v6643_v8 = vpop.f32.mrf.mxu1  ;;  %v4723_v60 = vrot.slane %v4721_v13, 4  ;;  %v4724_v38 = vrot.slane %v9345_v62, 5  ;;  %v6694_v39 = vpop.f32.mrf.mxu0  ;;  %v10532_v59 = vcombine.low %v9129_v50, %v9133_v17  ;;  %v9397_v0 = vsel %vm7665_vm5, %v6158_v22, %v4714_v10  ;;  %v6144_v22 = vld [vmem:[%s7313_s11 + $0xa8] sm:$0xe] }
 0x143   : > { %v9389_v16 = vadd.f32 %v1660_v24, %v1209_v54  ;;  %v1220_v6 = vadd.f32 %v6643_v8, %v9026_v40  ;;  %v4168_v51 = vor.u32 %v4167_v12, %v4164_v55  ;;  %v10533_v21 = vcombine.low %v9165_v61, %v9187_v11 }
 0x144   : > { %v1211_v46 = vpop.f32.mrf.mxu1  ;;  %v4126_v40 = vsel %vm7354_vm2, %v9361_v18, %v9331_v41  ;;  %v4136_v50 = vsel %vm7354_vm2, %v4131_v32, %v9341_v48  ;;  %v9411_v17 = vsel %vm7665_vm5, %v4716_v3, %v4717_v29  ;;  %v4181_v62 = vshll.u32 %v9384_v36, 16  ;;  %v1676_v61 = vpop.f32.mrf.mxu0  ;;  %v6099_v18 = vld [vmem:[%s7313_s11 + $0xb4] sm:$0xf]  ;;  %v10534_v48 = vld [vmem:[#allocation20_spill] sm:$0xff]  ;;  %v9440_v3 = vld [vmem:[%s7313_s11 + $0xb8] sm:$0xf] }
 0x145   : > { %6981 = vmatmul.mubr.bf16.gmra.mxu0 %v10532_v59  ;;  %v9415_v54 = vadd.f32 %v6691_v9, %v1220_v6  ;;  %v1212_v11 = vadd.f32 %v1211_v46, %v9060_v47  ;;  %v4178_v10 = vor.u32 %v4177_v34, %v9386_v49  ;;  %v4728_v41 = vrot.slane %v9350_v15, 5  ;;  %v10535_v9 = vld [vmem:[#allocation15_spill] sm:$0xff] }
 0x146   : > { %6984 = vmatprep.mubr.bf16.mxu0 %v10533_v21  ;;  %v6646_v24 = vpop.f32.mrf.mxu1  ;;  %6933 = vmatmul.mubr.bf16.gmra.mxu1 %v10534_v48  ;;  %v4150_v32 = vsel %vm7354_vm2, %v4145_v58, %v9347_v45  ;;  %v4160_v29 = vsel %vm7354_vm2, %v4155_v26, %v4159_v19  ;;  %v9429_v47 = vsel %vm7665_vm5, %v6159_v30, %v4721_v13  ;;  %v6695_v12 = vpop.f32.mrf.mxu0  ;;  %v4169_v63 = vrot.slane %v4168_v51, 4  ;;  %v10536_v58 = vld [vmem:[#allocation17_spill] sm:$0xff]  ;;  %v10540_v48 = vld [vmem:[#allocation22_spill] sm:$0xff] }
 0x147   : > { %v9433_v1 = vsel %vm7665_vm5, %v4723_v60, %v4724_v38  ;;  %v9435_v15 = vadd.f32 %v1663_v4, %v1212_v11  ;;  %v1233_v55 = vadd.f32 %v6646_v24, %v10535_v9  ;;  %6936 = vmatprep.mubr.bf16.mxu1 %v9269_v43  ;;  %v6160_v45 = vrot.slane %v6144_v22, 9 }
 0x148   : > { %v1224_v19 = vpop.f32.mrf.mxu1  ;;  %v4183_v7 = vrot.slane %v4181_v62, 5  ;;  %v4731_v13 = vrot.slane %v9384_v36, 5  ;;  %v4186_v30 = vshrl.u32 %v6099_v18, 16  ;;  %v4189_v34 = vshll.u32 %v6099_v18, 16  ;;  %v1679_v26 = vpop.f32.mrf.mxu0 }
 0x149   : > { %v9443_v8 = vadd.f32 %v6694_v39, %v1233_v55  ;;  %v1225_v4 = vadd.f32 %v1224_v19, %v10536_v58  ;;  %v4179_v60 = vrot.slane %v4178_v10, 4  ;;  %v4730_v38 = vrot.slane %v4728_v41, 4  ;;  %v10537_v39 = vld [vmem:[#allocation19_spill] sm:$0xff] }
 0x14a   : > { %v6647_v43 = vpop.f32.mrf.mxu1  ;;  %v9446_v6 = vcombine.low %v4126_v40, %v4136_v50  ;;  %v6174_v59 = vcombine.low %v9397_v0, %v9411_v17  ;;  %v9450_v51 = vcombine.low %v4150_v32, %v4160_v29  ;;  %v4195_v36 = vshll.u32 %v9440_v3, 16  ;;  %v6698_v62 = vpop.f32.mrf.mxu0  ;;  %v6102_v50 = vld [vmem:[%s7313_s11 + $0xc0] sm:$0xf]  ;;  %v9464_v17 = vld [vmem:[%s7313_s11 + $0xc4] sm:$0xf] }
 0x14b   : > { %v9453_v46 = vadd.f32 %v1676_v61, %v1225_v4  ;;  %v1236_v21 = vadd.f32 %v6647_v43, %v10537_v39  ;;  %v10538_v22 = vcombine.low %v9227_v52, %v9248_v56  ;;  %v6175_v40 = vcombine.low %v9429_v47, %v9433_v1  ;;  %v10545_v47 = vld [vmem:[#allocation8_spill] sm:$0xff] }
 0x14c   : > { %v4199_v0 = vshrl.u32 %v9440_v3, 16  ;;  %v1227_v11 = vpop.f32.mrf.mxu1  ;;  %v10539_v61 = vcombine.low %v9277_v14, %v9292_v31  ;;  %v4174_v52 = vsel %vm7354_vm2, %v4169_v63, %v9386_v49  ;;  %v9474_v56 = vsel %vm7665_vm5, %v6160_v45, %v4728_v41  ;;  %v1692_v29 = vpop.f32.mrf.mxu0  ;;  %v9486_v31 = vld [vmem:[%s7313_s11 + $0xbc] sm:$0x1]  ;;  %v6145_v49 = vld [vmem:[%s7313_s11 + $0xb4] sm:$0xe] }
 0x14d   : > { %6985 = vmatmul.mubr.bf16.gmra.mxu0 %v10538_v22  ;;  %v4188_v10 = vrot.slane %v4186_v30, 4  ;;  %v4191_v18 = vrot.slane %v4189_v34, 5  ;;  %v9476_v24 = vadd.f32 %v6695_v12, %v1236_v21  ;;  %v1228_v32 = vadd.f32 %v1227_v11, %v10540_v48  ;;  %v9508_v21 = vld [vmem:[%s7313_s11 + $0xc8] sm:$0x1] }
 0x14e   : > { %6988 = vmatprep.mubr.bf16.mxu0 %v10539_v61  ;;  %v4184_v9 = vsel %vm7354_vm2, %v4179_v60, %v4183_v7  ;;  %v9483_v14 = vsel %vm7665_vm5, %v4730_v38, %v4731_v13  ;;  %v6650_v55 = vpop.f32.mrf.mxu1  ;;  %6937 = vmatmul.mubr.bf16.gmra.mxu1 %v9271_v53  ;;  %v9490_v41 = vrot.slane %v4195_v36, 5  ;;  %v4210_v12 = vshrl.u32 %v6102_v50, 16  ;;  %v6699_v30 = vpop.f32.mrf.mxu0 }
 0x14f   : > { %v4213_v63 = vshll.u32 %v6102_v50, 16  ;;  %v4219_v45 = vshll.u32 %v9464_v17, 16  ;;  %v9493_v19 = vadd.f32 %v1679_v26, %v1228_v32  ;;  %v1249_v7 = vadd.f32 %v6650_v55, %v9211_v44  ;;  %6940 = vmatprep.mubr.bf16.mxu1 %v9327_v23 }
 0x150   : > { %v4201_v13 = vrot.slane %v4199_v0, 4  ;;  %v4223_v34 = vshrl.u32 %v9464_v17, 16  ;;  %v1240_v58 = vpop.f32.mrf.mxu1  ;;  %v4192_v4 = vor.u32 %v4191_v18, %v4188_v10  ;;  %v4205_v53 = vshll.u32 %v9486_v31, 16  ;;  %v1695_v44 = vpop.f32.mrf.mxu0  ;;  %v6105_v10 = vld [vmem:[%s7313_s11 + $0xcc] sm:$0xf] }
 0x151   : > { %v6161_v60 = vrot.slane %v6145_v49, 9  ;;  %v4735_v38 = vrot.slane %v9440_v3, 5  ;;  %v9500_v43 = vadd.f32 %v6698_v62, %v1249_v7  ;;  %v1241_v26 = vadd.f32 %v1240_v58, %v9230_v2  ;;  %v6146_v49 = vld [vmem:[%s7313_s11 + $0xc0] sm:$0xe] }
 0x152   : > { %v9503_v36 = vcombine.low %v4174_v52, %v4184_v9  ;;  %v6176_v23 = vcombine.low %v9474_v56, %v9483_v14  ;;  %v6651_v39 = vpop.f32.mrf.mxu1  ;;  %v4212_v22 = vrot.slane %v4210_v12, 4  ;;  %v4215_v0 = vrot.slane %v4213_v63, 5  ;;  %v6702_v11 = vpop.f32.mrf.mxu0  ;;  %v9530_v9 = vld [vmem:[%s7313_s11 + $0xd0] sm:$0xf] }
 0x153   : > { %v9510_v50 = vrot.slane %v4219_v45, 5  ;;  %v4225_v3 = vrot.slane %v4223_v34, 4  ;;  %v9512_v62 = vadd.f32 %v1692_v29, %v1241_v26  ;;  %v1252_v2 = vadd.f32 %v6651_v39, %v9250_v27 }
 0x154   : > { %v10541_v61 = vcombine.low %v9306_v20, %v9316_v37  ;;  %v4202_v52 = vor.u32 %v4201_v13, %v9490_v41  ;;  %v4738_v56 = vrot.slane %v9486_v31, 5  ;;  %v1243_v18 = vpop.f32.mrf.mxu1  ;;  %v9521_v48 = vrot.slane %v4192_v4, 4  ;;  %v1708_v14 = vpop.f32.mrf.mxu0 }
 0x155   : > { %v9523_v32 = vrot.slane %v4205_v53, 5  ;;  %v9527_v27 = vsel %vm7665_vm5, %v6161_v60, %v4735_v38  ;;  %v4737_v29 = vrot.slane %v4735_v38, 4  ;;  %v9532_v20 = vadd.f32 %v6699_v30, %v1252_v2  ;;  %v10542_v30 = vld [vmem:[#allocation4_spill] sm:$0xff] }
 0x156   : > { %6989 = vmatmul.mubr.bf16.gmra.mxu0 %v10541_v61  ;;  %v1244_v37 = vadd.f32 %v1243_v18, %v9259_v35  ;;  %v4229_v31 = vshll.u32 %v9508_v21, 16  ;;  %v6654_v55 = vpop.f32.mrf.mxu1  ;;  %6941 = vmatmul.mubr.bf16.gmra.mxu1 %v9333_v5  ;;  %v4216_v12 = vor.u32 %v4215_v0, %v4212_v22  ;;  %v4226_v63 = vor.u32 %v4225_v3, %v9510_v50  ;;  %v6703_v58 = vpop.f32.mrf.mxu0 }
 0x157   : > { %6992 = vmatprep.mubr.bf16.mxu0 %v6174_v59  ;;  %v4742_v59 = vrot.slane %v9464_v17, 5  ;;  %v4234_v45 = vshrl.u32 %v6105_v10, 16  ;;  %v4237_v7 = vshll.u32 %v6105_v10, 16  ;;  %v1265_v34 = vadd.f32 %v6654_v55, %v10542_v30  ;;  %6944 = vmatprep.mubr.bf16.mxu1 %v9446_v6 }
 0x158   : > { %v9540_v13 = vadd.f32 %v1695_v44, %v1244_v37  ;;  %v4243_v35 = vshll.u32 %v9530_v9, 16  ;;  %v4247_v4 = vshrl.u32 %v9530_v9, 16  ;;  %v1256_v17 = vpop.f32.mrf.mxu1  ;;  %v4203_v53 = vrot.slane %v4202_v52, 4  ;;  %v10543_v44 = vld [vmem:[#allocation7_spill] sm:$0xff]  ;;  %v1711_v22 = vpop.f32.mrf.mxu0  ;;  %v10544_v37 = vld [vmem:[#allocation6_spill] sm:$0xff] }
 0x159   : > { %v4739_v5 = vsel %vm7665_vm5, %v4737_v29, %v4738_v56  ;;  %v6162_v60 = vrot.slane %v6146_v49, 9  ;;  %v4745_v38 = vrot.slane %v9508_v21, 5  ;;  %v9549_v26 = vadd.f32 %v6702_v11, %v1265_v34  ;;  %v6107_v21 = vld [vmem:[%s7313_s11 + $0xd4] sm:$0x1] }
 0x15a   : > { %v1257_v39 = vadd.f32 %v1256_v17, %v10543_v44  ;;  %v4231_v0 = vrot.slane %v4229_v31, 5  ;;  %v4744_v6 = vrot.slane %v4742_v59, 4  ;;  %v6655_v3 = vpop.f32.mrf.mxu1  ;;  %v4217_v2 = vrot.slane %v4216_v12, 4 }
 0x15b   : > { %v4227_v61 = vrot.slane %v4226_v63, 4  ;;  %v4236_v10 = vrot.slane %v4234_v45, 4  ;;  %v4239_v18 = vrot.slane %v4237_v7, 5  ;;  %v1268_v56 = vadd.f32 %v6655_v3, %v10544_v37  ;;  %v6706_v29 = vpop.f32.mrf.mxu0  ;;  %v6147_v7 = vld [vmem:[%s7313_s11 + $0xcc] sm:$0xe]  ;;  %s6189_s11 = sshll.u32 %s7215_s18, 8 }
 0x15c   : > { %v9552_v52 = vadd.f32 %v1708_v14, %v1257_v39  ;;  %v9559_v11 = vrot.slane %v4243_v35, 5  ;;  %v4249_v31 = vrot.slane %v4247_v4, 4  ;;  %v1259_v49 = vpop.f32.mrf.mxu1  ;;  %v4198_v14 = vsel %vm7354_vm2, %v9521_v48, %v9490_v41  ;;  %s9869_s14 = scalar_lea.vmem [#allocation2], %s6189_s11 }
 0x15d   : > { %v4208_v55 = vsel %vm7354_vm2, %v4203_v53, %v9523_v32  ;;  %v4749_v12 = vrot.slane %v9530_v9, 5  ;;  %v9569_v63 = vadd.f32 %v6703_v58, %v1268_v56  ;;  %v1260_v1 = vadd.f32 %v1259_v49, %v10545_v47  ;;  %v10546_v58 = vld [vmem:[#allocation10_spill] sm:$0xff] }
 0x15e   : > { %6993 = vmatmul.mubr.bf16.gmra.mxu0 %v6175_v40  ;;  %v1724_v40 = vpop.f32.mrf.mxu0  ;;  %v4743_v45 = vsel %vm7665_vm5, %v6162_v60, %v4742_v59  ;;  %v6658_v30 = vpop.f32.mrf.mxu1  ;;  %6945 = vmatmul.mubr.bf16.gmra.mxu1 %v9450_v51  ;;  %v6177_v41 = vcombine.low %v9527_v27, %v4739_v5  ;;  %v4222_v48 = vsel %vm7354_vm2, %v4217_v2, %v9510_v50  ;;  %v4253_v9 = vshll.u32 %v6107_v21, 16  ;;  %v10549_v49 = vld [vmem:[#allocation14_spill] sm:$0xff] }
 0x15f   : > { %6996 = vmatprep.mubr.bf16.mxu0 %v6176_v23  ;;  %v4746_v23 = vsel %vm7665_vm5, %v4744_v6, %v4745_v38  ;;  %v4240_v32 = vor.u32 %v4239_v18, %v4236_v10  ;;  %v9582_v34 = vadd.f32 %v1711_v22, %v1260_v1  ;;  %v1281_v35 = vadd.f32 %v6658_v30, %v10546_v58  ;;  %v10547_v38 = vld [vmem:[#allocation12_spill] sm:$0xff]  ;;  %v10548_v10 = vld [vmem:[#allocation13_spill] sm:$0xff] }
 0x160   : > { %v6707_v59 = vpop.f32.mrf.mxu0  ;;  %6948 = vmatprep.mubr.bf16.mxu1 %v9503_v36  ;;  %v4232_v4 = vsel %vm7354_vm2, %v4227_v61, %v4231_v0  ;;  %v4250_v51 = vor.u32 %v4249_v31, %v9559_v11  ;;  %v1272_v17 = vpop.f32.mrf.mxu1  ;;  %v6178_v27 = vcombine.low %v4743_v45, %v4746_v23  ;;  %v6163_v53 = vrot.slane %v6147_v7, 9  ;;  %v10550_v45 = vld [vmem:[#allocation16_spill] sm:$0xff] }
 0x161   : > { %v4751_v5 = vrot.slane %v4749_v12, 4  ;;  %v4752_v60 = vrot.slane %v6107_v21, 5  ;;  %v9589_v50 = vadd.f32 %v6706_v29, %v1281_v35  ;;  %v1273_v44 = vadd.f32 %v1272_v17, %v10547_v38  ;;  %v10553_v38 = vld [vmem:[#allocation23_spill] sm:$0xff] }
 0x162   : > { %v1727_v39 = vpop.f32.mrf.mxu0  ;;  %v6659_v22 = vpop.f32.mrf.mxu1  ;;  %v6121_v6 = vcombine.low %v4198_v14, %v4208_v55  ;;  %v6122_v3 = vcombine.low %v4222_v48, %v4232_v4  ;;  %v4241_v2 = vrot.slane %v4240_v32, 4  ;;  %v4251_v18 = vrot.slane %v4250_v51, 4  ;;  %v10551_v48 = vld [vmem:[#allocation18_spill] sm:$0xff] }
 0x163   : > { %v9592_v36 = vadd.f32 %v1724_v40, %v1273_v44  ;;  %v1284_v0 = vadd.f32 %v6659_v22, %v10548_v10  ;;  %v4255_v37 = vrot.slane %v4253_v9, 5  ;;  %v4750_v29 = vsel %vm7665_vm5, %v6163_v53, %v4749_v12 }
 0x164   : > { %v6710_v61 = vpop.f32.mrf.mxu0  ;;  %v1275_v56 = vpop.f32.mrf.mxu1  ;;  %v4753_v21 = vsel %vm7665_vm5, %v4751_v5, %v4752_v60  ;;  %v4246_v1 = vsel %vm7354_vm2, %v4241_v2, %v9559_v11  ;;  %v10552_v11 = vld [vmem:[#allocation21_spill] sm:$0xff] }
 0x165   : > { %v9599_v31 = vadd.f32 %v6707_v59, %v1284_v0  ;;  %v1276_v14 = vadd.f32 %v1275_v56, %v10549_v49  ;;  %v4256_v57 = vsel %vm7354_vm2, %v4251_v18, %v4255_v37  ;;  %v6179_v12 = vcombine.low %v4750_v29, %v4753_v21  ;;  %v10555_v18 = vld [vmem:[#allocation25_spill] sm:$0xff]  ;;  %v10556_v21 = vld [vmem:[#allocation26_spill] sm:$0xff] }
 0x166   : > { %6997 = vmatmul.mubr.bf16.gmra.mxu0 %v6177_v41  ;;  %v1740_v55 = vpop.f32.mrf.mxu0  ;;  %v6662_v47 = vpop.f32.mrf.mxu1  ;;  %6949 = vmatmul.mubr.bf16.gmra.mxu1 %v6121_v6  ;;  %v6123_v35 = vcombine.low %v4246_v1, %v4256_v57  ;;  %v10557_v1 = vld [vmem:[#allocation27_spill] sm:$0xff] }
 0x167   : > { %7000 = vmatprep.mubr.bf16.mxu0 %v6178_v27  ;;  %v9605_v40 = vadd.f32 %v1727_v39, %v1276_v14  ;;  %v1297_v23 = vadd.f32 %v6662_v47, %v10550_v45  ;;  %6952 = vmatprep.mubr.bf16.mxu1 %v6122_v3  ;;  %v10554_v3 = vld [vmem:[#allocation24_spill] sm:$0xff] }
 0x168   : > { %v6711_v7 = vpop.f32.mrf.mxu0  ;;  %v1288_v30 = vpop.f32.mrf.mxu1 }
 0x169   : > { %v9610_v41 = vadd.f32 %v6710_v61, %v1297_v23  ;;  %v1289_v32 = vadd.f32 %v1288_v30, %v10551_v48 }
 0x16a   : > { %v1743_v9 = vpop.f32.mrf.mxu0  ;;  %v6663_v58 = vpop.f32.mrf.mxu1 }
 0x16b   : > { %v9613_v59 = vadd.f32 %v1740_v55, %v1289_v32  ;;  %v1300_v4 = vadd.f32 %v6663_v58, %v10552_v11  ;;  %v10559_v58 = vld [vmem:[#allocation29_spill] sm:$0xff] }
 0x16c   : > { %v6714_v51 = vpop.f32.mrf.mxu0  ;;  %v1291_v17 = vpop.f32.mrf.mxu1 }
 0x16d   : > { %v9616_v27 = vadd.f32 %v6711_v7, %v1300_v4  ;;  %v1292_v28 = vadd.f32 %v1291_v17, %v9206_v33 }
 0x16e   : > { %7001 = vmatmul.mubr.bf16.gmra.mxu0 %v6179_v12  ;;  %v1756_v53 = vpop.f32.mrf.mxu0  ;;  %v6666_v5 = vpop.f32.mrf.mxu1  ;;  %6953 = vmatmul.mubr.bf16.gmra.mxu1 %v6123_v35  ;;  %v10558_v12 = vld [vmem:[#allocation28_spill] sm:$0xff] }
 0x16f   : > { %v9619_v60 = vadd.f32 %v1743_v9, %v1292_v28  ;;  %v1313_v44 = vadd.f32 %v6666_v5, %v10553_v38 }
 0x170   : > { %v6715_v39 = vpop.f32.mrf.mxu0  ;;  %v1304_v22 = vpop.f32.mrf.mxu1 }
 0x171   : > { %v9622_v6 = vadd.f32 %v6714_v51, %v1313_v44  ;;  %v1305_v2 = vadd.f32 %v1304_v22, %v10554_v3 }
 0x172   : > { %v1759_v10 = vpop.f32.mrf.mxu0  ;;  %v6667_v0 = vpop.f32.mrf.mxu1 }
 0x173   : > { %v9625_v61 = vadd.f32 %v1756_v53, %v1305_v2  ;;  %v1316_v37 = vadd.f32 %v6667_v0, %v10555_v18 }
 0x174   : > { %v6782_v33 = vpop.f32.mrf.mxu0  ;;  %v1307_v56 = vpop.f32.mrf.mxu1 }
 0x175   : > { %v9628_v29 = vadd.f32 %v6715_v39, %v1316_v37  ;;  %v1308_v49 = vadd.f32 %v1307_v56, %v10556_v21 }
 0x176   : > { %v2783_v14 = vpop.f32.mrf.mxu0  ;;  %v6734_v55 = vpop.f32.mrf.mxu1 }
 0x177   : > { %v9631_v47 = vadd.f32 %v1759_v10, %v1308_v49  ;;  %v2159_v45 = vadd.f32 %v6734_v55, %v10557_v1 }
 0x178   : > { %v6783_v23 = vpop.f32.mrf.mxu0  ;;  %v2030_v7 = vpop.f32.mrf.mxu1 }
 0x179   : > { %v9634_v57 = vadd.f32 %v6782_v33, %v2159_v45  ;;  %v2157_v30 = vadd.f32 %v2030_v7, %v10558_v12 }
 0x17a   : > { %v2786_v48 = vpop.f32.mrf.mxu0  ;;  %v6735_v32 = vpop.f32.mrf.mxu1 }
 0x17b   : > { %v9637_v9 = vadd.f32 %v2783_v14, %v2157_v30  ;;  %v2160_v35 = vadd.f32 %v6735_v32, %v10559_v58 }
 0x17c   : > { %v6786_v11 = vpop.f32.mrf.mxu0  ;;  %v2033_v4 = vpop.f32.mrf.mxu1 }
 0x17d   : > { %v9640_v51 = vadd.f32 %v6783_v23, %v2160_v35  ;;  %v2158_v17 = vadd.f32 %v2033_v4, %v9376_v25 }
 0x17e   : > { %v2799_v28 = vpop.f32.mrf.mxu0  ;;  %v6738_v53 = vpop.f32.mrf.mxu1 }
 0x17f   : > { %v9643_v5 = vadd.f32 %v2786_v48, %v2158_v17  ;;  %v2163_v38 = vadd.f32 %v6738_v53, %v9380_v42 }
 0x180   : > { %v6787_v44 = vpop.f32.mrf.mxu0  ;;  %v2046_v39 = vpop.f32.mrf.mxu1 }
 0x181   : > { %v9646_v22 = vadd.f32 %v6786_v11, %v2163_v38  ;;  %v2161_v3 = vadd.f32 %v2046_v39, %v9389_v16 }
 0x182   : > { %v2802_v2 = vpop.f32.mrf.mxu0  ;;  %v6739_v10 = vpop.f32.mrf.mxu1 }
 0x183   : > { %v9649_v0 = vadd.f32 %v2799_v28, %v2161_v3  ;;  %v2164_v18 = vadd.f32 %v6739_v10, %v9415_v54 }
 0x184   : > { %v6790_v37 = vpop.f32.mrf.mxu0  ;;  %v2049_v25 = vpop.f32.mrf.mxu1 }
 0x185   : > { %v9652_v33 = vadd.f32 %v6787_v44, %v2164_v18  ;;  %v2162_v56 = vadd.f32 %v2049_v25, %v9435_v15 }
 0x186   : > { %v2815_v21 = vpop.f32.mrf.mxu0  ;;  %v6742_v42 = vpop.f32.mrf.mxu1 }
 0x187   : > { %v9655_v49 = vadd.f32 %v2802_v2, %v2162_v56  ;;  %v2167_v14 = vadd.f32 %v6742_v42, %v9443_v8 }
 0x188   : > { %v6791_v55 = vpop.f32.mrf.mxu0  ;;  %v2062_v16 = vpop.f32.mrf.mxu1 }
 0x189   : > { %v9658_v1 = vadd.f32 %v6790_v37, %v2167_v14  ;;  %v2165_v45 = vadd.f32 %v2062_v16, %v9453_v46 }
 0x18a   : > { %v2818_v23 = vpop.f32.mrf.mxu0  ;;  %v6743_v54 = vpop.f32.mrf.mxu1 }
 0x18b   : > { %v9661_v7 = vadd.f32 %v2815_v21, %v2165_v45  ;;  %v2168_v12 = vadd.f32 %v6743_v54, %v9476_v24 }
 0x18c   : > { %v6794_v30 = vpop.f32.mrf.mxu0  ;;  %v2065_v15 = vpop.f32.mrf.mxu1 }
 0x18d   : > { %v9664_v48 = vadd.f32 %v6791_v55, %v2168_v12  ;;  %v2166_v32 = vadd.f32 %v2065_v15, %v9493_v19 }
 0x18e   : > { %v2831_v58 = vpop.f32.mrf.mxu0  ;;  %v6746_v8 = vpop.f32.mrf.mxu1 }
 0x18f   : > { %v9667_v35 = vadd.f32 %v2818_v23, %v2166_v32  ;;  %v2171_v11 = vadd.f32 %v6746_v8, %v9500_v43 }
 0x190   : > { %v6795_v4 = vpop.f32.mrf.mxu0  ;;  %v2078_v46 = vpop.f32.mrf.mxu1 }
 0x191   : > { %v9670_v17 = vadd.f32 %v6794_v30, %v2171_v11  ;;  %v2169_v28 = vadd.f32 %v2078_v46, %v9512_v62 }
 0x192   : > { %v2834_v53 = vpop.f32.mrf.mxu0  ;;  %v6747_v24 = vpop.f32.mrf.mxu1 }
 0x193   : > { %v9673_v38 = vadd.f32 %v2831_v58, %v2169_v28  ;;  %v2172_v44 = vadd.f32 %v6747_v24, %v9532_v20 }
 0x194   : > { %v6798_v39 = vpop.f32.mrf.mxu0  ;;  %v2081_v19 = vpop.f32.mrf.mxu1 }
 0x195   : > { %v9676_v3 = vadd.f32 %v6795_v4, %v2172_v44  ;;  %v2170_v2 = vadd.f32 %v2081_v19, %v9540_v13 }
 0x196   : > { %v2847_v10 = vpop.f32.mrf.mxu0  ;;  %v6750_v43 = vpop.f32.mrf.mxu1 }
 0x197   : > { %v9679_v18 = vadd.f32 %v2834_v53, %v2170_v2  ;;  %v2175_v37 = vadd.f32 %v6750_v43, %v9549_v26 }
 0x198   : > { %v6799_v25 = vpop.f32.mrf.mxu0  ;;  %v2094_v62 = vpop.f32.mrf.mxu1 }
 0x199   : > { %v9682_v56 = vadd.f32 %v6798_v39, %v2175_v37  ;;  %v2173_v21 = vadd.f32 %v2094_v62, %v9552_v52 }
 0x19a   : > { %v2850_v42 = vpop.f32.mrf.mxu0  ;;  %v6751_v20 = vpop.f32.mrf.mxu1 }
 0x19b   : > { %v9685_v14 = vadd.f32 %v2847_v10, %v2173_v21  ;;  %v2176_v55 = vadd.f32 %v6751_v20, %v9569_v63 }
 0x19c   : > { %v6802_v16 = vpop.f32.mrf.mxu0  ;;  %v2097_v13 = vpop.f32.mrf.mxu1 }
 0x19d   : > { %v9688_v45 = vadd.f32 %v6799_v25, %v2176_v55  ;;  %v2174_v23 = vadd.f32 %v2097_v13, %v9582_v34 }
 0x19e   : > { %v2863_v54 = vpop.f32.mrf.mxu0  ;;  %v6754_v26 = vpop.f32.mrf.mxu1 }
 0x19f   : > { %10560 = vst [vmem:[#allocation5_spill] sm:$0xff] %v9688_v45  ;;  %v9691_v12 = vadd.f32 %v2850_v42, %v2174_v23  ;;  %v2179_v30 = vadd.f32 %v6754_v26, %v9589_v50 }
 0x1a0   : > { %v6803_v15 = vpop.f32.mrf.mxu0  ;;  %v2110_v52 = vpop.f32.mrf.mxu1 }
 0x1a1   : > { %10561 = vst [vmem:[#allocation9_spill] sm:$0xff] %v9691_v12  ;;  %v9694_v32 = vadd.f32 %v6802_v16, %v2179_v30  ;;  %v2177_v58 = vadd.f32 %v2110_v52, %v9592_v36 }
 0x1a2   : > { %v2866_v8 = vpop.f32.mrf.mxu0  ;;  %v6755_v63 = vpop.f32.mrf.mxu1 }
 0x1a3   : > { %10562 = vst [vmem:[#allocation11_spill] sm:$0xff] %v9694_v32  ;;  %v9697_v11 = vadd.f32 %v2863_v54, %v2177_v58  ;;  %v2180_v4 = vadd.f32 %v6755_v63, %v9599_v31 }
 0x1a4   : > { %v6806_v46 = vpop.f32.mrf.mxu0  ;;  %v2113_v34 = vpop.f32.mrf.mxu1 }
 0x1a5   : > { %10563 = vst [vmem:[#allocation20_spill] sm:$0xff] %v9697_v11  ;;  %v9700_v28 = vadd.f32 %v6803_v15, %v2180_v4  ;;  %v2178_v53 = vadd.f32 %v2113_v34, %v9605_v40 }
 0x1a6   : > { %v2879_v24 = vpop.f32.mrf.mxu0  ;;  %v6758_v50 = vpop.f32.mrf.mxu1 }
 0x1a7   : > { %10564 = vst [vmem:[#allocation15_spill] sm:$0xff] %v9700_v28  ;;  %v9703_v44 = vadd.f32 %v2866_v8, %v2178_v53  ;;  %v2183_v39 = vadd.f32 %v6758_v50, %v9610_v41 }
 0x1a8   : > { %v6807_v19 = vpop.f32.mrf.mxu0  ;;  %v2126_v36 = vpop.f32.mrf.mxu1 }
 0x1a9   : > { %10565 = vst [vmem:[#allocation17_spill] sm:$0xff] %v9703_v44  ;;  %v9706_v2 = vadd.f32 %v6806_v46, %v2183_v39  ;;  %v2181_v10 = vadd.f32 %v2126_v36, %v9613_v59 }
 0x1aa   : > { %v2882_v43 = vpop.f32.mrf.mxu0  ;;  %v6759_v31 = vpop.f32.mrf.mxu1 }
 0x1ab   : > { %10566 = vst [vmem:[#allocation19_spill] sm:$0xff] %v9706_v2  ;;  %v9709_v37 = vadd.f32 %v2879_v24, %v2181_v10  ;;  %v2184_v25 = vadd.f32 %v6759_v31, %v9616_v27 }
 0x1ac   : > { %v6810_v62 = vpop.f32.mrf.mxu0  ;;  %v2129_v40 = vpop.f32.mrf.mxu1 }
 0x1ad   : > { %10567 = vst [vmem:[#allocation22_spill] sm:$0xff] %v9709_v37  ;;  %v9712_v21 = vadd.f32 %v6807_v19, %v2184_v25  ;;  %v2182_v42 = vadd.f32 %v2129_v40, %v9619_v60 }
 0x1ae   : > { %v2895_v20 = vpop.f32.mrf.mxu0  ;;  %v6762_v41 = vpop.f32.mrf.mxu1 }
 0x1af   : > { %10568 = vst [vmem:[#allocation4_spill] sm:$0xff] %v9712_v21  ;;  %v9715_v55 = vadd.f32 %v2882_v43, %v2182_v42  ;;  %v2187_v16 = vadd.f32 %v6762_v41, %v9622_v6 }
 0x1b0   : > { %v6811_v13 = vpop.f32.mrf.mxu0  ;;  %v2142_v59 = vpop.f32.mrf.mxu1 }
 0x1b1   : > { %10569 = vst [vmem:[#allocation7_spill] sm:$0xff] %v9715_v55  ;;  %v9718_v23 = vadd.f32 %v6810_v62, %v2187_v16  ;;  %v2185_v54 = vadd.f32 %v2142_v59, %v9625_v61 }
 0x1b2   : > { %v2898_v26 = vpop.f32.mrf.mxu0  ;;  %v6763_v27 = vpop.f32.mrf.mxu1 }
 0x1b3   : > { %10570 = vst [vmem:[#allocation6_spill] sm:$0xff] %v9718_v23  ;;  %v9721_v30 = vadd.f32 %v2895_v20, %v2185_v54  ;;  %v2188_v15 = vadd.f32 %v6763_v27, %v9628_v29 }
 0x1b4   : > { %v9724_v52 = vpop.f32.mrf.mxu0  ;;  %v2145_v60 = vpop.f32.mrf.mxu1 }
 0x1b5   : > { %10571 = vst [vmem:[#allocation8_spill] sm:$0xff] %v9721_v30  ;;  %v9726_v58 = vadd.f32 %v6811_v13, %v2188_v15  ;;  %v2186_v8 = vadd.f32 %v2145_v60, %v9631_v47 }
 0x1b6   : > { %v9729_v6 = vpop.f32.mrf.mxu0  ;;  %v6830_v63 = vpop.f32.mrf.mxu1 }
 0x1b7   : > { %10572 = vst [vmem:[#allocation10_spill] sm:$0xff] %v9726_v58  ;;  %v9731_v4 = vadd.f32 %v2898_v26, %v2186_v8 }
 0x1b8   : > { %v9733_v46 = vpop.f32.mrf.mxu0  ;;  %v3280_v61 = vpop.f32.mrf.mxu1 }
 0x1b9   : > { %10573 = vst [vmem:[#allocation12_spill] sm:$0xff] %v9731_v4 }
 0x1ba   : > { %v9735_v34 = vpop.f32.mrf.mxu0  ;;  %v6831_v53 = vpop.f32.mrf.mxu1 }
 0x1bc   : > { %v9737_v24 = vpop.f32.mrf.mxu0  ;;  %v3283_v29 = vpop.f32.mrf.mxu1 }
 0x1be   : > { %v9739_v50 = vpop.f32.mrf.mxu0  ;;  %v9741_v39 = vpop.f32.mrf.mxu1 }
 0x1c0   : > { %v9743_v19 = vpop.f32.mrf.mxu0  ;;  %v9745_v47 = vpop.f32.mrf.mxu1 }
 0x1c2   : > { %v9747_v36 = vpop.f32.mrf.mxu0  ;;  %v9749_v10 = vpop.f32.mrf.mxu1 }
 0x1c4   : > { %v9751_v43 = vpop.f32.mrf.mxu0  ;;  %v9753_v31 = vpop.f32.mrf.mxu1 }
 0x1c6   : > { %v9755_v25 = vpop.f32.mrf.mxu0  ;;  %v9757_v62 = vpop.f32.mrf.mxu1 }
 0x1c8   : > { %v9759_v40 = vpop.f32.mrf.mxu0  ;;  %v9761_v42 = vpop.f32.mrf.mxu1 }
 0x1ca   : > { %v9763_v20 = vpop.f32.mrf.mxu0  ;;  %v9765_v41 = vpop.f32.mrf.mxu1 }
 0x1cc   : > { %v9767_v16 = vpop.f32.mrf.mxu0  ;;  %v9769_v13 = vpop.f32.mrf.mxu1 }
 0x1ce   : > { %v9771_v59 = vpop.f32.mrf.mxu0  ;;  %v9773_v54 = vpop.f32.mrf.mxu1 }
 0x1d0   : > { %v9775_v26 = vpop.f32.mrf.mxu0  ;;  %v9777_v27 = vpop.f32.mrf.mxu1 }
 0x1d2   : > { %v9779_v15 = vpop.f32.mrf.mxu0  ;;  %v9781_v60 = vpop.f32.mrf.mxu1 }
 0x1d4   : > { %v9783_v8 = vpop.f32.mrf.mxu0  ;;  %v9785_v4 = vpop.f32.mrf.mxu1 }
 0x1d5   : > { %10574 = vst [vmem:[#allocation13_spill] sm:$0xff] %v9783_v8 }
 0x1d6   : > { %v9787_v58 = vpop.f32.mrf.mxu0  ;;  %v9789_v30 = vpop.f32.mrf.mxu1 }
 0x1d7   : > { %10575 = vst [vmem:[#allocation14_spill] sm:$0xff] %v9787_v58 }
 0x1d8   : > { %v9791_v23 = vpop.f32.mrf.mxu0  ;;  %v9793_v55 = vpop.f32.mrf.mxu1 }
 0x1d9   : > { %10576 = vst [vmem:[#allocation16_spill] sm:$0xff] %v9791_v23 }
 0x1da   : > { %v9795_v21 = vpop.f32.mrf.mxu0  ;;  %v9797_v37 = vpop.f32.mrf.mxu1 }
 0x1db   : > { %10577 = vst [vmem:[#allocation18_spill] sm:$0xff] %v9795_v21  ;;  %10578 = vst [vmem:[#allocation21_spill] sm:$0xff] %v9797_v37 }
 0x1dc   : > { %v9799_v2 = vpop.f32.mrf.mxu0  ;;  %v9801_v44 = vpop.f32.mrf.mxu1 }
 0x1dd   : > { %10579 = vst [vmem:[#allocation23_spill] sm:$0xff] %v9799_v2  ;;  %10580 = vst [vmem:[#allocation24_spill] sm:$0xff] %v9801_v44 }
 0x1de   : > { %v9803_v28 = vpop.f32.mrf.mxu0  ;;  %v9805_v11 = vpop.f32.mrf.mxu1 }
 0x1df   : > { %10581 = vst [vmem:[#allocation25_spill] sm:$0xff] %v9803_v28  ;;  %10582 = vst [vmem:[#allocation26_spill] sm:$0xff] %v9805_v11 }
 0x1e0   : > { %v9807_v32 = vpop.f32.mrf.mxu0  ;;  %v9809_v58 = vpop.f32.mrf.mxu1 }
 0x1e1   : > { %10583 = vst [vmem:[#allocation27_spill] sm:$0xff] %v9807_v32  ;;  %10584 = vst [vmem:[#allocation28_spill] sm:$0xff] %v9809_v58 }
 0x1e2   : > { %v9811_v8 = vpop.f32.mrf.mxu0  ;;  %v9813_v23 = vpop.f32.mrf.mxu1 }
 0x1e3   : > { %10585 = vst [vmem:[#allocation29_spill] sm:$0xff] %v9811_v8  ;;  %10586 = vst [vmem:[#allocation30_spill] sm:$0xff] %v9813_v23 }
 0x1e4   : > { %v9815_v12 = vpop.f32.mrf.mxu0  ;;  %v9817_v21 = vpop.f32.mrf.mxu1 }
 0x1e5   : > { %10587 = vst [vmem:[#allocation31_spill] sm:$0xff] %v9815_v12  ;;  %10588 = vst [vmem:[#allocation32_spill] sm:$0xff] %v9817_v21 }
 0x1e6   : > { %v9819_v37 = vpop.f32.mrf.mxu0  ;;  %v9821_v2 = vpop.f32.mrf.mxu1 }
 0x1e7   : > { %10589 = vst [vmem:[#allocation33_spill] sm:$0xff] %v9819_v37  ;;  %10590 = vst [vmem:[#allocation34_spill] sm:$0xff] %v9821_v2 }
 0x1e8   : > { %v9823_v44 = vpop.f32.mrf.mxu0  ;;  %v9825_v28 = vpop.f32.mrf.mxu1 }
 0x1e9   : > { %10591 = vst [vmem:[#allocation35_spill] sm:$0xff] %v9823_v44  ;;  %10592 = vst [vmem:[#allocation36_spill] sm:$0xff] %v9825_v28  ;;  %v3409_v44 = vadd.f32 %v6830_v63, %v9634_v57 }
 0x1ea   : > { %v9827_v11 = vpop.f32.mrf.mxu0  ;;  %v9829_v32 = vpop.f32.mrf.mxu1 }
 0x1eb   : > { %10593 = vst [vmem:[#allocation37_spill] sm:$0xff] %v9827_v11  ;;  %10594 = vst [vmem:[#allocation38_spill] sm:$0xff] %v9829_v32  ;;  %v3407_v32 = vadd.f32 %v3280_v61, %v9637_v9  ;;  %v9859_v9 = vld [vmem:[%s10395_s2] ss:$0 sm:$0xff] }
 0x1ec   : > { %v9831_v58 = vpop.f32.mrf.mxu0  ;;  %v9833_v8 = vpop.f32.mrf.mxu1 }
 0x1ed   : > { %10595 = vst [vmem:[#allocation39_spill] sm:$0xff] %v9831_v58  ;;  %10596 = vst [vmem:[#allocation40_spill] sm:$0xff] %v9833_v8 }
 0x1ee   : > { %v9835_v23 = vpop.f32.mrf.mxu0  ;;  %v9837_v12 = vpop.f32.mrf.mxu1 }
 0x1ef   : > { %10597 = vst [vmem:[#allocation41_spill] sm:$0xff] %v9835_v23  ;;  %10598 = vst [vmem:[#allocation42_spill] sm:$0xff] %v9837_v12  ;;  %v3795_v23 = vadd.f32 %v9724_v52, %v3409_v44  ;;  %v3410_v12 = vadd.f32 %v6831_v53, %v9640_v51  ;;  %v3413_v51 = vadd.f32 %v9741_v39, %v9646_v22 }
 0x1f0   : > { %v9839_v37 = vpop.f32.mrf.mxu0  ;;  %v9841_v2 = vpop.f32.mrf.mxu1 }
 0x1f1   : > { %10599 = vst [vmem:[#allocation43_spill] sm:$0xff] %v9839_v37  ;;  %10600 = vst [vmem:[#allocation44_spill] sm:$0xff] %v9841_v2  ;;  %v3408_v37 = vadd.f32 %v3283_v29, %v9643_v5  ;;  %v3793_v2 = vadd.f32 %v9729_v6, %v3407_v32 }
 0x1f2   : > { %v9844_v28 = vpop.f32.mrf.mxu0  ;;  %v9846_v11 = vpop.f32.mrf.mxu1 }
 0x1f3   : > { %10601 = vst [vmem:[#allocation45_spill] sm:$0xff] %v9844_v28  ;;  %10602 = vst [vmem:[#allocation46_spill] sm:$0xff] %v9846_v11  ;;  %v3796_v28 = vadd.f32 %v9733_v46, %v3410_v12  ;;  %v3794_v53 = vadd.f32 %v9735_v34, %v3408_v37  ;;  %v3799_v12 = vadd.f32 %v9737_v24, %v3413_v51 }
 0x1f4   : > { %v9849_v21 = vpop.f32.mrf.mxu1  ;;  %v3417_v46 = vadd.f32 %v9757_v62, %v9658_v1 }
 0x1f5   : > { %v6974_v58 = vpop.f32.mrf.mxu0  ;;  %10603 = vst [vmem:[#allocation47_spill] sm:$0xff] %v9849_v21 }
 0x1f6   : > { %v6926_v45 = vpop.f32.mrf.mxu1 }
 0x1f7   : > { %v4916_v8 = vpop.f32.mrf.mxu0  ;;  %v4548_v57 = vadd.f32 %v6926_v45, %v3795_v23  ;;  %v3411_v45 = vadd.f32 %v9745_v47, %v9649_v0  ;;  %v3414_v0 = vadd.f32 %v9749_v10, %v9652_v33  ;;  %v3418_v33 = vadd.f32 %v9765_v41, %v9664_v48 }
 0x1f8   : > { %v4419_v61 = vpop.f32.mrf.mxu1 }
 0x1f9   : > { %v6975_v63 = vpop.f32.mrf.mxu0  ;;  %v5045_v44 = vadd.f32 %v6974_v58, %v4548_v57  ;;  %v4546_v52 = vadd.f32 %v4419_v61, %v3793_v2  ;;  %v3797_v24 = vadd.f32 %v9739_v50, %v3411_v45  ;;  %v3415_v57 = vadd.f32 %v9761_v42, %v9661_v7 }
 0x1fa   : > { %v6927_v32 = vpop.f32.mrf.mxu1  ;;  %v3800_v62 = vadd.f32 %v9743_v19, %v3414_v0  ;;  %v3803_v61 = vadd.f32 %v9751_v43, %v3417_v46  ;;  %v3416_v19 = vadd.f32 %v9769_v13, %v9667_v35  ;;  %v3422_v0 = vadd.f32 %v9781_v60, %v9676_v3 }
 0x1fb   : > { %v4919_v5 = vpop.f32.mrf.mxu0  ;;  %v5084_v23 = vadd.f32 %v9859_v9, %v5045_v44  ;;  %v5043_v6 = vadd.f32 %v4916_v8, %v4546_v52  ;;  %v4549_v29 = vadd.f32 %v6927_v32, %v3796_v28  ;;  %v3412_v28 = vadd.f32 %v9753_v31, %v9655_v49 }
 0x1fc   : > { %v4422_v11 = vpop.f32.mrf.mxu1 }
 0x1fd   : > { %v6978_v21 = vpop.f32.mrf.mxu0  ;;  %5118 = vst [vmem:[%s9869_s14 + $0x10] sm:$0xff] %v5084_v23  ;;  %v5082_v22 = vadd.f32 %v9859_v9, %v5043_v6  ;;  %v5046_v2 = vadd.f32 %v6975_v63, %v4549_v29  ;;  %v4547_v37 = vadd.f32 %v4422_v11, %v3794_v53  ;;  %v3798_v63 = vadd.f32 %v9747_v36, %v3412_v28 }
 0x1fe   : > { %v6930_v34 = vpop.f32.mrf.mxu1  ;;  %v5191_v53 = vmul.f32 %v5084_v23, %v5084_v23 }
 0x1ff   : > { %v4932_v58 = vpop.f32.mrf.mxu0  ;;  %5116 = vst [vmem:[%s9869_s14] sm:$0xff] %v5082_v22  ;;  %v5085_v39 = vadd.f32 %v9859_v9, %v5046_v2  ;;  %v5044_v47 = vadd.f32 %v4919_v5, %v4547_v37  ;;  %v4552_v8 = vadd.f32 %v6930_v34, %v3799_v12  ;;  %v5189_v51 = vmul.f32 %v5082_v22, %v5082_v22 }
 0x200   : > { %v4435_v49 = vpop.f32.mrf.mxu1  ;;  %v3804_v5 = vadd.f32 %v9759_v40, %v3418_v33  ;;  %v3421_v12 = vadd.f32 %v9773_v54, %v9670_v17 }
 0x201   : > { %v6979_v11 = vpop.f32.mrf.mxu0  ;;  %5119 = vst [vmem:[%s9869_s14 + $0x18] sm:$0xff] %v5085_v39  ;;  %v5083_v1 = vadd.f32 %v9859_v9, %v5044_v47  ;;  %v5049_v10 = vadd.f32 %v6978_v21, %v4552_v8  ;;  %v4550_v31 = vadd.f32 %v4435_v49, %v3797_v24  ;;  %v3801_v21 = vadd.f32 %v9755_v25, %v3415_v57 }
 0x202   : > { %v6931_v44 = vpop.f32.mrf.mxu1  ;;  %v3419_v25 = vadd.f32 %v9777_v27, %v9673_v38  ;;  %v5192_v35 = vmul.f32 %v5085_v39, %v5085_v39  ;;  %v3802_v8 = vadd.f32 %v9763_v20, %v3416_v19  ;;  %v3423_v19 = vadd.f32 %v9793_v55, %v9685_v14 }
 0x203   : > { %v4935_v50 = vpop.f32.mrf.mxu0  ;;  %5117 = vst [vmem:[%s9869_s14 + $0x8] sm:$0xff] %v5083_v1  ;;  %v5149_v7 = vadd.f32 %v5083_v1, %v5082_v22  ;;  %v5190_v42 = vmul.f32 %v5083_v1, %v5083_v1  ;;  %v5088_v48 = vadd.f32 %v9859_v9, %v5049_v10  ;;  %v5047_v41 = vadd.f32 %v4932_v58, %v4550_v31 }
 0x204   : > { %v4553_v36 = vadd.f32 %v6931_v44, %v3800_v62  ;;  %v4438_v43 = vpop.f32.mrf.mxu1  ;;  %v3807_v10 = vadd.f32 %v9767_v16, %v3421_v12  ;;  %v3805_v31 = vadd.f32 %v9771_v59, %v3419_v25  ;;  %v10606_v12 = vld [vmem:[#allocation9_spill] sm:$0xff]  ;;  %v10607_v25 = vld [vmem:[#allocation24_spill] sm:$0xff] }
 0x205   : > { %v6982_v52 = vpop.f32.mrf.mxu0  ;;  %v5150_v32 = vadd.f32 %v5149_v7, %v5084_v23  ;;  %v5221_v45 = vadd.f32 %v5190_v42, %v5189_v51  ;;  %5122 = vst [vmem:[%s9869_s14 + $0x30] sm:$0xff] %v5088_v48  ;;  %v5086_v6 = vadd.f32 %v9859_v9, %v5047_v41  ;;  %v4551_v22 = vadd.f32 %v4438_v43, %v3798_v63 }
 0x206   : > { %v5050_v40 = vadd.f32 %v6979_v11, %v4553_v36  ;;  %v6934_v2 = vpop.f32.mrf.mxu1  ;;  %v5195_v7 = vmul.f32 %v5088_v48, %v5088_v48  ;;  %v3425_v41 = vadd.f32 %v9789_v30, %v9682_v56 }
 0x207   : > { %v4948_v29 = vpop.f32.mrf.mxu0  ;;  %v5222_v13 = vadd.f32 %v5221_v45, %v5191_v53  ;;  %5120 = vst [vmem:[%s9869_s14 + $0x20] sm:$0xff] %v5086_v6  ;;  %v5151_v37 = vadd.f32 %v5150_v32, %v5085_v39  ;;  %v4556_v23 = vadd.f32 %v6934_v2, %v3803_v61  ;;  %v5193_v28 = vmul.f32 %v5086_v6, %v5086_v6  ;;  %v10605_v32 = vld [vmem:[#allocation21_spill] sm:$0xff] }
 0x208   : > { %v5089_v46 = vadd.f32 %v9859_v9, %v5050_v40  ;;  %v5048_v17 = vadd.f32 %v4935_v50, %v4551_v22  ;;  %v4451_v54 = vpop.f32.mrf.mxu1  ;;  %v3420_v39 = vadd.f32 %v9785_v4, %v9679_v18  ;;  %v3808_v4 = vadd.f32 %v9775_v26, %v3422_v0  ;;  %v10608_v0 = vld [vmem:[#allocation13_spill] sm:$0xff] }
 0x209   : > { %v6983_v58 = vpop.f32.mrf.mxu0  ;;  %v5152_v34 = vadd.f32 %v5151_v37, %v5086_v6  ;;  %v5223_v38 = vadd.f32 %v5222_v13, %v5192_v35  ;;  %v5053_v27 = vadd.f32 %v6982_v52, %v4556_v23  ;;  %v4554_v24 = vadd.f32 %v4451_v54, %v3801_v21 }
 0x20a   : > { %5123 = vst [vmem:[%s9869_s14 + $0x38] sm:$0xff] %v5089_v46  ;;  %v5087_v3 = vadd.f32 %v9859_v9, %v5048_v17  ;;  %v6935_v60 = vpop.f32.mrf.mxu1  ;;  %v3806_v44 = vadd.f32 %v9779_v15, %v3420_v39  ;;  %v5196_v36 = vmul.f32 %v5089_v46, %v5089_v46  ;;  %v3424_v40 = vadd.f32 %v10607_v25, %v10606_v12  ;;  %v10620_v25 = vld [vmem:[#allocation23_spill] sm:$0xff] }
 0x20b   : > { %v4951_v47 = vpop.f32.mrf.mxu0  ;;  %v5224_v11 = vadd.f32 %v5223_v38, %v5193_v28  ;;  %v5092_v57 = vadd.f32 %v9859_v9, %v5053_v27  ;;  %v5051_v33 = vadd.f32 %v4948_v29, %v4554_v24  ;;  %v4557_v49 = vadd.f32 %v6935_v60, %v3804_v5  ;;  %v10610_v27 = vld [vmem:[#allocation16_spill] sm:$0xff]  ;;  %v10611_v60 = vld [vmem:[#allocation18_spill] sm:$0xff] }
 0x20c   : > { %5121 = vst [vmem:[%s9869_s14 + $0x28] sm:$0xff] %v5087_v3  ;;  %v5153_v20 = vadd.f32 %v5152_v34, %v5087_v3  ;;  %v5194_v50 = vmul.f32 %v5087_v3, %v5087_v3  ;;  %v4454_v18 = vpop.f32.mrf.mxu1  ;;  %v3811_v28 = vadd.f32 %v10608_v0, %v3425_v41  ;;  %v10617_v41 = vld [vmem:[#allocation30_spill] sm:$0xff] }
 0x20d   : > { %v6986_v1 = vpop.f32.mrf.mxu0  ;;  %5126 = vst [vmem:[%s9869_s14 + $0x50] sm:$0xff] %v5092_v57  ;;  %v5090_v62 = vadd.f32 %v9859_v9, %v5051_v33  ;;  %v5054_v63 = vadd.f32 %v6983_v58, %v4557_v49  ;;  %v4555_v61 = vadd.f32 %v4454_v18, %v3802_v8  ;;  %v5199_v33 = vmul.f32 %v5092_v57, %v5092_v57 }
 0x20e   : > { %v5154_v16 = vadd.f32 %v5153_v20, %v5088_v48  ;;  %v5225_v42 = vadd.f32 %v5224_v11, %v5194_v50  ;;  %v6938_v59 = vpop.f32.mrf.mxu1  ;;  %v10604_v48 = vld [vmem:[#allocation5_spill] sm:$0xff]  ;;  %v3810_v11 = vadd.f32 %v10611_v60, %v3424_v40  ;;  %v10613_v20 = vld [vmem:[#allocation26_spill] sm:$0xff]  ;;  %v10624_v60 = vld [vmem:[#allocation19_spill] sm:$0xff] }
 0x20f   : > { %v4964_v51 = vpop.f32.mrf.mxu0  ;;  %5124 = vst [vmem:[%s9869_s14 + $0x40] sm:$0xff] %v5090_v62  ;;  %v5093_v52 = vadd.f32 %v9859_v9, %v5054_v63  ;;  %v5052_v26 = vadd.f32 %v4951_v47, %v4555_v61  ;;  %v4560_v21 = vadd.f32 %v6938_v59, %v3807_v10  ;;  %v3426_v45 = vadd.f32 %v10605_v32, %v10604_v48  ;;  %v10614_v61 = vld [vmem:[#allocation20_spill] sm:$0xff] }
 0x210   : > { %v5226_v15 = vadd.f32 %v5225_v42, %v5195_v7  ;;  %v5155_v43 = vadd.f32 %v5154_v16, %v5089_v46  ;;  %v4467_v53 = vpop.f32.mrf.mxu1  ;;  %v5197_v14 = vmul.f32 %v5090_v62, %v5090_v62  ;;  %v10609_v46 = vld [vmem:[#allocation14_spill] sm:$0xff] }
 0x211   : > { %v6987_v5 = vpop.f32.mrf.mxu0  ;;  %5127 = vst [vmem:[%s9869_s14 + $0x58] sm:$0xff] %v5093_v52  ;;  %v5091_v56 = vadd.f32 %v9859_v9, %v5052_v26  ;;  %v5057_v30 = vadd.f32 %v6986_v1, %v4560_v21  ;;  %v4558_v6 = vadd.f32 %v4467_v53, %v3805_v31  ;;  %v3809_v17 = vadd.f32 %v10609_v46, %v3423_v19  ;;  %v10612_v31 = vld [vmem:[#allocation11_spill] sm:$0xff] }
 0x212   : > { %v5156_v22 = vadd.f32 %v5155_v43, %v5090_v62  ;;  %v5227_v55 = vadd.f32 %v5226_v15, %v5196_v36  ;;  %v6939_v2 = vpop.f32.mrf.mxu1  ;;  %v3812_v24 = vadd.f32 %v10610_v27, %v3426_v45  ;;  %v3429_v50 = vadd.f32 %v10613_v20, %v10612_v31  ;;  %v10618_v15 = vld [vmem:[#allocation17_spill] sm:$0xff]  ;;  %v10619_v43 = vld [vmem:[#allocation32_spill] sm:$0xff]  ;;  %v10626_v20 = vld [vmem:[#allocation22_spill] sm:$0xff] }
 0x213   : > { %v4967_v29 = vpop.f32.mrf.mxu0  ;;  %5125 = vst [vmem:[%s9869_s14 + $0x48] sm:$0xff] %v5091_v56  ;;  %v5198_v35 = vmul.f32 %v5091_v56, %v5091_v56  ;;  %v5096_v13 = vadd.f32 %v9859_v9, %v5057_v30  ;;  %v5055_v37 = vadd.f32 %v4964_v51, %v4558_v6  ;;  %v4561_v23 = vadd.f32 %v6939_v2, %v3808_v4  ;;  %v10615_v51 = vld [vmem:[#allocation28_spill] sm:$0xff]  ;;  %v10621_v2 = vld [vmem:[#allocation25_spill] sm:$0xff] }
 0x214   : > { %v5228_v54 = vadd.f32 %v5227_v55, %v5197_v14  ;;  %v5157_v34 = vadd.f32 %v5156_v22, %v5091_v56  ;;  %v4470_v38 = vpop.f32.mrf.mxu1  ;;  %v5200_v7 = vmul.f32 %v5093_v52, %v5093_v52  ;;  %v3428_v53 = vadd.f32 %v10619_v43, %v10618_v15  ;;  %v10623_v27 = vld [vmem:[#allocation29_spill] sm:$0xff] }
 0x215   : > { %5130 = vst [vmem:[%s9869_s14 + $0x70] sm:$0xff] %v5096_v13  ;;  %v5094_v47 = vadd.f32 %v9859_v9, %v5055_v37  ;;  %v5058_v8 = vadd.f32 %v6987_v5, %v4561_v23  ;;  %v4559_v39 = vadd.f32 %v4470_v38, %v3806_v44  ;;  %v3427_v44 = vadd.f32 %v10615_v51, %v10614_v61  ;;  %v10628_v51 = vld [vmem:[#allocation4_spill] sm:$0xff] }
 0x216   : > { %v6990_v58 = vpop.f32.mrf.mxu0  ;;  %v5158_v49 = vadd.f32 %v5157_v34, %v5092_v57  ;;  %v5229_v1 = vadd.f32 %v5228_v54, %v5198_v35  ;;  %v6942_v10 = vpop.f32.mrf.mxu1  ;;  %v10616_v57 = vld [vmem:[#allocation15_spill] sm:$0xff]  ;;  %v3815_v40 = vadd.f32 %v10620_v25, %v3429_v50 }
 0x217   : > { %5128 = vst [vmem:[%s9869_s14 + $0x60] sm:$0xff] %v5094_v47  ;;  %v5097_v18 = vadd.f32 %v9859_v9, %v5058_v8  ;;  %v5056_v4 = vadd.f32 %v4967_v29, %v4559_v39  ;;  %v4564_v62 = vadd.f32 %v6942_v10, %v3811_v28  ;;  %v3430_v26 = vadd.f32 %v10617_v41, %v10616_v57  ;;  %v10622_v28 = vld [vmem:[#allocation27_spill] sm:$0xff] }
 0x218   : > { %v4980_v3 = vpop.f32.mrf.mxu0  ;;  %v5230_v16 = vadd.f32 %v5229_v1, %v5199_v33  ;;  %v5159_v42 = vadd.f32 %v5158_v49, %v5093_v52  ;;  %v4483_v59 = vpop.f32.mrf.mxu1  ;;  %v5201_v32 = vmul.f32 %v5094_v47, %v5094_v47  ;;  %v3813_v35 = vadd.f32 %v10621_v2, %v3427_v44  ;;  %v10625_v33 = vld [vmem:[#allocation34_spill] sm:$0xff]  ;;  %v10634_v2 = vld [vmem:[#allocation35_spill] sm:$0xff] }
 0x219   : > { %5131 = vst [vmem:[%s9869_s14 + $0x78] sm:$0xff] %v5097_v18  ;;  %v5095_v21 = vadd.f32 %v9859_v9, %v5056_v4  ;;  %v5061_v5 = vadd.f32 %v6990_v58, %v4564_v62  ;;  %v4562_v19 = vadd.f32 %v4483_v59, %v3809_v17  ;;  %v3816_v46 = vadd.f32 %v10622_v28, %v3430_v26  ;;  %v10629_v44 = vld [vmem:[#allocation38_spill] sm:$0xff] }
 0x21a   : > { %v6991_v63 = vpop.f32.mrf.mxu0  ;;  %v5160_v48 = vadd.f32 %v5159_v42, %v5094_v47  ;;  %v5231_v45 = vadd.f32 %v5230_v16, %v5200_v7  ;;  %v6943_v56 = vpop.f32.mrf.mxu1  ;;  %v5203_v17 = vmul.f32 %v5096_v13, %v5096_v13  ;;  %v3433_v49 = vadd.f32 %v10625_v33, %v10624_v60  ;;  %v10635_v28 = vld [vmem:[#allocation6_spill] sm:$0xff]  ;;  %v10638_v33 = vld [vmem:[#allocation8_spill] sm:$0xff] }
 0x21b   : > { %5129 = vst [vmem:[%s9869_s14 + $0x68] sm:$0xff] %v5095_v21  ;;  %v5202_v52 = vmul.f32 %v5095_v21, %v5095_v21  ;;  %v5100_v30 = vadd.f32 %v9859_v9, %v5061_v5  ;;  %v5059_v6 = vadd.f32 %v4980_v3, %v4562_v19  ;;  %v4565_v29 = vadd.f32 %v6943_v56, %v3812_v24  ;;  %v10630_v19 = vld [vmem:[#allocation31_spill] sm:$0xff] }
 0x21c   : > { %v4983_v36 = vpop.f32.mrf.mxu0  ;;  %v5232_v22 = vadd.f32 %v5231_v45, %v5201_v32  ;;  %v5161_v14 = vadd.f32 %v5160_v48, %v5095_v21  ;;  %v4486_v55 = vpop.f32.mrf.mxu1  ;;  %v3814_v24 = vadd.f32 %v10623_v27, %v3428_v53  ;;  %v3434_v7 = vadd.f32 %v10629_v44, %v10628_v51  ;;  %v10631_v48 = vld [vmem:[#allocation7_spill] sm:$0xff]  ;;  %v10632_v32 = vld [vmem:[#allocation40_spill] sm:$0xff] }
 0x21d   : > { %5134 = vst [vmem:[%s9869_s14 + $0x90] sm:$0xff] %v5100_v30  ;;  %v5098_v37 = vadd.f32 %v9859_v9, %v5059_v6  ;;  %v5062_v23 = vadd.f32 %v6991_v63, %v4565_v29  ;;  %v4563_v58 = vadd.f32 %v4486_v55, %v3810_v11  ;;  %v5204_v11 = vmul.f32 %v5097_v18, %v5097_v18 }
 0x21e   : > { %v6994_v12 = vpop.f32.mrf.mxu0  ;;  %v5162_v54 = vadd.f32 %v5161_v14, %v5096_v13  ;;  %v5233_v34 = vadd.f32 %v5232_v22, %v5202_v52  ;;  %v6946_v38 = vpop.f32.mrf.mxu1  ;;  %v10627_v13 = vld [vmem:[#allocation36_spill] sm:$0xff]  ;;  %v3432_v45 = vadd.f32 %v10632_v32, %v10631_v48  ;;  %v10645_v32 = vld [vmem:[#allocation41_spill] sm:$0xff] }
 0x21f   : > { %5132 = vst [vmem:[%s9869_s14 + $0x80] sm:$0xff] %v5098_v37  ;;  %v5101_v47 = vadd.f32 %v9859_v9, %v5062_v23  ;;  %v5060_v8 = vadd.f32 %v4983_v36, %v4563_v58  ;;  %v4568_v39 = vadd.f32 %v6946_v38, %v3815_v40  ;;  %v3431_v50 = vadd.f32 %v10627_v13, %v10626_v20 }
 0x220   : > { %v4996_v0 = vpop.f32.mrf.mxu0  ;;  %v5234_v1 = vadd.f32 %v5233_v34, %v5203_v17  ;;  %v5163_v10 = vadd.f32 %v5162_v54, %v5097_v18  ;;  %v4499_v31 = vpop.f32.mrf.mxu1  ;;  %v5205_v42 = vmul.f32 %v5098_v37, %v5098_v37  ;;  %v3819_v36 = vadd.f32 %v10630_v19, %v3433_v49  ;;  %v10639_v49 = vld [vmem:[#allocation44_spill] sm:$0xff] }
 0x221   : > { %5135 = vst [vmem:[%s9869_s14 + $0x98] sm:$0xff] %v5101_v47  ;;  %v5099_v4 = vadd.f32 %v9859_v9, %v5060_v8  ;;  %v5065_v62 = vadd.f32 %v6994_v12, %v4568_v39  ;;  %v4566_v63 = vadd.f32 %v4499_v31, %v3813_v35  ;;  %v10633_v12 = vld [vmem:[#allocation33_spill] sm:$0xff]  ;;  %v5207_v40 = vmul.f32 %v5100_v30, %v5100_v30 }
 0x222   : > { %v6995_v3 = vpop.f32.mrf.mxu0  ;;  %v5164_v16 = vadd.f32 %v5163_v10, %v5098_v37  ;;  %v5235_v59 = vadd.f32 %v5234_v1, %v5204_v11  ;;  %v6947_v57 = vpop.f32.mrf.mxu1  ;;  %v3817_v25 = vadd.f32 %v10633_v12, %v3431_v50  ;;  %v3820_v35 = vadd.f32 %v10634_v2, %v3434_v7 }
 0x223   : > { %5133 = vst [vmem:[%s9869_s14 + $0x88] sm:$0xff] %v5099_v4  ;;  %v5206_v18 = vmul.f32 %v5099_v4, %v5099_v4  ;;  %v5104_v41 = vadd.f32 %v9859_v9, %v5065_v62  ;;  %v5063_v26 = vadd.f32 %v4996_v0, %v4566_v63  ;;  %v4569_v21 = vadd.f32 %v6947_v57, %v3816_v46  ;;  %v10636_v46 = vld [vmem:[#allocation42_spill] sm:$0xff]  ;;  %v10640_v63 = vld [vmem:[#allocation39_spill] sm:$0xff] }
 0x224   : > { %v4999_v61 = vpop.f32.mrf.mxu0  ;;  %v5236_v15 = vadd.f32 %v5235_v59, %v5205_v42  ;;  %v5165_v43 = vadd.f32 %v5164_v16, %v5099_v4  ;;  %v4502_v53 = vpop.f32.mrf.mxu1  ;;  %v3437_v17 = vadd.f32 %v10636_v46, %v10635_v28  ;;  %v5208_v54 = vmul.f32 %v5101_v47, %v5101_v47  ;;  %v10641_v16 = vld [vmem:[#allocation10_spill] sm:$0xff] }
 0x225   : > { %5138 = vst [vmem:[%s9869_s14 + $0xb0] sm:$0xff] %v5104_v41  ;;  %v5102_v56 = vadd.f32 %v9859_v9, %v5063_v26  ;;  %v5066_v52 = vadd.f32 %v6995_v3, %v4569_v21  ;;  %v4567_v6 = vadd.f32 %v4502_v53, %v3814_v24  ;;  %v10637_v24 = vld [vmem:[#allocation37_spill] sm:$0xff]  ;;  %v3435_v11 = vadd.f32 %v10639_v49, %v10638_v33  ;;  %v10642_v42 = vld [vmem:[#allocation46_spill] sm:$0xff]  ;;  %v10643_v21 = vld [vmem:[#allocation12_spill] sm:$0xff] }
 0x226   : > { %v6998_v5 = vpop.f32.mrf.mxu0  ;;  %v5166_v22 = vadd.f32 %v5165_v43, %v5100_v30  ;;  %v5237_v14 = vadd.f32 %v5236_v15, %v5206_v18  ;;  %v6950_v55 = vpop.f32.mrf.mxu1  ;;  %v3818_v30 = vadd.f32 %v10637_v24, %v3432_v45  ;;  %v3438_v59 = vadd.f32 %v10642_v42, %v10641_v16 }
 0x227   : > { %5136 = vst [vmem:[%s9869_s14 + $0xa0] sm:$0xff] %v5102_v56  ;;  %v5105_v37 = vadd.f32 %v9859_v9, %v5066_v52  ;;  %v5064_v23 = vadd.f32 %v4999_v61, %v4567_v6  ;;  %v4572_v58 = vadd.f32 %v6950_v55, %v3819_v36  ;;  %v5209_v10 = vmul.f32 %v5102_v56, %v5102_v56 }
 0x228   : > { %v5012_v29 = vpop.f32.mrf.mxu0  ;;  %v5238_v34 = vadd.f32 %v5237_v14, %v5207_v40  ;;  %v5167_v38 = vadd.f32 %v5166_v22, %v5101_v47  ;;  %v4515_v27 = vpop.f32.mrf.mxu1  ;;  %v3823_v61 = vadd.f32 %v10640_v63, %v3437_v17  ;;  %v5211_v36 = vmul.f32 %v5104_v41, %v5104_v41  ;;  %v10646_v22 = vld [vmem:[#allocation43_spill] sm:$0xff] }
 0x229   : > { %5139 = vst [vmem:[%s9869_s14 + $0xb8] sm:$0xff] %v5105_v37  ;;  %v5103_v8 = vadd.f32 %v9859_v9, %v5064_v23  ;;  %v5069_v39 = vadd.f32 %v6998_v5, %v4572_v58  ;;  %v4570_v3 = vadd.f32 %v4515_v27, %v3817_v25  ;;  %v10644_v5 = vld [vmem:[#allocation47_spill] sm:$0xff]  ;;  %v3821_v45 = vadd.f32 %v10645_v32, %v3435_v11 }
 0x22a   : > { %v6999_v0 = vpop.f32.mrf.mxu0  ;;  %v5168_v1 = vadd.f32 %v5167_v38, %v5102_v56  ;;  %v5239_v31 = vadd.f32 %v5238_v34, %v5208_v54  ;;  %v6951_v20 = vpop.f32.mrf.mxu1  ;;  %v3436_v19 = vadd.f32 %v10644_v5, %v10643_v21  ;;  %v3824_v14 = vadd.f32 %v10646_v22, %v3438_v59 }
 0x22b   : > { %5137 = vst [vmem:[%s9869_s14 + $0xa8] sm:$0xff] %v5103_v8  ;;  %v5210_v13 = vmul.f32 %v5103_v8, %v5103_v8  ;;  %v5108_v47 = vadd.f32 %v9859_v9, %v5069_v39  ;;  %v5067_v50 = vadd.f32 %v5012_v29, %v4570_v3  ;;  %v4573_v4 = vadd.f32 %v6951_v20, %v3820_v35  ;;  %v10647_v35 = vld [vmem:[#allocation45_spill] sm:$0xff] }
 0x22c   : > { %v5015_v60 = vpop.f32.mrf.mxu0  ;;  %v5240_v51 = vadd.f32 %v5239_v31, %v5209_v10  ;;  %v5169_v44 = vadd.f32 %v5168_v1, %v5103_v8  ;;  %v4518_v7 = vpop.f32.mrf.mxu1  ;;  %v5212_v29 = vmul.f32 %v5105_v37, %v5105_v37  ;;  %v3822_v23 = vadd.f32 %v10647_v35, %v3436_v19 }
 0x22d   : > { %5142 = vst [vmem:[%s9869_s14 + $0xd0] sm:$0xff] %v5108_v47  ;;  %v5106_v57 = vadd.f32 %v9859_v9, %v5067_v50  ;;  %v5070_v18 = vadd.f32 %v6999_v0, %v4573_v4  ;;  %v4571_v26 = vadd.f32 %v4518_v7, %v3818_v30 }
 0x22e   : > { %v7002_v62 = vpop.f32.mrf.mxu0  ;;  %v5170_v15 = vadd.f32 %v5169_v44, %v5104_v41  ;;  %v5241_v43 = vadd.f32 %v5240_v51, %v5210_v13  ;;  %v6954_v53 = vpop.f32.mrf.mxu1 }
 0x22f   : > { %5140 = vst [vmem:[%s9869_s14 + $0xc0] sm:$0xff] %v5106_v57  ;;  %v5109_v56 = vadd.f32 %v9859_v9, %v5070_v18  ;;  %v5068_v52 = vadd.f32 %v5015_v60, %v4571_v26  ;;  %v4576_v6 = vadd.f32 %v6954_v53, %v3823_v61  ;;  %v5213_v0 = vmul.f32 %v5106_v57, %v5106_v57 }
 0x230   : > { %v5028_v48 = vpop.f32.mrf.mxu0  ;;  %v5242_v12 = vadd.f32 %v5241_v43, %v5211_v36  ;;  %v5171_v25 = vadd.f32 %v5170_v15, %v5105_v37  ;;  %v4531_v40 = vpop.f32.mrf.mxu1  ;;  %v5215_v60 = vmul.f32 %v5108_v47, %v5108_v47 }
 0x231   : > { %5143 = vst [vmem:[%s9869_s14 + $0xd8] sm:$0xff] %v5109_v56  ;;  %v5107_v41 = vadd.f32 %v9859_v9, %v5068_v52  ;;  %v5073_v55 = vadd.f32 %v7002_v62, %v4576_v6  ;;  %v4574_v2 = vadd.f32 %v4531_v40, %v3821_v45  ;;  %v5216_v31 = vmul.f32 %v5109_v56, %v5109_v56 }
 0x232   : > { %v5172_v58 = vadd.f32 %v5171_v25, %v5106_v57  ;;  %v5243_v28 = vadd.f32 %v5242_v12, %v5212_v29  ;;  %v6955_v46 = vpop.f32.mrf.mxu1  ;;  %v7003_v17 = vpop.f32.mrf.mxu0 }
 0x233   : > { %5141 = vst [vmem:[%s9869_s14 + $0xc8] sm:$0xff] %v5107_v41  ;;  %v5214_v54 = vmul.f32 %v5107_v41, %v5107_v41  ;;  %v5112_v37 = vadd.f32 %v9859_v9, %v5073_v55  ;;  %v5071_v34 = vadd.f32 %v5028_v48, %v4574_v2  ;;  %v4577_v38 = vadd.f32 %v6955_v46, %v3824_v14  ;;  %v5148_v48 = vld [vmem:[#allocation3] sm:$0x1] }
 0x234   : > { %v5244_v27 = vadd.f32 %v5243_v28, %v5213_v0  ;;  %v5173_v24 = vadd.f32 %v5172_v58, %v5107_v41  ;;  %v4534_v30 = vpop.f32.mrf.mxu1  ;;  %v5031_v11 = vpop.f32.mrf.mxu0 }
 0x235   : > { %5146 = vst [vmem:[%s9869_s14 + $0xf0] sm:$0xff] %v5112_v37  ;;  %v5110_v8 = vadd.f32 %v9859_v9, %v5071_v34  ;;  %v5074_v39 = vadd.f32 %v7003_v17, %v4577_v38  ;;  %v4575_v3 = vadd.f32 %v4534_v30, %v3822_v23 }
 0x236   : > { %v5174_v33 = vadd.f32 %v5173_v24, %v5108_v47  ;;  %v5245_v49 = vadd.f32 %v5244_v27, %v5214_v54  ;;  %v5219_v47 = vmul.f32 %v5112_v37, %v5112_v37 }
 0x237   : > { %5144 = vst [vmem:[%s9869_s14 + $0xe0] sm:$0xff] %v5110_v8  ;;  %v5113_v1 = vadd.f32 %v9859_v9, %v5074_v39  ;;  %v5072_v10 = vadd.f32 %v5031_v11, %v4575_v3  ;;  %v5217_v62 = vmul.f32 %v5110_v8, %v5110_v8 }
 0x238   : > { %v5246_v20 = vadd.f32 %v5245_v49, %v5215_v60  ;;  %v5175_v13 = vadd.f32 %v5174_v33, %v5109_v56  ;;  %v5188_v56 = vld [vmem:[#allocation3 + $0x1] sm:$0x1] }
 0x239   : > { %5147 = vst [vmem:[%s9869_s14 + $0xf8] sm:$0xff] %v5113_v1  ;;  %v5111_v50 = vadd.f32 %v9859_v9, %v5072_v10  ;;  %v5220_v42 = vmul.f32 %v5113_v1, %v5113_v1 }
 0x23a   : > { %v5176_v4 = vadd.f32 %v5175_v13, %v5110_v8  ;;  %v5247_v63 = vadd.f32 %v5246_v20, %v5216_v31 }
 0x23b   : > { %5145 = vst [vmem:[%s9869_s14 + $0xe8] sm:$0xff] %v5111_v50  ;;  %v5218_v61 = vmul.f32 %v5111_v50, %v5111_v50 }
 0x23c   : > { %v5248_v51 = vadd.f32 %v5247_v63, %v5217_v62  ;;  %v5177_v44 = vadd.f32 %v5176_v4, %v5111_v50 }
 0x23e   : > { %v5178_v7 = vadd.f32 %v5177_v44, %v5112_v37  ;;  %v5249_v16 = vadd.f32 %v5248_v51, %v5218_v61 }
 0x240   : > { %v5179_v59 = vadd.f32 %v5178_v7, %v5113_v1  ;;  %v5250_v57 = vadd.f32 %v5249_v16, %v5219_v47 }
 0x242   : > { %v5180_v18 = vrot.slane %v5179_v59, 4  ;;  %v5251_v26 = vadd.f32 %v5250_v57, %v5220_v42 }
 0x244   : > { %v5181_v21 = vadd.f32 %v5180_v18, %v5179_v59  ;;  %v5252_v5 = vrot.slane %v5251_v26, 4 }
 0x246   : > { %v5182_v19 = vrot.slane %v5181_v21, 2  ;;  %v5253_v36 = vadd.f32 %v5252_v5, %v5251_v26 }
 0x248   : > { %v5183_v9 = vadd.f32 %v5182_v19, %v5181_v21  ;;  %v5254_v15 = vrot.slane %v5253_v36, 2 }
 0x24a   : > { %v5184_v43 = vrot.slane %v5183_v9, 1  ;;  %v5255_v53 = vadd.f32 %v5254_v15, %v5253_v36 }
 0x24c   : > { %v5185_v32 = vadd.f32 %v5184_v43, %v5183_v9  ;;  %v5256_v45 = vrot.slane %v5255_v53, 1 }
 0x24e   : > { %v5186_v52 = vadd.f32 %v5185_v32, %v5148_v48  ;;  %v5257_v6 = vadd.f32 %v5256_v45, %v5255_v53 }
 0x250   : > { %5187 = vst [vmem:[#allocation3] sm:$0x1] %v5186_v52  ;;  %v5258_v29 = vadd.f32 %v5257_v6, %v5188_v56 }
 0x252   : > { %5259 = vst [vmem:[#allocation3 + $0x1] sm:$0x1] %v5258_v29 }
 0x253 PF: > { %p6190_p11 = scmp.ne.s32.totalorder %s7219_s19, 1 }
 0x254   : > { %s6191_s15 = sshll.u32 (!%p6190_p11), %s7215_s18, 8 }
 0x255   : > { %5263 = sbr.rel (%p6190_p11) target bundleno = 676 (0x2a4), region = 52  ;;  %s10018_s16 = scalar_lea.vmem (!%p6190_p11), [#allocation2], %s6191_s15 }
 0x25a   : > { %v5298_v12 = vld [vmem:[#allocation3] sm:$0x1]  ;;  %v5300_v25 = vld [vmem:[#allocation3 + $0x1] sm:$0x1]  ;;  %v5305_v14 = vlaneseq  ;;  %v10024_v28 = vld [vmem:[%s10018_s16 + $0x8] sm:$0xff] }
 0x25b   : > { %v5299_v40 = vmul.f32 0.001953125, %v5298_v12  ;;  %v5301_v22 = vmul.f32 0.001953125, %v5300_v25  ;;  %v10021_v0 = vld [vmem:[%s10018_s16] sm:$0xff]  ;;  %v10029_v17 = vld [vmem:[%s10018_s16 + $0x10] sm:$0xff]  ;;  %v10032_v54 = vld [vmem:[%s10018_s16 + $0x18] sm:$0xff] }
 0x25c   : > { %v10014_v2 = vshrl.u32 %v5305_v14, 7  ;;  %v10035_v37 = vld [vmem:[%s10018_s16 + $0x20] sm:$0xff]  ;;  %v10038_v34 = vld [vmem:[%s10018_s16 + $0x28] sm:$0xff]  ;;  %v10041_v38 = vld [vmem:[%s10018_s16 + $0x30] sm:$0xff] }
 0x25d   : > { %v5302_v41 = vmul.f32 %v5299_v40, %v5299_v40  ;;  %v10044_v27 = vld [vmem:[%s10018_s16 + $0x38] sm:$0xff]  ;;  %v10047_v24 = vld [vmem:[%s10018_s16 + $0x40] sm:$0xff]  ;;  %v10050_v30 = vld [vmem:[%s10018_s16 + $0x48] sm:$0xff] }
 0x25e   : > { %v5307_v58 = vsub.s32 0, %v10014_v2  ;;  %v10053_v8 = vld [vmem:[%s10018_s16 + $0x50] sm:$0xff]  ;;  %v10056_v39 = vld [vmem:[%s10018_s16 + $0x58] sm:$0xff]  ;;  %v10059_v3 = vld [vmem:[%s10018_s16 + $0x60] sm:$0xff] }
 0x25f   : > { %v5303_v55 = vsub.f32 %v5301_v22, %v5302_v41  ;;  %v10062_v60 = vld [vmem:[%s10018_s16 + $0x68] sm:$0xff]  ;;  %v10067_v49 = vld [vmem:[%s10018_s16 + $0x70] sm:$0xff]  ;;  %v10070_v11 = vld [vmem:[%s10018_s16 + $0x78] sm:$0xff] }
 0x260   : > { %v10026_v46 = vrot.slane %v5299_v40, %v5307_v58  ;;  %v10073_v1 = vld [vmem:[%s10018_s16 + $0x80] sm:$0xff]  ;;  %v10084_v50 = vld [vmem:[%s10018_s16 + $0x88] sm:$0xff]  ;;  %v10087_v4 = vld [vmem:[%s10018_s16 + $0x90] sm:$0xff] }
 0x261   : > { %v5304_v35 = vmax.f32 %v5303_v55, 0.0  ;;  %v10090_v62 = vld [vmem:[%s10018_s16 + $0x98] sm:$0xff]  ;;  %v10101_v47 = vld [vmem:[%s10018_s16 + $0xa0] sm:$0xff]  ;;  %v10104_v7 = vld [vmem:[%s10018_s16 + $0xa8] sm:$0xff] }
 0x262   : > { %v5309_v33 = vsub.f32 %v10021_v0, %v10026_v46  ;;  %v5310_v10 = vsub.f32 %v10024_v28, %v10026_v46  ;;  %v5311_v31 = vsub.f32 %v10029_v17, %v10026_v46  ;;  %v5312_v20 = vsub.f32 %v10032_v54, %v10026_v46  ;;  %v10107_v16 = vld [vmem:[%s10018_s16 + $0xb0] sm:$0xff]  ;;  %v10118_v26 = vld [vmem:[%s10018_s16 + $0xb8] sm:$0xff]  ;;  %v10121_v21 = vld [vmem:[%s10018_s16 + $0xc0] sm:$0xff] }
 0x263   : > { %v5341_v23 = vadd.f32 1e-05, %v5304_v35  ;;  %v5313_v13 = vsub.f32 %v10035_v37, %v10026_v46  ;;  %v5314_v63 = vsub.f32 %v10038_v34, %v10026_v46  ;;  %v5315_v61 = vsub.f32 %v10041_v38, %v10026_v46  ;;  %v10124_v5 = vld [vmem:[%s10018_s16 + $0xc8] sm:$0xff]  ;;  %v10135_v43 = vld [vmem:[%s10018_s16 + $0xd0] sm:$0xff]  ;;  %v10138_v53 = vld [vmem:[%s10018_s16 + $0xd8] sm:$0xff] }
 0x264   : > { %v5316_v51 = vsub.f32 %v10044_v27, %v10026_v46  ;;  %v5317_v44 = vsub.f32 %v10047_v24, %v10026_v46  ;;  %v5318_v42 = vsub.f32 %v10050_v30, %v10026_v46  ;;  %v5319_v59 = vsub.f32 %v10053_v8, %v10026_v46  ;;  %v10141_v48 = vld [vmem:[%s10018_s16 + $0xe0] sm:$0xff]  ;;  %v10152_v6 = vld [vmem:[%s10018_s16 + $0xe8] sm:$0xff]  ;;  %v10155_v29 = vld [vmem:[%s10018_s16 + $0xf0] sm:$0xff] }
 0x265   : > { %7191 = vrsqrt.f32 %v5341_v23  ;;  %v5320_v57 = vsub.f32 %v10056_v39, %v10026_v46  ;;  %v5321_v18 = vsub.f32 %v10059_v3, %v10026_v46  ;;  %v5322_v19 = vsub.f32 %v10062_v60, %v10026_v46  ;;  %v10158_v12 = vld [vmem:[%s10018_s16 + $0xf8] sm:$0xff]  ;;  %v10179_v0 = vld [vmem:[%s10396_s3] ss:$0 sm:$0xff] }
 0x266   : > { %v5323_v36 = vsub.f32 %v10067_v49, %v10026_v46  ;;  %v5324_v9 = vsub.f32 %v10070_v11, %v10026_v46  ;;  %v5325_v15 = vsub.f32 %v10073_v1, %v10026_v46  ;;  %v5326_v32 = vsub.f32 %v10084_v50, %v10026_v46 }
 0x267   : > { %v5327_v45 = vsub.f32 %v10087_v4, %v10026_v46  ;;  %v5328_v56 = vsub.f32 %v10090_v62, %v10026_v46  ;;  %v5329_v52 = vsub.f32 %v10101_v47, %v10026_v46  ;;  %v5330_v40 = vsub.f32 %v10104_v7, %v10026_v46 }
 0x268   : > { %v5331_v22 = vsub.f32 %v10107_v16, %v10026_v46 }
 0x272   : > { %v7192_v25 = vpop.eup %7191 }
 0x273   : > { %v10168_v55 = vrot.slane %v7192_v25, %v5307_v58  ;;  %v10196_v25 = vld [vmem:[%s10397_s4] ss:$0 sm:$0xff] }
 0x275   : > { %v5347_v37 = vmul.f32 %v10168_v55, %v5309_v33  ;;  %v5348_v34 = vmul.f32 %v10168_v55, %v5310_v10  ;;  %v5349_v38 = vmul.f32 %v10168_v55, %v5311_v31  ;;  %v5350_v27 = vmul.f32 %v10168_v55, %v5312_v20 }
 0x276   : > { %v5351_v58 = vmul.f32 %v10168_v55, %v5313_v13  ;;  %v5352_v17 = vmul.f32 %v10168_v55, %v5314_v63  ;;  %v5353_v28 = vmul.f32 %v10168_v55, %v5315_v61  ;;  %v5354_v54 = vmul.f32 %v10168_v55, %v5316_v51 }
 0x277   : > { %v5386_v33 = vmul.f32 %v10179_v0, %v5347_v37  ;;  %v5387_v10 = vmul.f32 %v10179_v0, %v5348_v34  ;;  %v5388_v31 = vmul.f32 %v10179_v0, %v5349_v38  ;;  %v5389_v20 = vmul.f32 %v10179_v0, %v5350_v27 }
 0x278   : > { %v5390_v23 = vmul.f32 %v10179_v0, %v5351_v58  ;;  %v5391_v35 = vmul.f32 %v10179_v0, %v5352_v17  ;;  %v5392_v13 = vmul.f32 %v10179_v0, %v5353_v28  ;;  %v5393_v63 = vmul.f32 %v10179_v0, %v5354_v54 }
 0x279   : > { %v5425_v61 = vadd.f32 %v10196_v25, %v5386_v33  ;;  %v5426_v51 = vadd.f32 %v10196_v25, %v5387_v10  ;;  %v5427_v37 = vadd.f32 %v10196_v25, %v5388_v31  ;;  %v5428_v34 = vadd.f32 %v10196_v25, %v5389_v20 }
 0x27a   : > { %v5429_v38 = vadd.f32 %v10196_v25, %v5390_v23  ;;  %v5430_v27 = vadd.f32 %v10196_v25, %v5391_v35  ;;  %v5431_v58 = vadd.f32 %v10196_v25, %v5392_v13  ;;  %v5432_v17 = vadd.f32 %v10196_v25, %v5393_v63 }
 0x27b   : > { %v5457_v2 = vmax.f32 %v5425_v61, 0.0  ;;  %v5458_v28 = vmax.f32 %v5426_v51, 0.0  ;;  %v5459_v54 = vmax.f32 %v5427_v37, 0.0  ;;  %v5460_v33 = vmax.f32 %v5428_v34, 0.0 }
 0x27c   : > { %v5461_v41 = vmax.f32 %v5429_v38, 0.0  ;;  %v5462_v10 = vmax.f32 %v5430_v27, 0.0  ;;  %v5463_v14 = vmax.f32 %v5431_v58, 0.0  ;;  %v5464_v31 = vmax.f32 %v5432_v17, 0.0 }
 0x27d   : > { %v6264_v20 = vpack.c.bf16 %v5458_v28, %v5457_v2  ;;  %v6269_v23 = vpack.c.bf16 %v5460_v33, %v5459_v54  ;;  %v5355_v35 = vmul.f32 %v10168_v55, %v5317_v44  ;;  %v5356_v13 = vmul.f32 %v10168_v55, %v5318_v42 }
 0x27e   : > { %v6274_v63 = vpack.c.bf16 %v5462_v10, %v5461_v41  ;;  %v6279_v61 = vpack.c.bf16 %v5464_v31, %v5463_v14  ;;  %v5357_v51 = vmul.f32 %v10168_v55, %v5319_v59  ;;  %v5358_v2 = vmul.f32 %v10168_v55, %v5320_v57 }
 0x27f   : > { %6265 = vst [vmem:[%s7308_s8] sm:$0xff] %v6264_v20   ;;  %6341 = vst [vmem:[%s7308_s8 + $0x8] sm:$0xff] %v6269_v23   ;;  %v5394_v24 = vmul.f32 %v10179_v0, %v5355_v35  ;;  %v5395_v30 = vmul.f32 %v10179_v0, %v5356_v13  ;;  %v5359_v44 = vmul.f32 %v10168_v55, %v5321_v18 }
 0x280   : > { %v5360_v8 = vmul.f32 %v10168_v55, %v5322_v19  ;;  %6342 = vst [vmem:[%s7308_s8 + $0x10] sm:$0xff] %v6274_v63   ;;  %6343 = vst [vmem:[%s7308_s8 + $0x18] sm:$0xff] %v6279_v61   ;;  %v5396_v39 = vmul.f32 %v10179_v0, %v5357_v51  ;;  %v5397_v42 = vmul.f32 %v10179_v0, %v5358_v2 }
 0x281   : > { %v5361_v59 = vmul.f32 %v10168_v55, %v5323_v36  ;;  %v5362_v3 = vmul.f32 %v10168_v55, %v5324_v9  ;;  %v5433_v60 = vadd.f32 %v10196_v25, %v5394_v24  ;;  %v5434_v57 = vadd.f32 %v10196_v25, %v5395_v30 }
 0x282   : > { %v5398_v18 = vmul.f32 %v10179_v0, %v5359_v44  ;;  %v5399_v19 = vmul.f32 %v10179_v0, %v5360_v8  ;;  %v5435_v14 = vadd.f32 %v10196_v25, %v5396_v39  ;;  %v5436_v41 = vadd.f32 %v10196_v25, %v5397_v42 }
 0x283   : > { %v5400_v49 = vmul.f32 %v10179_v0, %v5361_v59  ;;  %v5401_v36 = vmul.f32 %v10179_v0, %v5362_v3  ;;  %v5465_v37 = vmax.f32 %v5433_v60, 0.0  ;;  %v5466_v11 = vmax.f32 %v5434_v57, 0.0 }
 0x284   : > { %v5437_v9 = vadd.f32 %v10196_v25, %v5398_v18  ;;  %v5438_v34 = vadd.f32 %v10196_v25, %v5399_v19  ;;  %v5467_v38 = vmax.f32 %v5435_v14, 0.0  ;;  %v5468_v27 = vmax.f32 %v5436_v41, 0.0 }
 0x285   : > { %v5439_v58 = vadd.f32 %v10196_v25, %v5400_v49  ;;  %v5440_v17 = vadd.f32 %v10196_v25, %v5401_v36  ;;  %v6284_v28 = vpack.c.bf16 %v5466_v11, %v5465_v37  ;;  %v5363_v10 = vmul.f32 %v10168_v55, %v5325_v15 }
 0x286   : > { %v5469_v54 = vmax.f32 %v5437_v9, 0.0  ;;  %v5470_v33 = vmax.f32 %v5438_v34, 0.0  ;;  %v6289_v31 = vpack.c.bf16 %v5468_v27, %v5467_v38  ;;  %v5364_v35 = vmul.f32 %v10168_v55, %v5326_v32 }
 0x287   : > { %v5471_v20 = vmax.f32 %v5439_v58, 0.0  ;;  %v5472_v23 = vmax.f32 %v5440_v17, 0.0  ;;  %6344 = vst [vmem:[%s7308_s8 + $0x20] sm:$0xff] %v6284_v28   ;;  %v5402_v63 = vmul.f32 %v10179_v0, %v5363_v10  ;;  %v5365_v1 = vmul.f32 %v10168_v55, %v5327_v45 }
 0x288   : > { %v6294_v13 = vpack.c.bf16 %v5470_v33, %v5469_v54  ;;  %v5366_v15 = vmul.f32 %v10168_v55, %v5328_v56  ;;  %6345 = vst [vmem:[%s7308_s8 + $0x28] sm:$0xff] %v6289_v31   ;;  %v5403_v50 = vmul.f32 %v10179_v0, %v5364_v35  ;;  %v5367_v32 = vmul.f32 %v10168_v55, %v5329_v52 }
 0x289   : > { %v6299_v61 = vpack.c.bf16 %v5472_v23, %v5471_v20  ;;  %v5368_v4 = vmul.f32 %v10168_v55, %v5330_v40  ;;  %v5441_v45 = vadd.f32 %v10196_v25, %v5402_v63  ;;  %v5404_v62 = vmul.f32 %v10179_v0, %v5365_v1 }
 0x28a   : > { %6346 = vst [vmem:[%s7308_s8 + $0x30] sm:$0xff] %v6294_v13   ;;  %v5405_v56 = vmul.f32 %v10179_v0, %v5366_v15  ;;  %v5369_v51 = vmul.f32 %v10168_v55, %v5331_v22  ;;  %v5442_v47 = vadd.f32 %v10196_v25, %v5403_v50  ;;  %v5406_v52 = vmul.f32 %v10179_v0, %v5367_v32 }
 0x28b   : > { %6347 = vst [vmem:[%s7308_s8 + $0x38] sm:$0xff] %v6299_v61   ;;  %v5407_v7 = vmul.f32 %v10179_v0, %v5368_v4  ;;  %v10648_v40 = vsub.f32 %v10118_v26, %v10026_v46  ;;  %v5473_v24 = vmax.f32 %v5441_v45, 0.0  ;;  %v5443_v30 = vadd.f32 %v10196_v25, %v5404_v62 }
 0x28c   : > { %v5444_v44 = vadd.f32 %v10196_v25, %v5405_v56  ;;  %v5408_v16 = vmul.f32 %v10179_v0, %v5369_v51  ;;  %v5474_v22 = vmax.f32 %v5442_v47, 0.0  ;;  %v5445_v8 = vadd.f32 %v10196_v25, %v5406_v52 }
 0x28d   : > { %v5370_v2 = vmul.f32 %v10168_v55, %v10648_v40  ;;  %v5446_v39 = vadd.f32 %v10196_v25, %v5407_v7  ;;  %v5475_v59 = vmax.f32 %v5443_v30, 0.0  ;;  %v10649_v60 = vsub.f32 %v10121_v21, %v10026_v46 }
 0x28e   : > { %v5476_v3 = vmax.f32 %v5444_v44, 0.0  ;;  %v5447_v26 = vadd.f32 %v10196_v25, %v5408_v16  ;;  %v6304_v18 = vpack.c.bf16 %v5474_v22, %v5473_v24  ;;  %v5477_v19 = vmax.f32 %v5445_v8, 0.0 }
 0x28f   : > { %v5409_v42 = vmul.f32 %v10179_v0, %v5370_v2  ;;  %v5371_v57 = vmul.f32 %v10168_v55, %v10649_v60  ;;  %v5478_v14 = vmax.f32 %v5446_v39, 0.0  ;;  %v10650_v37 = vsub.f32 %v10124_v5, %v10026_v46 }
 0x290   : > { %v6309_v49 = vpack.c.bf16 %v5476_v3, %v5475_v59  ;;  %v5479_v36 = vmax.f32 %v5447_v26, 0.0  ;;  %6348 = vst [vmem:[%s7308_s8 + $0x40] sm:$0xff] %v6304_v18   ;;  %v10651_v38 = vsub.f32 %v10135_v43, %v10026_v46  ;;  %v10652_v58 = vsub.f32 %v10138_v53, %v10026_v46 }
 0x291   : > { %v5448_v41 = vadd.f32 %v10196_v25, %v5409_v42  ;;  %v5372_v11 = vmul.f32 %v10168_v55, %v10650_v37  ;;  %v5410_v9 = vmul.f32 %v10179_v0, %v5371_v57  ;;  %v6314_v34 = vpack.c.bf16 %v5478_v14, %v5477_v19 }
 0x292   : > { %v5373_v27 = vmul.f32 %v10168_v55, %v10651_v38  ;;  %v5374_v17 = vmul.f32 %v10168_v55, %v10652_v58  ;;  %6349 = vst [vmem:[%s7308_s8 + $0x48] sm:$0xff] %v6309_v49   ;;  %v10653_v54 = vsub.f32 %v10141_v48, %v10026_v46  ;;  %v10654_v43 = vsub.f32 %v10152_v6, %v10026_v46 }
 0x293   : > { %v5480_v21 = vmax.f32 %v5448_v41, 0.0  ;;  %v5411_v5 = vmul.f32 %v10179_v0, %v5372_v11  ;;  %v5449_v28 = vadd.f32 %v10196_v25, %v5410_v9  ;;  %6350 = vst [vmem:[%s7308_s8 + $0x50] sm:$0xff] %v6314_v34   ;;  %v10655_v23 = vsub.f32 %v10155_v29, %v10026_v46 }
 0x294   : > { %v5375_v33 = vmul.f32 %v10168_v55, %v10653_v54  ;;  %v5376_v10 = vmul.f32 %v10168_v55, %v10654_v43  ;;  %v5412_v31 = vmul.f32 %v10179_v0, %v5373_v27  ;;  %v5413_v20 = vmul.f32 %v10179_v0, %v5374_v17 }
 0x295   : > { %v6319_v53 = vpack.c.bf16 %v5480_v21, %v5479_v36  ;;  %v5377_v35 = vmul.f32 %v10168_v55, %v10655_v23  ;;  %v5450_v48 = vadd.f32 %v10196_v25, %v5411_v5  ;;  %v5481_v13 = vmax.f32 %v5449_v28, 0.0 }
 0x296   : > { %v5414_v63 = vmul.f32 %v10179_v0, %v5375_v33  ;;  %v5415_v6 = vmul.f32 %v10179_v0, %v5376_v10  ;;  %v5451_v1 = vadd.f32 %v10196_v25, %v5412_v31  ;;  %v5452_v15 = vadd.f32 %v10196_v25, %v5413_v20 }
 0x297   : > { %6351 = vst [vmem:[%s7308_s8 + $0x58] sm:$0xff] %v6319_v53   ;;  %v10656_v61 = vsub.f32 %v10158_v12, %v10026_v46  ;;  %v5416_v50 = vmul.f32 %v10179_v0, %v5377_v35  ;;  %v5482_v32 = vmax.f32 %v5450_v48, 0.0 }
 0x298   : > { %v5453_v4 = vadd.f32 %v10196_v25, %v5414_v63  ;;  %v5454_v45 = vadd.f32 %v10196_v25, %v5415_v6  ;;  %v5483_v62 = vmax.f32 %v5451_v1, 0.0  ;;  %v5484_v56 = vmax.f32 %v5452_v15, 0.0 }
 0x299   : > { %v5378_v29 = vmul.f32 %v10168_v55, %v10656_v61  ;;  %v5455_v47 = vadd.f32 %v10196_v25, %v5416_v50  ;;  %v6324_v46 = vpack.c.bf16 %v5482_v32, %v5481_v13 }
 0x29a   : > { %v5485_v12 = vmax.f32 %v5453_v4, 0.0  ;;  %v5486_v52 = vmax.f32 %v5454_v45, 0.0  ;;  %v6329_v55 = vpack.c.bf16 %v5484_v56, %v5483_v62 }
 0x29b   : > { %v5417_v51 = vmul.f32 %v10179_v0, %v5378_v29  ;;  %v5487_v40 = vmax.f32 %v5455_v47, 0.0  ;;  %6352 = vst [vmem:[%s7308_s8 + $0x60] sm:$0xff] %v6324_v46  }
 0x29c   : > { %v6334_v2 = vpack.c.bf16 %v5486_v52, %v5485_v12  ;;  %6353 = vst [vmem:[%s7308_s8 + $0x68] sm:$0xff] %v6329_v55  }
 0x29d   : > { %v5456_v7 = vadd.f32 %v10196_v25, %v5417_v51 }
 0x29e   : > { %6354 = vst [vmem:[%s7308_s8 + $0x70] sm:$0xff] %v6334_v2  }
 0x29f   : > { %v5488_v24 = vmax.f32 %v5456_v7, 0.0 }
 0x2a1   : > { %v6339_v30 = vpack.c.bf16 %v5488_v24, %v5487_v40 }
 0x2a3   : > { %6355 = vst [vmem:[%s7308_s8 + $0x78] sm:$0xff] %v6339_v30  }
 0x2a4 PF: > { %s15_s22 = sadd.s32 1, %s7231_s22   ;;  %s10657_s18 = smov %s7223_s20 }
 0x2a5   : > { %p12_p12 = scmp.ge.s32.totalorder %s15_s22, 6   ;;  %s10658_s19 = smov %s7227_s21 }
 0x2a6   : > { %s10659_s20 = smov %s10662_s23  ;;  %s10660_s21 = smov %s10666_s24 }
 0x2a7   :  { %14 = sbr.rel (!%p12_p12) target bundleno = 3 (0x3), region = 86 }

</bundles_post_ra>
